<compile_context>
chip_gen: v7x
topology: tpu7x:2x2x1
jax: 0.10.0
libtpu: 0.0.40
codegen_flags: <defaults>
</compile_context>

<pallas_src>
import functools

import jax
import jax.numpy as jnp
from jax import lax
from jax.experimental import pallas as pl
from jax.experimental.pallas import tpu as pltpu

D_MODEL = 24        # TR feature dim (24, 8, 8)
N_HEADS = 3
HEAD_DIM = D_MODEL // N_HEADS
FF_DIM = 64
SEQ = 8 * 8
NUM_CLASSES = 2
LN_EPS = 1e-5


def _round_up(x, m):
    return (x + m - 1) // m * m


def _choose_m_tiling(M):
    """Pick (padded_M, tile_M): biggest tile <= 1024 that still yields >= 2
    grid steps (keeps both v7x TensorCores busy); tiny M -> one block."""
    Mp = _round_up(M, 8)
    for t in (1024, 512, 256, 128, 64, 32, 16, 8):
        if Mp % t == 0 and Mp // t >= 2:
            return Mp, t
    return Mp, Mp


# ----------------------------------------------------------------------------
# Generic fused GEMM kernel:  act(A @ B)   (bf16 MXU, f32 acc, bf16 store)
# ----------------------------------------------------------------------------
def _gemm_kernel(a_ref, b_ref, o_ref, *, activation):
    a = a_ref[...]
    if a.dtype != jnp.bfloat16:
        a = a.astype(jnp.bfloat16)          # cast in-kernel (no extra HBM pass)
    acc = jnp.dot(a, b_ref[...], preferred_element_type=jnp.float32)
    if activation == "relu":
        acc = jnp.maximum(acc, 0.0)
    o_ref[...] = acc.astype(o_ref.dtype)


def pallas_matmul(a, b, activation=None, out_dtype=jnp.bfloat16):
    """A:(M,K) @ B:(K,N) with fused ReLU epilogue.  B is pre-prepared
    (K,N)-layout bf16.  Whole K is one full-extent block (no K pad needed)."""
    M, K = a.shape
    K2, N = b.shape
    assert K == K2
    Mp, tm = _choose_m_tiling(M)
    if Mp != M:
        a = jnp.pad(a, ((0, Mp - M), (0, 0)))

    out = pl.pallas_call(
        functools.partial(_gemm_kernel, activation=activation),
        out_shape=jax.ShapeDtypeStruct((Mp, N), out_dtype),
        grid=(Mp // tm,),
        in_specs=[pl.BlockSpec((tm, K), lambda i: (i, 0)),
                  pl.BlockSpec((K, N), lambda i: (0, 0))],
        out_specs=pl.BlockSpec((tm, N), lambda i: (i, 0)),
        compiler_params=pltpu.CompilerParams(
            dimension_semantics=("parallel",)),
    )(a, b)
    return out if Mp == M else out[:M]


# ----------------------------------------------------------------------------
# Fused bottleneck-tail kernel: 3x3 GEMM -> ReLU -> 1x1 (+skip) -> ReLU -> proj
# All intermediates (N = 32 / 96 / 24, < 128 lanes) stay VMEM-resident.
# ----------------------------------------------------------------------------
def _bottleneck_tail_kernel(p_ref, xs_ref, w2_ref, wsc_ref, w3_ref, wp_ref,
                            o_ref):
    y2 = jnp.dot(p_ref[...], w2_ref[...], preferred_element_type=jnp.float32)
    y2 = jnp.maximum(y2, 0.0).astype(jnp.bfloat16)
    sc = jnp.dot(xs_ref[...], wsc_ref[...], preferred_element_type=jnp.float32)
    y3 = jnp.dot(y2, w3_ref[...], preferred_element_type=jnp.float32) + sc
    y3 = jnp.maximum(y3, 0.0).astype(jnp.bfloat16)
    out = jnp.dot(y3, wp_ref[...], preferred_element_type=jnp.float32)
    out = jnp.maximum(out, 0.0)
    o_ref[...] = out.astype(o_ref.dtype)


def bottleneck_tail(patches2, xs, w2, wsc, w3, wp):
    M, K = patches2.shape
    Ks = xs.shape[1]
    N = wp.shape[1]
    Mp, tm = _choose_m_tiling(M)
    if Mp != M:
        patches2 = jnp.pad(patches2, ((0, Mp - M), (0, 0)))
        xs = jnp.pad(xs, ((0, Mp - M), (0, 0)))

    out = pl.pallas_call(
        _bottleneck_tail_kernel,
        out_shape=jax.ShapeDtypeStruct((Mp, N), jnp.bfloat16),
        grid=(Mp // tm,),
        in_specs=[pl.BlockSpec((tm, K), lambda i: (i, 0)),
                  pl.BlockSpec((tm, Ks), lambda i: (i, 0)),
                  pl.BlockSpec(w2.shape, lambda i: (0, 0)),
                  pl.BlockSpec(wsc.shape, lambda i: (0, 0)),
                  pl.BlockSpec(w3.shape, lambda i: (0, 0)),
                  pl.BlockSpec(wp.shape, lambda i: (0, 0))],
        out_specs=pl.BlockSpec((tm, N), lambda i: (i, 0)),
        compiler_params=pltpu.CompilerParams(
            dimension_semantics=("parallel",)),
    )(patches2, xs, w2, wsc, w3, wp)
    return out if Mp == M else out[:M]


# ----------------------------------------------------------------------------
# Fused TR head kernel: pos-add + 2 transformer layers + mean-pool + classifier
# grid=(B,)  -> one batch element per grid step (v7x: one per TensorCore).
# ----------------------------------------------------------------------------
def _layernorm(x, g, b):
    mu = jnp.mean(x, axis=-1, keepdims=True)
    var = jnp.mean(jnp.square(x - mu), axis=-1, keepdims=True)
    return (x - mu) * lax.rsqrt(var + LN_EPS) * g + b


def _tr_head_kernel(x_ref, pos_ref,
                    wq_ref, wk_ref, wv_ref, bq_ref, bk_ref, bv_ref,
                    wo_ref, bo_ref, g1_ref, be1_ref,
                    w1_ref, b1_ref, w2_ref, b2_ref, g2_ref, be2_ref,
                    wh_ref, bh_ref, o_ref, *, n_layers, n_heads, head_dim):
    x = x_ref[0].astype(jnp.float32) + pos_ref[...]          # (S, D) f32
    S, D = x.shape
    scale = 1.0 / float(head_dim) ** 0.5
    lane = lax.broadcasted_iota(jnp.int32, (1, D), 1)

    for l in range(n_layers):
        xb = x.astype(jnp.bfloat16)
        # Full-width QKV projections (all heads at once, bf16 MXU, f32 acc).
        q = jnp.dot(xb, wq_ref[l], preferred_element_type=jnp.float32) + bq_ref[l]
        k = jnp.dot(xb, wk_ref[l], preferred_element_type=jnp.float32) + bk_ref[l]
        v = jnp.dot(xb, wv_ref[l], preferred_element_type=jnp.float32) + bv_ref[l]
        kb = k.astype(jnp.bfloat16)

        # Per-head attention via lane masks (no in-kernel lane slicing);
        # sum_h p_h @ (v * mask_h) == concat_h(p_h @ v_h).
        attn = jnp.zeros((S, D), jnp.float32)
        for h in range(n_heads):
            mh = (lane >= h * head_dim) & (lane < (h + 1) * head_dim)
            qh = jnp.where(mh, q, 0.0).astype(jnp.bfloat16)
            vh = jnp.where(mh, v, 0.0).astype(jnp.bfloat16)
            s = lax.dot_general(qh, kb, (((1,), (1,)), ((), ())),
                                preferred_element_type=jnp.float32) * scale
            m = jnp.max(s, axis=-1, keepdims=True)
            p = jnp.exp(s - m)
            p = p / jnp.sum(p, axis=-1, keepdims=True)        # exact softmax
            attn = attn + jnp.dot(p.astype(jnp.bfloat16), vh,
                                  preferred_element_type=jnp.float32)

        o = jnp.dot(attn.astype(jnp.bfloat16), wo_ref[l],
                    preferred_element_type=jnp.float32) + bo_ref[l]

        # Post-LN (torch nn.TransformerEncoderLayer default) + FFN.
        h1 = _layernorm(x + o, g1_ref[l], be1_ref[l])
        f = jnp.dot(h1.astype(jnp.bfloat16), w1_ref[l],
                    preferred_element_type=jnp.float32) + b1_ref[l]
        f = jnp.maximum(f, 0.0).astype(jnp.bfloat16)
        f = jnp.dot(f, w2_ref[l], preferred_element_type=jnp.float32) + b2_ref[l]
        x = _layernorm(h1 + f, g2_ref[l], be2_ref[l])

    # mean-pool + classifier head (linear, so mean(x @ W) == mean(x) @ W)
    tl = jnp.dot(x, wh_ref[...], preferred_element_type=jnp.float32)
    logits = jnp.mean(tl, axis=0, keepdims=True) + bh_ref[...]   # (1, 2)
    o_ref[0] = jnp.broadcast_to(logits, o_ref.shape[1:]).astype(o_ref.dtype)


def tr_head_forward(trp, tokens):
    B, S, D = tokens.shape
    names = ["wq", "wk", "wv", "bq", "bk", "bv", "wo", "bo", "g1", "be1",
             "w1", "b1", "w2", "b2", "g2", "be2", "wh", "bh"]
    weights = [trp[n] for n in names]

    def _const_spec(arr):
        nd = arr.ndim
        return pl.BlockSpec(arr.shape, lambda b, _nd=nd: (0,) * _nd)

    in_specs = ([pl.BlockSpec((1, S, D), lambda b: (b, 0, 0)),
                 _const_spec(trp["pos"])] +
                [_const_spec(w) for w in weights])

    # Output padded to (B, 8, 2) so the block's sublane dim is 8; row 0 holds
    # the logits (sliced outside with a trivial XLA slice).
    out = pl.pallas_call(
        functools.partial(_tr_head_kernel, n_layers=trp["wq"].shape[0],
                          n_heads=N_HEADS, head_dim=HEAD_DIM),
        out_shape=jax.ShapeDtypeStruct((B, 8, NUM_CLASSES), jnp.float32),
        grid=(B,),
        in_specs=in_specs,
        out_specs=pl.BlockSpec((1, 8, NUM_CLASSES), lambda b: (b, 0, 0)),
        compiler_params=pltpu.CompilerParams(
            dimension_semantics=("parallel",)),
    )(tokens, trp["pos"], *weights)
    return out[:, 0, :]


# ----------------------------------------------------------------------------
# Backbone: stem 7x7/s2 GEMM, maxpool, fused bottleneck block + projection
# ----------------------------------------------------------------------------
def backbone_forward(bb, images_nchw):
    # One NCHW->NHWC transpose + bf16 cast up front; everything stays
    # channels-last bf16 (im2col patches are already bf16 -> half the HBM
    # intermediate for the 49x-expanded stem patches).
    x = jnp.transpose(images_nchw, (0, 2, 3, 1)).astype(jnp.bfloat16)

    # Stem: 7x7 / stride 2 / pad 3, folded BN (identity stats), ReLU.
    patches = lax.conv_general_dilated_patches(
        x, (7, 7), (2, 2), [(3, 3), (3, 3)],
        dimension_numbers=("NHWC", "HWIO", "NHWC"))
    B, H1, W1, ckk = patches.shape
    y = pallas_matmul(patches.reshape(B * H1 * W1, ckk), bb["stem_w"],
                      activation="relu")
    x = y.reshape(B, H1, W1, -1)                               # (B,32,32,64)

    # TODO(synk): maxpool kept in plain JAX (trivial window reduction).
    x = lax.reduce_window(x, jnp.array(-jnp.inf, x.dtype), lax.max,
                          (1, 3, 3, 1), (1, 2, 2, 1),
                          ((0, 0), (1, 1), (1, 1), (0, 0)))    # (B,16,16,64)
    B, H2, W2, C = x.shape

    # Bottleneck 1x1 reduce (64->32) + ReLU (needed in HBM for the 3x3 im2col).
    y1 = pallas_matmul(x.reshape(B * H2 * W2, C), bb["bn_w1"],
                       activation="relu").reshape(B, H2, W2, -1)

    # im2col for the 3x3 / stride-2 conv; feature order (C, kh, kw) matches
    # torch weight.reshape(O, C*kh*kw).
    p2 = lax.conv_general_dilated_patches(
        y1, (3, 3), (2, 2), [(1, 1), (1, 1)],
        dimension_numbers=("NHWC", "HWIO", "NHWC"))
    B, H3, W3, ckk2 = p2.shape                                 # (B,8,8,288)

    # Skip branch input: stride-2 subsample of the pooled features.
    xs = x[:, ::2, ::2, :].reshape(B * H3 * W3, C)

    # Fused tail: 3x3 GEMM + ReLU, 1x1 skip, 1x1 + skip-add + ReLU, 1x1 proj.
    out = bottleneck_tail(p2.reshape(B * H3 * W3, ckk2), xs,
                          bb["bn_w2"], bb["bn_wsc"], bb["bn_w3"], bb["proj_w"])
    return out.reshape(B, H3, W3, -1)                          # (B,8,8,24) bf16


def res_tr_forward(prepared, images):
    feat = backbone_forward(prepared["backbone"], images)
    B, H, W, C = feat.shape
    tokens = feat.reshape(B, H * W, C)                         # (B, 64, 24)
    return tr_head_forward(prepared["tr"], tokens)


# ----------------------------------------------------------------------------
# Parameters: deterministic init (PyTorch layouts) + one-time kernel prep
# ----------------------------------------------------------------------------
def init_params(key):
    keys = jax.random.split(key, 20)

    def nrm(k, shape, scale=0.05):
        return jax.random.normal(k, shape, jnp.float32) * scale

    backbone = dict(
        stem_w=nrm(keys[0], (64, 3, 7, 7)),
        bn_w1=nrm(keys[1], (32, 64, 1, 1)),
        bn_w2=nrm(keys[2], (32, 32, 3, 3)),
        bn_w3=nrm(keys[3], (96, 32, 1, 1)),
        bn_wsc=nrm(keys[4], (96, 64, 1, 1)),
        proj_w=nrm(keys[5], (D_MODEL, 96, 1, 1)),
    )

    layers = []
    for li in range(2):
        base = 6 + 4 * li
        layers.append(dict(
            wqkv=nrm(keys[base + 0], (D_MODEL, 3 * D_MODEL)),
            bqkv=jnp.zeros((3 * D_MODEL,), jnp.float32),
            wo=nrm(keys[base + 1], (D_MODEL, D_MODEL)),
            bo=jnp.zeros((D_MODEL,), jnp.float32),
            ln1_g=jnp.ones((D_MODEL,), jnp.float32),
            ln1_b=jnp.zeros((D_MODEL,), jnp.float32),
            w1=nrm(keys[base + 2], (D_MODEL, FF_DIM)),
            b1=jnp.zeros((FF_DIM,), jnp.float32),
            w2=nrm(keys[base + 3], (FF_DIM, D_MODEL)),
            b2=jnp.zeros((D_MODEL,), jnp.float32),
            ln2_g=jnp.ones((D_MODEL,), jnp.float32),
            ln2_b=jnp.zeros((D_MODEL,), jnp.float32),
        ))

    tr = dict(
        pos_emb=nrm(keys[14], (1, SEQ, D_MODEL), 0.02),
        layers=layers,
        wh=nrm(keys[15], (D_MODEL, NUM_CLASSES)),
        bh=jnp.zeros((NUM_CLASSES,), jnp.float32),
    )
    return dict(backbone=backbone, tr=tr)


def prepare_params(params):
    """One-time weight prep: OIHW -> (C*kh*kw, O) bf16 GEMM layout, stacked /
    split / bf16-cast TR weights.  Runs once, outside jit."""
    bb = params["backbone"]

    def prep_w(w):
        o = w.shape[0]
        return jnp.asarray(w.reshape(o, -1).T, jnp.bfloat16)

    backbone = {k: prep_w(bb[k])
                for k in ("stem_w", "bn_w1", "bn_w2", "bn_w3", "bn_wsc",
                          "proj_w")}

    tr = params["tr"]
    L, D = len(tr["layers"]), D_MODEL

    def stack(name):
        return jnp.stack([lp[name] for lp in tr["layers"]])

    wqkv, bqkv = stack("wqkv"), stack("bqkv")
    tr_prep = dict(
        pos=tr["pos_emb"].reshape(SEQ, D).astype(jnp.float32),
        wq=jnp.asarray(wqkv[:, :, 0 * D:1 * D], jnp.bfloat16),
        wk=jnp.asarray(wqkv[:, :, 1 * D:2 * D], jnp.bfloat16),
        wv=jnp.asarray(wqkv[:, :, 2 * D:3 * D], jnp.bfloat16),
        bq=bqkv[:, 0 * D:1 * D].reshape(L, 1, D).astype(jnp.float32),
        bk=bqkv[:, 1 * D:2 * D].reshape(L, 1, D).astype(jnp.float32),
        bv=bqkv[:, 2 * D:3 * D].reshape(L, 1, D).astype(jnp.float32),
        wo=jnp.asarray(stack("wo"), jnp.bfloat16),
        bo=stack("bo").reshape(L, 1, D).astype(jnp.float32),
        g1=stack("ln1_g").reshape(L, 1, D).astype(jnp.float32),
        be1=stack("ln1_b").reshape(L, 1, D).astype(jnp.float32),
        w1=jnp.asarray(stack("w1"), jnp.bfloat16),
        b1=stack("b1").reshape(L, 1, FF_DIM).astype(jnp.float32),
        w2=jnp.asarray(stack("w2"), jnp.bfloat16),
        b2=stack("b2").reshape(L, 1, D).astype(jnp.float32),
        g2=stack("ln2_g").reshape(L, 1, D).astype(jnp.float32),
        be2=stack("ln2_b").reshape(L, 1, D).astype(jnp.float32),
        wh=tr["wh"].astype(jnp.float32),
        bh=tr["bh"].reshape(1, NUM_CLASSES).astype(jnp.float32),
    )
    return dict(backbone=backbone, tr=tr_prep)


if __name__ == "__main__":
    key = jax.random.PRNGKey(0)
    pkey, xkey = jax.random.split(key)
    params = init_params(pkey)
    prepared = prepare_params(params)     # one-time weight prep (outside jit)
    # 64x64 images -> /2 stem -> /2 maxpool -> /2 bottleneck = 8x8 features.
    images = jax.random.normal(xkey, (2, 3, 64, 64), jnp.float32)

    fwd = jax.jit(res_tr_forward)
    logits = fwd(prepared, images)
    logits = jax.block_until_ready(logits)
    assert logits.shape == (2, NUM_CLASSES)
    assert bool(jnp.all(jnp.isfinite(logits)))
    print("KERNEL_OK")
</pallas_src>

<mosaic_0001>
module attributes {stable_mosaic.version = 11 : i64} {
  func.func @_gemm_kernel(%arg0: i32, %arg1: memref<1024x147xbf16, #tpu.memory_space<vmem>>, %arg2: memref<147x64xbf16, #tpu.memory_space<vmem>>, %arg3: memref<1024x64xbf16, #tpu.memory_space<vmem>>) attributes {dimension_semantics = [#tpu.dimension_semantics<parallel>], iteration_bounds = array<i64: 2>, scalar_prefetch = 0 : i64, scratch_operands = 0 : i64, tpu.core_type = #tpu.core_type<tc>, window_params = [{transform_indices = @transform_0, window_bounds = array<i64: 1024, 147>}, {pipeline_mode = #tpu.pipeline_mode<synchronous>, transform_indices = @transform_1, window_bounds = array<i64: 147, 64>}, {transform_indices = @transform_2, window_bounds = array<i64: 1024, 64>}]} {
    %c0 = arith.constant 0 : index
    %c0_0 = arith.constant 0 : index
    %0 = vector.load %arg1[%c0, %c0_0] : memref<1024x147xbf16, #tpu.memory_space<vmem>>, vector<1024x147xbf16>
    %c0_1 = arith.constant 0 : index
    %c0_2 = arith.constant 0 : index
    %1 = vector.load %arg2[%c0_1, %c0_2] : memref<147x64xbf16, #tpu.memory_space<vmem>>, vector<147x64xbf16>
    %cst = arith.constant dense<0.000000e+00> : vector<1024x64xf32>
    %2 = tpu.matmul %0, %1, %cst {dimension_numbers = #tpu.dot_dimension_numbers<[1], [0], [0], [1], [0, 0, 1, 1], [], []>} : vector<1024x147xbf16>, vector<147x64xbf16>, vector<1024x64xf32> -> vector<1024x64xf32>
    %cst_3 = arith.constant 0.000000e+00 : f32
    %3 = vector.broadcast %cst_3 : f32 to vector<1024x64xf32>
    %4 = arith.maximumf %2, %3 : vector<1024x64xf32>
    %5 = arith.truncf %4 : vector<1024x64xf32> to vector<1024x64xbf16>
    %c0_4 = arith.constant 0 : index
    %c0_5 = arith.constant 0 : index
    %6 = vector.load %arg3[%c0_4, %c0_5] : memref<1024x64xbf16, #tpu.memory_space<vmem>>, vector<1024x64xbf16>
    tpu.vector_store %arg3[%c0_4, %c0_5], %5 {strides = array<i32>} : memref<1024x64xbf16, #tpu.memory_space<vmem>>, vector<1024x64xbf16>,
    return
  }
  func.func @transform_0(%arg0: i32) -> (i32, i32) {
    %c0_i32 = arith.constant 0 : i32
    %c0_i32_0 = arith.constant 0 : i32
    return %arg0, %c0_i32 : i32, i32
  }
  func.func @transform_1(%arg0: i32) -> (i32, i32) {
    %c0_i32 = arith.constant 0 : i32
    %c0_i32_0 = arith.constant 0 : i32
    %c0_i32_1 = arith.constant 0 : i32
    return %c0_i32, %c0_i32_0 : i32, i32
  }
  func.func @transform_2(%arg0: i32) -> (i32, i32) {
    %c0_i32 = arith.constant 0 : i32
    %c0_i32_0 = arith.constant 0 : i32
    return %arg0, %c0_i32 : i32, i32
  }
}

module attributes {stable_mosaic.version = 11 : i64} {
  func.func @_gemm_kernel(%arg0: i32, %arg1: memref<256x64xbf16, #tpu.memory_space<vmem>>, %arg2: memref<64x32xbf16, #tpu.memory_space<vmem>>, %arg3: memref<256x32xbf16, #tpu.memory_space<vmem>>) attributes {dimension_semantics = [#tpu.dimension_semantics<parallel>], iteration_bounds = array<i64: 2>, scalar_prefetch = 0 : i64, scratch_operands = 0 : i64, tpu.core_type = #tpu.core_type<tc>, window_params = [{transform_indices = @transform_0, window_bounds = array<i64: 256, 64>}, {pipeline_mode = #tpu.pipeline_mode<synchronous>, transform_indices = @transform_1, window_bounds = array<i64: 64, 32>}, {transform_indices = @transform_2, window_bounds = array<i64: 256, 32>}]} {
    %c0 = arith.constant 0 : index
    %c0_0 = arith.constant 0 : index
    %0 = vector.load %arg1[%c0, %c0_0] : memref<256x64xbf16, #tpu.memory_space<vmem>>, vector<256x64xbf16>
    %c0_1 = arith.constant 0 : index
    %c0_2 = arith.constant 0 : index
    %1 = vector.load %arg2[%c0_1, %c0_2] : memref<64x32xbf16, #tpu.memory_space<vmem>>, vector<64x32xbf16>
    %cst = arith.constant dense<0.000000e+00> : vector<256x32xf32>
    %2 = tpu.matmul %0, %1, %cst {dimension_numbers = #tpu.dot_dimension_numbers<[1], [0], [0], [1], [0, 0, 1, 1], [], []>} : vector<256x64xbf16>, vector<64x32xbf16>, vector<256x32xf32> -> vector<256x32xf32>
    %cst_3 = arith.constant 0.000000e+00 : f32
    %3 = vector.broadcast %cst_3 : f32 to vector<256x32xf32>
    %4 = arith.maximumf %2, %3 : vector<256x32xf32>
    %5 = arith.truncf %4 : vector<256x32xf32> to vector<256x32xbf16>
    %c0_4 = arith.constant 0 : index
    %c0_5 = arith.constant 0 : index
    %6 = vector.load %arg3[%c0_4, %c0_5] : memref<256x32xbf16, #tpu.memory_space<vmem>>, vector<256x32xbf16>
    tpu.vector_store %arg3[%c0_4, %c0_5], %5 {strides = array<i32>} : memref<256x32xbf16, #tpu.memory_space<vmem>>, vector<256x32xbf16>,
    return
  }
  func.func @transform_0(%arg0: i32) -> (i32, i32) {
    %c0_i32 = arith.constant 0 : i32
    %c0_i32_0 = arith.constant 0 : i32
    return %arg0, %c0_i32 : i32, i32
  }
  func.func @transform_1(%arg0: i32) -> (i32, i32) {
    %c0_i32 = arith.constant 0 : i32
    %c0_i32_0 = arith.constant 0 : i32
    %c0_i32_1 = arith.constant 0 : i32
    return %c0_i32, %c0_i32_0 : i32, i32
  }
  func.func @transform_2(%arg0: i32) -> (i32, i32) {
    %c0_i32 = arith.constant 0 : i32
    %c0_i32_0 = arith.constant 0 : i32
    return %arg0, %c0_i32 : i32, i32
  }
}

module attributes {stable_mosaic.version = 11 : i64} {
  func.func @_bottleneck_tail_kernel(%arg0: i32, %arg1: memref<64x288xbf16, #tpu.memory_space<vmem>>, %arg2: memref<64x64xbf16, #tpu.memory_space<vmem>>, %arg3: memref<288x32xbf16, #tpu.memory_space<vmem>>, %arg4: memref<64x96xbf16, #tpu.memory_space<vmem>>, %arg5: memref<32x96xbf16, #tpu.memory_space<vmem>>, %arg6: memref<96x24xbf16, #tpu.memory_space<vmem>>, %arg7: memref<64x24xbf16, #tpu.memory_space<vmem>>) attributes {dimension_semantics = [#tpu.dimension_semantics<parallel>], iteration_bounds = array<i64: 2>, scalar_prefetch = 0 : i64, scratch_operands = 0 : i64, tpu.core_type = #tpu.core_type<tc>, window_params = [{transform_indices = @transform_0, window_bounds = array<i64: 64, 288>}, {transform_indices = @transform_1, window_bounds = array<i64: 64, 64>}, {pipeline_mode = #tpu.pipeline_mode<synchronous>, transform_indices = @transform_2, window_bounds = array<i64: 288, 32>}, {pipeline_mode = #tpu.pipeline_mode<synchronous>, transform_indices = @transform_3, window_bounds = array<i64: 64, 96>}, {pipeline_mode = #tpu.pipeline_mode<synchronous>, transform_indices = @transform_4, window_bounds = array<i64: 32, 96>}, {pipeline_mode = #tpu.pipeline_mode<synchronous>, transform_indices = @transform_5, window_bounds = array<i64: 96, 24>}, {transform_indices = @transform_6, window_bounds = array<i64: 64, 24>}]} {
    %c0 = arith.constant 0 : index
    %c0_0 = arith.constant 0 : index
    %0 = vector.load %arg1[%c0, %c0_0] : memref<64x288xbf16, #tpu.memory_space<vmem>>, vector<64x288xbf16>
    %c0_1 = arith.constant 0 : index
    %c0_2 = arith.constant 0 : index
    %1 = vector.load %arg3[%c0_1, %c0_2] : memref<288x32xbf16, #tpu.memory_space<vmem>>, vector<288x32xbf16>
    %cst = arith.constant dense<0.000000e+00> : vector<64x32xf32>
    %2 = tpu.matmul %0, %1, %cst {dimension_numbers = #tpu.dot_dimension_numbers<[1], [0], [0], [1], [0, 0, 1, 1], [], []>} : vector<64x288xbf16>, vector<288x32xbf16>, vector<64x32xf32> -> vector<64x32xf32>
    %cst_3 = arith.constant 0.000000e+00 : f32
    %3 = vector.broadcast %cst_3 : f32 to vector<64x32xf32>
    %4 = arith.maximumf %2, %3 : vector<64x32xf32>
    %5 = arith.truncf %4 : vector<64x32xf32> to vector<64x32xbf16>
    %c0_4 = arith.constant 0 : index
    %c0_5 = arith.constant 0 : index
    %6 = vector.load %arg2[%c0_4, %c0_5] : memref<64x64xbf16, #tpu.memory_space<vmem>>, vector<64x64xbf16>
    %c0_6 = arith.constant 0 : index
    %c0_7 = arith.constant 0 : index
    %7 = vector.load %arg4[%c0_6, %c0_7] : memref<64x96xbf16, #tpu.memory_space<vmem>>, vector<64x96xbf16>
    %cst_8 = arith.constant dense<0.000000e+00> : vector<64x96xf32>
    %8 = tpu.matmul %6, %7, %cst_8 {dimension_numbers = #tpu.dot_dimension_numbers<[1], [0], [0], [1], [0, 0, 1, 1], [], []>} : vector<64x64xbf16>, vector<64x96xbf16>, vector<64x96xf32> -> vector<64x96xf32>
    %c0_9 = arith.constant 0 : index
    %c0_10 = arith.constant 0 : index
    %9 = vector.load %arg5[%c0_9, %c0_10] : memref<32x96xbf16, #tpu.memory_space<vmem>>, vector<32x96xbf16>
    %cst_11 = arith.constant dense<0.000000e+00> : vector<64x96xf32>
    %10 = tpu.matmul %5, %9, %cst_11 {dimension_numbers = #tpu.dot_dimension_numbers<[1], [0], [0], [1], [0, 0, 1, 1], [], []>} : vector<64x32xbf16>, vector<32x96xbf16>, vector<64x96xf32> -> vector<64x96xf32>
    %11 = arith.addf %10, %8 : vector<64x96xf32>
    %cst_12 = arith.constant 0.000000e+00 : f32
    %12 = vector.broadcast %cst_12 : f32 to vector<64x96xf32>
    %13 = arith.maximumf %11, %12 : vector<64x96xf32>
    %14 = arith.truncf %13 : vector<64x96xf32> to vector<64x96xbf16>
    %c0_13 = arith.constant 0 : index
    %c0_14 = arith.constant 0 : index
    %15 = vector.load %arg6[%c0_13, %c0_14] : memref<96x24xbf16, #tpu.memory_space<vmem>>, vector<96x24xbf16>
    %cst_15 = arith.constant dense<0.000000e+00> : vector<64x24xf32>
    %16 = tpu.matmul %14, %15, %cst_15 {dimension_numbers = #tpu.dot_dimension_numbers<[1], [0], [0], [1], [0, 0, 1, 1], [], []>} : vector<64x96xbf16>, vector<96x24xbf16>, vector<64x24xf32> -> vector<64x24xf32>
    %cst_16 = arith.constant 0.000000e+00 : f32
    %17 = vector.broadcast %cst_16 : f32 to vector<64x24xf32>
    %18 = arith.maximumf %16, %17 : vector<64x24xf32>
    %19 = arith.truncf %18 : vector<64x24xf32> to vector<64x24xbf16>
    %c0_17 = arith.constant 0 : index
    %c0_18 = arith.constant 0 : index
    %20 = vector.load %arg7[%c0_17, %c0_18] : memref<64x24xbf16, #tpu.memory_space<vmem>>, vector<64x24xbf16>
    tpu.vector_store %arg7[%c0_17, %c0_18], %19 {strides = array<i32>} : memref<64x24xbf16, #tpu.memory_space<vmem>>, vector<64x24xbf16>,
    return
  }
  func.func @transform_0(%arg0: i32) -> (i32, i32) {
    %c0_i32 = arith.constant 0 : i32
    %c0_i32_0 = arith.constant 0 : i32
    return %arg0, %c0_i32 : i32, i32
  }
  func.func @transform_1(%arg0: i32) -> (i32, i32) {
    %c0_i32 = arith.constant 0 : i32
    %c0_i32_0 = arith.constant 0 : i32
    return %arg0, %c0_i32 : i32, i32
  }
  func.func @transform_2(%arg0: i32) -> (i32, i32) {
    %c0_i32 = arith.constant 0 : i32
    %c0_i32_0 = arith.constant 0 : i32
    %c0_i32_1 = arith.constant 0 : i32
    return %c0_i32, %c0_i32_0 : i32, i32
  }
  func.func @transform_3(%arg0: i32) -> (i32, i32) {
    %c0_i32 = arith.constant 0 : i32
    %c0_i32_0 = arith.constant 0 : i32
    %c0_i32_1 = arith.constant 0 : i32
    return %c0_i32, %c0_i32_0 : i32, i32
  }
  func.func @transform_4(%arg0: i32) -> (i32, i32) {
    %c0_i32 = arith.constant 0 : i32
    %c0_i32_0 = arith.constant 0 : i32
    %c0_i32_1 = arith.constant 0 : i32
    return %c0_i32, %c0_i32_0 : i32, i32
  }
  func.func @transform_5(%arg0: i32) -> (i32, i32) {
    %c0_i32 = arith.constant 0 : i32
    %c0_i32_0 = arith.constant 0 : i32
    %c0_i32_1 = arith.constant 0 : i32
    return %c0_i32, %c0_i32_0 : i32, i32
  }
  func.func @transform_6(%arg0: i32) -> (i32, i32) {
    %c0_i32 = arith.constant 0 : i32
    %c0_i32_0 = arith.constant 0 : i32
    return %arg0, %c0_i32 : i32, i32
  }
}

module attributes {stable_mosaic.version = 11 : i64} {
  func.func @_tr_head_kernel(%arg0: i32, %arg1: memref<1x64x24xbf16, #tpu.memory_space<vmem>>, %arg2: memref<64x24xf32, #tpu.memory_space<vmem>>, %arg3: memref<2x24x24xbf16, #tpu.memory_space<vmem>>, %arg4: memref<2x24x24xbf16, #tpu.memory_space<vmem>>, %arg5: memref<2x24x24xbf16, #tpu.memory_space<vmem>>, %arg6: memref<2x1x24xf32, #tpu.memory_space<vmem>>, %arg7: memref<2x1x24xf32, #tpu.memory_space<vmem>>, %arg8: memref<2x1x24xf32, #tpu.memory_space<vmem>>, %arg9: memref<2x24x24xbf16, #tpu.memory_space<vmem>>, %arg10: memref<2x1x24xf32, #tpu.memory_space<vmem>>, %arg11: memref<2x1x24xf32, #tpu.memory_space<vmem>>, %arg12: memref<2x1x24xf32, #tpu.memory_space<vmem>>, %arg13: memref<2x24x64xbf16, #tpu.memory_space<vmem>>, %arg14: memref<2x1x64xf32, #tpu.memory_space<vmem>>, %arg15: memref<2x64x24xbf16, #tpu.memory_space<vmem>>, %arg16: memref<2x1x24xf32, #tpu.memory_space<vmem>>, %arg17: memref<2x1x24xf32, #tpu.memory_space<vmem>>, %arg18: memref<2x1x24xf32, #tpu.memory_space<vmem>>, %arg19: memref<24x2xf32, #tpu.memory_space<vmem>>, %arg20: memref<1x2xf32, #tpu.memory_space<vmem>>, %arg21: memref<1x8x2xf32, #tpu.memory_space<vmem>>) attributes {dimension_semantics = [#tpu.dimension_semantics<parallel>], iteration_bounds = array<i64: 2>, scalar_prefetch = 0 : i64, scratch_operands = 0 : i64, tpu.core_type = #tpu.core_type<tc>, window_params = [{transform_indices = @transform_0, window_bounds = array<i64: 1, 64, 24>}, {pipeline_mode = #tpu.pipeline_mode<synchronous>, transform_indices = @transform_1, window_bounds = array<i64: 64, 24>}, {pipeline_mode = #tpu.pipeline_mode<synchronous>, transform_indices = @transform_2, window_bounds = array<i64: 2, 24, 24>}, {pipeline_mode = #tpu.pipeline_mode<synchronous>, transform_indices = @transform_3, window_bounds = array<i64: 2, 24, 24>}, {pipeline_mode = #tpu.pipeline_mode<synchronous>, transform_indices = @transform_4, window_bounds = array<i64: 2, 24, 24>}, {pipeline_mode = #tpu.pipeline_mode<synchronous>, transform_indices = @transform_5, window_bounds = array<i64: 2, 1, 24>}, {pipeline_mode = #tpu.pipeline_mode<synchronous>, transform_indices = @transform_6, window_bounds = array<i64: 2, 1, 24>}, {pipeline_mode = #tpu.pipeline_mode<synchronous>, transform_indices = @transform_7, window_bounds = array<i64: 2, 1, 24>}, {pipeline_mode = #tpu.pipeline_mode<synchronous>, transform_indices = @transform_8, window_bounds = array<i64: 2, 24, 24>}, {pipeline_mode = #tpu.pipeline_mode<synchronous>, transform_indices = @transform_9, window_bounds = array<i64: 2, 1, 24>}, {pipeline_mode = #tpu.pipeline_mode<synchronous>, transform_indices = @transform_10, window_bounds = array<i64: 2, 1, 24>}, {pipeline_mode = #tpu.pipeline_mode<synchronous>, transform_indices = @transform_11, window_bounds = array<i64: 2, 1, 24>}, {pipeline_mode = #tpu.pipeline_mode<synchronous>, transform_indices = @transform_12, window_bounds = array<i64: 2, 24, 64>}, {pipeline_mode = #tpu.pipeline_mode<synchronous>, transform_indices = @transform_13, window_bounds = array<i64: 2, 1, 64>}, {pipeline_mode = #tpu.pipeline_mode<synchronous>, transform_indices = @transform_14, window_bounds = array<i64: 2, 64, 24>}, {pipeline_mode = #tpu.pipeline_mode<synchronous>, transform_indices = @transform_15, window_bounds = array<i64: 2, 1, 24>}, {pipeline_mode = #tpu.pipeline_mode<synchronous>, transform_indices = @transform_16, window_bounds = array<i64: 2, 1, 24>}, {pipeline_mode = #tpu.pipeline_mode<synchronous>, transform_indices = @transform_17, window_bounds = array<i64: 2, 1, 24>}, {pipeline_mode = #tpu.pipeline_mode<synchronous>, transform_indices = @transform_18, window_bounds = array<i64: 24, 2>}, {pipeline_mode = #tpu.pipeline_mode<synchronous>, transform_indices = @transform_19, window_bounds = array<i64: 1, 2>}, {transform_indices = @transform_20, window_bounds = array<i64: 1, 8, 2>}]} {
    %c0 = arith.constant 0 : index
    %c0_0 = arith.constant 0 : index
    %c0_1 = arith.constant 0 : index
    %0 = vector.load %arg1[%c0, %c0_0, %c0_1] : memref<1x64x24xbf16, #tpu.memory_space<vmem>>, vector<1x64x24xbf16>
    %1 = vector.shape_cast %0 : vector<1x64x24xbf16> to vector<64x24xbf16>
    %2 = arith.extf %1 : vector<64x24xbf16> to vector<64x24xf32>
    %c0_2 = arith.constant 0 : index
    %c0_3 = arith.constant 0 : index
    %3 = vector.load %arg2[%c0_2, %c0_3] : memref<64x24xf32, #tpu.memory_space<vmem>>, vector<64x24xf32>
    %4 = arith.addf %2, %3 : vector<64x24xf32>
    %5 = tpu.iota {dimensions = array<i32: 1>} : vector<1x24xi32>
    %6 = arith.truncf %4 : vector<64x24xf32> to vector<64x24xbf16>
    %c0_4 = arith.constant 0 : index
    %c0_5 = arith.constant 0 : index
    %c0_6 = arith.constant 0 : index
    %7 = vector.load %arg3[%c0_4, %c0_5, %c0_6] : memref<2x24x24xbf16, #tpu.memory_space<vmem>>, vector<1x24x24xbf16>
    %8 = vector.shape_cast %7 : vector<1x24x24xbf16> to vector<24x24xbf16>
    %cst = arith.constant dense<0.000000e+00> : vector<64x24xf32>
    %9 = tpu.matmul %6, %8, %cst {dimension_numbers = #tpu.dot_dimension_numbers<[1], [0], [0], [1], [0, 0, 1, 1], [], []>} : vector<64x24xbf16>, vector<24x24xbf16>, vector<64x24xf32> -> vector<64x24xf32>
    %c0_7 = arith.constant 0 : index
    %c0_8 = arith.constant 0 : index
    %c0_9 = arith.constant 0 : index
    %10 = vector.load %arg6[%c0_7, %c0_8, %c0_9] : memref<2x1x24xf32, #tpu.memory_space<vmem>>, vector<1x1x24xf32>
    %11 = vector.shape_cast %10 : vector<1x1x24xf32> to vector<1x24xf32>
    %12 = vector.broadcast %11 : vector<1x24xf32> to vector<64x24xf32>
    %13 = arith.addf %9, %12 : vector<64x24xf32>
    %c0_10 = arith.constant 0 : index
    %c0_11 = arith.constant 0 : index
    %c0_12 = arith.constant 0 : index
    %14 = vector.load %arg4[%c0_10, %c0_11, %c0_12] : memref<2x24x24xbf16, #tpu.memory_space<vmem>>, vector<1x24x24xbf16>
    %15 = vector.shape_cast %14 : vector<1x24x24xbf16> to vector<24x24xbf16>
    %cst_13 = arith.constant dense<0.000000e+00> : vector<64x24xf32>
    %16 = tpu.matmul %6, %15, %cst_13 {dimension_numbers = #tpu.dot_dimension_numbers<[1], [0], [0], [1], [0, 0, 1, 1], [], []>} : vector<64x24xbf16>, vector<24x24xbf16>, vector<64x24xf32> -> vector<64x24xf32>
    %c0_14 = arith.constant 0 : index
    %c0_15 = arith.constant 0 : index
    %c0_16 = arith.constant 0 : index
    %17 = vector.load %arg7[%c0_14, %c0_15, %c0_16] : memref<2x1x24xf32, #tpu.memory_space<vmem>>, vector<1x1x24xf32>
    %18 = vector.shape_cast %17 : vector<1x1x24xf32> to vector<1x24xf32>
    %19 = vector.broadcast %18 : vector<1x24xf32> to vector<64x24xf32>
    %20 = arith.addf %16, %19 : vector<64x24xf32>
    %c0_17 = arith.constant 0 : index
    %c0_18 = arith.constant 0 : index
    %c0_19 = arith.constant 0 : index
    %21 = vector.load %arg5[%c0_17, %c0_18, %c0_19] : memref<2x24x24xbf16, #tpu.memory_space<vmem>>, vector<1x24x24xbf16>
    %22 = vector.shape_cast %21 : vector<1x24x24xbf16> to vector<24x24xbf16>
    %cst_20 = arith.constant dense<0.000000e+00> : vector<64x24xf32>
    %23 = tpu.matmul %6, %22, %cst_20 {dimension_numbers = #tpu.dot_dimension_numbers<[1], [0], [0], [1], [0, 0, 1, 1], [], []>} : vector<64x24xbf16>, vector<24x24xbf16>, vector<64x24xf32> -> vector<64x24xf32>
    %c0_21 = arith.constant 0 : index
    %c0_22 = arith.constant 0 : index
    %c0_23 = arith.constant 0 : index
    %24 = vector.load %arg8[%c0_21, %c0_22, %c0_23] : memref<2x1x24xf32, #tpu.memory_space<vmem>>, vector<1x1x24xf32>
    %25 = vector.shape_cast %24 : vector<1x1x24xf32> to vector<1x24xf32>
    %26 = vector.broadcast %25 : vector<1x24xf32> to vector<64x24xf32>
    %27 = arith.addf %23, %26 : vector<64x24xf32>
    %28 = arith.truncf %20 : vector<64x24xf32> to vector<64x24xbf16>
    %cst_24 = arith.constant 0.000000e+00 : f32
    %29 = vector.broadcast %cst_24 : f32 to vector<64x24xf32>
    %c0_i32 = arith.constant 0 : i32
    %30 = vector.broadcast %c0_i32 : i32 to vector<1x24xi32>
    %31 = arith.cmpi sge, %5, %30 : vector<1x24xi32>
    %c8_i32 = arith.constant 8 : i32
    %32 = vector.broadcast %c8_i32 : i32 to vector<1x24xi32>
    %33 = arith.cmpi slt, %5, %32 : vector<1x24xi32>
    %34 = arith.andi %31, %33 : vector<1x24xi1>
    %cst_25 = arith.constant 0.000000e+00 : f32
    %35 = vector.shape_cast %34 : vector<1x24xi1> to vector<1x24xi1>
    %36 = vector.broadcast %35 : vector<1x24xi1> to vector<64x24xi1>
    %37 = vector.broadcast %cst_25 : f32 to vector<64x24xf32>
    %38 = arith.select %36, %13, %37 : vector<64x24xi1>, vector<64x24xf32>
    %39 = arith.truncf %38 : vector<64x24xf32> to vector<64x24xbf16>
    %cst_26 = arith.constant 0.000000e+00 : f32
    %40 = vector.shape_cast %34 : vector<1x24xi1> to vector<1x24xi1>
    %41 = vector.broadcast %40 : vector<1x24xi1> to vector<64x24xi1>
    %42 = vector.broadcast %cst_26 : f32 to vector<64x24xf32>
    %43 = arith.select %41, %27, %42 : vector<64x24xi1>, vector<64x24xf32>
    %44 = arith.truncf %43 : vector<64x24xf32> to vector<64x24xbf16>
    %cst_27 = arith.constant dense<0.000000e+00> : vector<64x64xf32>
    %45 = tpu.matmul %39, %28, %cst_27 {dimension_numbers = #tpu.dot_dimension_numbers<[1], [1], [0], [0], [0, 0, 1, 0], [], []>} : vector<64x24xbf16>, vector<64x24xbf16>, vector<64x64xf32> -> vector<64x64xf32>
    %cst_28 = arith.constant 0.353553385 : f32
    %46 = vector.broadcast %cst_28 : f32 to vector<64x64xf32>
    %47 = arith.mulf %45, %46 : vector<64x64xf32>
    %cst_29 = arith.constant dense<0xFF800000> : vector<64xf32>
    %48 = vector.multi_reduction <maximumf>, %47, %cst_29 [1] : vector<64x64xf32> to vector<64xf32>
    %49 = vector.shape_cast %48 : vector<64xf32> to vector<64x1xf32>
    %50 = vector.broadcast %49 : vector<64x1xf32> to vector<64x64xf32>
    %51 = arith.subf %47, %50 : vector<64x64xf32>
    %52 = math.exp %51 : vector<64x64xf32>
    %cst_30 = arith.constant dense<0.000000e+00> : vector<64xf32>
    %53 = vector.multi_reduction <add>, %52, %cst_30 [1] : vector<64x64xf32> to vector<64xf32>
    %54 = vector.shape_cast %53 : vector<64xf32> to vector<64x1xf32>
    %55 = vector.broadcast %54 : vector<64x1xf32> to vector<64x64xf32>
    %56 = arith.divf %52, %55 : vector<64x64xf32>
    %57 = arith.truncf %56 : vector<64x64xf32> to vector<64x64xbf16>
    %cst_31 = arith.constant dense<0.000000e+00> : vector<64x24xf32>
    %58 = tpu.matmul %57, %44, %cst_31 {dimension_numbers = #tpu.dot_dimension_numbers<[1], [0], [0], [1], [0, 0, 1, 1], [], []>} : vector<64x64xbf16>, vector<64x24xbf16>, vector<64x24xf32> -> vector<64x24xf32>
    %59 = arith.addf %29, %58 : vector<64x24xf32>
    %c8_i32_32 = arith.constant 8 : i32
    %60 = vector.broadcast %c8_i32_32 : i32 to vector<1x24xi32>
    %61 = arith.cmpi sge, %5, %60 : vector<1x24xi32>
    %c16_i32 = arith.constant 16 : i32
    %62 = vector.broadcast %c16_i32 : i32 to vector<1x24xi32>
    %63 = arith.cmpi slt, %5, %62 : vector<1x24xi32>
    %64 = arith.andi %61, %63 : vector<1x24xi1>
    %cst_33 = arith.constant 0.000000e+00 : f32
    %65 = vector.shape_cast %64 : vector<1x24xi1> to vector<1x24xi1>
    %66 = vector.broadcast %65 : vector<1x24xi1> to vector<64x24xi1>
    %67 = vector.broadcast %cst_33 : f32 to vector<64x24xf32>
    %68 = arith.select %66, %13, %67 : vector<64x24xi1>, vector<64x24xf32>
    %69 = arith.truncf %68 : vector<64x24xf32> to vector<64x24xbf16>
    %cst_34 = arith.constant 0.000000e+00 : f32
    %70 = vector.shape_cast %64 : vector<1x24xi1> to vector<1x24xi1>
    %71 = vector.broadcast %70 : vector<1x24xi1> to vector<64x24xi1>
    %72 = vector.broadcast %cst_34 : f32 to vector<64x24xf32>
    %73 = arith.select %71, %27, %72 : vector<64x24xi1>, vector<64x24xf32>
    %74 = arith.truncf %73 : vector<64x24xf32> to vector<64x24xbf16>
    %cst_35 = arith.constant dense<0.000000e+00> : vector<64x64xf32>
    %75 = tpu.matmul %69, %28, %cst_35 {dimension_numbers = #tpu.dot_dimension_numbers<[1], [1], [0], [0], [0, 0, 1, 0], [], []>} : vector<64x24xbf16>, vector<64x24xbf16>, vector<64x64xf32> -> vector<64x64xf32>
    %cst_36 = arith.constant 0.353553385 : f32
    %76 = vector.broadcast %cst_36 : f32 to vector<64x64xf32>
    %77 = arith.mulf %75, %76 : vector<64x64xf32>
    %cst_37 = arith.constant dense<0xFF800000> : vector<64xf32>
    %78 = vector.multi_reduction <maximumf>, %77, %cst_37 [1] : vector<64x64xf32> to vector<64xf32>
    %79 = vector.shape_cast %78 : vector<64xf32> to vector<64x1xf32>
    %80 = vector.broadcast %79 : vector<64x1xf32> to vector<64x64xf32>
    %81 = arith.subf %77, %80 : vector<64x64xf32>
    %82 = math.exp %81 : vector<64x64xf32>
    %cst_38 = arith.constant dense<0.000000e+00> : vector<64xf32>
    %83 = vector.multi_reduction <add>, %82, %cst_38 [1] : vector<64x64xf32> to vector<64xf32>
    %84 = vector.shape_cast %83 : vector<64xf32> to vector<64x1xf32>
    %85 = vector.broadcast %84 : vector<64x1xf32> to vector<64x64xf32>
    %86 = arith.divf %82, %85 : vector<64x64xf32>
    %87 = arith.truncf %86 : vector<64x64xf32> to vector<64x64xbf16>
    %cst_39 = arith.constant dense<0.000000e+00> : vector<64x24xf32>
    %88 = tpu.matmul %87, %74, %cst_39 {dimension_numbers = #tpu.dot_dimension_numbers<[1], [0], [0], [1], [0, 0, 1, 1], [], []>} : vector<64x64xbf16>, vector<64x24xbf16>, vector<64x24xf32> -> vector<64x24xf32>
    %89 = arith.addf %59, %88 : vector<64x24xf32>
    %c16_i32_40 = arith.constant 16 : i32
    %90 = vector.broadcast %c16_i32_40 : i32 to vector<1x24xi32>
    %91 = arith.cmpi sge, %5, %90 : vector<1x24xi32>
    %c24_i32 = arith.constant 24 : i32
    %92 = vector.broadcast %c24_i32 : i32 to vector<1x24xi32>
    %93 = arith.cmpi slt, %5, %92 : vector<1x24xi32>
    %94 = arith.andi %91, %93 : vector<1x24xi1>
    %cst_41 = arith.constant 0.000000e+00 : f32
    %95 = vector.shape_cast %94 : vector<1x24xi1> to vector<1x24xi1>
    %96 = vector.broadcast %95 : vector<1x24xi1> to vector<64x24xi1>
    %97 = vector.broadcast %cst_41 : f32 to vector<64x24xf32>
    %98 = arith.select %96, %13, %97 : vector<64x24xi1>, vector<64x24xf32>
    %99 = arith.truncf %98 : vector<64x24xf32> to vector<64x24xbf16>
    %cst_42 = arith.constant 0.000000e+00 : f32
    %100 = vector.shape_cast %94 : vector<1x24xi1> to vector<1x24xi1>
    %101 = vector.broadcast %100 : vector<1x24xi1> to vector<64x24xi1>
    %102 = vector.broadcast %cst_42 : f32 to vector<64x24xf32>
    %103 = arith.select %101, %27, %102 : vector<64x24xi1>, vector<64x24xf32>
    %104 = arith.truncf %103 : vector<64x24xf32> to vector<64x24xbf16>
    %cst_43 = arith.constant dense<0.000000e+00> : vector<64x64xf32>
    %105 = tpu.matmul %99, %28, %cst_43 {dimension_numbers = #tpu.dot_dimension_numbers<[1], [1], [0], [0], [0, 0, 1, 0], [], []>} : vector<64x24xbf16>, vector<64x24xbf16>, vector<64x64xf32> -> vector<64x64xf32>
    %cst_44 = arith.constant 0.353553385 : f32
    %106 = vector.broadcast %cst_44 : f32 to vector<64x64xf32>
    %107 = arith.mulf %105, %106 : vector<64x64xf32>
    %cst_45 = arith.constant dense<0xFF800000> : vector<64xf32>
    %108 = vector.multi_reduction <maximumf>, %107, %cst_45 [1] : vector<64x64xf32> to vector<64xf32>
    %109 = vector.shape_cast %108 : vector<64xf32> to vector<64x1xf32>
    %110 = vector.broadcast %109 : vector<64x1xf32> to vector<64x64xf32>
    %111 = arith.subf %107, %110 : vector<64x64xf32>
    %112 = math.exp %111 : vector<64x64xf32>
    %cst_46 = arith.constant dense<0.000000e+00> : vector<64xf32>
    %113 = vector.multi_reduction <add>, %112, %cst_46 [1] : vector<64x64xf32> to vector<64xf32>
    %114 = vector.shape_cast %113 : vector<64xf32> to vector<64x1xf32>
    %115 = vector.broadcast %114 : vector<64x1xf32> to vector<64x64xf32>
    %116 = arith.divf %112, %115 : vector<64x64xf32>
    %117 = arith.truncf %116 : vector<64x64xf32> to vector<64x64xbf16>
    %cst_47 = arith.constant dense<0.000000e+00> : vector<64x24xf32>
    %118 = tpu.matmul %117, %104, %cst_47 {dimension_numbers = #tpu.dot_dimension_numbers<[1], [0], [0], [1], [0, 0, 1, 1], [], []>} : vector<64x64xbf16>, vector<64x24xbf16>, vector<64x24xf32> -> vector<64x24xf32>
    %119 = arith.addf %89, %118 : vector<64x24xf32>
    %120 = arith.truncf %119 : vector<64x24xf32> to vector<64x24xbf16>
    %c0_48 = arith.constant 0 : index
    %c0_49 = arith.constant 0 : index
    %c0_50 = arith.constant 0 : index
    %121 = vector.load %arg9[%c0_48, %c0_49, %c0_50] : memref<2x24x24xbf16, #tpu.memory_space<vmem>>, vector<1x24x24xbf16>
    %122 = vector.shape_cast %121 : vector<1x24x24xbf16> to vector<24x24xbf16>
    %cst_51 = arith.constant dense<0.000000e+00> : vector<64x24xf32>
    %123 = tpu.matmul %120, %122, %cst_51 {dimension_numbers = #tpu.dot_dimension_numbers<[1], [0], [0], [1], [0, 0, 1, 1], [], []>} : vector<64x24xbf16>, vector<24x24xbf16>, vector<64x24xf32> -> vector<64x24xf32>
    %c0_52 = arith.constant 0 : index
    %c0_53 = arith.constant 0 : index
    %c0_54 = arith.constant 0 : index
    %124 = vector.load %arg10[%c0_52, %c0_53, %c0_54] : memref<2x1x24xf32, #tpu.memory_space<vmem>>, vector<1x1x24xf32>
    %125 = vector.shape_cast %124 : vector<1x1x24xf32> to vector<1x24xf32>
    %126 = vector.broadcast %125 : vector<1x24xf32> to vector<64x24xf32>
    %127 = arith.addf %123, %126 : vector<64x24xf32>
    %128 = arith.addf %4, %127 : vector<64x24xf32>
    %c0_55 = arith.constant 0 : index
    %c0_56 = arith.constant 0 : index
    %c0_57 = arith.constant 0 : index
    %129 = vector.load %arg11[%c0_55, %c0_56, %c0_57] : memref<2x1x24xf32, #tpu.memory_space<vmem>>, vector<1x1x24xf32>
    %130 = vector.shape_cast %129 : vector<1x1x24xf32> to vector<1x24xf32>
    %c0_58 = arith.constant 0 : index
    %c0_59 = arith.constant 0 : index
    %c0_60 = arith.constant 0 : index
    %131 = vector.load %arg12[%c0_58, %c0_59, %c0_60] : memref<2x1x24xf32, #tpu.memory_space<vmem>>, vector<1x1x24xf32>
    %132 = vector.shape_cast %131 : vector<1x1x24xf32> to vector<1x24xf32>
    %cst_61 = arith.constant dense<0.000000e+00> : vector<64xf32>
    %133 = vector.multi_reduction <add>, %128, %cst_61 [1] : vector<64x24xf32> to vector<64xf32>
    %134 = vector.shape_cast %133 : vector<64xf32> to vector<64x1xf32>
    %cst_62 = arith.constant 2.400000e+01 : f32
    %135 = vector.broadcast %cst_62 : f32 to vector<64x1xf32>
    %136 = arith.divf %134, %135 : vector<64x1xf32>
    %137 = vector.broadcast %136 : vector<64x1xf32> to vector<64x24xf32>
    %138 = arith.subf %128, %137 : vector<64x24xf32>
    %139 = arith.mulf %138, %138 : vector<64x24xf32>
    %cst_63 = arith.constant dense<0.000000e+00> : vector<64xf32>
    %140 = vector.multi_reduction <add>, %139, %cst_63 [1] : vector<64x24xf32> to vector<64xf32>
    %141 = vector.shape_cast %140 : vector<64xf32> to vector<64x1xf32>
    %cst_64 = arith.constant 2.400000e+01 : f32
    %142 = vector.broadcast %cst_64 : f32 to vector<64x1xf32>
    %143 = arith.divf %141, %142 : vector<64x1xf32>
    %144 = vector.broadcast %136 : vector<64x1xf32> to vector<64x24xf32>
    %145 = arith.subf %128, %144 : vector<64x24xf32>
    %cst_65 = arith.constant 9.99999974E-6 : f32
    %146 = vector.broadcast %cst_65 : f32 to vector<64x1xf32>
    %147 = arith.addf %143, %146 : vector<64x1xf32>
    %148 = math.rsqrt %147 : vector<64x1xf32>
    %149 = vector.broadcast %148 : vector<64x1xf32> to vector<64x24xf32>
    %150 = arith.mulf %145, %149 : vector<64x24xf32>
    %151 = vector.broadcast %130 : vector<1x24xf32> to vector<64x24xf32>
    %152 = arith.mulf %150, %151 : vector<64x24xf32>
    %153 = vector.broadcast %132 : vector<1x24xf32> to vector<64x24xf32>
    %154 = arith.addf %152, %153 : vector<64x24xf32>
    %155 = arith.truncf %154 : vector<64x24xf32> to vector<64x24xbf16>
    %c0_66 = arith.constant 0 : index
    %c0_67 = arith.constant 0 : index
    %c0_68 = arith.constant 0 : index
    %156 = vector.load %arg13[%c0_66, %c0_67, %c0_68] : memref<2x24x64xbf16, #tpu.memory_space<vmem>>, vector<1x24x64xbf16>
    %157 = vector.shape_cast %156 : vector<1x24x64xbf16> to vector<24x64xbf16>
    %cst_69 = arith.constant dense<0.000000e+00> : vector<64x64xf32>
    %158 = tpu.matmul %155, %157, %cst_69 {dimension_numbers = #tpu.dot_dimension_numbers<[1], [0], [0], [1], [0, 0, 1, 1], [], []>} : vector<64x24xbf16>, vector<24x64xbf16>, vector<64x64xf32> -> vector<64x64xf32>
    %c0_70 = arith.constant 0 : index
    %c0_71 = arith.constant 0 : index
    %c0_72 = arith.constant 0 : index
    %159 = vector.load %arg14[%c0_70, %c0_71, %c0_72] : memref<2x1x64xf32, #tpu.memory_space<vmem>>, vector<1x1x64xf32>
    %160 = vector.shape_cast %159 : vector<1x1x64xf32> to vector<1x64xf32>
    %161 = vector.broadcast %160 : vector<1x64xf32> to vector<64x64xf32>
    %162 = arith.addf %158, %161 : vector<64x64xf32>
    %cst_73 = arith.constant 0.000000e+00 : f32
    %163 = vector.broadcast %cst_73 : f32 to vector<64x64xf32>
    %164 = arith.maximumf %162, %163 : vector<64x64xf32>
    %165 = arith.truncf %164 : vector<64x64xf32> to vector<64x64xbf16>
    %c0_74 = arith.constant 0 : index
    %c0_75 = arith.constant 0 : index
    %c0_76 = arith.constant 0 : index
    %166 = vector.load %arg15[%c0_74, %c0_75, %c0_76] : memref<2x64x24xbf16, #tpu.memory_space<vmem>>, vector<1x64x24xbf16>
    %167 = vector.shape_cast %166 : vector<1x64x24xbf16> to vector<64x24xbf16>
    %cst_77 = arith.constant dense<0.000000e+00> : vector<64x24xf32>
    %168 = tpu.matmul %165, %167, %cst_77 {dimension_numbers = #tpu.dot_dimension_numbers<[1], [0], [0], [1], [0, 0, 1, 1], [], []>} : vector<64x64xbf16>, vector<64x24xbf16>, vector<64x24xf32> -> vector<64x24xf32>
    %c0_78 = arith.constant 0 : index
    %c0_79 = arith.constant 0 : index
    %c0_80 = arith.constant 0 : index
    %169 = vector.load %arg16[%c0_78, %c0_79, %c0_80] : memref<2x1x24xf32, #tpu.memory_space<vmem>>, vector<1x1x24xf32>
    %170 = vector.shape_cast %169 : vector<1x1x24xf32> to vector<1x24xf32>
    %171 = vector.broadcast %170 : vector<1x24xf32> to vector<64x24xf32>
    %172 = arith.addf %168, %171 : vector<64x24xf32>
    %173 = arith.addf %154, %172 : vector<64x24xf32>
    %c0_81 = arith.constant 0 : index
    %c0_82 = arith.constant 0 : index
    %c0_83 = arith.constant 0 : index
    %174 = vector.load %arg17[%c0_81, %c0_82, %c0_83] : memref<2x1x24xf32, #tpu.memory_space<vmem>>, vector<1x1x24xf32>
    %175 = vector.shape_cast %174 : vector<1x1x24xf32> to vector<1x24xf32>
    %c0_84 = arith.constant 0 : index
    %c0_85 = arith.constant 0 : index
    %c0_86 = arith.constant 0 : index
    %176 = vector.load %arg18[%c0_84, %c0_85, %c0_86] : memref<2x1x24xf32, #tpu.memory_space<vmem>>, vector<1x1x24xf32>
    %177 = vector.shape_cast %176 : vector<1x1x24xf32> to vector<1x24xf32>
    %cst_87 = arith.constant dense<0.000000e+00> : vector<64xf32>
    %178 = vector.multi_reduction <add>, %173, %cst_87 [1] : vector<64x24xf32> to vector<64xf32>
    %179 = vector.shape_cast %178 : vector<64xf32> to vector<64x1xf32>
    %cst_88 = arith.constant 2.400000e+01 : f32
    %180 = vector.broadcast %cst_88 : f32 to vector<64x1xf32>
    %181 = arith.divf %179, %180 : vector<64x1xf32>
    %182 = vector.broadcast %181 : vector<64x1xf32> to vector<64x24xf32>
    %183 = arith.subf %173, %182 : vector<64x24xf32>
    %184 = arith.mulf %183, %183 : vector<64x24xf32>
    %cst_89 = arith.constant dense<0.000000e+00> : vector<64xf32>
    %185 = vector.multi_reduction <add>, %184, %cst_89 [1] : vector<64x24xf32> to vector<64xf32>
    %186 = vector.shape_cast %185 : vector<64xf32> to vector<64x1xf32>
    %cst_90 = arith.constant 2.400000e+01 : f32
    %187 = vector.broadcast %cst_90 : f32 to vector<64x1xf32>
    %188 = arith.divf %186, %187 : vector<64x1xf32>
    %189 = vector.broadcast %181 : vector<64x1xf32> to vector<64x24xf32>
    %190 = arith.subf %173, %189 : vector<64x24xf32>
    %cst_91 = arith.constant 9.99999974E-6 : f32
    %191 = vector.broadcast %cst_91 : f32 to vector<64x1xf32>
    %192 = arith.addf %188, %191 : vector<64x1xf32>
    %193 = math.rsqrt %192 : vector<64x1xf32>
    %194 = vector.broadcast %193 : vector<64x1xf32> to vector<64x24xf32>
    %195 = arith.mulf %190, %194 : vector<64x24xf32>
    %196 = vector.broadcast %175 : vector<1x24xf32> to vector<64x24xf32>
    %197 = arith.mulf %195, %196 : vector<64x24xf32>
    %198 = vector.broadcast %177 : vector<1x24xf32> to vector<64x24xf32>
    %199 = arith.addf %197, %198 : vector<64x24xf32>
    %200 = arith.truncf %199 : vector<64x24xf32> to vector<64x24xbf16>
    %c1 = arith.constant 1 : index
    %c0_92 = arith.constant 0 : index
    %c0_93 = arith.constant 0 : index
    %201 = vector.load %arg3[%c1, %c0_92, %c0_93] : memref<2x24x24xbf16, #tpu.memory_space<vmem>>, vector<1x24x24xbf16>
    %202 = vector.shape_cast %201 : vector<1x24x24xbf16> to vector<24x24xbf16>
    %cst_94 = arith.constant dense<0.000000e+00> : vector<64x24xf32>
    %203 = tpu.matmul %200, %202, %cst_94 {dimension_numbers = #tpu.dot_dimension_numbers<[1], [0], [0], [1], [0, 0, 1, 1], [], []>} : vector<64x24xbf16>, vector<24x24xbf16>, vector<64x24xf32> -> vector<64x24xf32>
    %c1_95 = arith.constant 1 : index
    %c0_96 = arith.constant 0 : index
    %c0_97 = arith.constant 0 : index
    %204 = vector.load %arg6[%c1_95, %c0_96, %c0_97] : memref<2x1x24xf32, #tpu.memory_space<vmem>>, vector<1x1x24xf32>
    %205 = vector.shape_cast %204 : vector<1x1x24xf32> to vector<1x24xf32>
    %206 = vector.broadcast %205 : vector<1x24xf32> to vector<64x24xf32>
    %207 = arith.addf %203, %206 : vector<64x24xf32>
    %c1_98 = arith.constant 1 : index
    %c0_99 = arith.constant 0 : index
    %c0_100 = arith.constant 0 : index
    %208 = vector.load %arg4[%c1_98, %c0_99, %c0_100] : memref<2x24x24xbf16, #tpu.memory_space<vmem>>, vector<1x24x24xbf16>
    %209 = vector.shape_cast %208 : vector<1x24x24xbf16> to vector<24x24xbf16>
    %cst_101 = arith.constant dense<0.000000e+00> : vector<64x24xf32>
    %210 = tpu.matmul %200, %209, %cst_101 {dimension_numbers = #tpu.dot_dimension_numbers<[1], [0], [0], [1], [0, 0, 1, 1], [], []>} : vector<64x24xbf16>, vector<24x24xbf16>, vector<64x24xf32> -> vector<64x24xf32>
    %c1_102 = arith.constant 1 : index
    %c0_103 = arith.constant 0 : index
    %c0_104 = arith.constant 0 : index
    %211 = vector.load %arg7[%c1_102, %c0_103, %c0_104] : memref<2x1x24xf32, #tpu.memory_space<vmem>>, vector<1x1x24xf32>
    %212 = vector.shape_cast %211 : vector<1x1x24xf32> to vector<1x24xf32>
    %213 = vector.broadcast %212 : vector<1x24xf32> to vector<64x24xf32>
    %214 = arith.addf %210, %213 : vector<64x24xf32>
    %c1_105 = arith.constant 1 : index
    %c0_106 = arith.constant 0 : index
    %c0_107 = arith.constant 0 : index
    %215 = vector.load %arg5[%c1_105, %c0_106, %c0_107] : memref<2x24x24xbf16, #tpu.memory_space<vmem>>, vector<1x24x24xbf16>
    %216 = vector.shape_cast %215 : vector<1x24x24xbf16> to vector<24x24xbf16>
    %cst_108 = arith.constant dense<0.000000e+00> : vector<64x24xf32>
    %217 = tpu.matmul %200, %216, %cst_108 {dimension_numbers = #tpu.dot_dimension_numbers<[1], [0], [0], [1], [0, 0, 1, 1], [], []>} : vector<64x24xbf16>, vector<24x24xbf16>, vector<64x24xf32> -> vector<64x24xf32>
    %c1_109 = arith.constant 1 : index
    %c0_110 = arith.constant 0 : index
    %c0_111 = arith.constant 0 : index
    %218 = vector.load %arg8[%c1_109, %c0_110, %c0_111] : memref<2x1x24xf32, #tpu.memory_space<vmem>>, vector<1x1x24xf32>
    %219 = vector.shape_cast %218 : vector<1x1x24xf32> to vector<1x24xf32>
    %220 = vector.broadcast %219 : vector<1x24xf32> to vector<64x24xf32>
    %221 = arith.addf %217, %220 : vector<64x24xf32>
    %222 = arith.truncf %214 : vector<64x24xf32> to vector<64x24xbf16>
    %cst_112 = arith.constant 0.000000e+00 : f32
    %223 = vector.broadcast %cst_112 : f32 to vector<64x24xf32>
    %c0_i32_113 = arith.constant 0 : i32
    %224 = vector.broadcast %c0_i32_113 : i32 to vector<1x24xi32>
    %225 = arith.cmpi sge, %5, %224 : vector<1x24xi32>
    %c8_i32_114 = arith.constant 8 : i32
    %226 = vector.broadcast %c8_i32_114 : i32 to vector<1x24xi32>
    %227 = arith.cmpi slt, %5, %226 : vector<1x24xi32>
    %228 = arith.andi %225, %227 : vector<1x24xi1>
    %cst_115 = arith.constant 0.000000e+00 : f32
    %229 = vector.shape_cast %228 : vector<1x24xi1> to vector<1x24xi1>
    %230 = vector.broadcast %229 : vector<1x24xi1> to vector<64x24xi1>
    %231 = vector.broadcast %cst_115 : f32 to vector<64x24xf32>
    %232 = arith.select %230, %207, %231 : vector<64x24xi1>, vector<64x24xf32>
    %233 = arith.truncf %232 : vector<64x24xf32> to vector<64x24xbf16>
    %cst_116 = arith.constant 0.000000e+00 : f32
    %234 = vector.shape_cast %228 : vector<1x24xi1> to vector<1x24xi1>
    %235 = vector.broadcast %234 : vector<1x24xi1> to vector<64x24xi1>
    %236 = vector.broadcast %cst_116 : f32 to vector<64x24xf32>
    %237 = arith.select %235, %221, %236 : vector<64x24xi1>, vector<64x24xf32>
    %238 = arith.truncf %237 : vector<64x24xf32> to vector<64x24xbf16>
    %cst_117 = arith.constant dense<0.000000e+00> : vector<64x64xf32>
    %239 = tpu.matmul %233, %222, %cst_117 {dimension_numbers = #tpu.dot_dimension_numbers<[1], [1], [0], [0], [0, 0, 1, 0], [], []>} : vector<64x24xbf16>, vector<64x24xbf16>, vector<64x64xf32> -> vector<64x64xf32>
    %cst_118 = arith.constant 0.353553385 : f32
    %240 = vector.broadcast %cst_118 : f32 to vector<64x64xf32>
    %241 = arith.mulf %239, %240 : vector<64x64xf32>
    %cst_119 = arith.constant dense<0xFF800000> : vector<64xf32>
    %242 = vector.multi_reduction <maximumf>, %241, %cst_119 [1] : vector<64x64xf32> to vector<64xf32>
    %243 = vector.shape_cast %242 : vector<64xf32> to vector<64x1xf32>
    %244 = vector.broadcast %243 : vector<64x1xf32> to vector<64x64xf32>
    %245 = arith.subf %241, %244 : vector<64x64xf32>
    %246 = math.exp %245 : vector<64x64xf32>
    %cst_120 = arith.constant dense<0.000000e+00> : vector<64xf32>
    %247 = vector.multi_reduction <add>, %246, %cst_120 [1] : vector<64x64xf32> to vector<64xf32>
    %248 = vector.shape_cast %247 : vector<64xf32> to vector<64x1xf32>
    %249 = vector.broadcast %248 : vector<64x1xf32> to vector<64x64xf32>
    %250 = arith.divf %246, %249 : vector<64x64xf32>
    %251 = arith.truncf %250 : vector<64x64xf32> to vector<64x64xbf16>
    %cst_121 = arith.constant dense<0.000000e+00> : vector<64x24xf32>
    %252 = tpu.matmul %251, %238, %cst_121 {dimension_numbers = #tpu.dot_dimension_numbers<[1], [0], [0], [1], [0, 0, 1, 1], [], []>} : vector<64x64xbf16>, vector<64x24xbf16>, vector<64x24xf32> -> vector<64x24xf32>
    %253 = arith.addf %223, %252 : vector<64x24xf32>
    %c8_i32_122 = arith.constant 8 : i32
    %254 = vector.broadcast %c8_i32_122 : i32 to vector<1x24xi32>
    %255 = arith.cmpi sge, %5, %254 : vector<1x24xi32>
    %c16_i32_123 = arith.constant 16 : i32
    %256 = vector.broadcast %c16_i32_123 : i32 to vector<1x24xi32>
    %257 = arith.cmpi slt, %5, %256 : vector<1x24xi32>
    %258 = arith.andi %255, %257 : vector<1x24xi1>
    %cst_124 = arith.constant 0.000000e+00 : f32
    %259 = vector.shape_cast %258 : vector<1x24xi1> to vector<1x24xi1>
    %260 = vector.broadcast %259 : vector<1x24xi1> to vector<64x24xi1>
    %261 = vector.broadcast %cst_124 : f32 to vector<64x24xf32>
    %262 = arith.select %260, %207, %261 : vector<64x24xi1>, vector<64x24xf32>
    %263 = arith.truncf %262 : vector<64x24xf32> to vector<64x24xbf16>
    %cst_125 = arith.constant 0.000000e+00 : f32
    %264 = vector.shape_cast %258 : vector<1x24xi1> to vector<1x24xi1>
    %265 = vector.broadcast %264 : vector<1x24xi1> to vector<64x24xi1>
    %266 = vector.broadcast %cst_125 : f32 to vector<64x24xf32>
    %267 = arith.select %265, %221, %266 : vector<64x24xi1>, vector<64x24xf32>
    %268 = arith.truncf %267 : vector<64x24xf32> to vector<64x24xbf16>
    %cst_126 = arith.constant dense<0.000000e+00> : vector<64x64xf32>
    %269 = tpu.matmul %263, %222, %cst_126 {dimension_numbers = #tpu.dot_dimension_numbers<[1], [1], [0], [0], [0, 0, 1, 0], [], []>} : vector<64x24xbf16>, vector<64x24xbf16>, vector<64x64xf32> -> vector<64x64xf32>
    %cst_127 = arith.constant 0.353553385 : f32
    %270 = vector.broadcast %cst_127 : f32 to vector<64x64xf32>
    %271 = arith.mulf %269, %270 : vector<64x64xf32>
    %cst_128 = arith.constant dense<0xFF800000> : vector<64xf32>
    %272 = vector.multi_reduction <maximumf>, %271, %cst_128 [1] : vector<64x64xf32> to vector<64xf32>
    %273 = vector.shape_cast %272 : vector<64xf32> to vector<64x1xf32>
    %274 = vector.broadcast %273 : vector<64x1xf32> to vector<64x64xf32>
    %275 = arith.subf %271, %274 : vector<64x64xf32>
    %276 = math.exp %275 : vector<64x64xf32>
    %cst_129 = arith.constant dense<0.000000e+00> : vector<64xf32>
    %277 = vector.multi_reduction <add>, %276, %cst_129 [1] : vector<64x64xf32> to vector<64xf32>
    %278 = vector.shape_cast %277 : vector<64xf32> to vector<64x1xf32>
    %279 = vector.broadcast %278 : vector<64x1xf32> to vector<64x64xf32>
    %280 = arith.divf %276, %279 : vector<64x64xf32>
    %281 = arith.truncf %280 : vector<64x64xf32> to vector<64x64xbf16>
    %cst_130 = arith.constant dense<0.000000e+00> : vector<64x24xf32>
    %282 = tpu.matmul %281, %268, %cst_130 {dimension_numbers = #tpu.dot_dimension_numbers<[1], [0], [0], [1], [0, 0, 1, 1], [], []>} : vector<64x64xbf16>, vector<64x24xbf16>, vector<64x24xf32> -> vector<64x24xf32>
    %283 = arith.addf %253, %282 : vector<64x24xf32>
    %c16_i32_131 = arith.constant 16 : i32
    %284 = vector.broadcast %c16_i32_131 : i32 to vector<1x24xi32>
    %285 = arith.cmpi sge, %5, %284 : vector<1x24xi32>
    %c24_i32_132 = arith.constant 24 : i32
    %286 = vector.broadcast %c24_i32_132 : i32 to vector<1x24xi32>
    %287 = arith.cmpi slt, %5, %286 : vector<1x24xi32>
    %288 = arith.andi %285, %287 : vector<1x24xi1>
    %cst_133 = arith.constant 0.000000e+00 : f32
    %289 = vector.shape_cast %288 : vector<1x24xi1> to vector<1x24xi1>
    %290 = vector.broadcast %289 : vector<1x24xi1> to vector<64x24xi1>
    %291 = vector.broadcast %cst_133 : f32 to vector<64x24xf32>
    %292 = arith.select %290, %207, %291 : vector<64x24xi1>, vector<64x24xf32>
    %293 = arith.truncf %292 : vector<64x24xf32> to vector<64x24xbf16>
    %cst_134 = arith.constant 0.000000e+00 : f32
    %294 = vector.shape_cast %288 : vector<1x24xi1> to vector<1x24xi1>
    %295 = vector.broadcast %294 : vector<1x24xi1> to vector<64x24xi1>
    %296 = vector.broadcast %cst_134 : f32 to vector<64x24xf32>
    %297 = arith.select %295, %221, %296 : vector<64x24xi1>, vector<64x24xf32>
    %298 = arith.truncf %297 : vector<64x24xf32> to vector<64x24xbf16>
    %cst_135 = arith.constant dense<0.000000e+00> : vector<64x64xf32>
    %299 = tpu.matmul %293, %222, %cst_135 {dimension_numbers = #tpu.dot_dimension_numbers<[1], [1], [0], [0], [0, 0, 1, 0], [], []>} : vector<64x24xbf16>, vector<64x24xbf16>, vector<64x64xf32> -> vector<64x64xf32>
    %cst_136 = arith.constant 0.353553385 : f32
    %300 = vector.broadcast %cst_136 : f32 to vector<64x64xf32>
    %301 = arith.mulf %299, %300 : vector<64x64xf32>
    %cst_137 = arith.constant dense<0xFF800000> : vector<64xf32>
    %302 = vector.multi_reduction <maximumf>, %301, %cst_137 [1] : vector<64x64xf32> to vector<64xf32>
    %303 = vector.shape_cast %302 : vector<64xf32> to vector<64x1xf32>
    %304 = vector.broadcast %303 : vector<64x1xf32> to vector<64x64xf32>
    %305 = arith.subf %301, %304 : vector<64x64xf32>
    %306 = math.exp %305 : vector<64x64xf32>
    %cst_138 = arith.constant dense<0.000000e+00> : vector<64xf32>
    %307 = vector.multi_reduction <add>, %306, %cst_138 [1] : vector<64x64xf32> to vector<64xf32>
    %308 = vector.shape_cast %307 : vector<64xf32> to vector<64x1xf32>
    %309 = vector.broadcast %308 : vector<64x1xf32> to vector<64x64xf32>
    %310 = arith.divf %306, %309 : vector<64x64xf32>
    %311 = arith.truncf %310 : vector<64x64xf32> to vector<64x64xbf16>
    %cst_139 = arith.constant dense<0.000000e+00> : vector<64x24xf32>
    %312 = tpu.matmul %311, %298, %cst_139 {dimension_numbers = #tpu.dot_dimension_numbers<[1], [0], [0], [1], [0, 0, 1, 1], [], []>} : vector<64x64xbf16>, vector<64x24xbf16>, vector<64x24xf32> -> vector<64x24xf32>
    %313 = arith.addf %283, %312 : vector<64x24xf32>
    %314 = arith.truncf %313 : vector<64x24xf32> to vector<64x24xbf16>
    %c1_140 = arith.constant 1 : index
    %c0_141 = arith.constant 0 : index
    %c0_142 = arith.constant 0 : index
    %315 = vector.load %arg9[%c1_140, %c0_141, %c0_142] : memref<2x24x24xbf16, #tpu.memory_space<vmem>>, vector<1x24x24xbf16>
    %316 = vector.shape_cast %315 : vector<1x24x24xbf16> to vector<24x24xbf16>
    %cst_143 = arith.constant dense<0.000000e+00> : vector<64x24xf32>
    %317 = tpu.matmul %314, %316, %cst_143 {dimension_numbers = #tpu.dot_dimension_numbers<[1], [0], [0], [1], [0, 0, 1, 1], [], []>} : vector<64x24xbf16>, vector<24x24xbf16>, vector<64x24xf32> -> vector<64x24xf32>
    %c1_144 = arith.constant 1 : index
    %c0_145 = arith.constant 0 : index
    %c0_146 = arith.constant 0 : index
    %318 = vector.load %arg10[%c1_144, %c0_145, %c0_146] : memref<2x1x24xf32, #tpu.memory_space<vmem>>, vector<1x1x24xf32>
    %319 = vector.shape_cast %318 : vector<1x1x24xf32> to vector<1x24xf32>
    %320 = vector.broadcast %319 : vector<1x24xf32> to vector<64x24xf32>
    %321 = arith.addf %317, %320 : vector<64x24xf32>
    %322 = arith.addf %199, %321 : vector<64x24xf32>
    %c1_147 = arith.constant 1 : index
    %c0_148 = arith.constant 0 : index
    %c0_149 = arith.constant 0 : index
    %323 = vector.load %arg11[%c1_147, %c0_148, %c0_149] : memref<2x1x24xf32, #tpu.memory_space<vmem>>, vector<1x1x24xf32>
    %324 = vector.shape_cast %323 : vector<1x1x24xf32> to vector<1x24xf32>
    %c1_150 = arith.constant 1 : index
    %c0_151 = arith.constant 0 : index
    %c0_152 = arith.constant 0 : index
    %325 = vector.load %arg12[%c1_150, %c0_151, %c0_152] : memref<2x1x24xf32, #tpu.memory_space<vmem>>, vector<1x1x24xf32>
    %326 = vector.shape_cast %325 : vector<1x1x24xf32> to vector<1x24xf32>
    %cst_153 = arith.constant dense<0.000000e+00> : vector<64xf32>
    %327 = vector.multi_reduction <add>, %322, %cst_153 [1] : vector<64x24xf32> to vector<64xf32>
    %328 = vector.shape_cast %327 : vector<64xf32> to vector<64x1xf32>
    %cst_154 = arith.constant 2.400000e+01 : f32
    %329 = vector.broadcast %cst_154 : f32 to vector<64x1xf32>
    %330 = arith.divf %328, %329 : vector<64x1xf32>
    %331 = vector.broadcast %330 : vector<64x1xf32> to vector<64x24xf32>
    %332 = arith.subf %322, %331 : vector<64x24xf32>
    %333 = arith.mulf %332, %332 : vector<64x24xf32>
    %cst_155 = arith.constant dense<0.000000e+00> : vector<64xf32>
    %334 = vector.multi_reduction <add>, %333, %cst_155 [1] : vector<64x24xf32> to vector<64xf32>
    %335 = vector.shape_cast %334 : vector<64xf32> to vector<64x1xf32>
    %cst_156 = arith.constant 2.400000e+01 : f32
    %336 = vector.broadcast %cst_156 : f32 to vector<64x1xf32>
    %337 = arith.divf %335, %336 : vector<64x1xf32>
    %338 = vector.broadcast %330 : vector<64x1xf32> to vector<64x24xf32>
    %339 = arith.subf %322, %338 : vector<64x24xf32>
    %cst_157 = arith.constant 9.99999974E-6 : f32
    %340 = vector.broadcast %cst_157 : f32 to vector<64x1xf32>
    %341 = arith.addf %337, %340 : vector<64x1xf32>
    %342 = math.rsqrt %341 : vector<64x1xf32>
    %343 = vector.broadcast %342 : vector<64x1xf32> to vector<64x24xf32>
    %344 = arith.mulf %339, %343 : vector<64x24xf32>
    %345 = vector.broadcast %324 : vector<1x24xf32> to vector<64x24xf32>
    %346 = arith.mulf %344, %345 : vector<64x24xf32>
    %347 = vector.broadcast %326 : vector<1x24xf32> to vector<64x24xf32>
    %348 = arith.addf %346, %347 : vector<64x24xf32>
    %349 = arith.truncf %348 : vector<64x24xf32> to vector<64x24xbf16>
    %c1_158 = arith.constant 1 : index
    %c0_159 = arith.constant 0 : index
    %c0_160 = arith.constant 0 : index
    %350 = vector.load %arg13[%c1_158, %c0_159, %c0_160] : memref<2x24x64xbf16, #tpu.memory_space<vmem>>, vector<1x24x64xbf16>
    %351 = vector.shape_cast %350 : vector<1x24x64xbf16> to vector<24x64xbf16>
    %cst_161 = arith.constant dense<0.000000e+00> : vector<64x64xf32>
    %352 = tpu.matmul %349, %351, %cst_161 {dimension_numbers = #tpu.dot_dimension_numbers<[1], [0], [0], [1], [0, 0, 1, 1], [], []>} : vector<64x24xbf16>, vector<24x64xbf16>, vector<64x64xf32> -> vector<64x64xf32>
    %c1_162 = arith.constant 1 : index
    %c0_163 = arith.constant 0 : index
    %c0_164 = arith.constant 0 : index
    %353 = vector.load %arg14[%c1_162, %c0_163, %c0_164] : memref<2x1x64xf32, #tpu.memory_space<vmem>>, vector<1x1x64xf32>
    %354 = vector.shape_cast %353 : vector<1x1x64xf32> to vector<1x64xf32>
    %355 = vector.broadcast %354 : vector<1x64xf32> to vector<64x64xf32>
    %356 = arith.addf %352, %355 : vector<64x64xf32>
    %cst_165 = arith.constant 0.000000e+00 : f32
    %357 = vector.broadcast %cst_165 : f32 to vector<64x64xf32>
    %358 = arith.maximumf %356, %357 : vector<64x64xf32>
    %359 = arith.truncf %358 : vector<64x64xf32> to vector<64x64xbf16>
    %c1_166 = arith.constant 1 : index
    %c0_167 = arith.constant 0 : index
    %c0_168 = arith.constant 0 : index
    %360 = vector.load %arg15[%c1_166, %c0_167, %c0_168] : memref<2x64x24xbf16, #tpu.memory_space<vmem>>, vector<1x64x24xbf16>
    %361 = vector.shape_cast %360 : vector<1x64x24xbf16> to vector<64x24xbf16>
    %cst_169 = arith.constant dense<0.000000e+00> : vector<64x24xf32>
    %362 = tpu.matmul %359, %361, %cst_169 {dimension_numbers = #tpu.dot_dimension_numbers<[1], [0], [0], [1], [0, 0, 1, 1], [], []>} : vector<64x64xbf16>, vector<64x24xbf16>, vector<64x24xf32> -> vector<64x24xf32>
    %c1_170 = arith.constant 1 : index
    %c0_171 = arith.constant 0 : index
    %c0_172 = arith.constant 0 : index
    %363 = vector.load %arg16[%c1_170, %c0_171, %c0_172] : memref<2x1x24xf32, #tpu.memory_space<vmem>>, vector<1x1x24xf32>
    %364 = vector.shape_cast %363 : vector<1x1x24xf32> to vector<1x24xf32>
    %365 = vector.broadcast %364 : vector<1x24xf32> to vector<64x24xf32>
    %366 = arith.addf %362, %365 : vector<64x24xf32>
    %367 = arith.addf %348, %366 : vector<64x24xf32>
    %c1_173 = arith.constant 1 : index
    %c0_174 = arith.constant 0 : index
    %c0_175 = arith.constant 0 : index
    %368 = vector.load %arg17[%c1_173, %c0_174, %c0_175] : memref<2x1x24xf32, #tpu.memory_space<vmem>>, vector<1x1x24xf32>
    %369 = vector.shape_cast %368 : vector<1x1x24xf32> to vector<1x24xf32>
    %c1_176 = arith.constant 1 : index
    %c0_177 = arith.constant 0 : index
    %c0_178 = arith.constant 0 : index
    %370 = vector.load %arg18[%c1_176, %c0_177, %c0_178] : memref<2x1x24xf32, #tpu.memory_space<vmem>>, vector<1x1x24xf32>
    %371 = vector.shape_cast %370 : vector<1x1x24xf32> to vector<1x24xf32>
    %cst_179 = arith.constant dense<0.000000e+00> : vector<64xf32>
    %372 = vector.multi_reduction <add>, %367, %cst_179 [1] : vector<64x24xf32> to vector<64xf32>
    %373 = vector.shape_cast %372 : vector<64xf32> to vector<64x1xf32>
    %cst_180 = arith.constant 2.400000e+01 : f32
    %374 = vector.broadcast %cst_180 : f32 to vector<64x1xf32>
    %375 = arith.divf %373, %374 : vector<64x1xf32>
    %376 = vector.broadcast %375 : vector<64x1xf32> to vector<64x24xf32>
    %377 = arith.subf %367, %376 : vector<64x24xf32>
    %378 = arith.mulf %377, %377 : vector<64x24xf32>
    %cst_181 = arith.constant dense<0.000000e+00> : vector<64xf32>
    %379 = vector.multi_reduction <add>, %378, %cst_181 [1] : vector<64x24xf32> to vector<64xf32>
    %380 = vector.shape_cast %379 : vector<64xf32> to vector<64x1xf32>
    %cst_182 = arith.constant 2.400000e+01 : f32
    %381 = vector.broadcast %cst_182 : f32 to vector<64x1xf32>
    %382 = arith.divf %380, %381 : vector<64x1xf32>
    %383 = vector.broadcast %375 : vector<64x1xf32> to vector<64x24xf32>
    %384 = arith.subf %367, %383 : vector<64x24xf32>
    %cst_183 = arith.constant 9.99999974E-6 : f32
    %385 = vector.broadcast %cst_183 : f32 to vector<64x1xf32>
    %386 = arith.addf %382, %385 : vector<64x1xf32>
    %387 = math.rsqrt %386 : vector<64x1xf32>
    %388 = vector.broadcast %387 : vector<64x1xf32> to vector<64x24xf32>
    %389 = arith.mulf %384, %388 : vector<64x24xf32>
    %390 = vector.broadcast %369 : vector<1x24xf32> to vector<64x24xf32>
    %391 = arith.mulf %389, %390 : vector<64x24xf32>
    %392 = vector.broadcast %371 : vector<1x24xf32> to vector<64x24xf32>
    %393 = arith.addf %391, %392 : vector<64x24xf32>
    %c0_184 = arith.constant 0 : index
    %c0_185 = arith.constant 0 : index
    %394 = vector.load %arg19[%c0_184, %c0_185] : memref<24x2xf32, #tpu.memory_space<vmem>>, vector<24x2xf32>
    %cst_186 = arith.constant dense<0.000000e+00> : vector<64x2xf32>
    %395 = tpu.matmul %393, %394, %cst_186 {dimension_numbers = #tpu.dot_dimension_numbers<[1], [0], [0], [1], [0, 0, 1, 1], [], []>} : vector<64x24xf32>, vector<24x2xf32>, vector<64x2xf32> -> vector<64x2xf32>
    %cst_187 = arith.constant dense<0.000000e+00> : vector<2xf32>
    %396 = vector.multi_reduction <add>, %395, %cst_187 [0] : vector<64x2xf32> to vector<2xf32>
    %397 = vector.shape_cast %396 : vector<2xf32> to vector<1x2xf32>
    %cst_188 = arith.constant 6.400000e+01 : f32
    %398 = vector.broadcast %cst_188 : f32 to vector<1x2xf32>
    %399 = arith.divf %397, %398 : vector<1x2xf32>
    %c0_189 = arith.constant 0 : index
    %c0_190 = arith.constant 0 : index
    %400 = vector.load %arg20[%c0_189, %c0_190] : memref<1x2xf32, #tpu.memory_space<vmem>>, vector<1x2xf32>
    %401 = arith.addf %399, %400 : vector<1x2xf32>
    %402 = vector.shape_cast %401 : vector<1x2xf32> to vector<1x2xf32>
    %403 = vector.broadcast %402 : vector<1x2xf32> to vector<8x2xf32>
    %c0_191 = arith.constant 0 : index
    %c0_192 = arith.constant 0 : index
    %c0_193 = arith.constant 0 : index
    %404 = vector.load %arg21[%c0_191, %c0_192, %c0_193] : memref<1x8x2xf32, #tpu.memory_space<vmem>>, vector<1x8x2xf32>
    %405 = vector.shape_cast %404 : vector<1x8x2xf32> to vector<8x2xf32>
    %406 = vector.shape_cast %403 : vector<8x2xf32> to vector<1x8x2xf32>
    tpu.vector_store %arg21[%c0_191, %c0_192, %c0_193], %406 {strides = array<i32>} : memref<1x8x2xf32, #tpu.memory_space<vmem>>, vector<1x8x2xf32>,
    return
  }
  func.func @transform_0(%arg0: i32) -> (i32, i32, i32) {
    %c0_i32 = arith.constant 0 : i32
    %c0_i32_0 = arith.constant 0 : i32
    %c0_i32_1 = arith.constant 0 : i32
    return %arg0, %c0_i32, %c0_i32_0 : i32, i32, i32
  }
  func.func @transform_1(%arg0: i32) -> (i32, i32) {
    %c0_i32 = arith.constant 0 : i32
    %c0_i32_0 = arith.constant 0 : i32
    %c0_i32_1 = arith.constant 0 : i32
    return %c0_i32, %c0_i32_0 : i32, i32
  }
  func.func @transform_2(%arg0: i32) -> (i32, i32, i32) {
    %c0_i32 = arith.constant 0 : i32
    %c0_i32_0 = arith.constant 0 : i32
    %c0_i32_1 = arith.constant 0 : i32
    %c0_i32_2 = arith.constant 0 : i32
    return %c0_i32, %c0_i32_0, %c0_i32_1 : i32, i32, i32
  }
  func.func @transform_3(%arg0: i32) -> (i32, i32, i32) {
    %c0_i32 = arith.constant 0 : i32
    %c0_i32_0 = arith.constant 0 : i32
    %c0_i32_1 = arith.constant 0 : i32
    %c0_i32_2 = arith.constant 0 : i32
    return %c0_i32, %c0_i32_0, %c0_i32_1 : i32, i32, i32
  }
  func.func @transform_4(%arg0: i32) -> (i32, i32, i32) {
    %c0_i32 = arith.constant 0 : i32
    %c0_i32_0 = arith.constant 0 : i32
    %c0_i32_1 = arith.constant 0 : i32
    %c0_i32_2 = arith.constant 0 : i32
    return %c0_i32, %c0_i32_0, %c0_i32_1 : i32, i32, i32
  }
  func.func @transform_5(%arg0: i32) -> (i32, i32, i32) {
    %c0_i32 = arith.constant 0 : i32
    %c0_i32_0 = arith.constant 0 : i32
    %c0_i32_1 = arith.constant 0 : i32
    %c0_i32_2 = arith.constant 0 : i32
    return %c0_i32, %c0_i32_0, %c0_i32_1 : i32, i32, i32
  }
  func.func @transform_6(%arg0: i32) -> (i32, i32, i32) {
    %c0_i32 = arith.constant 0 : i32
    %c0_i32_0 = arith.constant 0 : i32
    %c0_i32_1 = arith.constant 0 : i32
    %c0_i32_2 = arith.constant 0 : i32
    return %c0_i32, %c0_i32_0, %c0_i32_1 : i32, i32, i32
  }
  func.func @transform_7(%arg0: i32) -> (i32, i32, i32) {
    %c0_i32 = arith.constant 0 : i32
    %c0_i32_0 = arith.constant 0 : i32
    %c0_i32_1 = arith.constant 0 : i32
    %c0_i32_2 = arith.constant 0 : i32
    return %c0_i32, %c0_i32_0, %c0_i32_1 : i32, i32, i32
  }
  func.func @transform_8(%arg0: i32) -> (i32, i32, i32) {
    %c0_i32 = arith.constant 0 : i32
    %c0_i32_0 = arith.constant 0 : i32
    %c0_i32_1 = arith.constant 0 : i32
    %c0_i32_2 = arith.constant 0 : i32
    return %c0_i32, %c0_i32_0, %c0_i32_1 : i32, i32, i32
  }
  func.func @transform_9(%arg0: i32) -> (i32, i32, i32) {
    %c0_i32 = arith.constant 0 : i32
    %c0_i32_0 = arith.constant 0 : i32
    %c0_i32_1 = arith.constant 0 : i32
    %c0_i32_2 = arith.constant 0 : i32
    return %c0_i32, %c0_i32_0, %c0_i32_1 : i32, i32, i32
  }
  func.func @transform_10(%arg0: i32) -> (i32, i32, i32) {
    %c0_i32 = arith.constant 0 : i32
    %c0_i32_0 = arith.constant 0 : i32
    %c0_i32_1 = arith.constant 0 : i32
    %c0_i32_2 = arith.constant 0 : i32
    return %c0_i32, %c0_i32_0, %c0_i32_1 : i32, i32, i32
  }
  func.func @transform_11(%arg0: i32) -> (i32, i32, i32) {
    %c0_i32 = arith.constant 0 : i32
    %c0_i32_0 = arith.constant 0 : i32
    %c0_i32_1 = arith.constant 0 : i32
    %c0_i32_2 = arith.constant 0 : i32
    return %c0_i32, %c0_i32_0, %c0_i32_1 : i32, i32, i32
  }
  func.func @transform_12(%arg0: i32) -> (i32, i32, i32) {
    %c0_i32 = arith.constant 0 : i32
    %c0_i32_0 = arith.constant 0 : i32
    %c0_i32_1 = arith.constant 0 : i32
    %c0_i32_2 = arith.constant 0 : i32
    return %c0_i32, %c0_i32_0, %c0_i32_1 : i32, i32, i32
  }
  func.func @transform_13(%arg0: i32) -> (i32, i32, i32) {
    %c0_i32 = arith.constant 0 : i32
    %c0_i32_0 = arith.constant 0 : i32
    %c0_i32_1 = arith.constant 0 : i32
    %c0_i32_2 = arith.constant 0 : i32
    return %c0_i32, %c0_i32_0, %c0_i32_1 : i32, i32, i32
  }
  func.func @transform_14(%arg0: i32) -> (i32, i32, i32) {
    %c0_i32 = arith.constant 0 : i32
    %c0_i32_0 = arith.constant 0 : i32
    %c0_i32_1 = arith.constant 0 : i32
    %c0_i32_2 = arith.constant 0 : i32
    return %c0_i32, %c0_i32_0, %c0_i32_1 : i32, i32, i32
  }
  func.func @transform_15(%arg0: i32) -> (i32, i32, i32) {
    %c0_i32 = arith.constant 0 : i32
    %c0_i32_0 = arith.constant 0 : i32
    %c0_i32_1 = arith.constant 0 : i32
    %c0_i32_2 = arith.constant 0 : i32
    return %c0_i32, %c0_i32_0, %c0_i32_1 : i32, i32, i32
  }
  func.func @transform_16(%arg0: i32) -> (i32, i32, i32) {
    %c0_i32 = arith.constant 0 : i32
    %c0_i32_0 = arith.constant 0 : i32
    %c0_i32_1 = arith.constant 0 : i32
    %c0_i32_2 = arith.constant 0 : i32
    return %c0_i32, %c0_i32_0, %c0_i32_1 : i32, i32, i32
  }
  func.func @transform_17(%arg0: i32) -> (i32, i32, i32) {
    %c0_i32 = arith.constant 0 : i32
    %c0_i32_0 = arith.constant 0 : i32
    %c0_i32_1 = arith.constant 0 : i32
    %c0_i32_2 = arith.constant 0 : i32
    return %c0_i32, %c0_i32_0, %c0_i32_1 : i32, i32, i32
  }
  func.func @transform_18(%arg0: i32) -> (i32, i32) {
    %c0_i32 = arith.constant 0 : i32
    %c0_i32_0 = arith.constant 0 : i32
    %c0_i32_1 = arith.constant 0 : i32
    return %c0_i32, %c0_i32_0 : i32, i32
  }
  func.func @transform_19(%arg0: i32) -> (i32, i32) {
    %c0_i32 = arith.constant 0 : i32
    %c0_i32_0 = arith.constant 0 : i32
    %c0_i32_1 = arith.constant 0 : i32
    return %c0_i32, %c0_i32_0 : i32, i32
  }
  func.func @transform_20(%arg0: i32) -> (i32, i32, i32) {
    %c0_i32 = arith.constant 0 : i32
    %c0_i32_0 = arith.constant 0 : i32
    %c0_i32_1 = arith.constant 0 : i32
    return %arg0, %c0_i32, %c0_i32_0 : i32, i32, i32
  }
}

</mosaic_0001>

<bundles_post_ra>
// kernel: res_tr_forward.4
= control target key start
LH: loop header
LB: loop body
LE: loop exit
PB: predicated region body
PF: predicated region fallthrough
CT: control target
= control target key end

     0   :  { %s3229_s9 = smov 0   ;;  %s3732_s0 = inlined_call_operand.vmem [shape: bf16[2048,147], index: 0, kind: input, shape index: {}]   ;;  %s3733_s1 = inlined_call_operand.vmem [shape: bf16[147,64], index: 1, kind: input, shape index: {}]   ;;  %s3734_s2 = inlined_call_operand.vmem [shape: bf16[2048,64], index: 2, kind: output, shape index: {}]  }
   0x1 LB: > { %s2501_s10 = sadd.s32 4294967295, %s3210_s9   ;;  %p2505_p0 = scmp.ge.s32.totalorder %s3210_s9, 1  ;;  %s3210_s9 = sphi %s3229_s9, %s12_s9  }
   0x2   : > { %p114_p1 = scmp.lt.s32.totalorder %s3210_s9, 3 }
   0x4   : > { %p115_p2 = pnand %p2505_p0, %p114_p1 }
   0x5   : > { %v3002_v0 = vld [vmem:[%s3733_s1] sm:$0xff] (!%p115_p2)   ;;  %v3212_v1 = vmov (!%p115_p2), 0   ;;  %v3003_v2 = vld [vmem:[%s3733_s1 + $0x8] sm:$0xff] (!%p115_p2)   ;;  %v3004_v3 = vld [vmem:[%s3733_s1 + $0x10] sm:$0xff] (!%p115_p2)   ;;  %s2506_s17 = sshll.u32 (!%p115_p2), %s2501_s10, 7  ;;  %vm931_vm0 = vcmask (!%p115_p2), 154624  }
   0x6   : > { %118 = sbr.rel (%p115_p2) target bundleno = 513 (0x201), region = 28  ;;  %1131 = vmatprep.subr.bf16.mxu0 (!%p115_p2), %v3212_v1  ;;  %2972 = vmatprep.subr.bf16.mxu1 (!%p115_p2), %v3212_v1  ;;  %p138_p3 = scmp.lt.s32.totalorder (!%p115_p2), %s2506_s17, 255  ;;  %v3005_v4 = vld [vmem:[%s3733_s1 + $0x18] sm:$0xff] (!%p115_p2)   ;;  %v3006_v5 = vld [vmem:[%s3733_s1 + $0x20] sm:$0xff] (!%p115_p2)   ;;  %v3007_v8 = vld [vmem:[%s3733_s1 + $0x28] sm:$0xff] (!%p115_p2)   ;;  %vm1124_vm1 = vcmask (!%p115_p2), 1040384  }
   0x7   : > { %1132 = vmatpush1.bf16.msra.mxu0 (!%p115_p2), %v3002_v0  ;;  %2982 = vmatpush1.bf16.msra.mxu1 (!%p115_p2), %v3002_v0  ;;  %v3008_v9 = vld [vmem:[%s3733_s1 + $0x30] sm:$0xff] (!%p115_p2)   ;;  %v3009_v10 = vld [vmem:[%s3733_s1 + $0x38] sm:$0xff] (!%p115_p2)   ;;  %vm1125_vm2 = vcmask (!%p115_p2), 1041408   ;;  %v3213_v11 = vmov (!%p115_p2), 65535   ;;  %v3010_v13 = vld [vmem:[%s3733_s1 + $0x40] sm:$0xff] (!%p115_p2)   ;;  %vm2316_vm3 = vcmask (!%p115_p2), 519168  }
   0x8   : > { %1133 = vmatprep.subr.bf16.mxu0 (!%p115_p2), %v3212_v1  ;;  %2973 = vmatprep.subr.bf16.mxu1 (!%p115_p2), %v3212_v1  ;;  %v1126_v12 = vsel (!%p115_p2), %vm1124_vm1, 4294967295, %v3213_v11  ;;  %v3011_v14 = vld [vmem:[%s3733_s1 + $0x48] ss:$0 sps:$4 sm:$0x33] (!%p115_p2)  }
   0x9   : > { %v1127_v15 = vsel (!%p115_p2), %vm1125_vm2, %v1126_v12, 0 }
   0xa   : > { %v1129_v16 = vand.u32 (!%p115_p2), %v3011_v14, %v1127_v15 }
   0xb   : > { %1134 = vmatpush1.bf16.msra.mxu0 (!%p115_p2), %v3003_v2  ;;  %2983 = vmatpush1.bf16.msra.mxu1 (!%p115_p2), %v3003_v2 }
   0xc   : > { %1135 = vmatprep.subr.bf16.mxu0 (!%p115_p2), %v3212_v1  ;;  %2974 = vmatprep.subr.bf16.mxu1 (!%p115_p2), %v3212_v1 }
   0xd   : > { %s3736_s17 = smov (!%p138_p3, %s2506_s17), 255 }
   0xe   : > { %s2843_s20 = sshll.u32 %s3736_s17, 3  ;;  %s2510_s8 = sshll.u32 %s3736_s17, 2 }
   0xf   : > { %1136 = vmatpush1.bf16.msra.mxu0 %v3004_v3  ;;  %2984 = vmatpush1.bf16.msra.mxu1 %v3004_v3  ;;  %s3255_s23 = scalar_lea.vmem %s3732_s0, %s2843_s20  ;;  %s3447_s12 = scalar_lea.vmem %s3734_s2, %s2510_s8 }
  0x10   : > { %1137 = vmatprep.subr.bf16.mxu0 %v3212_v1  ;;  %2975 = vmatprep.subr.bf16.mxu1 %v3212_v1  ;;  %v3014_v6 = vld [vmem:[%s3255_s23 + $0x4] ss:$8 sps:$4 sm:$0xff]   ;;  %v3012_v17 = vld [vmem:[%s3255_s23] ss:$8 sps:$4 sm:$0xff]   ;;  %v3018_v19 = vld [vmem:[%s3255_s23 + $0x14] ss:$8 sps:$4 sm:$0xff]  }
  0x11   : > { %v3017_v7 = vld [vmem:[%s3255_s23 + $0x204] ss:$8 sps:$4 sm:$0xff]   ;;  %2649 = vmatprep.mubr.msk.bf16.mxu0 %vm931_vm0, %v3014_v6  ;;  %v3015_v18 = vld [vmem:[%s3255_s23 + $0x200] ss:$8 sps:$4 sm:$0xff]   ;;  %v3020_v20 = vld [vmem:[%s3255_s23 + $0x214] ss:$8 sps:$4 sm:$0xff]  }
  0x12   : > { %2681 = vmatprep.mubr.msk.bf16.mxu1 %vm931_vm0, %v3017_v7  ;;  %v3022_v21 = vld [vmem:[%s3255_s23 + $0x10] ss:$8 sps:$4 sm:$0xff]   ;;  %v3024_v23 = vld [vmem:[%s3255_s23 + $0x24] ss:$8 sps:$4 sm:$0xff]   ;;  %v3028_v25 = vld [vmem:[%s3255_s23 + $0x20] ss:$8 sps:$4 sm:$0xff]  }
  0x13   : > { %1138 = vmatpush1.bf16.msra.mxu0 %v3005_v4  ;;  %2985 = vmatpush1.bf16.msra.mxu1 %v3005_v4  ;;  %v3023_v22 = vld [vmem:[%s3255_s23 + $0x210] ss:$8 sps:$4 sm:$0xff]   ;;  %v3026_v24 = vld [vmem:[%s3255_s23 + $0x224] ss:$8 sps:$4 sm:$0xff]   ;;  %v3029_v26 = vld [vmem:[%s3255_s23 + $0x220] ss:$8 sps:$4 sm:$0xff]  }
  0x14   : > { %1139 = vmatprep.subr.bf16.mxu0 %v3212_v1  ;;  %2976 = vmatprep.subr.bf16.mxu1 %v3212_v1  ;;  %v3030_v27 = vld [vmem:[%s3255_s23 + $0x34] ss:$8 sps:$4 sm:$0xff]   ;;  %v3034_v29 = vld [vmem:[%s3255_s23 + $0x30] ss:$8 sps:$4 sm:$0xff]   ;;  %v3036_v31 = vld [vmem:[%s3255_s23 + $0x44] ss:$8 sps:$4 sm:$0xff]  }
  0x15   : > { %v3032_v28 = vld [vmem:[%s3255_s23 + $0x234] ss:$8 sps:$4 sm:$0xff]   ;;  %v3035_v30 = vld [vmem:[%s3255_s23 + $0x230] ss:$8 sps:$4 sm:$0xff]   ;;  %v3038_v32 = vld [vmem:[%s3255_s23 + $0x244] ss:$8 sps:$4 sm:$0xff]  }
  0x16   : > { %v3040_v33 = vld [vmem:[%s3255_s23 + $0x40] ss:$8 sps:$4 sm:$0xff]   ;;  %v3042_v35 = vld [vmem:[%s3255_s23 + $0x54] ss:$8 sps:$4 sm:$0xff]   ;;  %v3046_v37 = vld [vmem:[%s3255_s23 + $0x50] ss:$8 sps:$4 sm:$0xff]  }
  0x17   : > { %1140 = vmatpush1.bf16.msra.mxu0 %v3006_v5  ;;  %2986 = vmatpush1.bf16.msra.mxu1 %v3006_v5  ;;  %v3041_v34 = vld [vmem:[%s3255_s23 + $0x240] ss:$8 sps:$4 sm:$0xff]   ;;  %v3044_v36 = vld [vmem:[%s3255_s23 + $0x254] ss:$8 sps:$4 sm:$0xff]   ;;  %v3047_v38 = vld [vmem:[%s3255_s23 + $0x250] ss:$8 sps:$4 sm:$0xff]  }
  0x18   : > { %1141 = vmatprep.subr.bf16.mxu0 %v3212_v1  ;;  %2977 = vmatprep.subr.bf16.mxu1 %v3212_v1  ;;  %v3048_v39 = vld [vmem:[%s3255_s23 + $0x64] ss:$8 sps:$4 sm:$0xff]   ;;  %v3052_v41 = vld [vmem:[%s3255_s23 + $0x60] ss:$8 sps:$4 sm:$0xff]   ;;  %v3054_v43 = vld [vmem:[%s3255_s23 + $0x74] ss:$8 sps:$4 sm:$0xff]  }
  0x19   : > { %v3050_v40 = vld [vmem:[%s3255_s23 + $0x264] ss:$8 sps:$4 sm:$0xff]   ;;  %v3053_v42 = vld [vmem:[%s3255_s23 + $0x260] ss:$8 sps:$4 sm:$0xff]   ;;  %v3056_v44 = vld [vmem:[%s3255_s23 + $0x274] ss:$8 sps:$4 sm:$0xff]  }
  0x1a   : > { %v3058_v45 = vld [vmem:[%s3255_s23 + $0x70] ss:$8 sps:$4 sm:$0xff]   ;;  %v3060_v47 = vld [vmem:[%s3255_s23 + $0x84] ss:$8 sps:$4 sm:$0xff]   ;;  %v3064_v49 = vld [vmem:[%s3255_s23 + $0x80] ss:$8 sps:$4 sm:$0xff]  }
  0x1b   : > { %1142 = vmatpush1.bf16.msra.mxu0 %v3007_v8  ;;  %2987 = vmatpush1.bf16.msra.mxu1 %v3007_v8  ;;  %v3059_v46 = vld [vmem:[%s3255_s23 + $0x270] ss:$8 sps:$4 sm:$0xff]   ;;  %v3062_v48 = vld [vmem:[%s3255_s23 + $0x284] ss:$8 sps:$4 sm:$0xff]   ;;  %v3065_v50 = vld [vmem:[%s3255_s23 + $0x280] ss:$8 sps:$4 sm:$0xff]  }
  0x1c   : > { %1143 = vmatprep.subr.bf16.mxu0 %v3212_v1  ;;  %2978 = vmatprep.subr.bf16.mxu1 %v3212_v1  ;;  %v3066_v51 = vld [vmem:[%s3255_s23 + $0x94] ss:$8 sps:$4 sm:$0xff]   ;;  %v3070_v53 = vld [vmem:[%s3255_s23 + $0x90] ss:$8 sps:$4 sm:$0xff]   ;;  %v3072_v55 = vld [vmem:[%s3255_s23 + $0xa4] ss:$8 sps:$4 sm:$0xff]  }
  0x1d   : > { %v3068_v52 = vld [vmem:[%s3255_s23 + $0x294] ss:$8 sps:$4 sm:$0xff]   ;;  %v3071_v54 = vld [vmem:[%s3255_s23 + $0x290] ss:$8 sps:$4 sm:$0xff]   ;;  %v3074_v56 = vld [vmem:[%s3255_s23 + $0x2a4] ss:$8 sps:$4 sm:$0xff]  }
  0x1e   : > { %v3076_v57 = vld [vmem:[%s3255_s23 + $0xa0] ss:$8 sps:$4 sm:$0xff]   ;;  %v3078_v59 = vld [vmem:[%s3255_s23 + $0xb4] ss:$8 sps:$4 sm:$0xff]   ;;  %v3082_v61 = vld [vmem:[%s3255_s23 + $0xb0] ss:$8 sps:$4 sm:$0xff]  }
  0x1f   : > { %1144 = vmatpush1.bf16.msra.mxu0 %v3008_v9  ;;  %2988 = vmatpush1.bf16.msra.mxu1 %v3008_v9  ;;  %v3077_v58 = vld [vmem:[%s3255_s23 + $0x2a0] ss:$8 sps:$4 sm:$0xff]   ;;  %v3080_v60 = vld [vmem:[%s3255_s23 + $0x2b4] ss:$8 sps:$4 sm:$0xff]   ;;  %v3083_v62 = vld [vmem:[%s3255_s23 + $0x2b0] ss:$8 sps:$4 sm:$0xff]  }
  0x20   : > { %1145 = vmatprep.subr.bf16.mxu0 %v3212_v1  ;;  %2979 = vmatprep.subr.bf16.mxu1 %v3212_v1  ;;  %v3084_v63 = vld [vmem:[%s3255_s23 + $0xc4] ss:$8 sps:$4 sm:$0xff]   ;;  %v3089_v2 = vld [vmem:[%s3255_s23 + $0x2c0] ss:$8 sps:$4 sm:$0xff]   ;;  %v3090_v3 = vld [vmem:[%s3255_s23 + $0xd4] ss:$8 sps:$4 sm:$0xff]  }
  0x21   : > { %v3086_v0 = vld [vmem:[%s3255_s23 + $0x2c4] ss:$8 sps:$4 sm:$0xff]   ;;  %v3092_v4 = vld [vmem:[%s3255_s23 + $0x2d4] ss:$8 sps:$4 sm:$0xff]   ;;  %v3094_v5 = vld [vmem:[%s3255_s23 + $0xd0] ss:$8 sps:$4 sm:$0xff]  }
  0x22   : > { %v3095_v6 = vld [vmem:[%s3255_s23 + $0x2d0] ss:$8 sps:$4 sm:$0xff]   ;;  %v3096_v7 = vld [vmem:[%s3255_s23 + $0xe4] ss:$8 sps:$4 sm:$0xff]   ;;  %v3100_v9 = vld [vmem:[%s3255_s23 + $0xe0] ss:$8 sps:$4 sm:$0xff]  }
  0x23   : > { %1146 = vmatpush1.bf16.msra.mxu0 %v3009_v10  ;;  %2989 = vmatpush1.bf16.msra.mxu1 %v3009_v10  ;;  %v3098_v8 = vld [vmem:[%s3255_s23 + $0x2e4] ss:$8 sps:$4 sm:$0xff]   ;;  %v3101_v10 = vld [vmem:[%s3255_s23 + $0x2e0] ss:$8 sps:$4 sm:$0xff]   ;;  %v3102_v11 = vld [vmem:[%s3255_s23 + $0xf4] ss:$8 sps:$4 sm:$0xff]  }
  0x24   : > { %1147 = vmatprep.subr.bf16.mxu0 %v3212_v1  ;;  %2980 = vmatprep.subr.bf16.mxu1 %v3212_v1  ;;  %v3104_v12 = vld [vmem:[%s3255_s23 + $0x2f4] ss:$8 sps:$4 sm:$0xff]   ;;  %v3107_v14 = vld [vmem:[%s3255_s23 + $0x2f0] ss:$8 sps:$4 sm:$0xff]   ;;  %v3108_v15 = vld [vmem:[%s3255_s23 + $0x104] ss:$8 sps:$4 sm:$0xff]  }
  0x27   : > { %1148 = vmatpush1.bf16.msra.mxu0 %v3010_v13  ;;  %2990 = vmatpush1.bf16.msra.mxu1 %v3010_v13  ;;  %v3106_v13 = vld [vmem:[%s3255_s23 + $0xf0] ss:$8 sps:$4 sm:$0xff]  }
  0x28   : > { %1149 = vmatprep.subr.bf16.mxu0 %v3212_v1  ;;  %2981 = vmatprep.subr.bf16.mxu1 %v3212_v1  ;;  %v3088_v1 = vld [vmem:[%s3255_s23 + $0xc0] ss:$8 sps:$4 sm:$0xff]  }
  0x2b   : > { %1150 = vmatpush1.bf16.msra.mxu0 %v1129_v16  ;;  %2991 = vmatpush1.bf16.msra.mxu1 %v1129_v16  ;;  %v3110_v16 = vld [vmem:[%s3255_s23 + $0x304] ss:$8 sps:$4 sm:$0xff]  }
  0x2e   : > { %1164 = vmatmul.mubr.bf16.vlgmr.msra.gmra.mrb[0].mxu0 %v3012_v17  ;;  %1420 = vmatmul.mubr.bf16.vlgmr.msra.gmra.mrb[0].mxu1 %v3015_v18  ;;  %v3112_v17 = vld [vmem:[%s3255_s23 + $0x100] ss:$8 sps:$4 sm:$0xff]  }
  0x2f   : > { %2650 = vmatprep.mubr.msk.bf16.mxu0 %vm931_vm0, %v3018_v19  ;;  %2682 = vmatprep.mubr.msk.bf16.mxu1 %vm931_vm0, %v3020_v20  ;;  %v3113_v18 = vld [vmem:[%s3255_s23 + $0x300] ss:$8 sps:$4 sm:$0xff]   ;;  %v3114_v19 = vld [vmem:[%s3255_s23 + $0x114] ss:$8 sps:$4 sm:$0xff]  }
  0x30   : > { %v3116_v20 = vld [vmem:[%s3255_s23 + $0x314] ss:$8 sps:$4 sm:$0xff]  }
  0x36   : > { %1172 = vmatmul.mubr.bf16.gmra.mrb[4].mxu0 %v3022_v21  ;;  %1428 = vmatmul.mubr.bf16.gmra.mrb[4].mxu1 %v3023_v22  ;;  %v3118_v21 = vld [vmem:[%s3255_s23 + $0x110] ss:$8 sps:$4 sm:$0xff]  }
  0x37   : > { %2651 = vmatprep.mubr.msk.bf16.mxu0 %vm931_vm0, %v3024_v23  ;;  %2683 = vmatprep.mubr.msk.bf16.mxu1 %vm931_vm0, %v3026_v24  ;;  %v3119_v22 = vld [vmem:[%s3255_s23 + $0x310] ss:$8 sps:$4 sm:$0xff]   ;;  %v3120_v23 = vld [vmem:[%s3255_s23 + $0x124] ss:$8 sps:$4 sm:$0xff]  }
  0x38   : > { %v3122_v24 = vld [vmem:[%s3255_s23 + $0x324] ss:$8 sps:$4 sm:$0xff]  }
  0x3e   : > { %1180 = vmatmul.mubr.bf16.gmra.mrb[8].mxu0 %v3028_v25  ;;  %1436 = vmatmul.mubr.bf16.gmra.mrb[8].mxu1 %v3029_v26  ;;  %v3124_v25 = vld [vmem:[%s3255_s23 + $0x120] ss:$8 sps:$4 sm:$0xff]  }
  0x3f   : > { %2652 = vmatprep.mubr.msk.bf16.mxu0 %vm931_vm0, %v3030_v27  ;;  %2684 = vmatprep.mubr.msk.bf16.mxu1 %vm931_vm0, %v3032_v28  ;;  %v3125_v26 = vld [vmem:[%s3255_s23 + $0x320] ss:$8 sps:$4 sm:$0xff]   ;;  %v3126_v27 = vld [vmem:[%s3255_s23 + $0x134] ss:$8 sps:$4 sm:$0xff]  }
  0x40   : > { %v3128_v28 = vld [vmem:[%s3255_s23 + $0x334] ss:$8 sps:$4 sm:$0xff]  }
  0x46   : > { %1188 = vmatmul.mubr.bf16.gmra.mrb[12].mxu0 %v3034_v29  ;;  %1444 = vmatmul.mubr.bf16.gmra.mrb[12].mxu1 %v3035_v30  ;;  %v3130_v29 = vld [vmem:[%s3255_s23 + $0x130] ss:$8 sps:$4 sm:$0xff]  }
  0x47   : > { %2653 = vmatprep.mubr.msk.bf16.mxu0 %vm931_vm0, %v3036_v31  ;;  %2685 = vmatprep.mubr.msk.bf16.mxu1 %vm931_vm0, %v3038_v32  ;;  %v3131_v30 = vld [vmem:[%s3255_s23 + $0x330] ss:$8 sps:$4 sm:$0xff]   ;;  %v3132_v31 = vld [vmem:[%s3255_s23 + $0x144] ss:$8 sps:$4 sm:$0xff]  }
  0x48   : > { %v3134_v32 = vld [vmem:[%s3255_s23 + $0x344] ss:$8 sps:$4 sm:$0xff]  }
  0x4e   : > { %1196 = vmatmul.mubr.bf16.gmra.mrb[16].mxu0 %v3040_v33  ;;  %1452 = vmatmul.mubr.bf16.gmra.mrb[16].mxu1 %v3041_v34  ;;  %v3136_v33 = vld [vmem:[%s3255_s23 + $0x140] ss:$8 sps:$4 sm:$0xff]  }
  0x4f   : > { %2654 = vmatprep.mubr.msk.bf16.mxu0 %vm931_vm0, %v3042_v35  ;;  %2686 = vmatprep.mubr.msk.bf16.mxu1 %vm931_vm0, %v3044_v36  ;;  %v3137_v34 = vld [vmem:[%s3255_s23 + $0x340] ss:$8 sps:$4 sm:$0xff]   ;;  %v3138_v35 = vld [vmem:[%s3255_s23 + $0x154] ss:$8 sps:$4 sm:$0xff]  }
  0x50   : > { %v3140_v36 = vld [vmem:[%s3255_s23 + $0x354] ss:$8 sps:$4 sm:$0xff]  }
  0x56   : > { %1204 = vmatmul.mubr.bf16.gmra.mrb[20].mxu0 %v3046_v37  ;;  %1460 = vmatmul.mubr.bf16.gmra.mrb[20].mxu1 %v3047_v38  ;;  %v3142_v37 = vld [vmem:[%s3255_s23 + $0x150] ss:$8 sps:$4 sm:$0xff]  }
  0x57   : > { %2655 = vmatprep.mubr.msk.bf16.mxu0 %vm931_vm0, %v3048_v39  ;;  %2687 = vmatprep.mubr.msk.bf16.mxu1 %vm931_vm0, %v3050_v40  ;;  %v3143_v38 = vld [vmem:[%s3255_s23 + $0x350] ss:$8 sps:$4 sm:$0xff]   ;;  %v3144_v39 = vld [vmem:[%s3255_s23 + $0x164] ss:$8 sps:$4 sm:$0xff]  }
  0x58   : > { %v3146_v40 = vld [vmem:[%s3255_s23 + $0x364] ss:$8 sps:$4 sm:$0xff]  }
  0x5e   : > { %1212 = vmatmul.mubr.bf16.gmra.mrb[24].mxu0 %v3052_v41  ;;  %1468 = vmatmul.mubr.bf16.gmra.mrb[24].mxu1 %v3053_v42  ;;  %v3148_v41 = vld [vmem:[%s3255_s23 + $0x160] ss:$8 sps:$4 sm:$0xff]  }
  0x5f   : > { %2656 = vmatprep.mubr.msk.bf16.mxu0 %vm931_vm0, %v3054_v43  ;;  %2688 = vmatprep.mubr.msk.bf16.mxu1 %vm931_vm0, %v3056_v44  ;;  %v3149_v42 = vld [vmem:[%s3255_s23 + $0x360] ss:$8 sps:$4 sm:$0xff]   ;;  %v3150_v43 = vld [vmem:[%s3255_s23 + $0x174] ss:$8 sps:$4 sm:$0xff]  }
  0x60   : > { %v3152_v44 = vld [vmem:[%s3255_s23 + $0x374] ss:$8 sps:$4 sm:$0xff]  }
  0x66   : > { %1220 = vmatmul.mubr.bf16.gmra.mrb[28].mxu0 %v3058_v45  ;;  %1476 = vmatmul.mubr.bf16.gmra.mrb[28].mxu1 %v3059_v46  ;;  %v3154_v45 = vld [vmem:[%s3255_s23 + $0x170] ss:$8 sps:$4 sm:$0xff]  }
  0x67   : > { %2657 = vmatprep.mubr.msk.bf16.mxu0 %vm931_vm0, %v3060_v47  ;;  %2689 = vmatprep.mubr.msk.bf16.mxu1 %vm931_vm0, %v3062_v48  ;;  %v3155_v46 = vld [vmem:[%s3255_s23 + $0x370] ss:$8 sps:$4 sm:$0xff]   ;;  %v3156_v47 = vld [vmem:[%s3255_s23 + $0x184] ss:$8 sps:$4 sm:$0xff]  }
  0x68   : > { %v3158_v48 = vld [vmem:[%s3255_s23 + $0x384] ss:$8 sps:$4 sm:$0xff]  }
  0x6e   : > { %1228 = vmatmul.mubr.bf16.gmra.mrb[32].mxu0 %v3064_v49  ;;  %1484 = vmatmul.mubr.bf16.gmra.mrb[32].mxu1 %v3065_v50  ;;  %v3160_v49 = vld [vmem:[%s3255_s23 + $0x180] ss:$8 sps:$4 sm:$0xff]  }
  0x6f   : > { %2658 = vmatprep.mubr.msk.bf16.mxu0 %vm931_vm0, %v3066_v51  ;;  %2690 = vmatprep.mubr.msk.bf16.mxu1 %vm931_vm0, %v3068_v52  ;;  %v3161_v50 = vld [vmem:[%s3255_s23 + $0x380] ss:$8 sps:$4 sm:$0xff]   ;;  %v3162_v51 = vld [vmem:[%s3255_s23 + $0x194] ss:$8 sps:$4 sm:$0xff]  }
  0x70   : > { %v3164_v52 = vld [vmem:[%s3255_s23 + $0x394] ss:$8 sps:$4 sm:$0xff]  }
  0x76   : > { %1236 = vmatmul.mubr.bf16.gmra.mrb[36].mxu0 %v3070_v53  ;;  %1492 = vmatmul.mubr.bf16.gmra.mrb[36].mxu1 %v3071_v54  ;;  %v3166_v53 = vld [vmem:[%s3255_s23 + $0x190] ss:$8 sps:$4 sm:$0xff]  }
  0x77   : > { %2659 = vmatprep.mubr.msk.bf16.mxu0 %vm931_vm0, %v3072_v55  ;;  %2691 = vmatprep.mubr.msk.bf16.mxu1 %vm931_vm0, %v3074_v56  ;;  %v3167_v54 = vld [vmem:[%s3255_s23 + $0x390] ss:$8 sps:$4 sm:$0xff]   ;;  %v3168_v55 = vld [vmem:[%s3255_s23 + $0x1a4] ss:$8 sps:$4 sm:$0xff]  }
  0x78   : > { %v3170_v56 = vld [vmem:[%s3255_s23 + $0x3a4] ss:$8 sps:$4 sm:$0xff]  }
  0x7e   : > { %1244 = vmatmul.mubr.bf16.gmra.mrb[40].mxu0 %v3076_v57  ;;  %1500 = vmatmul.mubr.bf16.gmra.mrb[40].mxu1 %v3077_v58  ;;  %v3172_v57 = vld [vmem:[%s3255_s23 + $0x1a0] ss:$8 sps:$4 sm:$0xff]  }
  0x7f   : > { %2660 = vmatprep.mubr.msk.bf16.mxu0 %vm931_vm0, %v3078_v59  ;;  %2692 = vmatprep.mubr.msk.bf16.mxu1 %vm931_vm0, %v3080_v60  ;;  %v3173_v58 = vld [vmem:[%s3255_s23 + $0x3a0] ss:$8 sps:$4 sm:$0xff]   ;;  %v3174_v59 = vld [vmem:[%s3255_s23 + $0x1b4] ss:$8 sps:$4 sm:$0xff]  }
  0x80   : > { %v3176_v60 = vld [vmem:[%s3255_s23 + $0x3b4] ss:$8 sps:$4 sm:$0xff]  }
  0x86   : > { %1252 = vmatmul.mubr.bf16.gmra.mrb[44].mxu0 %v3082_v61  ;;  %1508 = vmatmul.mubr.bf16.gmra.mrb[44].mxu1 %v3083_v62 }
  0x87   : > { %2661 = vmatprep.mubr.msk.bf16.mxu0 %vm931_vm0, %v3084_v63  ;;  %2693 = vmatprep.mubr.msk.bf16.mxu1 %vm931_vm0, %v3086_v0  ;;  %v3178_v63 = vld [vmem:[%s3255_s23 + $0x1b0] ss:$8 sps:$4 sm:$0xff]  }
  0x8e   : > { %1260 = vmatmul.mubr.bf16.gmra.mrb[48].mxu0 %v3088_v1  ;;  %1516 = vmatmul.mubr.bf16.gmra.mrb[48].mxu1 %v3089_v2 }
  0x8f   : > { %2662 = vmatprep.mubr.msk.bf16.mxu0 %vm931_vm0, %v3090_v3  ;;  %2694 = vmatprep.mubr.msk.bf16.mxu1 %vm931_vm0, %v3092_v4  ;;  %v3179_v4 = vld [vmem:[%s3255_s23 + $0x3b0] ss:$8 sps:$4 sm:$0xff]  }
  0x96   : > { %1268 = vmatmul.mubr.bf16.gmra.mrb[52].mxu0 %v3094_v5  ;;  %1524 = vmatmul.mubr.bf16.gmra.mrb[52].mxu1 %v3095_v6 }
  0x97   : > { %2663 = vmatprep.mubr.msk.bf16.mxu0 %vm931_vm0, %v3096_v7  ;;  %2695 = vmatprep.mubr.msk.bf16.mxu1 %vm931_vm0, %v3098_v8  ;;  %v3180_v7 = vld [vmem:[%s3255_s23 + $0x1c4] ss:$8 sps:$4 sm:$0xff]  }
  0x98   : > { %v3182_v8 = vld [vmem:[%s3255_s23 + $0x3c4] ss:$8 sps:$4 sm:$0xff]  }
  0x9e   : > { %1276 = vmatmul.mubr.bf16.gmra.mrb[56].mxu0 %v3100_v9  ;;  %1532 = vmatmul.mubr.bf16.gmra.mrb[56].mxu1 %v3101_v10 }
  0x9f   : > { %2664 = vmatprep.mubr.msk.bf16.mxu0 %vm931_vm0, %v3102_v11  ;;  %2696 = vmatprep.mubr.msk.bf16.mxu1 %vm931_vm0, %v3104_v12 }
  0xa6   : > { %1284 = vmatmul.mubr.bf16.gmra.mrb[60].mxu0 %v3106_v13  ;;  %1540 = vmatmul.mubr.bf16.gmra.mrb[60].mxu1 %v3107_v14 }
  0xa7   : > { %2665 = vmatprep.mubr.msk.bf16.mxu0 %vm931_vm0, %v3108_v15  ;;  %2697 = vmatprep.mubr.msk.bf16.mxu1 %vm931_vm0, %v3110_v16 }
  0xae   : > { %1292 = vmatmul.mubr.bf16.gmra.mrb[64].mxu0 %v3112_v17  ;;  %1548 = vmatmul.mubr.bf16.gmra.mrb[64].mxu1 %v3113_v18 }
  0xaf   : > { %2666 = vmatprep.mubr.msk.bf16.mxu0 %vm931_vm0, %v3114_v19  ;;  %2698 = vmatprep.mubr.msk.bf16.mxu1 %vm931_vm0, %v3116_v20  ;;  %v3184_v19 = vld [vmem:[%s3255_s23 + $0x1c0] ss:$8 sps:$4 sm:$0xff]  }
  0xb6   : > { %1300 = vmatmul.mubr.bf16.gmra.mrb[68].mxu0 %v3118_v21  ;;  %1556 = vmatmul.mubr.bf16.gmra.mrb[68].mxu1 %v3119_v22 }
  0xb7   : > { %2667 = vmatprep.mubr.msk.bf16.mxu0 %vm931_vm0, %v3120_v23  ;;  %2699 = vmatprep.mubr.msk.bf16.mxu1 %vm931_vm0, %v3122_v24  ;;  %v3185_v24 = vld [vmem:[%s3255_s23 + $0x3c0] ss:$8 sps:$4 sm:$0xff]  }
  0xbe   : > { %1308 = vmatmul.mubr.bf16.gmra.mrb[72].mxu0 %v3124_v25  ;;  %1564 = vmatmul.mubr.bf16.gmra.mrb[72].mxu1 %v3125_v26 }
  0xbf   : > { %2668 = vmatprep.mubr.msk.bf16.mxu0 %vm931_vm0, %v3126_v27  ;;  %2700 = vmatprep.mubr.msk.bf16.mxu1 %vm931_vm0, %v3128_v28  ;;  %v3186_v27 = vld [vmem:[%s3255_s23 + $0x1d4] ss:$8 sps:$4 sm:$0xff]  }
  0xc0   : > { %v3188_v28 = vld [vmem:[%s3255_s23 + $0x3d4] ss:$8 sps:$4 sm:$0xff]  }
  0xc6   : > { %1316 = vmatmul.mubr.bf16.gmra.mrb[76].mxu0 %v3130_v29  ;;  %1572 = vmatmul.mubr.bf16.gmra.mrb[76].mxu1 %v3131_v30 }
  0xc7   : > { %2669 = vmatprep.mubr.msk.bf16.mxu0 %vm931_vm0, %v3132_v31  ;;  %2701 = vmatprep.mubr.msk.bf16.mxu1 %vm931_vm0, %v3134_v32 }
  0xce   : > { %1324 = vmatmul.mubr.bf16.gmra.mrb[80].mxu0 %v3136_v33  ;;  %1580 = vmatmul.mubr.bf16.gmra.mrb[80].mxu1 %v3137_v34 }
  0xcf   : > { %2670 = vmatprep.mubr.msk.bf16.mxu0 %vm931_vm0, %v3138_v35  ;;  %2702 = vmatprep.mubr.msk.bf16.mxu1 %vm931_vm0, %v3140_v36 }
  0xd6   : > { %1332 = vmatmul.mubr.bf16.gmra.mrb[84].mxu0 %v3142_v37  ;;  %1588 = vmatmul.mubr.bf16.gmra.mrb[84].mxu1 %v3143_v38 }
  0xd7   : > { %2671 = vmatprep.mubr.msk.bf16.mxu0 %vm931_vm0, %v3144_v39  ;;  %2703 = vmatprep.mubr.msk.bf16.mxu1 %vm931_vm0, %v3146_v40  ;;  %v3190_v39 = vld [vmem:[%s3255_s23 + $0x1d0] ss:$8 sps:$4 sm:$0xff]  }
  0xde   : > { %1340 = vmatmul.mubr.bf16.gmra.mrb[88].mxu0 %v3148_v41  ;;  %1596 = vmatmul.mubr.bf16.gmra.mrb[88].mxu1 %v3149_v42 }
  0xdf   : > { %2672 = vmatprep.mubr.msk.bf16.mxu0 %vm931_vm0, %v3150_v43  ;;  %2704 = vmatprep.mubr.msk.bf16.mxu1 %vm931_vm0, %v3152_v44  ;;  %v3191_v44 = vld [vmem:[%s3255_s23 + $0x3d0] ss:$8 sps:$4 sm:$0xff]  }
  0xe6   : > { %1348 = vmatmul.mubr.bf16.gmra.mrb[92].mxu0 %v3154_v45  ;;  %1604 = vmatmul.mubr.bf16.gmra.mrb[92].mxu1 %v3155_v46 }
  0xe7   : > { %2673 = vmatprep.mubr.msk.bf16.mxu0 %vm931_vm0, %v3156_v47  ;;  %2705 = vmatprep.mubr.msk.bf16.mxu1 %vm931_vm0, %v3158_v48  ;;  %v3192_v47 = vld [vmem:[%s3255_s23 + $0x1e4] ss:$8 sps:$4 sm:$0xff]  }
  0xe8   : > { %v3194_v48 = vld [vmem:[%s3255_s23 + $0x3e4] ss:$8 sps:$4 sm:$0xff]  }
  0xee   : > { %1356 = vmatmul.mubr.bf16.gmra.mrb[96].mxu0 %v3160_v49  ;;  %1612 = vmatmul.mubr.bf16.gmra.mrb[96].mxu1 %v3161_v50 }
  0xef   : > { %2674 = vmatprep.mubr.msk.bf16.mxu0 %vm931_vm0, %v3162_v51  ;;  %2706 = vmatprep.mubr.msk.bf16.mxu1 %vm931_vm0, %v3164_v52 }
  0xf6   : > { %1364 = vmatmul.mubr.bf16.gmra.mrb[100].mxu0 %v3166_v53  ;;  %1620 = vmatmul.mubr.bf16.gmra.mrb[100].mxu1 %v3167_v54 }
  0xf7   : > { %2675 = vmatprep.mubr.msk.bf16.mxu0 %vm931_vm0, %v3168_v55  ;;  %2707 = vmatprep.mubr.msk.bf16.mxu1 %vm931_vm0, %v3170_v56 }
  0xfe   : > { %1372 = vmatmul.mubr.bf16.gmra.mrb[104].mxu0 %v3172_v57  ;;  %1628 = vmatmul.mubr.bf16.gmra.mrb[104].mxu1 %v3173_v58 }
  0xff   : > { %2676 = vmatprep.mubr.msk.bf16.mxu0 %vm931_vm0, %v3174_v59  ;;  %2708 = vmatprep.mubr.msk.bf16.mxu1 %vm931_vm0, %v3176_v60  ;;  %v3196_v59 = vld [vmem:[%s3255_s23 + $0x1e0] ss:$8 sps:$4 sm:$0xff]  }
 0x101   : > { %v1165_v61 = vpop.f32.mrb[0].mxu0  ;;  %v1421_v62 = vpop.f32.mrb[0].mxu1 }
 0x102   : > { %v1676_v0 = vmax.f32 %v1165_v61, 0.0  ;;  %v1740_v1 = vmax.f32 %v1421_v62, 0.0  ;;  %v1167_v2 = vpop.f32.mrb[1].mxu0  ;;  %v1423_v3 = vpop.f32.mrb[1].mxu1 }
 0x103   : > { %v1168_v5 = vpop.f32.mrb[2].mxu0  ;;  %v1424_v6 = vpop.f32.mrb[2].mxu1  ;;  %v3198_v3 = vld [vmem:[%s3255_s23 + $0x1f4] ss:$8 sps:$4 sm:$0xff]  }
 0x104   : > { %v2844_v9 = vpack.c.bf16 %v1676_v0, %v1676_v0  ;;  %v2908_v10 = vpack.c.bf16 %v1740_v1, %v1740_v1  ;;  %v1677_v11 = vmax.f32 %v1168_v5, 0.0  ;;  %v1741_v12 = vmax.f32 %v1424_v6, 0.0  ;;  %v1170_v13 = vpop.f32.mrb[3].mxu0  ;;  %v1426_v14 = vpop.f32.mrb[3].mxu1  ;;  %v3197_v0 = vld [vmem:[%s3255_s23 + $0x3e0] ss:$8 sps:$4 sm:$0xff]  }
 0x106   : > { %2317 = vst.msk [vmem:[%s3447_s12] sm:$0xf] %vm2316_vm3, %v2844_v9  ;;  %2381 = vst.msk [vmem:[%s3447_s12 + $0x100] sm:$0xf] %vm2316_vm3, %v2908_v10  ;;  %v2845_v15 = vpack.c.bf16 %v1677_v11, %v1677_v11  ;;  %v2909_v16 = vpack.c.bf16 %v1741_v12, %v1741_v12  ;;  %1380 = vmatmul.mubr.bf16.gmra.mrb[108].mxu0 %v3178_v63  ;;  %1636 = vmatmul.mubr.bf16.gmra.mrb[108].mxu1 %v3179_v4  ;;  %v3200_v4 = vld [vmem:[%s3255_s23 + $0x3f4] ss:$8 sps:$4 sm:$0xff]  }
 0x107   : > { %2677 = vmatprep.mubr.msk.bf16.mxu0 %vm931_vm0, %v3180_v7  ;;  %2709 = vmatprep.mubr.msk.bf16.mxu1 %vm931_vm0, %v3182_v8 }
 0x108   : > { %2318 = vst.msk [vmem:[%s3447_s12 + $0x4] sm:$0xf] %vm2316_vm3, %v2845_v15  ;;  %2382 = vst.msk [vmem:[%s3447_s12 + $0x104] sm:$0xf] %vm2316_vm3, %v2909_v16  ;;  %v3202_v15 = vld [vmem:[%s3255_s23 + $0x1f0] ss:$8 sps:$4 sm:$0xff]  }
 0x109   : > { %v1173_v17 = vpop.f32.mrb[4].mxu0  ;;  %v1429_v18 = vpop.f32.mrb[4].mxu1 }
 0x10a   : > { %v1678_v20 = vmax.f32 %v1173_v17, 0.0  ;;  %v1742_v21 = vmax.f32 %v1429_v18, 0.0  ;;  %v1175_v22 = vpop.f32.mrb[5].mxu0  ;;  %v1431_v23 = vpop.f32.mrb[5].mxu1 }
 0x10b   : > { %v1176_v25 = vpop.f32.mrb[6].mxu0  ;;  %v1432_v26 = vpop.f32.mrb[6].mxu1 }
 0x10c   : > { %v2846_v29 = vpack.c.bf16 %v1678_v20, %v1678_v20  ;;  %v2910_v30 = vpack.c.bf16 %v1742_v21, %v1742_v21  ;;  %v1679_v31 = vmax.f32 %v1176_v25, 0.0  ;;  %v1743_v32 = vmax.f32 %v1432_v26, 0.0  ;;  %v1178_v33 = vpop.f32.mrb[7].mxu0  ;;  %v1434_v34 = vpop.f32.mrb[7].mxu1  ;;  %v3203_v20 = vld [vmem:[%s3255_s23 + $0x3f0] ss:$8 sps:$4 sm:$0xff]  }
 0x10e   : > { %2319 = vst.msk [vmem:[%s3447_s12 + $0x8] sm:$0xf] %vm2316_vm3, %v2846_v29  ;;  %2383 = vst.msk [vmem:[%s3447_s12 + $0x108] sm:$0xf] %vm2316_vm3, %v2910_v30  ;;  %v2847_v35 = vpack.c.bf16 %v1679_v31, %v1679_v31  ;;  %v2911_v36 = vpack.c.bf16 %v1743_v32, %v1743_v32  ;;  %1388 = vmatmul.mubr.bf16.gmra.mrb[112].mxu0 %v3184_v19  ;;  %1644 = vmatmul.mubr.bf16.gmra.mrb[112].mxu1 %v3185_v24 }
 0x10f   : > { %2678 = vmatprep.mubr.msk.bf16.mxu0 %vm931_vm0, %v3186_v27  ;;  %2710 = vmatprep.mubr.msk.bf16.mxu1 %vm931_vm0, %v3188_v28 }
 0x110   : > { %2320 = vst.msk [vmem:[%s3447_s12 + $0xc] sm:$0xf] %vm2316_vm3, %v2847_v35  ;;  %2384 = vst.msk [vmem:[%s3447_s12 + $0x10c] sm:$0xf] %vm2316_vm3, %v2911_v36 }
 0x111   : > { %v1181_v37 = vpop.f32.mrb[8].mxu0  ;;  %v1437_v38 = vpop.f32.mrb[8].mxu1 }
 0x112   : > { %v1680_v40 = vmax.f32 %v1181_v37, 0.0  ;;  %v1744_v41 = vmax.f32 %v1437_v38, 0.0  ;;  %v1183_v42 = vpop.f32.mrb[9].mxu0  ;;  %v1439_v43 = vpop.f32.mrb[9].mxu1 }
 0x113   : > { %v1184_v45 = vpop.f32.mrb[10].mxu0  ;;  %v1440_v46 = vpop.f32.mrb[10].mxu1 }
 0x114   : > { %v2848_v49 = vpack.c.bf16 %v1680_v40, %v1680_v40  ;;  %v2912_v50 = vpack.c.bf16 %v1744_v41, %v1744_v41  ;;  %v1681_v51 = vmax.f32 %v1184_v45, 0.0  ;;  %v1745_v52 = vmax.f32 %v1440_v46, 0.0  ;;  %v1186_v53 = vpop.f32.mrb[11].mxu0  ;;  %v1442_v54 = vpop.f32.mrb[11].mxu1 }
 0x116   : > { %2321 = vst.msk [vmem:[%s3447_s12 + $0x10] sm:$0xf] %vm2316_vm3, %v2848_v49  ;;  %2385 = vst.msk [vmem:[%s3447_s12 + $0x110] sm:$0xf] %vm2316_vm3, %v2912_v50  ;;  %v2849_v55 = vpack.c.bf16 %v1681_v51, %v1681_v51  ;;  %v2913_v56 = vpack.c.bf16 %v1745_v52, %v1745_v52  ;;  %1396 = vmatmul.mubr.bf16.gmra.mrb[116].mxu0 %v3190_v39  ;;  %1652 = vmatmul.mubr.bf16.gmra.mrb[116].mxu1 %v3191_v44 }
 0x117   : > { %2679 = vmatprep.mubr.msk.bf16.mxu0 %vm931_vm0, %v3192_v47  ;;  %2711 = vmatprep.mubr.msk.bf16.mxu1 %vm931_vm0, %v3194_v48 }
 0x118   : > { %2322 = vst.msk [vmem:[%s3447_s12 + $0x14] sm:$0xf] %vm2316_vm3, %v2849_v55  ;;  %2386 = vst.msk [vmem:[%s3447_s12 + $0x114] sm:$0xf] %vm2316_vm3, %v2913_v56 }
 0x119   : > { %v1189_v57 = vpop.f32.mrb[12].mxu0  ;;  %v1445_v58 = vpop.f32.mrb[12].mxu1 }
 0x11a   : > { %v1682_v60 = vmax.f32 %v1189_v57, 0.0  ;;  %v1746_v61 = vmax.f32 %v1445_v58, 0.0  ;;  %v1191_v62 = vpop.f32.mrb[13].mxu0  ;;  %v1447_v63 = vpop.f32.mrb[13].mxu1 }
 0x11b   : > { %v1192_v1 = vpop.f32.mrb[14].mxu0  ;;  %v1448_v2 = vpop.f32.mrb[14].mxu1 }
 0x11c   : > { %v2850_v5 = vpack.c.bf16 %v1682_v60, %v1682_v60  ;;  %v2914_v6 = vpack.c.bf16 %v1746_v61, %v1746_v61  ;;  %v1683_v7 = vmax.f32 %v1192_v1, 0.0  ;;  %v1747_v8 = vmax.f32 %v1448_v2, 0.0  ;;  %v1194_v9 = vpop.f32.mrb[15].mxu0  ;;  %v1450_v10 = vpop.f32.mrb[15].mxu1 }
 0x11e   : > { %2323 = vst.msk [vmem:[%s3447_s12 + $0x18] sm:$0xf] %vm2316_vm3, %v2850_v5  ;;  %2387 = vst.msk [vmem:[%s3447_s12 + $0x118] sm:$0xf] %vm2316_vm3, %v2914_v6  ;;  %v2851_v11 = vpack.c.bf16 %v1683_v7, %v1683_v7  ;;  %v2915_v12 = vpack.c.bf16 %v1747_v8, %v1747_v8  ;;  %1404 = vmatmul.mubr.bf16.gmra.mrb[120].mxu0 %v3196_v59  ;;  %1660 = vmatmul.mubr.bf16.gmra.mrb[120].mxu1 %v3197_v0 }
 0x11f   : > { %2680 = vmatprep.mubr.msk.bf16.mxu0 %vm931_vm0, %v3198_v3  ;;  %2712 = vmatprep.mubr.msk.bf16.mxu1 %vm931_vm0, %v3200_v4 }
 0x120   : > { %2324 = vst.msk [vmem:[%s3447_s12 + $0x1c] sm:$0xf] %vm2316_vm3, %v2851_v11  ;;  %2388 = vst.msk [vmem:[%s3447_s12 + $0x11c] sm:$0xf] %vm2316_vm3, %v2915_v12 }
 0x121   : > { %v1197_v13 = vpop.f32.mrb[16].mxu0  ;;  %v1453_v14 = vpop.f32.mrb[16].mxu1 }
 0x122   : > { %v1684_v16 = vmax.f32 %v1197_v13, 0.0  ;;  %v1748_v17 = vmax.f32 %v1453_v14, 0.0  ;;  %v1199_v18 = vpop.f32.mrb[17].mxu0  ;;  %v1455_v19 = vpop.f32.mrb[17].mxu1 }
 0x123   : > { %v1200_v21 = vpop.f32.mrb[18].mxu0  ;;  %v1456_v22 = vpop.f32.mrb[18].mxu1 }
 0x124   : > { %v2852_v23 = vpack.c.bf16 %v1684_v16, %v1684_v16  ;;  %v2916_v24 = vpack.c.bf16 %v1748_v17, %v1748_v17  ;;  %v1685_v25 = vmax.f32 %v1200_v21, 0.0  ;;  %v1749_v26 = vmax.f32 %v1456_v22, 0.0  ;;  %v1202_v27 = vpop.f32.mrb[19].mxu0  ;;  %v1458_v28 = vpop.f32.mrb[19].mxu1 }
 0x126   : > { %2325 = vst.msk [vmem:[%s3447_s12 + $0x20] sm:$0xf] %vm2316_vm3, %v2852_v23  ;;  %2389 = vst.msk [vmem:[%s3447_s12 + $0x120] sm:$0xf] %vm2316_vm3, %v2916_v24  ;;  %v2853_v29 = vpack.c.bf16 %v1685_v25, %v1685_v25  ;;  %v2917_v30 = vpack.c.bf16 %v1749_v26, %v1749_v26  ;;  %1412 = vmatmul.mubr.bf16.gmra.mrb[124].mxu0 %v3202_v15  ;;  %1668 = vmatmul.mubr.bf16.gmra.mrb[124].mxu1 %v3203_v20 }
 0x128   : > { %2326 = vst.msk [vmem:[%s3447_s12 + $0x24] sm:$0xf] %vm2316_vm3, %v2853_v29  ;;  %2390 = vst.msk [vmem:[%s3447_s12 + $0x124] sm:$0xf] %vm2316_vm3, %v2917_v30 }
 0x129   : > { %v1205_v31 = vpop.f32.mrb[20].mxu0  ;;  %v1461_v32 = vpop.f32.mrb[20].mxu1 }
 0x12a   : > { %v1686_v33 = vmax.f32 %v1205_v31, 0.0  ;;  %v1750_v34 = vmax.f32 %v1461_v32, 0.0  ;;  %v1207_v35 = vpop.f32.mrb[21].mxu0  ;;  %v1463_v36 = vpop.f32.mrb[21].mxu1 }
 0x12b   : > { %v1208_v37 = vpop.f32.mrb[22].mxu0  ;;  %v1464_v38 = vpop.f32.mrb[22].mxu1 }
 0x12c   : > { %v2854_v39 = vpack.c.bf16 %v1686_v33, %v1686_v33  ;;  %v2918_v40 = vpack.c.bf16 %v1750_v34, %v1750_v34  ;;  %v1687_v41 = vmax.f32 %v1208_v37, 0.0  ;;  %v1751_v42 = vmax.f32 %v1464_v38, 0.0  ;;  %v1210_v43 = vpop.f32.mrb[23].mxu0  ;;  %v1466_v44 = vpop.f32.mrb[23].mxu1 }
 0x12e   : > { %2327 = vst.msk [vmem:[%s3447_s12 + $0x28] sm:$0xf] %vm2316_vm3, %v2854_v39  ;;  %2391 = vst.msk [vmem:[%s3447_s12 + $0x128] sm:$0xf] %vm2316_vm3, %v2918_v40  ;;  %v2855_v45 = vpack.c.bf16 %v1687_v41, %v1687_v41  ;;  %v2919_v46 = vpack.c.bf16 %v1751_v42, %v1751_v42 }
 0x130   : > { %2328 = vst.msk [vmem:[%s3447_s12 + $0x2c] sm:$0xf] %vm2316_vm3, %v2855_v45  ;;  %2392 = vst.msk [vmem:[%s3447_s12 + $0x12c] sm:$0xf] %vm2316_vm3, %v2919_v46 }
 0x131   : > { %v1213_v47 = vpop.f32.mrb[24].mxu0  ;;  %v1469_v48 = vpop.f32.mrb[24].mxu1 }
 0x132   : > { %v1688_v49 = vmax.f32 %v1213_v47, 0.0  ;;  %v1752_v50 = vmax.f32 %v1469_v48, 0.0  ;;  %v1215_v51 = vpop.f32.mrb[25].mxu0  ;;  %v1471_v52 = vpop.f32.mrb[25].mxu1 }
 0x133   : > { %v1216_v53 = vpop.f32.mrb[26].mxu0  ;;  %v1472_v54 = vpop.f32.mrb[26].mxu1 }
 0x134   : > { %v2856_v55 = vpack.c.bf16 %v1688_v49, %v1688_v49  ;;  %v2920_v56 = vpack.c.bf16 %v1752_v50, %v1752_v50  ;;  %v1689_v57 = vmax.f32 %v1216_v53, 0.0  ;;  %v1753_v58 = vmax.f32 %v1472_v54, 0.0  ;;  %v1218_v59 = vpop.f32.mrb[27].mxu0  ;;  %v1474_v60 = vpop.f32.mrb[27].mxu1 }
 0x136   : > { %2329 = vst.msk [vmem:[%s3447_s12 + $0x30] sm:$0xf] %vm2316_vm3, %v2856_v55  ;;  %2393 = vst.msk [vmem:[%s3447_s12 + $0x130] sm:$0xf] %vm2316_vm3, %v2920_v56  ;;  %v2857_v61 = vpack.c.bf16 %v1689_v57, %v1689_v57  ;;  %v2921_v62 = vpack.c.bf16 %v1753_v58, %v1753_v58 }
 0x138   : > { %2330 = vst.msk [vmem:[%s3447_s12 + $0x34] sm:$0xf] %vm2316_vm3, %v2857_v61  ;;  %2394 = vst.msk [vmem:[%s3447_s12 + $0x134] sm:$0xf] %vm2316_vm3, %v2921_v62 }
 0x139   : > { %v1221_v63 = vpop.f32.mrb[28].mxu0  ;;  %v1477_v0 = vpop.f32.mrb[28].mxu1 }
 0x13a   : > { %v1690_v1 = vmax.f32 %v1221_v63, 0.0  ;;  %v1754_v2 = vmax.f32 %v1477_v0, 0.0  ;;  %v1223_v3 = vpop.f32.mrb[29].mxu0  ;;  %v1479_v4 = vpop.f32.mrb[29].mxu1 }
 0x13b   : > { %v1224_v5 = vpop.f32.mrb[30].mxu0  ;;  %v1480_v6 = vpop.f32.mrb[30].mxu1 }
 0x13c   : > { %v2858_v7 = vpack.c.bf16 %v1690_v1, %v1690_v1  ;;  %v2922_v8 = vpack.c.bf16 %v1754_v2, %v1754_v2  ;;  %v1691_v9 = vmax.f32 %v1224_v5, 0.0  ;;  %v1755_v10 = vmax.f32 %v1480_v6, 0.0  ;;  %v1226_v11 = vpop.f32.mrb[31].mxu0  ;;  %v1482_v12 = vpop.f32.mrb[31].mxu1 }
 0x13e   : > { %2331 = vst.msk [vmem:[%s3447_s12 + $0x38] sm:$0xf] %vm2316_vm3, %v2858_v7  ;;  %2395 = vst.msk [vmem:[%s3447_s12 + $0x138] sm:$0xf] %vm2316_vm3, %v2922_v8  ;;  %v2859_v13 = vpack.c.bf16 %v1691_v9, %v1691_v9  ;;  %v2923_v14 = vpack.c.bf16 %v1755_v10, %v1755_v10 }
 0x140   : > { %2332 = vst.msk [vmem:[%s3447_s12 + $0x3c] sm:$0xf] %vm2316_vm3, %v2859_v13  ;;  %2396 = vst.msk [vmem:[%s3447_s12 + $0x13c] sm:$0xf] %vm2316_vm3, %v2923_v14 }
 0x141   : > { %v1229_v15 = vpop.f32.mrb[32].mxu0  ;;  %v1485_v16 = vpop.f32.mrb[32].mxu1 }
 0x142   : > { %v1692_v17 = vmax.f32 %v1229_v15, 0.0  ;;  %v1756_v18 = vmax.f32 %v1485_v16, 0.0  ;;  %v1231_v19 = vpop.f32.mrb[33].mxu0  ;;  %v1487_v20 = vpop.f32.mrb[33].mxu1 }
 0x143   : > { %v1232_v21 = vpop.f32.mrb[34].mxu0  ;;  %v1488_v22 = vpop.f32.mrb[34].mxu1 }
 0x144   : > { %v2860_v23 = vpack.c.bf16 %v1692_v17, %v1692_v17  ;;  %v2924_v24 = vpack.c.bf16 %v1756_v18, %v1756_v18  ;;  %v1693_v25 = vmax.f32 %v1232_v21, 0.0  ;;  %v1757_v26 = vmax.f32 %v1488_v22, 0.0  ;;  %v1234_v27 = vpop.f32.mrb[35].mxu0  ;;  %v1490_v28 = vpop.f32.mrb[35].mxu1 }
 0x146   : > { %2333 = vst.msk [vmem:[%s3447_s12 + $0x40] sm:$0xf] %vm2316_vm3, %v2860_v23  ;;  %2397 = vst.msk [vmem:[%s3447_s12 + $0x140] sm:$0xf] %vm2316_vm3, %v2924_v24  ;;  %v2861_v29 = vpack.c.bf16 %v1693_v25, %v1693_v25  ;;  %v2925_v30 = vpack.c.bf16 %v1757_v26, %v1757_v26 }
 0x148   : > { %2334 = vst.msk [vmem:[%s3447_s12 + $0x44] sm:$0xf] %vm2316_vm3, %v2861_v29  ;;  %2398 = vst.msk [vmem:[%s3447_s12 + $0x144] sm:$0xf] %vm2316_vm3, %v2925_v30 }
 0x149   : > { %v1237_v31 = vpop.f32.mrb[36].mxu0  ;;  %v1493_v32 = vpop.f32.mrb[36].mxu1 }
 0x14a   : > { %v1694_v33 = vmax.f32 %v1237_v31, 0.0  ;;  %v1758_v34 = vmax.f32 %v1493_v32, 0.0  ;;  %v1239_v35 = vpop.f32.mrb[37].mxu0  ;;  %v1495_v36 = vpop.f32.mrb[37].mxu1 }
 0x14b   : > { %v1240_v37 = vpop.f32.mrb[38].mxu0  ;;  %v1496_v38 = vpop.f32.mrb[38].mxu1 }
 0x14c   : > { %v2862_v39 = vpack.c.bf16 %v1694_v33, %v1694_v33  ;;  %v2926_v40 = vpack.c.bf16 %v1758_v34, %v1758_v34  ;;  %v1695_v41 = vmax.f32 %v1240_v37, 0.0  ;;  %v1759_v42 = vmax.f32 %v1496_v38, 0.0  ;;  %v1242_v43 = vpop.f32.mrb[39].mxu0  ;;  %v1498_v44 = vpop.f32.mrb[39].mxu1 }
 0x14e   : > { %2335 = vst.msk [vmem:[%s3447_s12 + $0x48] sm:$0xf] %vm2316_vm3, %v2862_v39  ;;  %2399 = vst.msk [vmem:[%s3447_s12 + $0x148] sm:$0xf] %vm2316_vm3, %v2926_v40  ;;  %v2863_v45 = vpack.c.bf16 %v1695_v41, %v1695_v41  ;;  %v2927_v46 = vpack.c.bf16 %v1759_v42, %v1759_v42 }
 0x150   : > { %2336 = vst.msk [vmem:[%s3447_s12 + $0x4c] sm:$0xf] %vm2316_vm3, %v2863_v45  ;;  %2400 = vst.msk [vmem:[%s3447_s12 + $0x14c] sm:$0xf] %vm2316_vm3, %v2927_v46 }
 0x151   : > { %v1245_v47 = vpop.f32.mrb[40].mxu0  ;;  %v1501_v48 = vpop.f32.mrb[40].mxu1 }
 0x152   : > { %v1696_v49 = vmax.f32 %v1245_v47, 0.0  ;;  %v1760_v50 = vmax.f32 %v1501_v48, 0.0  ;;  %v1247_v51 = vpop.f32.mrb[41].mxu0  ;;  %v1503_v52 = vpop.f32.mrb[41].mxu1 }
 0x153   : > { %v1248_v53 = vpop.f32.mrb[42].mxu0  ;;  %v1504_v54 = vpop.f32.mrb[42].mxu1 }
 0x154   : > { %v2864_v55 = vpack.c.bf16 %v1696_v49, %v1696_v49  ;;  %v2928_v56 = vpack.c.bf16 %v1760_v50, %v1760_v50  ;;  %v1697_v57 = vmax.f32 %v1248_v53, 0.0  ;;  %v1761_v58 = vmax.f32 %v1504_v54, 0.0  ;;  %v1250_v59 = vpop.f32.mrb[43].mxu0  ;;  %v1506_v60 = vpop.f32.mrb[43].mxu1 }
 0x156   : > { %2337 = vst.msk [vmem:[%s3447_s12 + $0x50] sm:$0xf] %vm2316_vm3, %v2864_v55  ;;  %2401 = vst.msk [vmem:[%s3447_s12 + $0x150] sm:$0xf] %vm2316_vm3, %v2928_v56  ;;  %v2865_v61 = vpack.c.bf16 %v1697_v57, %v1697_v57  ;;  %v2929_v62 = vpack.c.bf16 %v1761_v58, %v1761_v58 }
 0x158   : > { %2338 = vst.msk [vmem:[%s3447_s12 + $0x54] sm:$0xf] %vm2316_vm3, %v2865_v61  ;;  %2402 = vst.msk [vmem:[%s3447_s12 + $0x154] sm:$0xf] %vm2316_vm3, %v2929_v62 }
 0x159   : > { %v1253_v63 = vpop.f32.mrb[44].mxu0  ;;  %v1509_v0 = vpop.f32.mrb[44].mxu1 }
 0x15a   : > { %v1698_v1 = vmax.f32 %v1253_v63, 0.0  ;;  %v1762_v2 = vmax.f32 %v1509_v0, 0.0  ;;  %v1255_v3 = vpop.f32.mrb[45].mxu0  ;;  %v1511_v4 = vpop.f32.mrb[45].mxu1 }
 0x15b   : > { %v1256_v5 = vpop.f32.mrb[46].mxu0  ;;  %v1512_v6 = vpop.f32.mrb[46].mxu1 }
 0x15c   : > { %v2866_v7 = vpack.c.bf16 %v1698_v1, %v1698_v1  ;;  %v2930_v8 = vpack.c.bf16 %v1762_v2, %v1762_v2  ;;  %v1699_v9 = vmax.f32 %v1256_v5, 0.0  ;;  %v1763_v10 = vmax.f32 %v1512_v6, 0.0  ;;  %v1258_v11 = vpop.f32.mrb[47].mxu0  ;;  %v1514_v12 = vpop.f32.mrb[47].mxu1 }
 0x15e   : > { %2339 = vst.msk [vmem:[%s3447_s12 + $0x58] sm:$0xf] %vm2316_vm3, %v2866_v7  ;;  %2403 = vst.msk [vmem:[%s3447_s12 + $0x158] sm:$0xf] %vm2316_vm3, %v2930_v8  ;;  %v2867_v13 = vpack.c.bf16 %v1699_v9, %v1699_v9  ;;  %v2931_v14 = vpack.c.bf16 %v1763_v10, %v1763_v10 }
 0x160   : > { %2340 = vst.msk [vmem:[%s3447_s12 + $0x5c] sm:$0xf] %vm2316_vm3, %v2867_v13  ;;  %2404 = vst.msk [vmem:[%s3447_s12 + $0x15c] sm:$0xf] %vm2316_vm3, %v2931_v14 }
 0x161   : > { %v1261_v15 = vpop.f32.mrb[48].mxu0  ;;  %v1517_v16 = vpop.f32.mrb[48].mxu1 }
 0x162   : > { %v1700_v17 = vmax.f32 %v1261_v15, 0.0  ;;  %v1764_v18 = vmax.f32 %v1517_v16, 0.0  ;;  %v1263_v19 = vpop.f32.mrb[49].mxu0  ;;  %v1519_v20 = vpop.f32.mrb[49].mxu1 }
 0x163   : > { %v1264_v21 = vpop.f32.mrb[50].mxu0  ;;  %v1520_v22 = vpop.f32.mrb[50].mxu1 }
 0x164   : > { %v2868_v23 = vpack.c.bf16 %v1700_v17, %v1700_v17  ;;  %v2932_v24 = vpack.c.bf16 %v1764_v18, %v1764_v18  ;;  %v1701_v25 = vmax.f32 %v1264_v21, 0.0  ;;  %v1765_v26 = vmax.f32 %v1520_v22, 0.0  ;;  %v1266_v27 = vpop.f32.mrb[51].mxu0  ;;  %v1522_v28 = vpop.f32.mrb[51].mxu1 }
 0x166   : > { %2341 = vst.msk [vmem:[%s3447_s12 + $0x60] sm:$0xf] %vm2316_vm3, %v2868_v23  ;;  %2405 = vst.msk [vmem:[%s3447_s12 + $0x160] sm:$0xf] %vm2316_vm3, %v2932_v24  ;;  %v2869_v29 = vpack.c.bf16 %v1701_v25, %v1701_v25  ;;  %v2933_v30 = vpack.c.bf16 %v1765_v26, %v1765_v26 }
 0x168   : > { %2342 = vst.msk [vmem:[%s3447_s12 + $0x64] sm:$0xf] %vm2316_vm3, %v2869_v29  ;;  %2406 = vst.msk [vmem:[%s3447_s12 + $0x164] sm:$0xf] %vm2316_vm3, %v2933_v30 }
 0x169   : > { %v1269_v31 = vpop.f32.mrb[52].mxu0  ;;  %v1525_v32 = vpop.f32.mrb[52].mxu1 }
 0x16a   : > { %v1702_v33 = vmax.f32 %v1269_v31, 0.0  ;;  %v1766_v34 = vmax.f32 %v1525_v32, 0.0  ;;  %v1271_v35 = vpop.f32.mrb[53].mxu0  ;;  %v1527_v36 = vpop.f32.mrb[53].mxu1 }
 0x16b   : > { %v1272_v37 = vpop.f32.mrb[54].mxu0  ;;  %v1528_v38 = vpop.f32.mrb[54].mxu1 }
 0x16c   : > { %v2870_v39 = vpack.c.bf16 %v1702_v33, %v1702_v33  ;;  %v2934_v40 = vpack.c.bf16 %v1766_v34, %v1766_v34  ;;  %v1703_v41 = vmax.f32 %v1272_v37, 0.0  ;;  %v1767_v42 = vmax.f32 %v1528_v38, 0.0  ;;  %v1274_v43 = vpop.f32.mrb[55].mxu0  ;;  %v1530_v44 = vpop.f32.mrb[55].mxu1 }
 0x16e   : > { %2343 = vst.msk [vmem:[%s3447_s12 + $0x68] sm:$0xf] %vm2316_vm3, %v2870_v39  ;;  %2407 = vst.msk [vmem:[%s3447_s12 + $0x168] sm:$0xf] %vm2316_vm3, %v2934_v40  ;;  %v2871_v45 = vpack.c.bf16 %v1703_v41, %v1703_v41  ;;  %v2935_v46 = vpack.c.bf16 %v1767_v42, %v1767_v42 }
 0x170   : > { %2344 = vst.msk [vmem:[%s3447_s12 + $0x6c] sm:$0xf] %vm2316_vm3, %v2871_v45  ;;  %2408 = vst.msk [vmem:[%s3447_s12 + $0x16c] sm:$0xf] %vm2316_vm3, %v2935_v46 }
 0x171   : > { %v1277_v47 = vpop.f32.mrb[56].mxu0  ;;  %v1533_v48 = vpop.f32.mrb[56].mxu1 }
 0x172   : > { %v1704_v49 = vmax.f32 %v1277_v47, 0.0  ;;  %v1768_v50 = vmax.f32 %v1533_v48, 0.0  ;;  %v1279_v51 = vpop.f32.mrb[57].mxu0  ;;  %v1535_v52 = vpop.f32.mrb[57].mxu1 }
 0x173   : > { %v1280_v53 = vpop.f32.mrb[58].mxu0  ;;  %v1536_v54 = vpop.f32.mrb[58].mxu1 }
 0x174   : > { %v2872_v55 = vpack.c.bf16 %v1704_v49, %v1704_v49  ;;  %v2936_v56 = vpack.c.bf16 %v1768_v50, %v1768_v50  ;;  %v1705_v57 = vmax.f32 %v1280_v53, 0.0  ;;  %v1769_v58 = vmax.f32 %v1536_v54, 0.0  ;;  %v1282_v59 = vpop.f32.mrb[59].mxu0  ;;  %v1538_v60 = vpop.f32.mrb[59].mxu1 }
 0x176   : > { %2345 = vst.msk [vmem:[%s3447_s12 + $0x70] sm:$0xf] %vm2316_vm3, %v2872_v55  ;;  %2409 = vst.msk [vmem:[%s3447_s12 + $0x170] sm:$0xf] %vm2316_vm3, %v2936_v56  ;;  %v2873_v61 = vpack.c.bf16 %v1705_v57, %v1705_v57  ;;  %v2937_v62 = vpack.c.bf16 %v1769_v58, %v1769_v58 }
 0x178   : > { %2346 = vst.msk [vmem:[%s3447_s12 + $0x74] sm:$0xf] %vm2316_vm3, %v2873_v61  ;;  %2410 = vst.msk [vmem:[%s3447_s12 + $0x174] sm:$0xf] %vm2316_vm3, %v2937_v62 }
 0x179   : > { %v1285_v63 = vpop.f32.mrb[60].mxu0  ;;  %v1541_v0 = vpop.f32.mrb[60].mxu1 }
 0x17a   : > { %v1706_v1 = vmax.f32 %v1285_v63, 0.0  ;;  %v1770_v2 = vmax.f32 %v1541_v0, 0.0  ;;  %v1287_v3 = vpop.f32.mrb[61].mxu0  ;;  %v1543_v4 = vpop.f32.mrb[61].mxu1 }
 0x17b   : > { %v1288_v5 = vpop.f32.mrb[62].mxu0  ;;  %v1544_v6 = vpop.f32.mrb[62].mxu1 }
 0x17c   : > { %v2874_v7 = vpack.c.bf16 %v1706_v1, %v1706_v1  ;;  %v2938_v8 = vpack.c.bf16 %v1770_v2, %v1770_v2  ;;  %v1707_v9 = vmax.f32 %v1288_v5, 0.0  ;;  %v1771_v10 = vmax.f32 %v1544_v6, 0.0  ;;  %v1290_v11 = vpop.f32.mrb[63].mxu0  ;;  %v1546_v12 = vpop.f32.mrb[63].mxu1 }
 0x17e   : > { %2347 = vst.msk [vmem:[%s3447_s12 + $0x78] sm:$0xf] %vm2316_vm3, %v2874_v7  ;;  %2411 = vst.msk [vmem:[%s3447_s12 + $0x178] sm:$0xf] %vm2316_vm3, %v2938_v8  ;;  %v2875_v13 = vpack.c.bf16 %v1707_v9, %v1707_v9  ;;  %v2939_v14 = vpack.c.bf16 %v1771_v10, %v1771_v10 }
 0x180   : > { %2348 = vst.msk [vmem:[%s3447_s12 + $0x7c] sm:$0xf] %vm2316_vm3, %v2875_v13  ;;  %2412 = vst.msk [vmem:[%s3447_s12 + $0x17c] sm:$0xf] %vm2316_vm3, %v2939_v14 }
 0x181   : > { %v1293_v15 = vpop.f32.mrb[64].mxu0  ;;  %v1549_v16 = vpop.f32.mrb[64].mxu1 }
 0x182   : > { %v1708_v17 = vmax.f32 %v1293_v15, 0.0  ;;  %v1772_v18 = vmax.f32 %v1549_v16, 0.0  ;;  %v1295_v19 = vpop.f32.mrb[65].mxu0  ;;  %v1551_v20 = vpop.f32.mrb[65].mxu1 }
 0x183   : > { %v1296_v21 = vpop.f32.mrb[66].mxu0  ;;  %v1552_v22 = vpop.f32.mrb[66].mxu1 }
 0x184   : > { %v2876_v23 = vpack.c.bf16 %v1708_v17, %v1708_v17  ;;  %v2940_v24 = vpack.c.bf16 %v1772_v18, %v1772_v18  ;;  %v1709_v25 = vmax.f32 %v1296_v21, 0.0  ;;  %v1773_v26 = vmax.f32 %v1552_v22, 0.0  ;;  %v1298_v27 = vpop.f32.mrb[67].mxu0  ;;  %v1554_v28 = vpop.f32.mrb[67].mxu1 }
 0x186   : > { %2349 = vst.msk [vmem:[%s3447_s12 + $0x80] sm:$0xf] %vm2316_vm3, %v2876_v23  ;;  %2413 = vst.msk [vmem:[%s3447_s12 + $0x180] sm:$0xf] %vm2316_vm3, %v2940_v24  ;;  %v2877_v29 = vpack.c.bf16 %v1709_v25, %v1709_v25  ;;  %v2941_v30 = vpack.c.bf16 %v1773_v26, %v1773_v26 }
 0x188   : > { %2350 = vst.msk [vmem:[%s3447_s12 + $0x84] sm:$0xf] %vm2316_vm3, %v2877_v29  ;;  %2414 = vst.msk [vmem:[%s3447_s12 + $0x184] sm:$0xf] %vm2316_vm3, %v2941_v30 }
 0x189   : > { %v1301_v31 = vpop.f32.mrb[68].mxu0  ;;  %v1557_v32 = vpop.f32.mrb[68].mxu1 }
 0x18a   : > { %v1710_v33 = vmax.f32 %v1301_v31, 0.0  ;;  %v1774_v34 = vmax.f32 %v1557_v32, 0.0  ;;  %v1303_v35 = vpop.f32.mrb[69].mxu0  ;;  %v1559_v36 = vpop.f32.mrb[69].mxu1 }
 0x18b   : > { %v1304_v37 = vpop.f32.mrb[70].mxu0  ;;  %v1560_v38 = vpop.f32.mrb[70].mxu1 }
 0x18c   : > { %v2878_v39 = vpack.c.bf16 %v1710_v33, %v1710_v33  ;;  %v2942_v40 = vpack.c.bf16 %v1774_v34, %v1774_v34  ;;  %v1711_v41 = vmax.f32 %v1304_v37, 0.0  ;;  %v1775_v42 = vmax.f32 %v1560_v38, 0.0  ;;  %v1306_v43 = vpop.f32.mrb[71].mxu0  ;;  %v1562_v44 = vpop.f32.mrb[71].mxu1 }
 0x18e   : > { %2351 = vst.msk [vmem:[%s3447_s12 + $0x88] sm:$0xf] %vm2316_vm3, %v2878_v39  ;;  %2415 = vst.msk [vmem:[%s3447_s12 + $0x188] sm:$0xf] %vm2316_vm3, %v2942_v40  ;;  %v2879_v45 = vpack.c.bf16 %v1711_v41, %v1711_v41  ;;  %v2943_v46 = vpack.c.bf16 %v1775_v42, %v1775_v42 }
 0x190   : > { %2352 = vst.msk [vmem:[%s3447_s12 + $0x8c] sm:$0xf] %vm2316_vm3, %v2879_v45  ;;  %2416 = vst.msk [vmem:[%s3447_s12 + $0x18c] sm:$0xf] %vm2316_vm3, %v2943_v46 }
 0x191   : > { %v1309_v47 = vpop.f32.mrb[72].mxu0  ;;  %v1565_v48 = vpop.f32.mrb[72].mxu1 }
 0x192   : > { %v1712_v49 = vmax.f32 %v1309_v47, 0.0  ;;  %v1776_v50 = vmax.f32 %v1565_v48, 0.0  ;;  %v1311_v51 = vpop.f32.mrb[73].mxu0  ;;  %v1567_v52 = vpop.f32.mrb[73].mxu1 }
 0x193   : > { %v1312_v53 = vpop.f32.mrb[74].mxu0  ;;  %v1568_v54 = vpop.f32.mrb[74].mxu1 }
 0x194   : > { %v2880_v55 = vpack.c.bf16 %v1712_v49, %v1712_v49  ;;  %v2944_v56 = vpack.c.bf16 %v1776_v50, %v1776_v50  ;;  %v1713_v57 = vmax.f32 %v1312_v53, 0.0  ;;  %v1777_v58 = vmax.f32 %v1568_v54, 0.0  ;;  %v1314_v59 = vpop.f32.mrb[75].mxu0  ;;  %v1570_v60 = vpop.f32.mrb[75].mxu1 }
 0x196   : > { %2353 = vst.msk [vmem:[%s3447_s12 + $0x90] sm:$0xf] %vm2316_vm3, %v2880_v55  ;;  %2417 = vst.msk [vmem:[%s3447_s12 + $0x190] sm:$0xf] %vm2316_vm3, %v2944_v56  ;;  %v2881_v61 = vpack.c.bf16 %v1713_v57, %v1713_v57  ;;  %v2945_v62 = vpack.c.bf16 %v1777_v58, %v1777_v58 }
 0x198   : > { %2354 = vst.msk [vmem:[%s3447_s12 + $0x94] sm:$0xf] %vm2316_vm3, %v2881_v61  ;;  %2418 = vst.msk [vmem:[%s3447_s12 + $0x194] sm:$0xf] %vm2316_vm3, %v2945_v62 }
 0x199   : > { %v1317_v63 = vpop.f32.mrb[76].mxu0  ;;  %v1573_v0 = vpop.f32.mrb[76].mxu1 }
 0x19a   : > { %v1714_v1 = vmax.f32 %v1317_v63, 0.0  ;;  %v1778_v2 = vmax.f32 %v1573_v0, 0.0  ;;  %v1319_v3 = vpop.f32.mrb[77].mxu0  ;;  %v1575_v4 = vpop.f32.mrb[77].mxu1 }
 0x19b   : > { %v1320_v5 = vpop.f32.mrb[78].mxu0  ;;  %v1576_v6 = vpop.f32.mrb[78].mxu1 }
 0x19c   : > { %v2882_v7 = vpack.c.bf16 %v1714_v1, %v1714_v1  ;;  %v2946_v8 = vpack.c.bf16 %v1778_v2, %v1778_v2  ;;  %v1715_v9 = vmax.f32 %v1320_v5, 0.0  ;;  %v1779_v10 = vmax.f32 %v1576_v6, 0.0  ;;  %v1322_v11 = vpop.f32.mrb[79].mxu0  ;;  %v1578_v12 = vpop.f32.mrb[79].mxu1 }
 0x19e   : > { %2355 = vst.msk [vmem:[%s3447_s12 + $0x98] sm:$0xf] %vm2316_vm3, %v2882_v7  ;;  %2419 = vst.msk [vmem:[%s3447_s12 + $0x198] sm:$0xf] %vm2316_vm3, %v2946_v8  ;;  %v2883_v13 = vpack.c.bf16 %v1715_v9, %v1715_v9  ;;  %v2947_v14 = vpack.c.bf16 %v1779_v10, %v1779_v10 }
 0x1a0   : > { %2356 = vst.msk [vmem:[%s3447_s12 + $0x9c] sm:$0xf] %vm2316_vm3, %v2883_v13  ;;  %2420 = vst.msk [vmem:[%s3447_s12 + $0x19c] sm:$0xf] %vm2316_vm3, %v2947_v14 }
 0x1a1   : > { %v1325_v15 = vpop.f32.mrb[80].mxu0  ;;  %v1581_v16 = vpop.f32.mrb[80].mxu1 }
 0x1a2   : > { %v1716_v17 = vmax.f32 %v1325_v15, 0.0  ;;  %v1780_v18 = vmax.f32 %v1581_v16, 0.0  ;;  %v1327_v19 = vpop.f32.mrb[81].mxu0  ;;  %v1583_v20 = vpop.f32.mrb[81].mxu1 }
 0x1a3   : > { %v1328_v21 = vpop.f32.mrb[82].mxu0  ;;  %v1584_v22 = vpop.f32.mrb[82].mxu1 }
 0x1a4   : > { %v2884_v23 = vpack.c.bf16 %v1716_v17, %v1716_v17  ;;  %v2948_v24 = vpack.c.bf16 %v1780_v18, %v1780_v18  ;;  %v1717_v25 = vmax.f32 %v1328_v21, 0.0  ;;  %v1781_v26 = vmax.f32 %v1584_v22, 0.0  ;;  %v1330_v27 = vpop.f32.mrb[83].mxu0  ;;  %v1586_v28 = vpop.f32.mrb[83].mxu1 }
 0x1a6   : > { %2357 = vst.msk [vmem:[%s3447_s12 + $0xa0] sm:$0xf] %vm2316_vm3, %v2884_v23  ;;  %2421 = vst.msk [vmem:[%s3447_s12 + $0x1a0] sm:$0xf] %vm2316_vm3, %v2948_v24  ;;  %v2885_v29 = vpack.c.bf16 %v1717_v25, %v1717_v25  ;;  %v2949_v30 = vpack.c.bf16 %v1781_v26, %v1781_v26 }
 0x1a8   : > { %2358 = vst.msk [vmem:[%s3447_s12 + $0xa4] sm:$0xf] %vm2316_vm3, %v2885_v29  ;;  %2422 = vst.msk [vmem:[%s3447_s12 + $0x1a4] sm:$0xf] %vm2316_vm3, %v2949_v30 }
 0x1a9   : > { %v1333_v31 = vpop.f32.mrb[84].mxu0  ;;  %v1589_v32 = vpop.f32.mrb[84].mxu1 }
 0x1aa   : > { %v1718_v33 = vmax.f32 %v1333_v31, 0.0  ;;  %v1782_v34 = vmax.f32 %v1589_v32, 0.0  ;;  %v1335_v35 = vpop.f32.mrb[85].mxu0  ;;  %v1591_v36 = vpop.f32.mrb[85].mxu1 }
 0x1ab   : > { %v1336_v37 = vpop.f32.mrb[86].mxu0  ;;  %v1592_v38 = vpop.f32.mrb[86].mxu1 }
 0x1ac   : > { %v2886_v39 = vpack.c.bf16 %v1718_v33, %v1718_v33  ;;  %v2950_v40 = vpack.c.bf16 %v1782_v34, %v1782_v34  ;;  %v1719_v41 = vmax.f32 %v1336_v37, 0.0  ;;  %v1783_v42 = vmax.f32 %v1592_v38, 0.0  ;;  %v1338_v43 = vpop.f32.mrb[87].mxu0  ;;  %v1594_v44 = vpop.f32.mrb[87].mxu1 }
 0x1ae   : > { %2359 = vst.msk [vmem:[%s3447_s12 + $0xa8] sm:$0xf] %vm2316_vm3, %v2886_v39  ;;  %2423 = vst.msk [vmem:[%s3447_s12 + $0x1a8] sm:$0xf] %vm2316_vm3, %v2950_v40  ;;  %v2887_v45 = vpack.c.bf16 %v1719_v41, %v1719_v41  ;;  %v2951_v46 = vpack.c.bf16 %v1783_v42, %v1783_v42 }
 0x1b0   : > { %2360 = vst.msk [vmem:[%s3447_s12 + $0xac] sm:$0xf] %vm2316_vm3, %v2887_v45  ;;  %2424 = vst.msk [vmem:[%s3447_s12 + $0x1ac] sm:$0xf] %vm2316_vm3, %v2951_v46 }
 0x1b1   : > { %v1341_v47 = vpop.f32.mrb[88].mxu0  ;;  %v1597_v48 = vpop.f32.mrb[88].mxu1 }
 0x1b2   : > { %v1720_v49 = vmax.f32 %v1341_v47, 0.0  ;;  %v1784_v50 = vmax.f32 %v1597_v48, 0.0  ;;  %v1343_v51 = vpop.f32.mrb[89].mxu0  ;;  %v1599_v52 = vpop.f32.mrb[89].mxu1 }
 0x1b3   : > { %v1344_v53 = vpop.f32.mrb[90].mxu0  ;;  %v1600_v54 = vpop.f32.mrb[90].mxu1 }
 0x1b4   : > { %v2888_v55 = vpack.c.bf16 %v1720_v49, %v1720_v49  ;;  %v2952_v56 = vpack.c.bf16 %v1784_v50, %v1784_v50  ;;  %v1721_v57 = vmax.f32 %v1344_v53, 0.0  ;;  %v1785_v58 = vmax.f32 %v1600_v54, 0.0  ;;  %v1346_v59 = vpop.f32.mrb[91].mxu0  ;;  %v1602_v60 = vpop.f32.mrb[91].mxu1 }
 0x1b6   : > { %2361 = vst.msk [vmem:[%s3447_s12 + $0xb0] sm:$0xf] %vm2316_vm3, %v2888_v55  ;;  %2425 = vst.msk [vmem:[%s3447_s12 + $0x1b0] sm:$0xf] %vm2316_vm3, %v2952_v56  ;;  %v2889_v61 = vpack.c.bf16 %v1721_v57, %v1721_v57  ;;  %v2953_v62 = vpack.c.bf16 %v1785_v58, %v1785_v58 }
 0x1b8   : > { %2362 = vst.msk [vmem:[%s3447_s12 + $0xb4] sm:$0xf] %vm2316_vm3, %v2889_v61  ;;  %2426 = vst.msk [vmem:[%s3447_s12 + $0x1b4] sm:$0xf] %vm2316_vm3, %v2953_v62 }
 0x1b9   : > { %v1349_v63 = vpop.f32.mrb[92].mxu0  ;;  %v1605_v0 = vpop.f32.mrb[92].mxu1 }
 0x1ba   : > { %v1722_v1 = vmax.f32 %v1349_v63, 0.0  ;;  %v1786_v2 = vmax.f32 %v1605_v0, 0.0  ;;  %v1351_v3 = vpop.f32.mrb[93].mxu0  ;;  %v1607_v4 = vpop.f32.mrb[93].mxu1 }
 0x1bb   : > { %v1352_v5 = vpop.f32.mrb[94].mxu0  ;;  %v1608_v6 = vpop.f32.mrb[94].mxu1 }
 0x1bc   : > { %v2890_v7 = vpack.c.bf16 %v1722_v1, %v1722_v1  ;;  %v2954_v8 = vpack.c.bf16 %v1786_v2, %v1786_v2  ;;  %v1723_v9 = vmax.f32 %v1352_v5, 0.0  ;;  %v1787_v10 = vmax.f32 %v1608_v6, 0.0  ;;  %v1354_v11 = vpop.f32.mrb[95].mxu0  ;;  %v1610_v12 = vpop.f32.mrb[95].mxu1 }
 0x1be   : > { %2363 = vst.msk [vmem:[%s3447_s12 + $0xb8] sm:$0xf] %vm2316_vm3, %v2890_v7  ;;  %2427 = vst.msk [vmem:[%s3447_s12 + $0x1b8] sm:$0xf] %vm2316_vm3, %v2954_v8  ;;  %v2891_v13 = vpack.c.bf16 %v1723_v9, %v1723_v9  ;;  %v2955_v14 = vpack.c.bf16 %v1787_v10, %v1787_v10 }
 0x1c0   : > { %2364 = vst.msk [vmem:[%s3447_s12 + $0xbc] sm:$0xf] %vm2316_vm3, %v2891_v13  ;;  %2428 = vst.msk [vmem:[%s3447_s12 + $0x1bc] sm:$0xf] %vm2316_vm3, %v2955_v14 }
 0x1c1   : > { %v1357_v15 = vpop.f32.mrb[96].mxu0  ;;  %v1613_v16 = vpop.f32.mrb[96].mxu1 }
 0x1c2   : > { %v1724_v17 = vmax.f32 %v1357_v15, 0.0  ;;  %v1788_v18 = vmax.f32 %v1613_v16, 0.0  ;;  %v1359_v19 = vpop.f32.mrb[97].mxu0  ;;  %v1615_v20 = vpop.f32.mrb[97].mxu1 }
 0x1c3   : > { %v1360_v21 = vpop.f32.mrb[98].mxu0  ;;  %v1616_v22 = vpop.f32.mrb[98].mxu1 }
 0x1c4   : > { %v2892_v23 = vpack.c.bf16 %v1724_v17, %v1724_v17  ;;  %v2956_v24 = vpack.c.bf16 %v1788_v18, %v1788_v18  ;;  %v1725_v25 = vmax.f32 %v1360_v21, 0.0  ;;  %v1789_v26 = vmax.f32 %v1616_v22, 0.0  ;;  %v1362_v27 = vpop.f32.mrb[99].mxu0  ;;  %v1618_v28 = vpop.f32.mrb[99].mxu1 }
 0x1c6   : > { %2365 = vst.msk [vmem:[%s3447_s12 + $0xc0] sm:$0xf] %vm2316_vm3, %v2892_v23  ;;  %2429 = vst.msk [vmem:[%s3447_s12 + $0x1c0] sm:$0xf] %vm2316_vm3, %v2956_v24  ;;  %v2893_v29 = vpack.c.bf16 %v1725_v25, %v1725_v25  ;;  %v2957_v30 = vpack.c.bf16 %v1789_v26, %v1789_v26 }
 0x1c8   : > { %2366 = vst.msk [vmem:[%s3447_s12 + $0xc4] sm:$0xf] %vm2316_vm3, %v2893_v29  ;;  %2430 = vst.msk [vmem:[%s3447_s12 + $0x1c4] sm:$0xf] %vm2316_vm3, %v2957_v30 }
 0x1c9   : > { %v1365_v31 = vpop.f32.mrb[100].mxu0  ;;  %v1621_v32 = vpop.f32.mrb[100].mxu1 }
 0x1ca   : > { %v1726_v33 = vmax.f32 %v1365_v31, 0.0  ;;  %v1790_v34 = vmax.f32 %v1621_v32, 0.0  ;;  %v1367_v35 = vpop.f32.mrb[101].mxu0  ;;  %v1623_v36 = vpop.f32.mrb[101].mxu1 }
 0x1cb   : > { %v1368_v37 = vpop.f32.mrb[102].mxu0  ;;  %v1624_v38 = vpop.f32.mrb[102].mxu1 }
 0x1cc   : > { %v2894_v39 = vpack.c.bf16 %v1726_v33, %v1726_v33  ;;  %v2958_v40 = vpack.c.bf16 %v1790_v34, %v1790_v34  ;;  %v1727_v41 = vmax.f32 %v1368_v37, 0.0  ;;  %v1791_v42 = vmax.f32 %v1624_v38, 0.0  ;;  %v1370_v43 = vpop.f32.mrb[103].mxu0  ;;  %v1626_v44 = vpop.f32.mrb[103].mxu1 }
 0x1ce   : > { %2367 = vst.msk [vmem:[%s3447_s12 + $0xc8] sm:$0xf] %vm2316_vm3, %v2894_v39  ;;  %2431 = vst.msk [vmem:[%s3447_s12 + $0x1c8] sm:$0xf] %vm2316_vm3, %v2958_v40  ;;  %v2895_v45 = vpack.c.bf16 %v1727_v41, %v1727_v41  ;;  %v2959_v46 = vpack.c.bf16 %v1791_v42, %v1791_v42 }
 0x1d0   : > { %2368 = vst.msk [vmem:[%s3447_s12 + $0xcc] sm:$0xf] %vm2316_vm3, %v2895_v45  ;;  %2432 = vst.msk [vmem:[%s3447_s12 + $0x1cc] sm:$0xf] %vm2316_vm3, %v2959_v46 }
 0x1d1   : > { %v1373_v47 = vpop.f32.mrb[104].mxu0  ;;  %v1629_v48 = vpop.f32.mrb[104].mxu1 }
 0x1d2   : > { %v1728_v49 = vmax.f32 %v1373_v47, 0.0  ;;  %v1792_v50 = vmax.f32 %v1629_v48, 0.0  ;;  %v1375_v51 = vpop.f32.mrb[105].mxu0  ;;  %v1631_v52 = vpop.f32.mrb[105].mxu1 }
 0x1d3   : > { %v1376_v53 = vpop.f32.mrb[106].mxu0  ;;  %v1632_v54 = vpop.f32.mrb[106].mxu1 }
 0x1d4   : > { %v2896_v55 = vpack.c.bf16 %v1728_v49, %v1728_v49  ;;  %v2960_v56 = vpack.c.bf16 %v1792_v50, %v1792_v50  ;;  %v1729_v57 = vmax.f32 %v1376_v53, 0.0  ;;  %v1793_v58 = vmax.f32 %v1632_v54, 0.0  ;;  %v1378_v59 = vpop.f32.mrb[107].mxu0  ;;  %v1634_v60 = vpop.f32.mrb[107].mxu1 }
 0x1d6   : > { %2369 = vst.msk [vmem:[%s3447_s12 + $0xd0] sm:$0xf] %vm2316_vm3, %v2896_v55  ;;  %2433 = vst.msk [vmem:[%s3447_s12 + $0x1d0] sm:$0xf] %vm2316_vm3, %v2960_v56  ;;  %v2897_v61 = vpack.c.bf16 %v1729_v57, %v1729_v57  ;;  %v2961_v62 = vpack.c.bf16 %v1793_v58, %v1793_v58 }
 0x1d8   : > { %2370 = vst.msk [vmem:[%s3447_s12 + $0xd4] sm:$0xf] %vm2316_vm3, %v2897_v61  ;;  %2434 = vst.msk [vmem:[%s3447_s12 + $0x1d4] sm:$0xf] %vm2316_vm3, %v2961_v62 }
 0x1d9   : > { %v1381_v63 = vpop.f32.mrb[108].mxu0  ;;  %v1637_v0 = vpop.f32.mrb[108].mxu1 }
 0x1da   : > { %v1730_v1 = vmax.f32 %v1381_v63, 0.0  ;;  %v1794_v2 = vmax.f32 %v1637_v0, 0.0  ;;  %v1383_v3 = vpop.f32.mrb[109].mxu0  ;;  %v1639_v4 = vpop.f32.mrb[109].mxu1 }
 0x1db   : > { %v1384_v5 = vpop.f32.mrb[110].mxu0  ;;  %v1640_v6 = vpop.f32.mrb[110].mxu1 }
 0x1dc   : > { %v2898_v7 = vpack.c.bf16 %v1730_v1, %v1730_v1  ;;  %v2962_v8 = vpack.c.bf16 %v1794_v2, %v1794_v2  ;;  %v1731_v9 = vmax.f32 %v1384_v5, 0.0  ;;  %v1795_v10 = vmax.f32 %v1640_v6, 0.0  ;;  %v1386_v11 = vpop.f32.mrb[111].mxu0  ;;  %v1642_v12 = vpop.f32.mrb[111].mxu1 }
 0x1de   : > { %2371 = vst.msk [vmem:[%s3447_s12 + $0xd8] sm:$0xf] %vm2316_vm3, %v2898_v7  ;;  %2435 = vst.msk [vmem:[%s3447_s12 + $0x1d8] sm:$0xf] %vm2316_vm3, %v2962_v8  ;;  %v2899_v13 = vpack.c.bf16 %v1731_v9, %v1731_v9  ;;  %v2963_v14 = vpack.c.bf16 %v1795_v10, %v1795_v10 }
 0x1e0   : > { %2372 = vst.msk [vmem:[%s3447_s12 + $0xdc] sm:$0xf] %vm2316_vm3, %v2899_v13  ;;  %2436 = vst.msk [vmem:[%s3447_s12 + $0x1dc] sm:$0xf] %vm2316_vm3, %v2963_v14 }
 0x1e1   : > { %v1389_v15 = vpop.f32.mrb[112].mxu0  ;;  %v1645_v16 = vpop.f32.mrb[112].mxu1 }
 0x1e2   : > { %v1732_v17 = vmax.f32 %v1389_v15, 0.0  ;;  %v1796_v18 = vmax.f32 %v1645_v16, 0.0  ;;  %v1391_v19 = vpop.f32.mrb[113].mxu0  ;;  %v1647_v20 = vpop.f32.mrb[113].mxu1 }
 0x1e3   : > { %v1392_v21 = vpop.f32.mrb[114].mxu0  ;;  %v1648_v22 = vpop.f32.mrb[114].mxu1 }
 0x1e4   : > { %v2900_v23 = vpack.c.bf16 %v1732_v17, %v1732_v17  ;;  %v2964_v24 = vpack.c.bf16 %v1796_v18, %v1796_v18  ;;  %v1733_v25 = vmax.f32 %v1392_v21, 0.0  ;;  %v1797_v26 = vmax.f32 %v1648_v22, 0.0  ;;  %v1394_v27 = vpop.f32.mrb[115].mxu0  ;;  %v1650_v28 = vpop.f32.mrb[115].mxu1 }
 0x1e6   : > { %2373 = vst.msk [vmem:[%s3447_s12 + $0xe0] sm:$0xf] %vm2316_vm3, %v2900_v23  ;;  %2437 = vst.msk [vmem:[%s3447_s12 + $0x1e0] sm:$0xf] %vm2316_vm3, %v2964_v24  ;;  %v2901_v29 = vpack.c.bf16 %v1733_v25, %v1733_v25  ;;  %v2965_v30 = vpack.c.bf16 %v1797_v26, %v1797_v26 }
 0x1e8   : > { %2374 = vst.msk [vmem:[%s3447_s12 + $0xe4] sm:$0xf] %vm2316_vm3, %v2901_v29  ;;  %2438 = vst.msk [vmem:[%s3447_s12 + $0x1e4] sm:$0xf] %vm2316_vm3, %v2965_v30 }
 0x1e9   : > { %v1397_v31 = vpop.f32.mrb[116].mxu0  ;;  %v1653_v32 = vpop.f32.mrb[116].mxu1 }
 0x1ea   : > { %v1734_v33 = vmax.f32 %v1397_v31, 0.0  ;;  %v1798_v34 = vmax.f32 %v1653_v32, 0.0  ;;  %v1399_v35 = vpop.f32.mrb[117].mxu0  ;;  %v1655_v36 = vpop.f32.mrb[117].mxu1 }
 0x1eb   : > { %v1400_v37 = vpop.f32.mrb[118].mxu0  ;;  %v1656_v38 = vpop.f32.mrb[118].mxu1 }
 0x1ec   : > { %v2902_v39 = vpack.c.bf16 %v1734_v33, %v1734_v33  ;;  %v2966_v40 = vpack.c.bf16 %v1798_v34, %v1798_v34  ;;  %v1735_v41 = vmax.f32 %v1400_v37, 0.0  ;;  %v1799_v42 = vmax.f32 %v1656_v38, 0.0  ;;  %v1402_v43 = vpop.f32.mrb[119].mxu0  ;;  %v1658_v44 = vpop.f32.mrb[119].mxu1 }
 0x1ee   : > { %2375 = vst.msk [vmem:[%s3447_s12 + $0xe8] sm:$0xf] %vm2316_vm3, %v2902_v39  ;;  %2439 = vst.msk [vmem:[%s3447_s12 + $0x1e8] sm:$0xf] %vm2316_vm3, %v2966_v40  ;;  %v2903_v45 = vpack.c.bf16 %v1735_v41, %v1735_v41  ;;  %v2967_v46 = vpack.c.bf16 %v1799_v42, %v1799_v42 }
 0x1f0   : > { %2376 = vst.msk [vmem:[%s3447_s12 + $0xec] sm:$0xf] %vm2316_vm3, %v2903_v45  ;;  %2440 = vst.msk [vmem:[%s3447_s12 + $0x1ec] sm:$0xf] %vm2316_vm3, %v2967_v46 }
 0x1f1   : > { %v1405_v47 = vpop.f32.mrb[120].mxu0  ;;  %v1661_v48 = vpop.f32.mrb[120].mxu1 }
 0x1f2   : > { %v1736_v49 = vmax.f32 %v1405_v47, 0.0  ;;  %v1800_v50 = vmax.f32 %v1661_v48, 0.0  ;;  %v1407_v51 = vpop.f32.mrb[121].mxu0  ;;  %v1663_v52 = vpop.f32.mrb[121].mxu1 }
 0x1f3   : > { %v1408_v53 = vpop.f32.mrb[122].mxu0  ;;  %v1664_v54 = vpop.f32.mrb[122].mxu1 }
 0x1f4   : > { %v2904_v55 = vpack.c.bf16 %v1736_v49, %v1736_v49  ;;  %v2968_v56 = vpack.c.bf16 %v1800_v50, %v1800_v50  ;;  %v1737_v57 = vmax.f32 %v1408_v53, 0.0  ;;  %v1801_v58 = vmax.f32 %v1664_v54, 0.0  ;;  %v1410_v59 = vpop.f32.mrb[123].mxu0  ;;  %v1666_v60 = vpop.f32.mrb[123].mxu1 }
 0x1f6   : > { %2377 = vst.msk [vmem:[%s3447_s12 + $0xf0] sm:$0xf] %vm2316_vm3, %v2904_v55  ;;  %2441 = vst.msk [vmem:[%s3447_s12 + $0x1f0] sm:$0xf] %vm2316_vm3, %v2968_v56  ;;  %v2905_v61 = vpack.c.bf16 %v1737_v57, %v1737_v57  ;;  %v2969_v62 = vpack.c.bf16 %v1801_v58, %v1801_v58 }
 0x1f8   : > { %2378 = vst.msk [vmem:[%s3447_s12 + $0xf4] sm:$0xf] %vm2316_vm3, %v2905_v61  ;;  %2442 = vst.msk [vmem:[%s3447_s12 + $0x1f4] sm:$0xf] %vm2316_vm3, %v2969_v62 }
 0x1f9   : > { %v1413_v63 = vpop.f32.mrb[124].mxu0  ;;  %v1669_v0 = vpop.f32.mrb[124].mxu1 }
 0x1fa   : > { %v1738_v1 = vmax.f32 %v1413_v63, 0.0  ;;  %v1802_v2 = vmax.f32 %v1669_v0, 0.0  ;;  %v1415_v3 = vpop.f32.mrb[125].mxu0  ;;  %v1671_v4 = vpop.f32.mrb[125].mxu1 }
 0x1fb   : > { %v1416_v5 = vpop.f32.mrb[126].mxu0  ;;  %v1672_v6 = vpop.f32.mrb[126].mxu1 }
 0x1fc   : > { %v2906_v7 = vpack.c.bf16 %v1738_v1, %v1738_v1  ;;  %v2970_v8 = vpack.c.bf16 %v1802_v2, %v1802_v2  ;;  %v1739_v9 = vmax.f32 %v1416_v5, 0.0  ;;  %v1803_v10 = vmax.f32 %v1672_v6, 0.0  ;;  %v1418_v11 = vpop.f32.mrb[127].mxu0  ;;  %v1674_v12 = vpop.f32.mrb[127].mxu1 }
 0x1fe   : > { %2379 = vst.msk [vmem:[%s3447_s12 + $0xf8] sm:$0xf] %vm2316_vm3, %v2906_v7  ;;  %2443 = vst.msk [vmem:[%s3447_s12 + $0x1f8] sm:$0xf] %vm2316_vm3, %v2970_v8  ;;  %v2907_v13 = vpack.c.bf16 %v1739_v9, %v1739_v9  ;;  %v2971_v14 = vpack.c.bf16 %v1803_v10, %v1803_v10 }
 0x200   : > { %2380 = vst.msk [vmem:[%s3447_s12 + $0xfc] sm:$0xf] %vm2316_vm3, %v2907_v13  ;;  %2444 = vst.msk [vmem:[%s3447_s12 + $0x1fc] sm:$0xf] %vm2316_vm3, %v2971_v14 }
 0x201 PF: > { %s12_s9 = sadd.s32 1, %s3210_s9  }
 0x202   : > { %p9_p4 = scmp.ge.s32.totalorder %s12_s9, 4  }
 0x204   :  { %11 = sbr.rel (!%p9_p4) target bundleno = 1 (0x1), region = 58 }

// kernel: res_tr_forward.5
= control target key start
LH: loop header
LB: loop body
LE: loop exit
PB: predicated region body
PF: predicated region fallthrough
CT: control target
= control target key end

     0   :  { %s981_s9 = smov 0   ;;  %s1117_s0 = inlined_call_operand.vmem [shape: bf16[512,64], index: 0, kind: input, shape index: {}]   ;;  %s1118_s1 = inlined_call_operand.vmem [shape: bf16[64,32], index: 1, kind: input, shape index: {}]   ;;  %s1119_s2 = inlined_call_operand.vmem [shape: bf16[512,32], index: 2, kind: output, shape index: {}]  }
   0x1 LB: > { %s751_s10 = sadd.s32 4294967295, %s964_s9   ;;  %p755_p0 = scmp.ge.s32.totalorder %s964_s9, 1  ;;  %s964_s9 = sphi %s981_s9, %s12_s9  }
   0x2   : > { %p113_p1 = scmp.lt.s32.totalorder %s964_s9, 3 }
   0x4   : > { %p114_p2 = pnand %p755_p0, %p113_p1 }
   0x5   : > { %v938_v0 = vld [vmem:[%s1118_s1] sm:$0xff] (!%p114_p2)   ;;  %s756_s13 = sshll.u32 (!%p114_p2), %s751_s10, 5  ;;  %v939_v1 = vld [vmem:[%s1118_s1 + $0x8] sm:$0xff] (!%p114_p2)   ;;  %v940_v2 = vld [vmem:[%s1118_s1 + $0x10] sm:$0xff] (!%p114_p2)   ;;  %vm292_vm0 = vcmask (!%p114_p2), 523264   ;;  %vm662_vm1 = vcmask (!%p114_p2), 257024  }
   0x6   : > { %117 = sbr.rel (%p114_p2) target bundleno = 266 (0x10a), region = 28  ;;  %p136_p3 = scmp.lt.s32.totalorder (!%p114_p2), %s756_s13, 63  ;;  %882 = vmatprep.subr.bf16.mxu0 (!%p114_p2), %v938_v0  ;;  %922 = vmatprep.subr.bf16.mxu1 (!%p114_p2), %v938_v0  ;;  %v941_v3 = vld [vmem:[%s1118_s1 + $0x18] sm:$0xff] (!%p114_p2)  }
   0x7   : > { %883 = vmatpush3.bf16.msra.mxu0 (!%p114_p2), %v938_v0  ;;  %926 = vmatpush3.bf16.msra.mxu1 (!%p114_p2), %v938_v0 }
   0x8   : > { %884 = vmatprep.subr.bf16.mxu0 (!%p114_p2), %v939_v1  ;;  %923 = vmatprep.subr.bf16.mxu1 (!%p114_p2), %v939_v1 }
   0xb   : > { %885 = vmatpush3.bf16.msra.mxu0 (!%p114_p2), %v939_v1  ;;  %927 = vmatpush3.bf16.msra.mxu1 (!%p114_p2), %v939_v1 }
   0xc   : > { %886 = vmatprep.subr.bf16.mxu0 (!%p114_p2), %v940_v2  ;;  %924 = vmatprep.subr.bf16.mxu1 (!%p114_p2), %v940_v2 }
   0xd   : > { %s1121_s13 = smov (!%p136_p3, %s756_s13), 63 }
   0xe   : > { %s757_s18 = sshll.u32 %s1121_s13, 2 }
   0xf   : > { %s1009_s23 = scalar_lea.vmem %s1117_s0, %s757_s18  ;;  %887 = vmatpush3.bf16.msra.mxu0 %v940_v2  ;;  %928 = vmatpush3.bf16.msra.mxu1 %v940_v2  ;;  %s1048_s26 = scalar_lea.vmem %s1119_s2, %s757_s18 }
  0x10   : > { %v942_v4 = vld [vmem:[%s1009_s23] sm:$0xff]   ;;  %888 = vmatprep.subr.bf16.mxu0 %v941_v3  ;;  %925 = vmatprep.subr.bf16.mxu1 %v941_v3  ;;  %v944_v6 = vld [vmem:[%s1009_s23 + $0x8] sm:$0xff]   ;;  %v946_v8 = vld [vmem:[%s1009_s23 + $0x10] sm:$0xff]  }
  0x11   : > { %v943_v5 = vld [vmem:[%s1009_s23 + $0x40] sm:$0xff]   ;;  %890 = vmatprep.mubr.msk.bf16.mxu0 %vm292_vm0, %v942_v4  ;;  %v945_v7 = vld [vmem:[%s1009_s23 + $0x48] sm:$0xff]   ;;  %v947_v9 = vld [vmem:[%s1009_s23 + $0x50] sm:$0xff]  }
  0x12   : > { %906 = vmatprep.mubr.msk.bf16.mxu1 %vm292_vm0, %v943_v5  ;;  %v948_v10 = vld [vmem:[%s1009_s23 + $0x18] sm:$0xff]   ;;  %v950_v12 = vld [vmem:[%s1009_s23 + $0x20] sm:$0xff]   ;;  %v952_v14 = vld [vmem:[%s1009_s23 + $0x28] sm:$0xff]  }
  0x13   : > { %889 = vmatpush3.bf16.msra.mxu0 %v941_v3  ;;  %929 = vmatpush3.bf16.msra.mxu1 %v941_v3  ;;  %v949_v11 = vld [vmem:[%s1009_s23 + $0x58] sm:$0xff]   ;;  %v951_v13 = vld [vmem:[%s1009_s23 + $0x60] sm:$0xff]   ;;  %v953_v15 = vld [vmem:[%s1009_s23 + $0x68] sm:$0xff]  }
  0x14   : > { %v954_v16 = vld [vmem:[%s1009_s23 + $0x30] sm:$0xff]   ;;  %v956_v18 = vld [vmem:[%s1009_s23 + $0x38] sm:$0xff]  }
  0x15   : > { %v955_v17 = vld [vmem:[%s1009_s23 + $0x70] sm:$0xff]   ;;  %v957_v19 = vld [vmem:[%s1009_s23 + $0x78] sm:$0xff]  }
  0x16   : > { %891 = vmatmul.mubr.msk.bf16.vlgmr.msra.gmra.mrb[0].mxu0 %vm292_vm0, %v944_v6  ;;  %907 = vmatmul.mubr.msk.bf16.vlgmr.msra.gmra.mrb[0].mxu1 %vm292_vm0, %v945_v7 }
  0x17   : > { %894 = vmatprep.mubr.msk.bf16.mxu0 %vm292_vm0, %v946_v8  ;;  %910 = vmatprep.mubr.msk.bf16.mxu1 %vm292_vm0, %v947_v9 }
  0x1e   : > { %895 = vmatmul.mubr.msk.bf16.gmra.mrb[4].mxu0 %vm292_vm0, %v948_v10  ;;  %911 = vmatmul.mubr.msk.bf16.gmra.mrb[4].mxu1 %vm292_vm0, %v949_v11 }
  0x1f   : > { %898 = vmatprep.mubr.msk.bf16.mxu0 %vm292_vm0, %v950_v12  ;;  %914 = vmatprep.mubr.msk.bf16.mxu1 %vm292_vm0, %v951_v13 }
  0x26   : > { %899 = vmatmul.mubr.msk.bf16.gmra.mrb[8].mxu0 %vm292_vm0, %v952_v14  ;;  %915 = vmatmul.mubr.msk.bf16.gmra.mrb[8].mxu1 %vm292_vm0, %v953_v15 }
  0x27   : > { %902 = vmatprep.mubr.msk.bf16.mxu0 %vm292_vm0, %v954_v16  ;;  %918 = vmatprep.mubr.msk.bf16.mxu1 %vm292_vm0, %v955_v17 }
  0x2e   : > { %903 = vmatmul.mubr.msk.bf16.gmra.mrb[12].mxu0 %vm292_vm0, %v956_v18  ;;  %919 = vmatmul.mubr.msk.bf16.gmra.mrb[12].mxu1 %vm292_vm0, %v957_v19 }
  0xe9   : > { %v892_v20 = vpop.f32.mrb[0].mxu0  ;;  %v908_v21 = vpop.f32.mrb[0].mxu1 }
  0xea   : > { %v504_v22 = vmax.f32 %v892_v20, 0.0  ;;  %v520_v23 = vmax.f32 %v908_v21, 0.0  ;;  %v375_v24 = vpop.f32.mrb[1].mxu0  ;;  %v439_v25 = vpop.f32.mrb[1].mxu1 }
  0xeb   : > { %v502_v26 = vmax.f32 %v375_v24, 0.0  ;;  %v518_v27 = vmax.f32 %v439_v25, 0.0  ;;  %v893_v28 = vpop.f32.mrb[2].mxu0  ;;  %v909_v29 = vpop.f32.mrb[2].mxu1 }
  0xec   : > { %v832_v30 = vpack.c.bf16 %v504_v22, %v504_v22  ;;  %v848_v31 = vpack.c.bf16 %v520_v23, %v520_v23  ;;  %v505_v32 = vmax.f32 %v893_v28, 0.0  ;;  %v521_v33 = vmax.f32 %v909_v29, 0.0  ;;  %v378_v34 = vpop.f32.mrb[3].mxu0  ;;  %v442_v35 = vpop.f32.mrb[3].mxu1 }
  0xed   : > { %v830_v36 = vpack.c.bf16 %v502_v26, %v502_v26  ;;  %v846_v37 = vpack.c.bf16 %v518_v27, %v518_v27  ;;  %v503_v38 = vmax.f32 %v378_v34, 0.0  ;;  %v519_v39 = vmax.f32 %v442_v35, 0.0 }
  0xee   : > { %665 = vst.msk [vmem:[%s1048_s26 + $0x8] sm:$0xf] %vm662_vm1, %v832_v30  ;;  %681 = vst.msk [vmem:[%s1048_s26 + $0x48] sm:$0xf] %vm662_vm1, %v848_v31  ;;  %v833_v40 = vpack.c.bf16 %v505_v32, %v505_v32  ;;  %v849_v41 = vpack.c.bf16 %v521_v33, %v521_v33 }
  0xef   : > { %663 = vst.msk [vmem:[%s1048_s26] sm:$0xf] %vm662_vm1, %v830_v36  ;;  %679 = vst.msk [vmem:[%s1048_s26 + $0x40] sm:$0xf] %vm662_vm1, %v846_v37  ;;  %v831_v42 = vpack.c.bf16 %v503_v38, %v503_v38  ;;  %v847_v43 = vpack.c.bf16 %v519_v39, %v519_v39 }
  0xf0   : > { %666 = vst.msk [vmem:[%s1048_s26 + $0xc] sm:$0xf] %vm662_vm1, %v833_v40  ;;  %682 = vst.msk [vmem:[%s1048_s26 + $0x4c] sm:$0xf] %vm662_vm1, %v849_v41 }
  0xf1   : > { %664 = vst.msk [vmem:[%s1048_s26 + $0x4] sm:$0xf] %vm662_vm1, %v831_v42  ;;  %680 = vst.msk [vmem:[%s1048_s26 + $0x44] sm:$0xf] %vm662_vm1, %v847_v43  ;;  %v896_v44 = vpop.f32.mrb[4].mxu0  ;;  %v912_v45 = vpop.f32.mrb[4].mxu1 }
  0xf2   : > { %v508_v46 = vmax.f32 %v896_v44, 0.0  ;;  %v524_v47 = vmax.f32 %v912_v45, 0.0  ;;  %v391_v48 = vpop.f32.mrb[5].mxu0  ;;  %v455_v49 = vpop.f32.mrb[5].mxu1 }
  0xf3   : > { %v506_v50 = vmax.f32 %v391_v48, 0.0  ;;  %v522_v51 = vmax.f32 %v455_v49, 0.0  ;;  %v897_v52 = vpop.f32.mrb[6].mxu0  ;;  %v913_v53 = vpop.f32.mrb[6].mxu1 }
  0xf4   : > { %v836_v54 = vpack.c.bf16 %v508_v46, %v508_v46  ;;  %v852_v55 = vpack.c.bf16 %v524_v47, %v524_v47  ;;  %v509_v56 = vmax.f32 %v897_v52, 0.0  ;;  %v525_v57 = vmax.f32 %v913_v53, 0.0  ;;  %v394_v58 = vpop.f32.mrb[7].mxu0  ;;  %v458_v59 = vpop.f32.mrb[7].mxu1 }
  0xf5   : > { %v834_v60 = vpack.c.bf16 %v506_v50, %v506_v50  ;;  %v850_v61 = vpack.c.bf16 %v522_v51, %v522_v51  ;;  %v507_v62 = vmax.f32 %v394_v58, 0.0  ;;  %v523_v63 = vmax.f32 %v458_v59, 0.0 }
  0xf6   : > { %669 = vst.msk [vmem:[%s1048_s26 + $0x18] sm:$0xf] %vm662_vm1, %v836_v54  ;;  %685 = vst.msk [vmem:[%s1048_s26 + $0x58] sm:$0xf] %vm662_vm1, %v852_v55  ;;  %v837_v0 = vpack.c.bf16 %v509_v56, %v509_v56  ;;  %v853_v1 = vpack.c.bf16 %v525_v57, %v525_v57 }
  0xf7   : > { %667 = vst.msk [vmem:[%s1048_s26 + $0x10] sm:$0xf] %vm662_vm1, %v834_v60  ;;  %683 = vst.msk [vmem:[%s1048_s26 + $0x50] sm:$0xf] %vm662_vm1, %v850_v61  ;;  %v835_v2 = vpack.c.bf16 %v507_v62, %v507_v62  ;;  %v851_v3 = vpack.c.bf16 %v523_v63, %v523_v63 }
  0xf8   : > { %670 = vst.msk [vmem:[%s1048_s26 + $0x1c] sm:$0xf] %vm662_vm1, %v837_v0  ;;  %686 = vst.msk [vmem:[%s1048_s26 + $0x5c] sm:$0xf] %vm662_vm1, %v853_v1 }
  0xf9   : > { %668 = vst.msk [vmem:[%s1048_s26 + $0x14] sm:$0xf] %vm662_vm1, %v835_v2  ;;  %684 = vst.msk [vmem:[%s1048_s26 + $0x54] sm:$0xf] %vm662_vm1, %v851_v3  ;;  %v900_v4 = vpop.f32.mrb[8].mxu0  ;;  %v916_v5 = vpop.f32.mrb[8].mxu1 }
  0xfa   : > { %v512_v6 = vmax.f32 %v900_v4, 0.0  ;;  %v528_v7 = vmax.f32 %v916_v5, 0.0  ;;  %v407_v8 = vpop.f32.mrb[9].mxu0  ;;  %v471_v9 = vpop.f32.mrb[9].mxu1 }
  0xfb   : > { %v510_v10 = vmax.f32 %v407_v8, 0.0  ;;  %v526_v11 = vmax.f32 %v471_v9, 0.0  ;;  %v901_v12 = vpop.f32.mrb[10].mxu0  ;;  %v917_v13 = vpop.f32.mrb[10].mxu1 }
  0xfc   : > { %v840_v14 = vpack.c.bf16 %v512_v6, %v512_v6  ;;  %v856_v15 = vpack.c.bf16 %v528_v7, %v528_v7  ;;  %v513_v16 = vmax.f32 %v901_v12, 0.0  ;;  %v529_v17 = vmax.f32 %v917_v13, 0.0  ;;  %v410_v18 = vpop.f32.mrb[11].mxu0  ;;  %v474_v19 = vpop.f32.mrb[11].mxu1 }
  0xfd   : > { %v838_v20 = vpack.c.bf16 %v510_v10, %v510_v10  ;;  %v854_v21 = vpack.c.bf16 %v526_v11, %v526_v11  ;;  %v511_v22 = vmax.f32 %v410_v18, 0.0  ;;  %v527_v23 = vmax.f32 %v474_v19, 0.0 }
  0xfe   : > { %673 = vst.msk [vmem:[%s1048_s26 + $0x28] sm:$0xf] %vm662_vm1, %v840_v14  ;;  %689 = vst.msk [vmem:[%s1048_s26 + $0x68] sm:$0xf] %vm662_vm1, %v856_v15  ;;  %v841_v24 = vpack.c.bf16 %v513_v16, %v513_v16  ;;  %v857_v25 = vpack.c.bf16 %v529_v17, %v529_v17 }
  0xff   : > { %671 = vst.msk [vmem:[%s1048_s26 + $0x20] sm:$0xf] %vm662_vm1, %v838_v20  ;;  %687 = vst.msk [vmem:[%s1048_s26 + $0x60] sm:$0xf] %vm662_vm1, %v854_v21  ;;  %v839_v26 = vpack.c.bf16 %v511_v22, %v511_v22  ;;  %v855_v27 = vpack.c.bf16 %v527_v23, %v527_v23 }
 0x100   : > { %674 = vst.msk [vmem:[%s1048_s26 + $0x2c] sm:$0xf] %vm662_vm1, %v841_v24  ;;  %690 = vst.msk [vmem:[%s1048_s26 + $0x6c] sm:$0xf] %vm662_vm1, %v857_v25 }
 0x101   : > { %672 = vst.msk [vmem:[%s1048_s26 + $0x24] sm:$0xf] %vm662_vm1, %v839_v26  ;;  %688 = vst.msk [vmem:[%s1048_s26 + $0x64] sm:$0xf] %vm662_vm1, %v855_v27  ;;  %v904_v28 = vpop.f32.mrb[12].mxu0  ;;  %v920_v29 = vpop.f32.mrb[12].mxu1 }
 0x102   : > { %v516_v30 = vmax.f32 %v904_v28, 0.0  ;;  %v532_v31 = vmax.f32 %v920_v29, 0.0  ;;  %v423_v32 = vpop.f32.mrb[13].mxu0  ;;  %v487_v33 = vpop.f32.mrb[13].mxu1 }
 0x103   : > { %v514_v34 = vmax.f32 %v423_v32, 0.0  ;;  %v530_v35 = vmax.f32 %v487_v33, 0.0  ;;  %v905_v36 = vpop.f32.mrb[14].mxu0  ;;  %v921_v37 = vpop.f32.mrb[14].mxu1 }
 0x104   : > { %v844_v38 = vpack.c.bf16 %v516_v30, %v516_v30  ;;  %v860_v39 = vpack.c.bf16 %v532_v31, %v532_v31  ;;  %v517_v40 = vmax.f32 %v905_v36, 0.0  ;;  %v533_v41 = vmax.f32 %v921_v37, 0.0  ;;  %v426_v42 = vpop.f32.mrb[15].mxu0  ;;  %v490_v43 = vpop.f32.mrb[15].mxu1 }
 0x105   : > { %v842_v44 = vpack.c.bf16 %v514_v34, %v514_v34  ;;  %v858_v45 = vpack.c.bf16 %v530_v35, %v530_v35  ;;  %v515_v46 = vmax.f32 %v426_v42, 0.0  ;;  %v531_v47 = vmax.f32 %v490_v43, 0.0 }
 0x106   : > { %677 = vst.msk [vmem:[%s1048_s26 + $0x38] sm:$0xf] %vm662_vm1, %v844_v38  ;;  %693 = vst.msk [vmem:[%s1048_s26 + $0x78] sm:$0xf] %vm662_vm1, %v860_v39  ;;  %v845_v48 = vpack.c.bf16 %v517_v40, %v517_v40  ;;  %v861_v49 = vpack.c.bf16 %v533_v41, %v533_v41 }
 0x107   : > { %675 = vst.msk [vmem:[%s1048_s26 + $0x30] sm:$0xf] %vm662_vm1, %v842_v44  ;;  %691 = vst.msk [vmem:[%s1048_s26 + $0x70] sm:$0xf] %vm662_vm1, %v858_v45  ;;  %v843_v50 = vpack.c.bf16 %v515_v46, %v515_v46  ;;  %v859_v51 = vpack.c.bf16 %v531_v47, %v531_v47 }
 0x108   : > { %678 = vst.msk [vmem:[%s1048_s26 + $0x3c] sm:$0xf] %vm662_vm1, %v845_v48  ;;  %694 = vst.msk [vmem:[%s1048_s26 + $0x7c] sm:$0xf] %vm662_vm1, %v861_v49 }
 0x109   : > { %676 = vst.msk [vmem:[%s1048_s26 + $0x34] sm:$0xf] %vm662_vm1, %v843_v50  ;;  %692 = vst.msk [vmem:[%s1048_s26 + $0x74] sm:$0xf] %vm662_vm1, %v859_v51 }
 0x10a PF: > { %s12_s9 = sadd.s32 1, %s964_s9  }
 0x10b   : > { %p9_p4 = scmp.ge.s32.totalorder %s12_s9, 4  }
 0x10d   :  { %11 = sbr.rel (!%p9_p4) target bundleno = 1 (0x1), region = 58 }

// kernel: res_tr_forward.6
= control target key start
LH: loop header
LB: loop body
LE: loop exit
PB: predicated region body
PF: predicated region fallthrough
CT: control target
= control target key end

     0   :  { %s1485_s21 = smov 0   ;;  %s1639_s0 = inlined_call_operand.vmem [shape: bf16[128,288], index: 0, kind: input, shape index: {}]   ;;  %s1640_s1 = inlined_call_operand.vmem [shape: bf16[128,64], index: 1, kind: input, shape index: {}]   ;;  %s1641_s2 = inlined_call_operand.vmem [shape: bf16[288,32], index: 2, kind: input, shape index: {}]   ;;  %s1642_s3 = inlined_call_operand.vmem [shape: bf16[64,96], index: 3, kind: input, shape index: {}]   ;;  %s1643_s4 = inlined_call_operand.vmem [shape: bf16[32,96], index: 4, kind: input, shape index: {}]   ;;  %s1644_s5 = inlined_call_operand.vmem [shape: bf16[96,24], index: 5, kind: input, shape index: {}]   ;;  %s1645_s6 = inlined_call_operand.vmem [shape: bf16[128,24], index: 6, kind: output, shape index: {}]  }
   0x1 LB: > { %s1142_s22 = sadd.s32 4294967295, %s1448_s21   ;;  %p1146_p0 = scmp.ge.s32.totalorder %s1448_s21, 1  ;;  %s1448_s21 = sphi %s1485_s21, %s16_s21  }
   0x2   : > { %p225_p1 = scmp.lt.s32.totalorder %s1448_s21, 3 }
   0x4   : > { %p226_p2 = pnand %p1146_p0, %p225_p1 }
   0x5   : > { %v1392_v0 = vld [vmem:[%s1641_s2 + $0x40] sm:$0xff] (!%p226_p2)   ;;  %s1147_s27 = sshll.u32 (!%p226_p2), %s1142_s22, 3  ;;  %v1394_v2 = vld [vmem:[%s1641_s2 + $0x48] sm:$0xff] (!%p226_p2)   ;;  %v1396_v4 = vld [vmem:[%s1641_s2 + $0x50] sm:$0xff] (!%p226_p2)   ;;  %vm501_vm0 = vcmask (!%p226_p2), 261120   ;;  %vm716_vm1 = vcmask (!%p226_p2), 523264  }
   0x6   : > { %229 = sbr.rel (%p226_p2) target bundleno = 725 (0x2d5), region = 44  ;;  %v1393_v1 = vld [vmem:[%s1641_s2] sm:$0xff] (!%p226_p2)   ;;  %1233 = vmatprep.subr.bf16.mxu0 (!%p226_p2), %v1392_v0  ;;  %v1395_v3 = vld [vmem:[%s1641_s2 + $0x8] sm:$0xff] (!%p226_p2)   ;;  %p262_p3 = scmp.lt.s32.totalorder (!%p226_p2), %s1147_s27, 15  ;;  %v1397_v5 = vld [vmem:[%s1641_s2 + $0x10] sm:$0xff] (!%p226_p2)   ;;  %vm947_vm2 = vcmask (!%p226_p2), 785408  }
   0x7   : > { %1234 = vmatpush3.bf16.msra.mxu0 (!%p226_p2), %v1393_v1  ;;  %v1398_v6 = vld [vmem:[%s1641_s2 + $0x58] sm:$0xff] (!%p226_p2)   ;;  %v1400_v8 = vld [vmem:[%s1641_s2 + $0x60] sm:$0xff] (!%p226_p2)   ;;  %v1402_v11 = vld [vmem:[%s1641_s2 + $0x68] sm:$0xff] (!%p226_p2)   ;;  %vm1065_vm3 = vcmask (!%p226_p2), 191488  }
   0x8   : > { %1235 = vmatprep.subr.bf16.mxu0 (!%p226_p2), %v1394_v2  ;;  %v1399_v7 = vld [vmem:[%s1641_s2 + $0x18] sm:$0xff] (!%p226_p2)   ;;  %v1406_v9 = vld [vmem:[%s1641_s2 + $0x80] sm:$0xff] (!%p226_p2)   ;;  %v1403_v12 = vld [vmem:[%s1641_s2 + $0x28] sm:$0xff] (!%p226_p2)  }
   0x9   : > { %v1401_v10 = vld [vmem:[%s1641_s2 + $0x20] sm:$0xff] (!%p226_p2)   ;;  %1303 = vmatprep.subr.bf16.mxu1 (!%p226_p2), %v1406_v9  ;;  %v1409_v13 = vld [vmem:[%s1641_s2 + $0x88] sm:$0xff] (!%p226_p2)   ;;  %v1404_v14 = vld [vmem:[%s1641_s2 + $0x70] sm:$0xff] (!%p226_p2)  }
   0xa   : > { %1304 = vmatpush3.bf16.msra.mxu1 (!%p226_p2), %v1406_v9  ;;  %v1405_v18 = vld [vmem:[%s1641_s2 + $0x30] sm:$0xff] (!%p226_p2)   ;;  %v1407_v19 = vld [vmem:[%s1641_s2 + $0x78] sm:$0xff] (!%p226_p2)   ;;  %v1426_v24 = vld [vmem:[%s1642_s3] sm:$0xff] (!%p226_p2)  }
   0xb   : > { %1236 = vmatpush3.bf16.msra.mxu0 (!%p226_p2), %v1395_v3  ;;  %1305 = vmatprep.subr.bf16.mxu1 (!%p226_p2), %v1409_v13  ;;  %v1408_v21 = vld [vmem:[%s1641_s2 + $0x38] sm:$0xff] (!%p226_p2)   ;;  %v1427_v25 = vld [vmem:[%s1642_s3 + $0x8] sm:$0xff] (!%p226_p2)   ;;  %v1428_v27 = vld [vmem:[%s1642_s3 + $0x10] sm:$0xff] (!%p226_p2)  }
   0xc   : > { %1237 = vmatprep.subr.bf16.mxu0 (!%p226_p2), %v1396_v4  ;;  %v1429_v28 = vld [vmem:[%s1642_s3 + $0x18] sm:$0xff] (!%p226_p2)   ;;  %v1434_v38 = vld [vmem:[%s1643_s4] sm:$0xff] (!%p226_p2)   ;;  %v1435_v39 = vld [vmem:[%s1643_s4 + $0x8] sm:$0xff] (!%p226_p2)  }
   0xd   : > { %s1647_s27 = smov (!%p262_p3, %s1147_s27), 15  ;;  %v1436_v40 = vld [vmem:[%s1644_s5] sm:$0xff]   ;;  %v1437_v41 = vld [vmem:[%s1644_s5 + $0x8] sm:$0xff]   ;;  %v1438_v42 = vld [vmem:[%s1644_s5 + $0x10] sm:$0xff]  }
   0xe   : > { %s1383_s18 = smul.u32 12, %s1647_s27  ;;  %1306 = vmatpush3.bf16.msra.mxu1 %v1409_v13  ;;  %s1150_s28 = sshll.u32 %s1647_s27, 2  ;;  %v1607_v43 = vld [vmem:[%s1644_s5 + $0x18] sm:$0xff]  }
   0xf   : > { %1238 = vmatpush3.bf16.msra.mxu0 %v1397_v5  ;;  %1315 = vmatprep.subr.bf16.mxu1 %v1426_v24  ;;  %s272_s8 = scalar_lea.vmem %s1640_s1, %s1150_s28  ;;  %s278_s30 = scalar_lea.vmem %s1645_s6, %s1150_s28 }
  0x10   : > { %1239 = vmatprep.subr.bf16.mxu0 %v1398_v6  ;;  %s1535_s29 = scalar_lea.vmem %s1639_s0, %s1383_s18  ;;  %v1430_v34 = vld [vmem:[%s272_s8] sm:$0xff]   ;;  %v1431_v35 = vld [vmem:[%s272_s8 + $0x8] sm:$0xff]   ;;  %v1432_v36 = vld [vmem:[%s272_s8 + $0x10] sm:$0xff]  }
  0x11   : > { %v1412_v15 = vld [vmem:[%s1535_s29 + $0x4] ss:$12 sps:$4 sm:$0xff]   ;;  %v1413_v16 = vld [vmem:[%s1535_s29 + $0x8] ss:$12 sps:$4 sm:$0xff]   ;;  %v1414_v17 = vld [vmem:[%s1535_s29 + $0x20] ss:$12 sps:$4 sm:$0xff]  }
  0x12   : > { %546 = vmatprep.mubr.bf16.mxu0 %v1412_v15  ;;  %1307 = vmatprep.mubr.msk.bf16.mxu1 %vm501_vm0, %v1413_v16  ;;  %v1421_v20 = vld [vmem:[%s1535_s29 + $0x38] ss:$12 sps:$4 sm:$0xff]   ;;  %v1422_v22 = vld [vmem:[%s1535_s29 + $0x50] ss:$12 sps:$4 sm:$0xff]   ;;  %v1410_v23 = vld [vmem:[%s1535_s29] ss:$12 sps:$4 sm:$0xff]  }
  0x13   : > { %1240 = vmatpush3.bf16.msra.mxu0 %v1399_v7  ;;  %1308 = vmatmul.mubr.msk.bf16.vlgmr.msra.gmra.mrb[0].mxu1 %vm501_vm0, %v1414_v17  ;;  %v1415_v26 = vld [vmem:[%s1535_s29 + $0x1c] ss:$12 sps:$4 sm:$0xff]   ;;  %v1417_v29 = vld [vmem:[%s1535_s29 + $0x18] ss:$12 sps:$4 sm:$0xff]   ;;  %v1418_v30 = vld [vmem:[%s1535_s29 + $0x34] ss:$12 sps:$4 sm:$0xff]  }
  0x14   : > { %1241 = vmatprep.subr.bf16.mxu0 %v1400_v8  ;;  %1311 = vmatprep.mubr.msk.bf16.mxu1 %vm501_vm0, %v1421_v20  ;;  %v1420_v31 = vld [vmem:[%s1535_s29 + $0x30] ss:$12 sps:$4 sm:$0xff]   ;;  %v1423_v32 = vld [vmem:[%s1535_s29 + $0x4c] ss:$12 sps:$4 sm:$0xff]   ;;  %v1425_v33 = vld [vmem:[%s1535_s29 + $0x48] ss:$12 sps:$4 sm:$0xff]  }
  0x15   : > { %1316 = vmatpush3.bf16.msra.mxu1 %v1426_v24  ;;  %v1433_v37 = vld [vmem:[%s272_s8 + $0x18] sm:$0xff]  }
  0x16   : > { %1317 = vmatprep.subr.bf16.mxu1 %v1427_v25 }
  0x17   : > { %1242 = vmatpush3.bf16.msra.mxu0 %v1401_v10 }
  0x18   : > { %1243 = vmatprep.subr.bf16.mxu0 %v1402_v11 }
  0x19   : > { %1318 = vmatpush3.bf16.msra.mxu1 %v1427_v25 }
  0x1a   : > { %1319 = vmatprep.subr.bf16.mxu1 %v1428_v27 }
  0x1b   : > { %1244 = vmatpush3.bf16.msra.mxu0 %v1403_v12  ;;  %1312 = vmatmul.mubr.msk.bf16.gmra.mrb[4].mxu1 %vm501_vm0, %v1422_v22 }
  0x1c   : > { %1245 = vmatprep.subr.bf16.mxu0 %v1404_v14  ;;  %1323 = vmatprep.mubr.msk.bf16.mxu1 %vm716_vm1, %v1430_v34 }
  0x1d   : > { %1320 = vmatpush3.bf16.msra.mxu1 %v1428_v27 }
  0x1e   : > { %1321 = vmatprep.subr.bf16.mxu1 %v1429_v28 }
  0x1f   : > { %1246 = vmatpush3.bf16.msra.mxu0 %v1405_v18 }
  0x20   : > { %1247 = vmatprep.subr.bf16.mxu0 %v1407_v19 }
  0x21   : > { %1322 = vmatpush3.bf16.msra.mxu1 %v1429_v28 }
  0x22   : > { %1331 = vmatprep.subr.bf16.mxu1 %v1434_v38 }
  0x23   : > { %1248 = vmatpush3.bf16.msra.mxu0 %v1408_v21 }
  0x24   : > { %1324 = vmatmul.mubr.msk.bf16.vlgmr.msra.gmra.mrb[8].mxu1 %vm716_vm1, %v1431_v35  ;;  %1343 = vmatprep.subr.bf16.mxu0 %v1436_v40 }
  0x25   : > { %1327 = vmatprep.mubr.msk.bf16.mxu1 %vm716_vm1, %v1432_v36  ;;  %1332 = vmatpush3.bf16.msra.mxu1 %v1434_v38 }
  0x26   : > { %547 = vmatmul.mubr.bf16.vlgmr.msra.gmra.mrb[0].mxu0 %v1410_v23  ;;  %1333 = vmatprep.subr.bf16.mxu1 %v1435_v39 }
  0x27   : > { %554 = vmatprep.mubr.bf16.mxu0 %v1415_v26  ;;  %1344 = vmatpush3.bf16.msra.mxu0 %v1436_v40 }
  0x28   : > { %1345 = vmatprep.subr.bf16.mxu0 %v1437_v41 }
  0x29   : > { %1334 = vmatpush3.bf16.msra.mxu1 %v1435_v39 }
  0x2a   : > { %1363 = vmatprep.subr.bf16.mxu1 %v1436_v40 }
  0x2b   : > { %1346 = vmatpush3.bf16.msra.mxu0 %v1437_v41 }
  0x2c   : > { %1328 = vmatmul.mubr.msk.bf16.gmra.mrb[12].mxu1 %vm716_vm1, %v1433_v37  ;;  %1347 = vmatprep.subr.bf16.mxu0 %v1438_v42 }
  0x2e   : > { %555 = vmatmul.mubr.bf16.gmra.mrb[4].mxu0 %v1417_v29 }
  0x2f   : > { %562 = vmatprep.mubr.bf16.mxu0 %v1418_v30  ;;  %1348 = vmatpush3.bf16.msra.mxu0 %v1438_v42 }
  0x30   : > { %1349 = vmatprep.subr.bf16.mxu0 %v1607_v43 }
  0x33   : > { %1350 = vmatpush3.bf16.msra.mxu0 %v1607_v43 }
  0x36   : > { %563 = vmatmul.mubr.bf16.gmra.mrb[8].mxu0 %v1420_v31 }
  0x37   : > { %570 = vmatprep.mubr.bf16.mxu0 %v1423_v32  ;;  %v1440_v32 = vld [vmem:[%s1644_s5 + $0x20] sm:$0xff]  }
  0x38   : > { %1351 = vmatprep.subr.bf16.mxu0 %v1440_v32 }
  0x39   : > { %1352 = vmatpush3.bf16.msra.mxu0 %v1440_v32 }
  0x3e   : > { %571 = vmatmul.mubr.bf16.gmra.mrb[12].mxu0 %v1425_v33  ;;  %v1441_v33 = vld [vmem:[%s1644_s5 + $0x28] sm:$0xff]  }
  0x3f   : > { %1353 = vmatprep.subr.bf16.mxu0 %v1441_v33 }
  0x40   : > { %1354 = vmatpush3.bf16.msra.mxu0 %v1441_v33 }
  0xe6   : > { %v1309_v44 = vpop.f32.mrb[0].mxu1 }
  0xe7   : > { %v613_v45 = vpop.f32.mrb[1].mxu1 }
  0xe8   : > { %v1310_v46 = vpop.f32.mrb[2].mxu1 }
  0xe9   : > { %v616_v47 = vpop.f32.mrb[3].mxu1 }
  0xee   : > { %v1313_v48 = vpop.f32.mrb[4].mxu1 }
  0xef   : > { %v629_v49 = vpop.f32.mrb[5].mxu1 }
  0xf0   : > { %v1314_v51 = vpop.f32.mrb[6].mxu1 }
  0xf1   : > { %v632_v53 = vpop.f32.mrb[7].mxu1 }
  0xf9   : > { %v1249_v50 = vpop.f32.mrb[0].mxu0 }
  0xfa   : > { %v1250_v52 = vpop.f32.mrb[1].mxu0 }
  0xfb   : > { %v1251_v54 = vadd.f32 %v1250_v52, %v1249_v50  ;;  %v1252_v55 = vpop.f32.mrb[2].mxu0 }
  0xfc   : > { %v1253_v56 = vpop.f32.mrb[3].mxu0 }
  0xfd   : > { %v1254_v57 = vadd.f32 %v1253_v56, %v1252_v55  ;;  %v614_v58 = vadd.f32 %v1251_v54, %v613_v45 }
  0xff   : > { %v617_v59 = vadd.f32 %v1254_v57, %v616_v47  ;;  %v644_v60 = vmax.f32 %v614_v58, 0.0 }
 0x101   : > { %v645_v61 = vmax.f32 %v617_v59, 0.0  ;;  %v1255_v62 = vpop.f32.mrb[4].mxu0 }
 0x102   : > { %v1256_v63 = vpop.f32.mrb[5].mxu0 }
 0x103   : > { %v652_v0 = vpack.c.bf16 %v645_v61, %v644_v60  ;;  %v1257_v1 = vadd.f32 %v1256_v63, %v1255_v62  ;;  %v1258_v2 = vpop.f32.mrb[6].mxu0 }
 0x104   : > { %v1259_v3 = vpop.f32.mrb[7].mxu0 }
 0x105   : > { %v622_v4 = vadd.f32 %v1309_v44, %v1257_v1  ;;  %v1260_v5 = vadd.f32 %v1259_v3, %v1258_v2  ;;  %1335 = vmatprep.mubr.msk.bf16.mxu1 %vm501_vm0, %v652_v0 }
 0x107   : > { %v625_v6 = vadd.f32 %v1310_v46, %v1260_v5  ;;  %v646_v7 = vmax.f32 %v622_v4, 0.0 }
 0x109   : > { %v647_v8 = vmax.f32 %v625_v6, 0.0  ;;  %v1261_v9 = vpop.f32.mrb[8].mxu0 }
 0x10a   : > { %v1262_v10 = vpop.f32.mrb[9].mxu0 }
 0x10b   : > { %v653_v11 = vpack.c.bf16 %v647_v8, %v646_v7  ;;  %v1263_v12 = vadd.f32 %v1262_v10, %v1261_v9  ;;  %v1264_v13 = vpop.f32.mrb[10].mxu0 }
 0x10c   : > { %v1265_v14 = vpop.f32.mrb[11].mxu0 }
 0x10d   : > { %v1266_v15 = vadd.f32 %v1265_v14, %v1264_v13  ;;  %v630_v16 = vadd.f32 %v1263_v12, %v629_v49  ;;  %1336 = vmatmul.mubr.msk.bf16.vlgmr.msra.gmra.mrb[8].mxu1 %vm501_vm0, %v653_v11 }
 0x10e   : > { %1369 = vmatpush3.bf16.msra.mxu1 %v1436_v40 }
 0x10f   : > { %v633_v17 = vadd.f32 %v1266_v15, %v632_v53  ;;  %1364 = vmatprep.subr.bf16.mxu1 %v1437_v41  ;;  %v648_v18 = vmax.f32 %v630_v16, 0.0 }
 0x111   : > { %v649_v19 = vmax.f32 %v633_v17, 0.0  ;;  %v1267_v20 = vpop.f32.mrb[12].mxu0 }
 0x112   : > { %v1268_v21 = vpop.f32.mrb[13].mxu0  ;;  %1370 = vmatpush3.bf16.msra.mxu1 %v1437_v41 }
 0x113   : > { %v654_v22 = vpack.c.bf16 %v649_v19, %v648_v18  ;;  %v1269_v23 = vadd.f32 %v1268_v21, %v1267_v20  ;;  %v1270_v24 = vpop.f32.mrb[14].mxu0  ;;  %1365 = vmatprep.subr.bf16.mxu1 %v1438_v42 }
 0x114   : > { %v1271_v25 = vpop.f32.mrb[15].mxu0 }
 0x115   : > { %v638_v26 = vadd.f32 %v1313_v48, %v1269_v23  ;;  %v1272_v27 = vadd.f32 %v1271_v25, %v1270_v24  ;;  %1339 = vmatprep.mubr.msk.bf16.mxu1 %vm501_vm0, %v654_v22 }
 0x116   : > { %1371 = vmatpush3.bf16.msra.mxu1 %v1438_v42 }
 0x117   : > { %v641_v28 = vadd.f32 %v1314_v51, %v1272_v27  ;;  %1366 = vmatprep.subr.bf16.mxu1 %v1607_v43  ;;  %v650_v29 = vmax.f32 %v638_v26, 0.0 }
 0x119   : > { %v651_v30 = vmax.f32 %v641_v28, 0.0 }
 0x11a   : > { %1372 = vmatpush3.bf16.msra.mxu1 %v1607_v43 }
 0x11b   : > { %v655_v31 = vpack.c.bf16 %v651_v30, %v650_v29  ;;  %1367 = vmatprep.subr.bf16.mxu1 %v1440_v32 }
 0x11d   : > { %1340 = vmatmul.mubr.msk.bf16.gmra.mrb[12].mxu1 %vm501_vm0, %v655_v31 }
 0x11e   : > { %1373 = vmatpush3.bf16.msra.mxu1 %v1440_v32 }
 0x11f   : > { %1368 = vmatprep.subr.bf16.mxu1 %v1441_v33 }
 0x122   : > { %1374 = vmatpush3.bf16.msra.mxu1 %v1441_v33 }
 0x1e0   : > { %v1337_v34 = vpop.f32.mrb[8].mxu1 }
 0x1e1   : > { %v856_v35 = vpop.f32.mrb[9].mxu1  ;;  %v889_v37 = vmax.f32 %v1337_v34, 0.0 }
 0x1e2   : > { %v1338_v36 = vpop.f32.mrb[10].mxu1  ;;  %v887_v40 = vmax.f32 %v856_v35, 0.0 }
 0x1e3   : > { %v890_v38 = vmax.f32 %v1338_v36, 0.0  ;;  %v859_v39 = vpop.f32.mrb[11].mxu1 }
 0x1e4   : > { %v888_v41 = vmax.f32 %v859_v39, 0.0 }
 0x1e5   : > { %v896_v42 = vpack.c.bf16 %v890_v38, %v889_v37 }
 0x1e6   : > { %v895_v43 = vpack.c.bf16 %v888_v41, %v887_v40 }
 0x1e8   : > { %1355 = vmatprep.mubr.msk.bf16.mxu0 %vm947_vm2, %v895_v43 }
 0x1e9   : > { %1356 = vmatmul.mubr.msk.bf16.vlgmr.msra.gmra.mrb[16].mxu0 %vm947_vm2, %v896_v42 }
 0x1f0   : > { %v1341_v44 = vpop.f32.mrb[12].mxu1 }
 0x1f1   : > { %v872_v45 = vpop.f32.mrb[13].mxu1  ;;  %v893_v47 = vmax.f32 %v1341_v44, 0.0 }
 0x1f2   : > { %v1342_v46 = vpop.f32.mrb[14].mxu1  ;;  %v891_v50 = vmax.f32 %v872_v45, 0.0 }
 0x1f3   : > { %v894_v48 = vmax.f32 %v1342_v46, 0.0  ;;  %v875_v49 = vpop.f32.mrb[15].mxu1 }
 0x1f4   : > { %v892_v51 = vmax.f32 %v875_v49, 0.0 }
 0x1f5   : > { %v898_v52 = vpack.c.bf16 %v894_v48, %v893_v47 }
 0x1f6   : > { %v897_v53 = vpack.c.bf16 %v892_v51, %v891_v50 }
 0x1f8   : > { %1359 = vmatprep.mubr.msk.bf16.mxu1 %vm947_vm2, %v897_v53 }
 0x1f9   : > { %1360 = vmatmul.mubr.msk.bf16.vlgmr.msra.gmra.mrb[16].mxu1 %vm947_vm2, %v898_v52 }
 0x2bc   : > { %v1357_v54 = vpop.f32.mrb[16].mxu0 }
 0x2bd   : > { %v1027_v55 = vmax.f32 %v1357_v54, 0.0  ;;  %v994_v56 = vpop.f32.mrb[17].mxu0 }
 0x2be   : > { %v1025_v57 = vmax.f32 %v994_v56, 0.0  ;;  %v1358_v58 = vpop.f32.mrb[18].mxu0 }
 0x2bf   : > { %v1227_v59 = vpack.c.bf16 %v1027_v55, %v1027_v55  ;;  %v1028_v60 = vmax.f32 %v1358_v58, 0.0  ;;  %v997_v61 = vpop.f32.mrb[19].mxu0 }
 0x2c0   : > { %v1225_v62 = vpack.c.bf16 %v1025_v57, %v1025_v57  ;;  %v1026_v63 = vmax.f32 %v997_v61, 0.0 }
 0x2c1   : > { %1068 = vst.msk [vmem:[%s278_s30 + $0x8] sm:$0xf] %vm1065_vm3, %v1227_v59  ;;  %v1228_v0 = vpack.c.bf16 %v1028_v60, %v1028_v60 }
 0x2c2   : > { %1066 = vst.msk [vmem:[%s278_s30] sm:$0xf] %vm1065_vm3, %v1225_v62  ;;  %v1226_v1 = vpack.c.bf16 %v1026_v63, %v1026_v63 }
 0x2c3   : > { %1069 = vst.msk [vmem:[%s278_s30 + $0xc] sm:$0xf] %vm1065_vm3, %v1228_v0 }
 0x2c4   : > { %1067 = vst.msk [vmem:[%s278_s30 + $0x4] sm:$0xf] %vm1065_vm3, %v1226_v1 }
 0x2cc   : > { %v1361_v2 = vpop.f32.mrb[16].mxu1 }
 0x2cd   : > { %v1031_v3 = vmax.f32 %v1361_v2, 0.0  ;;  %v1010_v4 = vpop.f32.mrb[17].mxu1 }
 0x2ce   : > { %v1029_v5 = vmax.f32 %v1010_v4, 0.0  ;;  %v1362_v6 = vpop.f32.mrb[18].mxu1 }
 0x2cf   : > { %v1231_v7 = vpack.c.bf16 %v1031_v3, %v1031_v3  ;;  %v1032_v8 = vmax.f32 %v1362_v6, 0.0  ;;  %v1013_v9 = vpop.f32.mrb[19].mxu1 }
 0x2d0   : > { %v1229_v10 = vpack.c.bf16 %v1029_v5, %v1029_v5  ;;  %v1030_v11 = vmax.f32 %v1013_v9, 0.0 }
 0x2d1   : > { %1072 = vst.msk [vmem:[%s278_s30 + $0x18] sm:$0xf] %vm1065_vm3, %v1231_v7  ;;  %v1232_v12 = vpack.c.bf16 %v1032_v8, %v1032_v8 }
 0x2d2   : > { %1070 = vst.msk [vmem:[%s278_s30 + $0x10] sm:$0xf] %vm1065_vm3, %v1229_v10  ;;  %v1230_v13 = vpack.c.bf16 %v1030_v11, %v1030_v11 }
 0x2d3   : > { %1073 = vst.msk [vmem:[%s278_s30 + $0x1c] sm:$0xf] %vm1065_vm3, %v1232_v12 }
 0x2d4   : > { %1071 = vst.msk [vmem:[%s278_s30 + $0x14] sm:$0xf] %vm1065_vm3, %v1230_v13 }
 0x2d5 PF: > { %s16_s21 = sadd.s32 1, %s1448_s21  }
 0x2d6   : > { %p13_p4 = scmp.ge.s32.totalorder %s16_s21, 4  }
 0x2d8   :  { %15 = sbr.rel (!%p13_p4) target bundleno = 1 (0x1), region = 77 }

// kernel: res_tr_forward.7
= control target key start
LH: loop header
LB: loop body
LE: loop exit
PB: predicated region body
PF: predicated region fallthrough
CT: control target
= control target key end

     0   :  { %s7363_s0 = inlined_call_operand.vmem [shape: bf16[2,64,24], index: 0, kind: input, shape index: {}]   ;;  %s7364_s1 = inlined_call_operand.vmem [shape: f32[64,24], index: 1, kind: input, shape index: {}]   ;;  %s7365_s2 = inlined_call_operand.vmem [shape: bf16[2,24,24], index: 2, kind: input, shape index: {}]   ;;  %s7366_s3 = inlined_call_operand.vmem [shape: bf16[2,24,24], index: 3, kind: input, shape index: {}]   ;;  %s7367_s4 = inlined_call_operand.vmem [shape: bf16[2,24,24], index: 4, kind: input, shape index: {}]   ;;  %s7368_s5 = inlined_call_operand.vmem [shape: f32[2,1,24], index: 5, kind: input, shape index: {}]   ;;  %s7369_s6 = inlined_call_operand.vmem [shape: f32[2,1,24], index: 6, kind: input, shape index: {}]   ;;  %s7370_s7 = inlined_call_operand.vmem [shape: f32[2,1,24], index: 7, kind: input, shape index: {}]   ;;  %s7371_s8 = inlined_call_operand.vmem [shape: bf16[2,24,24], index: 8, kind: input, shape index: {}]   ;;  %s7372_s9 = inlined_call_operand.vmem [shape: f32[2,1,24], index: 9, kind: input, shape index: {}]   ;;  %s7373_s10 = inlined_call_operand.vmem [shape: f32[2,1,24], index: 10, kind: input, shape index: {}]   ;;  %s7374_s11 = inlined_call_operand.vmem [shape: f32[2,1,24], index: 11, kind: input, shape index: {}]   ;;  %s7375_s12 = inlined_call_operand.vmem [shape: bf16[2,24,64], index: 12, kind: input, shape index: {}]   ;;  %s7376_s13 = inlined_call_operand.vmem [shape: f32[2,1,64], index: 13, kind: input, shape index: {}]   ;;  %s7377_s14 = inlined_call_operand.vmem [shape: bf16[2,64,24], index: 14, kind: input, shape index: {}]   ;;  %s7378_s15 = inlined_call_operand.vmem [shape: f32[2,1,24], index: 15, kind: input, shape index: {}]   ;;  %s7379_s16 = inlined_call_operand.vmem [shape: f32[2,1,24], index: 16, kind: input, shape index: {}]   ;;  %s7380_s17 = inlined_call_operand.vmem [shape: f32[2,1,24], index: 17, kind: input, shape index: {}]   ;;  %s7381_s18 = inlined_call_operand.vmem [shape: f32[24,2], index: 18, kind: input, shape index: {}]   ;;  %s7382_s19 = inlined_call_operand.vmem [shape: f32[1,2], index: 19, kind: input, shape index: {}]   ;;  %s7383_s20 = inlined_call_operand.vmem [shape: f32[2,8,2], index: 20, kind: output, shape index: {}]  }
   0x1   :  { %7391 = sst [smem:[#allocation4_spill]] %s7363_s0 }
   0x2   :  { %7392 = sst [smem:[#allocation5_spill]] %s7364_s1  ;;  %s5732_s1 = smov 0  }
   0x3   :  { %7393 = sst [smem:[#allocation6_spill]] %s7365_s2 }
   0x4   :  { %7394 = sst [smem:[#allocation7_spill]] %s7366_s3 }
   0x5   :  { %7395 = sst [smem:[#allocation8_spill]] %s7367_s4 }
   0x6   :  { %7396 = sst [smem:[#allocation9_spill]] %s7381_s18 }
   0x7   :  { %7397 = sst [smem:[#allocation10_spill]] %s7382_s19 }
   0x8   :  { %7398 = sst [smem:[#allocation11_spill]] %s7383_s20 }
   0x9 LB: > { %7399 = sst [smem:[#allocation2_spill]] %s5625_s1  ;;  %s4420_s22 = sadd.s32 4294967295, %s5625_s1   ;;  %s5625_s1 = sphi %s5732_s1, %s30_s1  }
   0xa   : > { %p4424_p0 = scmp.ge.s32.totalorder %s5625_s1, 1  ;;  %p562_p1 = scmp.lt.s32.totalorder %s5625_s1, 3 }
   0xc   : > { %p563_p2 = pnand %p4424_p0, %p562_p1 }
   0xe   : > { %566 = sbr.rel (%p563_p2) target bundleno = 4968 (0x1368), region = 100 }
  0x15   : > { %s7400_s2 = sld [smem:[#allocation6_spill]]  ;;  %vm699_vm0 = vcmask 1043456   ;;  %p619_p3 = scmp.lt.s32.totalorder %s4420_s22, 1  ;;  %vm686_vm1 = vcmask 195584   ;;  %v661_v41 = vlaneseq  ;;  %v4428_v43 = vld [vmem:[%s7368_s5] ss:$0 sm:$0xff] }
  0x16   : > { %s7402_s28 = sld [smem:[#allocation7_spill]]  ;;  %s7403_s0 = sld [smem:[#allocation5_spill]]  ;;  %vm1072_vm11 = vcmask 523264   ;;  %vm4336_vm13 = vcmask 15360  }
  0x17   : > { %s7422_s22 = smov (!%p619_p3, %s4420_s22), 1  ;;  %s7404_s20 = sld [smem:[#allocation4_spill]]  ;;  %v5832_v42 = vand.u32 127, %v661_v41 }
  0x18   : > { %7401 = sst [smem:[#allocation3_spill]] %s7422_s22  ;;  %s4687_s4 = sshll.u32 %s7422_s22, 5 }
  0x19   : > { %s7405_s18 = sld [smem:[#allocation8_spill]]  ;;  %vm1165_vm2 = vcmp.ge.s32.totalorder %v5832_v42, 8  ;;  %vm1166_vm3 = vcmp.lt.s32.totalorder %v5832_v42, 16  ;;  %vm1525_vm4 = vcmp.ge.s32.totalorder %v5832_v42, 16  ;;  %vm1526_vm5 = vcmp.lt.s32.totalorder %v5832_v42, 24  ;;  %s7416_s22 = sld [smem:[#allocation9_spill]] }
  0x1a   : > { %vm947_vm6 = vcmp.lt.s32.totalorder %v5832_v42, 8  ;;  %vm5842_vm7 = vmand %vm1165_vm2, %vm1166_vm3  ;;  %s7417_s25 = sld [smem:[#allocation3_spill]]  ;;  %s7419_s27 = sld [smem:[#allocation11_spill]] }
  0x1b   : > { %v5335_v0 = vld [vmem:[%s7400_s2] sm:$0xff]   ;;  %v5336_v1 = vld [vmem:[%s7400_s2 + $0x8] ss:$0 sps:$4 sm:$0xff]   ;;  %vm5846_vm8 = vmand %vm1525_vm4, %vm1526_vm5 }
  0x1c   : > { %5256 = vmatprep.subr.bf16.mxu1 %v5335_v0  ;;  %4890 = vmatprep.subr.bf16.mxu0 %v5335_v0  ;;  %v701_v2 = vsel %vm699_vm0, %v5336_v1, 0  ;;  %v5337_v3 = vld [vmem:[%s7402_s28] sm:$0xff]   ;;  %v650_v5 = vld [vmem:[%s7403_s0 + $0x28] sm:$0xff]  ;;  %v651_v6 = vld [vmem:[%s7403_s0 + $0x30] sm:$0xff] }
  0x1d   : > { %5258 = vmatpush3.bf16.msra.mxu1 %v5335_v0  ;;  %4891 = vmatpush3.bf16.msra.mxu0 %v5335_v0  ;;  %v649_v4 = vld [vmem:[%s7403_s0 + $0x20] sm:$0xff]  ;;  %v652_v7 = vld [vmem:[%s7403_s0 + $0x38] sm:$0xff]  ;;  %s623_s19 = scalar_lea.vmem %s7404_s20, %s4687_s4  ;;  %v5338_v8 = vld [vmem:[%s7402_s28 + $0x8] ss:$0 sps:$4 sm:$0xff]   ;;  %s7418_s20 = sld [smem:[#allocation10_spill]] }
  0x1e   : > { %5293 = vmatprep.subr.msk.bf16.mxu1 %vm699_vm0, %v5336_v1  ;;  %5292 = vmatprep.subr.msk.bf16.mxu0 %vm699_vm0, %v5336_v1  ;;  %v645_v9 = vld [vmem:[%s7403_s0] sm:$0xff]  ;;  %v646_v10 = vld [vmem:[%s7403_s0 + $0x8] sm:$0xff]  ;;  %v647_v11 = vld [vmem:[%s7403_s0 + $0x10] sm:$0xff]  ;;  %v788_v37 = vsel %vm699_vm0, %v5338_v8, 0 }
  0x1f   : > { %v648_v12 = vld [vmem:[%s7403_s0 + $0x18] sm:$0xff]  ;;  %v5339_v13 = vld [vmem:[%s7405_s18] sm:$0xff]   ;;  %v4705_v14 = vld [vmem:[%s623_s19 + $0x10] sm:$0xff]  }
  0x20   : > { %v4706_v15 = vld [vmem:[%s623_s19 + $0x18] sm:$0xff]   ;;  %v4689_v16 = vld [vmem:[%s623_s19] sm:$0xff]   ;;  %v4698_v17 = vunpack.c.l.bf16 %v4705_v14  ;;  %v4699_v18 = vunpack.c.h.bf16 %v4705_v14  ;;  %v4704_v21 = vld [vmem:[%s623_s19 + $0x8] sm:$0xff]   ;;  %s4427_s4 = sshll.u32 %s7417_s25, 3 }
  0x21   : > { %5259 = vmatpush3.bf16.msra.mxu1 %v701_v2  ;;  %4893 = vmatpush3.bf16.msra.mxu0 %v701_v2  ;;  %v4702_v19 = vunpack.c.l.bf16 %v4706_v15  ;;  %v4703_v20 = vunpack.c.h.bf16 %v4706_v15  ;;  %v5340_v22 = vld [vmem:[%s7405_s18 + $0x8] ss:$0 sps:$4 sm:$0xff]   ;;  %v4690_v23 = vunpack.c.l.bf16 %v4689_v16  ;;  %v4691_v24 = vunpack.c.h.bf16 %v4689_v16  ;;  %vm5975_vm9 = vmpackc.low %vm5842_vm7, %vm5842_vm7  ;;  %s627_s29 = scalar_lea.vmem %s7419_s27, %s4427_s4 }
  0x22   : > { %4902 = vmatprep.subr.bf16.mxu1 %v5337_v3  ;;  %4914 = vmatprep.subr.bf16.mxu0 %v5339_v13  ;;  %v4694_v25 = vunpack.c.l.bf16 %v4704_v21  ;;  %v4695_v26 = vunpack.c.h.bf16 %v4704_v21  ;;  %v5791_v27 = vadd.f32 %v4698_v17, %v649_v4  ;;  %v5793_v28 = vadd.f32 %v4699_v18, %v650_v5  ;;  %vm6028_vm10 = vmpackc.low %vm947_vm6, %vm947_vm6 }
  0x23   : > { %v5795_v29 = vadd.f32 %v4702_v19, %v651_v6  ;;  %v5797_v30 = vadd.f32 %v4703_v20, %v652_v7  ;;  %v5799_v31 = vadd.f32 %v4690_v23, %v645_v9  ;;  %v5801_v32 = vadd.f32 %v4691_v24, %v646_v10  ;;  %vm6304_vm12 = vmpackc.low %vm5846_vm8, %vm5846_vm8 }
  0x24   : > { %v5803_v33 = vadd.f32 %v4694_v25, %v647_v11  ;;  %v5805_v34 = vadd.f32 %v4695_v26, %v648_v12  ;;  %v665_v35 = vpack.c.bf16 %v5793_v28, %v5791_v27  ;;  %v875_v38 = vsel %vm699_vm0, %v5340_v22, 0  ;;  %v5893_v11 = vld [vmem:[%s7369_s6] ss:$0 sm:$0xff] }
  0x25   : > { %v666_v36 = vpack.c.bf16 %v5797_v30, %v5795_v29  ;;  %v663_v39 = vpack.c.bf16 %v5801_v32, %v5799_v31 }
  0x26   : > { %4898 = vmatprep.mubr.msk.bf16.mxu1 %vm686_vm1, %v665_v35  ;;  %v664_v40 = vpack.c.bf16 %v5805_v34, %v5803_v33 }
  0x27   : > { %4899 = vmatmul.mubr.msk.bf16.vlgmr.msra.gmra.mrb[0].mxu1 %vm686_vm1, %v666_v36  ;;  %4894 = vmatprep.mubr.msk.bf16.mxu0 %vm686_vm1, %v663_v39 }
  0x28   : > { %4903 = vmatpush3.bf16.msra.mxu1 %v5337_v3  ;;  %4906 = vmatprep.mubr.msk.bf16.mxu1 %vm686_vm1, %v663_v39 }
  0x29   : > { %5294 = vmatprep.subr.msk.bf16.mxu1 %vm699_vm0, %v5338_v8  ;;  %4895 = vmatmul.mubr.msk.bf16.vlgmr.msra.gmra.mrb[0].mxu0 %vm686_vm1, %v664_v40 }
  0x2a   : > { %4915 = vmatpush3.bf16.msra.mxu0 %v5339_v13  ;;  %4918 = vmatprep.mubr.msk.bf16.mxu0 %vm686_vm1, %v663_v39 }
  0x2b   : > { %5295 = vmatprep.subr.msk.bf16.mxu0 %vm699_vm0, %v5340_v22 }
  0x2c   : > { %4905 = vmatpush3.bf16.msra.mxu1 %v788_v37 }
  0x2e   : > { %4917 = vmatpush3.bf16.msra.mxu0 %v875_v38 }
  0x2f   : > { %4907 = vmatmul.mubr.msk.bf16.vlgmr.msra.gmra.mrb[4].mxu1 %vm686_vm1, %v664_v40 }
  0x30   : > { %4910 = vmatprep.mubr.msk.bf16.mxu1 %vm686_vm1, %v665_v35 }
  0x31   : > { %4919 = vmatmul.mubr.msk.bf16.vlgmr.msra.gmra.mrb[4].mxu0 %vm686_vm1, %v664_v40 }
  0x32   : > { %4922 = vmatprep.mubr.msk.bf16.mxu0 %vm686_vm1, %v665_v35 }
  0x37   : > { %4911 = vmatmul.mubr.msk.bf16.gmra.mrb[8].mxu1 %vm686_vm1, %v666_v36 }
  0x39   : > { %4923 = vmatmul.mubr.msk.bf16.gmra.mrb[8].mxu0 %vm686_vm1, %v666_v36 }
  0xfa   : > { %v4900_v44 = vpop.f32.mrb[0].mxu1 }
  0xfb   : > { %v762_v46 = vadd.f32 %v4900_v44, %v4428_v43  ;;  %v753_v48 = vpop.f32.mrb[1].mxu1 }
  0xfc   : > { %v754_v49 = vadd.f32 %v4428_v43, %v753_v48  ;;  %v4901_v50 = vpop.f32.mrb[2].mxu1  ;;  %v4896_v51 = vpop.f32.mrb[0].mxu0 }
  0xfd   : > { %v5852_v52 = vsel %vm947_vm6, %v762_v46, 0.0  ;;  %v1176_v53 = vsel %vm5842_vm7, %v762_v46, 0.0  ;;  %v765_v54 = vadd.f32 %v4901_v50, %v4428_v43  ;;  %v756_v55 = vpop.f32.mrb[3].mxu1  ;;  %v737_v56 = vpop.f32.mrb[1].mxu0  ;;  %v1536_v57 = vsel %vm5846_vm8, %v762_v46, 0.0 }
  0xfe   : > { %v5860_v58 = vsel %vm947_vm6, %v754_v49, 0.0  ;;  %v1174_v59 = vsel %vm5842_vm7, %v754_v49, 0.0  ;;  %v757_v60 = vadd.f32 %v4428_v43, %v756_v55  ;;  %v4897_v61 = vpop.f32.mrb[2].mxu0  ;;  %v746_v1 = vadd.f32 %v4896_v51, %v4428_v43 }
  0xff   : > { %v5866_v62 = vsel %vm947_vm6, %v765_v54, 0.0  ;;  %v1177_v63 = vsel %vm5842_vm7, %v765_v54, 0.0  ;;  %v1537_v0 = vsel %vm5846_vm8, %v765_v54, 0.0  ;;  %v740_v2 = vpop.f32.mrb[3].mxu0  ;;  %v1534_v7 = vsel %vm5846_vm8, %v754_v49, 0.0 }
 0x100   : > { %v962_v3 = vpack.c.bf16 %v5866_v62, %v5852_v52  ;;  %v5874_v4 = vpack.c.bf16 %v1177_v63, %v1176_v53  ;;  %v5876_v5 = vpack.c.bf16 %v1537_v0, %v1536_v57  ;;  %v5880_v6 = vsel %vm947_vm6, %v757_v60, 0.0  ;;  %v4442_v54 = vld [vmem:[%s7370_s7] ss:$0 sm:$0xff] }
 0x101   : > { %v961_v8 = vpack.c.bf16 %v5880_v6, %v5860_v58  ;;  %v1175_v9 = vsel %vm5842_vm7, %v757_v60, 0.0  ;;  %v1535_v10 = vsel %vm5846_vm8, %v757_v60, 0.0  ;;  %v5901_v16 = vsel %vm947_vm6, %v746_v1, 0.0 }
 0x102   : > { %v5895_v12 = vpack.c.bf16 %v1175_v9, %v1174_v59  ;;  %v5897_v13 = vpack.c.bf16 %v1535_v10, %v1534_v7  ;;  %v4908_v14 = vpop.f32.mrb[4].mxu1  ;;  %v1172_v17 = vsel %vm5842_vm7, %v746_v1, 0.0  ;;  %v738_v18 = vadd.f32 %v4428_v43, %v737_v56 }
 0x103   : > { %v824_v15 = vpop.f32.mrb[5].mxu1  ;;  %v749_v19 = vadd.f32 %v4897_v61, %v4428_v43  ;;  %v833_v20 = vadd.f32 %v4908_v14, %v5893_v11  ;;  %v1532_v23 = vsel %vm5846_vm8, %v746_v1, 0.0  ;;  %v741_v24 = vadd.f32 %v4428_v43, %v740_v2 }
 0x104   : > { %v825_v21 = vadd.f32 %v5893_v11, %v824_v15  ;;  %v4909_v22 = vpop.f32.mrb[6].mxu1  ;;  %v4920_v25 = vpop.f32.mrb[4].mxu0  ;;  %v951_v36 = vsel %vm947_vm6, %v738_v18, 0.0  ;;  %v1170_v37 = vsel %vm5842_vm7, %v738_v18, 0.0  ;;  %v1530_v38 = vsel %vm5846_vm8, %v738_v18, 0.0 }
 0x105   : > { %v836_v26 = vadd.f32 %v4909_v22, %v5893_v11  ;;  %v827_v35 = vpop.f32.mrb[7].mxu1  ;;  %v911_v39 = vpop.f32.mrb[5].mxu0  ;;  %v5919_v44 = vsel %vm947_vm6, %v749_v19, 0.0  ;;  %v1173_v43 = vsel %vm5842_vm7, %v749_v19, 0.0  ;;  %v1533_v46 = vsel %vm5846_vm8, %v749_v19, 0.0 }
 0x106   : > { %v828_v40 = vadd.f32 %v5893_v11, %v827_v35  ;;  %v4921_v48 = vpop.f32.mrb[6].mxu0  ;;  %v960_v50 = vpack.c.bf16 %v5919_v44, %v5901_v16  ;;  %v5929_v51 = vpack.c.bf16 %v1173_v43, %v1172_v17  ;;  %v5931_v53 = vpack.c.bf16 %v1533_v46, %v1532_v23 }
 0x107   : > { %v5925_v49 = vpack.c.bf16 %v836_v26, %v833_v20  ;;  %v914_v55 = vpop.f32.mrb[7].mxu0  ;;  %v952_v57 = vsel %vm947_vm6, %v741_v24, 0.0  ;;  %v1171_v59 = vsel %vm5842_vm7, %v741_v24, 0.0  ;;  %v1531_v60 = vsel %vm5846_vm8, %v741_v24, 0.0 }
 0x108   : > { %v942_v56 = vpack.c.bf16 %v828_v40, %v825_v21  ;;  %v959_v61 = vpack.c.bf16 %v952_v57, %v951_v36  ;;  %v1178_v63 = vpack.c.bf16 %v1171_v59, %v1170_v37  ;;  %v5942_v0 = vpack.c.bf16 %v1531_v60, %v1530_v38 }
 0x109   : > { %v920_v7 = vadd.f32 %v4920_v25, %v4442_v54  ;;  %v912_v9 = vadd.f32 %v4442_v54, %v911_v39  ;;  %v923_v10 = vadd.f32 %v4921_v48, %v4442_v54  ;;  %v915_v17 = vadd.f32 %v4442_v54, %v914_v55 }
 0x10a   : > { %5296 = vmatprep.subr.msk.bf16.mxu1 %vm686_vm1, %v942_v56  ;;  %5300 = vmatprep.subr.msk.bf16.mxu0 %vm686_vm1, %v942_v56  ;;  %v988_v1 = vsel %vm686_vm1, %v942_v56, 0  ;;  %v4912_v2 = vpop.f32.mrb[8].mxu1  ;;  %v991_v55 = vsel %vm686_vm1, %v5925_v49, 0 }
 0x10b   : > { %4927 = vmatpush3.bf16.xpose.msra.mxu1 %v988_v1  ;;  %4943 = vmatpush3.bf16.xpose.msra.mxu0 %v988_v1  ;;  %v849_v14 = vadd.f32 %v4912_v2, %v5893_v11  ;;  %v840_v15 = vpop.f32.mrb[9].mxu1  ;;  %v5953_v20 = vpack.c.bf16 %v923_v10, %v920_v7  ;;  %v5958_v24 = vpack.c.bf16 %v915_v17, %v912_v9 }
 0x10c   : > { %5297 = vmatprep.subr.msk.bf16.mxu1 %vm686_vm1, %v5925_v49  ;;  %5301 = vmatprep.subr.msk.bf16.mxu0 %vm686_vm1, %v5925_v49  ;;  %v841_v18 = vadd.f32 %v5893_v11, %v840_v15  ;;  %v4913_v19 = vpop.f32.mrb[10].mxu1  ;;  %v4924_v21 = vpop.f32.mrb[8].mxu0 }
 0x10d   : > { %v852_v22 = vadd.f32 %v4913_v19, %v5893_v11  ;;  %v843_v23 = vpop.f32.mrb[11].mxu1  ;;  %4934 = vmatprep.mubr.msk.bf16.mxu1 %vm686_vm1, %v959_v61  ;;  %4950 = vmatprep.mubr.msk.bf16.mxu0 %vm686_vm1, %v1178_v63  ;;  %v936_v25 = vadd.f32 %v4924_v21, %v4442_v54  ;;  %v927_v26 = vpop.f32.mrb[9].mxu0 }
 0x10e   : > { %v844_v35 = vadd.f32 %v5893_v11, %v843_v23  ;;  %v928_v36 = vadd.f32 %v4442_v54, %v927_v26  ;;  %v4925_v37 = vpop.f32.mrb[10].mxu0 }
 0x10f   : > { %v945_v38 = vpack.c.bf16 %v852_v22, %v849_v14  ;;  %v939_v39 = vadd.f32 %v4925_v37, %v4442_v54  ;;  %v930_v40 = vpop.f32.mrb[11].mxu0 }
 0x110   : > { %v944_v43 = vpack.c.bf16 %v844_v35, %v841_v18  ;;  %v931_v46 = vadd.f32 %v4442_v54, %v930_v40 }
 0x111   : > { %v5961_v48 = vpack.c.bf16 %v939_v39, %v936_v25  ;;  %v997_v59 = vsel %vm686_vm1, %v945_v38, 0 }
 0x112   : > { %v5965_v57 = vpack.c.bf16 %v931_v46, %v928_v36  ;;  %v994_v11 = vsel %vm686_vm1, %v944_v43, 0 }
 0x113   : > { %4929 = vmatpush3.bf16.xpose.msra.mxu1 %v991_v55  ;;  %4945 = vmatpush3.bf16.xpose.msra.mxu0 %v991_v55 }
 0x114   : > { %5298 = vmatprep.subr.msk.bf16.mxu1 %vm686_vm1, %v944_v43  ;;  %5302 = vmatprep.subr.msk.bf16.mxu0 %vm686_vm1, %v944_v43 }
 0x11b   : > { %4931 = vmatpush3.bf16.xpose.msra.mxu1 %v994_v11  ;;  %4947 = vmatpush3.bf16.xpose.msra.mxu0 %v994_v11 }
 0x11c   : > { %5299 = vmatprep.subr.msk.bf16.mxu1 %vm686_vm1, %v945_v38  ;;  %5303 = vmatprep.subr.msk.bf16.mxu0 %vm686_vm1, %v945_v38 }
 0x123   : > { %4933 = vmatpush3.bf16.xpose.msra.mxu1 %v997_v59  ;;  %4949 = vmatpush3.bf16.xpose.msra.mxu0 %v997_v59 }
 0x124   : > { %5304 = vmatprep.subr.msk.bf16.mxu0 %vm686_vm1, %v942_v56  ;;  %4958 = vmatprep.subr.msk.bf16.mxu1 %vm5975_vm9, %v5958_v24 }
 0x12a   : > { %4935 = vmatmul.mubr.msk.bf16.vlgmr.msra.gmra.mrb[12].mxu1 %vm686_vm1, %v960_v50  ;;  %4951 = vmatmul.mubr.msk.bf16.vlgmr.msra.gmra.mrb[12].mxu0 %vm686_vm1, %v5929_v51 }
 0x12b   : > { %4938 = vmatprep.mubr.msk.bf16.mxu1 %vm686_vm1, %v961_v8  ;;  %4954 = vmatprep.mubr.msk.bf16.mxu0 %vm686_vm1, %v5895_v12 }
 0x12c   : > { %4991 = vmatpush3.bf16.xpose.msra.mxu0 %v988_v1  ;;  %4959 = vmatpush3.bf16.msk.msra.mxu1 %vm5975_vm9, %v5958_v24 }
 0x12d   : > { %5305 = vmatprep.subr.msk.bf16.mxu0 %vm686_vm1, %v5925_v49  ;;  %4960 = vmatprep.subr.msk.bf16.mxu1 %vm5975_vm9, %v5953_v20 }
 0x130   : > { %4961 = vmatpush3.bf16.msk.msra.mxu1 %vm5975_vm9, %v5953_v20 }
 0x131   : > { %4962 = vmatprep.subr.msk.bf16.mxu1 %vm5975_vm9, %v5965_v57 }
 0x132   : > { %4939 = vmatmul.mubr.msk.bf16.gmra.mrb[16].mxu1 %vm686_vm1, %v962_v3  ;;  %4955 = vmatmul.mubr.msk.bf16.gmra.mrb[16].mxu0 %vm686_vm1, %v5874_v4 }
 0x133   : > { %4998 = vmatprep.mubr.msk.bf16.mxu0 %vm686_vm1, %v5942_v0 }
 0x134   : > { %4993 = vmatpush3.bf16.xpose.msra.mxu0 %v991_v55  ;;  %4963 = vmatpush3.bf16.msk.msra.mxu1 %vm5975_vm9, %v5965_v57 }
 0x135   : > { %5306 = vmatprep.subr.msk.bf16.mxu0 %vm686_vm1, %v944_v43  ;;  %4964 = vmatprep.subr.msk.bf16.mxu1 %vm5975_vm9, %v5961_v48 }
 0x138   : > { %4965 = vmatpush3.bf16.msk.msra.mxu1 %vm5975_vm9, %v5961_v48 }
 0x139   : > { %4974 = vmatprep.subr.msk.bf16.mxu1 %vm6028_vm10, %v5958_v24 }
 0x13c   : > { %4995 = vmatpush3.bf16.xpose.msra.mxu0 %v994_v11 }
 0x13d   : > { %5307 = vmatprep.subr.msk.bf16.mxu0 %vm686_vm1, %v945_v38 }
 0x144   : > { %4997 = vmatpush3.bf16.xpose.msra.mxu0 %v997_v59 }
 0x14b   : > { %4999 = vmatmul.mubr.msk.bf16.vlgmr.msra.gmra.mrb[20].mxu0 %vm686_vm1, %v5931_v53 }
 0x14c   : > { %5002 = vmatprep.mubr.msk.bf16.mxu0 %vm686_vm1, %v5897_v13 }
 0x153   : > { %5003 = vmatmul.mubr.msk.bf16.gmra.mrb[24].mxu0 %vm686_vm1, %v5876_v5 }
 0x1fd   : > { %v4936_v58 = vpop.f32.mrb[12].mxu1  ;;  %v4952_v62 = vpop.f32.mrb[12].mxu0 }
 0x1fe   : > { %v6045_v3 = vmul.f32 0.35355338, %v4952_v62  ;;  %v1033_v4 = vpop.f32.mrb[13].mxu1  ;;  %v1240_v6 = vpop.f32.mrb[13].mxu0  ;;  %v6081_v26 = vmul.f32 0.35355338, %v4936_v58 }
 0x1ff   : > { %v6047_v8 = vmul.f32 0.35355338, %v1240_v6  ;;  %v4937_v12 = vpop.f32.mrb[14].mxu1  ;;  %v4953_v16 = vpop.f32.mrb[14].mxu0  ;;  %v6073_v21 = vmul.f32 0.35355338, %v1033_v4 }
 0x200   : > { %v1036_v44 = vpop.f32.mrb[15].mxu1  ;;  %v1243_v49 = vpop.f32.mrb[15].mxu0  ;;  %v6049_v50 = vmul.f32 0.35355338, %v4953_v16  ;;  %v1285_v5 = vsel %vm1072_vm11, %v6045_v3, -inf  ;;  %v1079_v39 = vsel %vm1072_vm11, %v6081_v26, -inf }
 0x201   : > { %v6051_v51 = vmul.f32 0.35355338, %v1243_v49  ;;  %v1279_v13 = vsel %vm1072_vm11, %v6047_v8, -inf  ;;  %1286 = vmax.xlane.f32.xlu1 %v1285_v5  ;;  %v6077_v23 = vmul.f32 0.35355338, %v1036_v44  ;;  %v1073_v35 = vsel %vm1072_vm11, %v6073_v21, -inf }
 0x202   : > { %1280 = vmax.xlane.f32.xlu0 %v1279_v13  ;;  %v1288_v53 = vsel %vm1072_vm11, %v6049_v50, -inf  ;;  %v6085_v36 = vmul.f32 0.35355338, %v4937_v12 }
 0x203   : > { %v1282_v61 = vsel %vm1072_vm11, %v6051_v51, -inf  ;;  %v1076_v37 = vsel %vm1072_vm11, %v6077_v23, -inf }
 0x204   : > { %v1082_v43 = vsel %vm1072_vm11, %v6085_v36, -inf }
 0x205   : > { %v4940_v56 = vpop.f32.mrb[16].mxu1  ;;  %v4956_v60 = vpop.f32.mrb[16].mxu0  ;;  %1289 = vmax.xlane.f32.xlu1 %v1288_v53 }
 0x206   : > { %1283 = vmax.xlane.f32.xlu0 %v1282_v61  ;;  %v1049_v63 = vpop.f32.mrb[17].mxu1  ;;  %v1256_v0 = vpop.f32.mrb[17].mxu0  ;;  %v6063_v14 = vmul.f32 0.35355338, %v4956_v60  ;;  %v6097_v46 = vmul.f32 0.35355338, %v4940_v56 }
 0x207   : > { %v6061_v1 = vmul.f32 0.35355338, %v1256_v0  ;;  %v4941_v2 = vpop.f32.mrb[18].mxu1  ;;  %v4957_v7 = vpop.f32.mrb[18].mxu0  ;;  %v6089_v38 = vmul.f32 0.35355338, %v1049_v63 }
 0x208   : > { %v1052_v9 = vpop.f32.mrb[19].mxu1  ;;  %v1259_v10 = vpop.f32.mrb[19].mxu0  ;;  %v6069_v18 = vmul.f32 0.35355338, %v4957_v7  ;;  %v1297_v22 = vsel %vm1072_vm11, %v6063_v14, -inf  ;;  %v1091_v58 = vsel %vm1072_vm11, %v6097_v46, -inf }
 0x209   : > { %v6065_v15 = vmul.f32 0.35355338, %v1259_v10  ;;  %v1291_v17 = vsel %vm1072_vm11, %v6061_v1, -inf  ;;  %v6093_v40 = vmul.f32 0.35355338, %v1052_v9  ;;  %v1085_v55 = vsel %vm1072_vm11, %v6089_v38, -inf }
 0x20a   : > { %1292 = vmax.xlane.f32.xlu0 %v1291_v17  ;;  %v1300_v25 = vsel %vm1072_vm11, %v6069_v18, -inf  ;;  %v6101_v11 = vmul.f32 0.35355338, %v4941_v2 }
 0x20b   : > { %v1294_v19 = vsel %vm1072_vm11, %v6065_v15, -inf  ;;  %v1088_v59 = vsel %vm1072_vm11, %v6093_v40, -inf }
 0x20c   : > { %1295 = vmax.xlane.f32.xlu1 %v1294_v19  ;;  %v1094_v6 = vsel %vm1072_vm11, %v6101_v11, -inf }
 0x20e   : > { %1298 = vmax.xlane.f32.xlu0 %v1297_v22 }
 0x210   : > { %1301 = vmax.xlane.f32.xlu1 %v1300_v25 }
 0x212   : > { %1074 = vmax.xlane.f32.xlu0 %v1073_v35 }
 0x214   : > { %1077 = vmax.xlane.f32.xlu1 %v1076_v37 }
 0x216   : > { %1080 = vmax.xlane.f32.xlu0 %v1079_v39 }
 0x218   : > { %1083 = vmax.xlane.f32.xlu1 %v1082_v43 }
 0x21a   : > { %1086 = vmax.xlane.f32.xlu0 %v1085_v55 }
 0x21c   : > { %1089 = vmax.xlane.f32.xlu1 %v1088_v59 }
 0x21e   : > { %v5000_v62 = vpop.f32.mrb[20].mxu0  ;;  %1092 = vmax.xlane.f32.xlu0 %v1091_v58 }
 0x21f   : > { %v1600_v4 = vpop.f32.mrb[21].mxu0  ;;  %v6111_v49 = vmul.f32 0.35355338, %v5000_v62 }
 0x220   : > { %v6109_v12 = vmul.f32 0.35355338, %v1600_v4  ;;  %v5001_v16 = vpop.f32.mrb[22].mxu0  ;;  %1095 = vmax.xlane.f32.xlu1 %v1094_v6 }
 0x221   : > { %v1603_v44 = vpop.f32.mrb[23].mxu0  ;;  %v6117_v53 = vmul.f32 0.35355338, %v5001_v16  ;;  %v1645_v61 = vsel %vm1072_vm11, %v6111_v49, -inf }
 0x222   : > { %v6113_v5 = vmul.f32 0.35355338, %v1603_v44  ;;  %v1639_v13 = vsel %vm1072_vm11, %v6109_v12, -inf }
 0x223   : > { %1640 = vmax.xlane.f32.xlu0 %v1639_v13  ;;  %v1648_v7 = vsel %vm1072_vm11, %v6117_v53, -inf }
 0x224   : > { %v1642_v56 = vsel %vm1072_vm11, %v6113_v5, -inf }
 0x225   : > { %1643 = vmax.xlane.f32.xlu1 %v1642_v56 }
 0x226   : > { %v5004_v60 = vpop.f32.mrb[24].mxu0 }
 0x227   : > { %v1616_v63 = vpop.f32.mrb[25].mxu0  ;;  %1646 = vmax.xlane.f32.xlu0 %v1645_v61  ;;  %v6127_v10 = vmul.f32 0.35355338, %v5004_v60 }
 0x228   : > { %v6123_v0 = vmul.f32 0.35355338, %v1616_v63  ;;  %v5005_v2 = vpop.f32.mrb[26].mxu0 }
 0x229   : > { %v1619_v9 = vpop.f32.mrb[27].mxu0  ;;  %1649 = vmax.xlane.f32.xlu1 %v1648_v7  ;;  %v6133_v22 = vmul.f32 0.35355338, %v5005_v2  ;;  %v1657_v35 = vsel %vm1072_vm11, %v6127_v10, -inf }
 0x22a   : > { %v6129_v17 = vmul.f32 0.35355338, %v1619_v9  ;;  %v1651_v19 = vsel %vm1072_vm11, %v6123_v0, -inf }
 0x22b   : > { %1652 = vmax.xlane.f32.xlu0 %v1651_v19  ;;  %v1660_v37 = vsel %vm1072_vm11, %v6133_v22, -inf }
 0x22c   : > { %v1654_v25 = vsel %vm1072_vm11, %v6129_v17, -inf }
 0x22d   : > { %1655 = vmax.xlane.f32.xlu1 %v1654_v25 }
 0x22f   : > { %1658 = vmax.xlane.f32.xlu0 %v1657_v35 }
 0x231   : > { %1661 = vmax.xlane.f32.xlu1 %v1660_v37 }
 0x28e   : > { %v1287_v39 = vpop.xlane.xlu1 %1286 }
 0x28f   : > { %v1281_v43 = vpop.xlane.xlu0 %1280  ;;  %v1305_v55 = vsub.f32 %v6045_v3, %v1287_v39 }
 0x290   : > { %v1303_v59 = vsub.f32 %v6047_v8, %v1281_v43 }
 0x291   : > { %v1315_v58 = vmul.f32 1.442695, %v1305_v55 }
 0x292   : > { %v1311_v62 = vmul.f32 1.442695, %v1303_v59  ;;  %v1290_v4 = vpop.xlane.xlu1 %1289 }
 0x293   : > { %v1284_v6 = vpop.xlane.xlu0 %1283  ;;  %v1306_v16 = vsub.f32 %v6049_v50, %v1290_v4 }
 0x294   : > { %v1304_v44 = vsub.f32 %v6051_v51, %v1284_v6  ;;  %5363 = vpow2.f32 %v1311_v62 }
 0x295   : > { %5365 = vpow2.f32 %v1315_v58  ;;  %v1317_v56 = vmul.f32 1.442695, %v1306_v16 }
 0x296   : > { %v1313_v13 = vmul.f32 1.442695, %v1304_v44 }
 0x297   : > { %v1293_v60 = vpop.xlane.xlu0 %1292 }
 0x298   : > { %v1307_v61 = vsub.f32 %v6061_v1, %v1293_v60  ;;  %5367 = vpow2.f32 %v1313_v13 }
 0x299   : > { %v1296_v63 = vpop.xlane.xlu1 %1295  ;;  %5369 = vpow2.f32 %v1317_v56 }
 0x29a   : > { %v1319_v3 = vmul.f32 1.442695, %v1307_v61  ;;  %v1308_v8 = vsub.f32 %v6065_v15, %v1296_v63 }
 0x29b   : > { %v1299_v2 = vpop.xlane.xlu0 %1298 }
 0x29c   : > { %5371 = vpow2.f32 %v1319_v3  ;;  %v1321_v7 = vmul.f32 1.442695, %v1308_v8  ;;  %v1309_v50 = vsub.f32 %v6063_v14, %v1299_v2 }
 0x29d   : > { %v1302_v9 = vpop.xlane.xlu1 %1301 }
 0x29e   : > { %v1323_v51 = vmul.f32 1.442695, %v1309_v50  ;;  %v1310_v19 = vsub.f32 %v6069_v18, %v1302_v9  ;;  %v6149_v25 = vpop.eup %5363  ;;  %5373 = vpow2.f32 %v1321_v7 }
 0x29f   : > { %v1075_v35 = vpop.xlane.xlu0 %1074  ;;  %v6151_v1 = vpop.eup %5365  ;;  %v1327_v39 = vsel %vm1072_vm11, %v6149_v25, 0.0 }
 0x2a0   : > { %5375 = vpow2.f32 %v1323_v51  ;;  %v1325_v37 = vmul.f32 1.442695, %v1310_v19  ;;  %v1097_v15 = vsub.f32 %v6073_v21, %v1075_v35  ;;  %1328 = vadd.xlane.f32.xlu0 %v1327_v39  ;;  %v1333_v58 = vsel %vm1072_vm11, %v6151_v1, 0.0 }
 0x2a1   : > { %v1078_v43 = vpop.xlane.xlu1 %1077 }
 0x2a2   : > { %v1105_v14 = vmul.f32 1.442695, %v1097_v15  ;;  %v1098_v55 = vsub.f32 %v6077_v23, %v1078_v43  ;;  %v6157_v59 = vpop.eup %5367  ;;  %5377 = vpow2.f32 %v1325_v37 }
 0x2a3   : > { %v1081_v18 = vpop.xlane.xlu0 %1080  ;;  %v1330_v21 = vsel %vm1072_vm11, %v6157_v59, 0.0  ;;  %v6164_v6 = vpop.eup %5369 }
 0x2a4   : > { %5379 = vpow2.f32 %v1105_v14  ;;  %v1107_v62 = vmul.f32 1.442695, %v1098_v55  ;;  %v1099_v4 = vsub.f32 %v6081_v26, %v1081_v18  ;;  %1334 = vadd.xlane.f32.xlu0 %v1333_v58  ;;  %1331 = vadd.xlane.f32.xlu1 %v1330_v21  ;;  %v1336_v63 = vsel %vm1072_vm11, %v6164_v6, 0.0 }
 0x2a5   : > { %v1084_v16 = vpop.xlane.xlu1 %1083 }
 0x2a6   : > { %v6166_v23 = vpop.eup %5371  ;;  %v1109_v44 = vmul.f32 1.442695, %v1099_v4  ;;  %v1100_v13 = vsub.f32 %v6085_v36, %v1084_v16  ;;  %5381 = vpow2.f32 %v1107_v62 }
 0x2a7   : > { %v1087_v56 = vpop.xlane.xlu0 %1086  ;;  %v1339_v60 = vsel %vm1072_vm11, %v6166_v23, 0.0 }
 0x2a8   : > { %5383 = vpow2.f32 %v1109_v44  ;;  %v1111_v26 = vmul.f32 1.442695, %v1100_v13  ;;  %v1101_v61 = vsub.f32 %v6089_v38, %v1087_v56  ;;  %v6174_v3 = vpop.eup %5373  ;;  %1340 = vadd.xlane.f32.xlu0 %v1339_v60  ;;  %1337 = vadd.xlane.f32.xlu1 %v1336_v63 }
 0x2a9   : > { %v1090_v8 = vpop.xlane.xlu1 %1089  ;;  %v1342_v19 = vsel %vm1072_vm11, %v6174_v3, 0.0 }
 0x2aa   : > { %v6176_v2 = vpop.eup %5375  ;;  %v1113_v36 = vmul.f32 1.442695, %v1101_v61  ;;  %v1102_v7 = vsub.f32 %v6093_v40, %v1090_v8  ;;  %5385 = vpow2.f32 %v1111_v26 }
 0x2ab   : > { %v1093_v50 = vpop.xlane.xlu0 %1092  ;;  %v1345_v9 = vsel %vm1072_vm11, %v6176_v2, 0.0 }
 0x2ac   : > { %5387 = vpow2.f32 %v1113_v36  ;;  %v1115_v38 = vmul.f32 1.442695, %v1102_v7  ;;  %v1103_v51 = vsub.f32 %v6097_v46, %v1093_v50  ;;  %v6184_v35 = vpop.eup %5377  ;;  %1346 = vadd.xlane.f32.xlu0 %v1345_v9  ;;  %1343 = vadd.xlane.f32.xlu1 %v1342_v19 }
 0x2ad   : > { %v1096_v37 = vpop.xlane.xlu1 %1095  ;;  %v1348_v55 = vsel %vm1072_vm11, %v6184_v35, 0.0 }
 0x2ae   : > { %v6186_v15 = vpop.eup %5379  ;;  %v1117_v40 = vmul.f32 1.442695, %v1103_v51  ;;  %v1104_v39 = vsub.f32 %v6101_v11, %v1096_v37  ;;  %5389 = vpow2.f32 %v1115_v38 }
 0x2af   : > { %v1121_v43 = vsel %vm1072_vm11, %v6186_v15, 0.0 }
 0x2b0   : > { %5391 = vpow2.f32 %v1117_v40  ;;  %v1119_v14 = vmul.f32 1.442695, %v1104_v39  ;;  %v1641_v46 = vpop.xlane.xlu0 %1640  ;;  %v6193_v18 = vpop.eup %5381  ;;  %1122 = vadd.xlane.f32.xlu0 %v1121_v43  ;;  %1349 = vadd.xlane.f32.xlu1 %v1348_v55 }
 0x2b1   : > { %v1663_v58 = vsub.f32 %v6109_v12, %v1641_v46  ;;  %v1124_v13 = vsel %vm1072_vm11, %v6193_v18, 0.0 }
 0x2b2   : > { %v6196_v62 = vpop.eup %5383  ;;  %v1644_v4 = vpop.xlane.xlu1 %1643  ;;  %5393 = vpow2.f32 %v1119_v14 }
 0x2b3   : > { %v1671_v11 = vmul.f32 1.442695, %v1663_v58  ;;  %v1664_v21 = vsub.f32 %v6113_v5, %v1644_v4  ;;  %v1127_v16 = vsel %vm1072_vm11, %v6196_v62, 0.0 }
 0x2b4   : > { %v1647_v44 = vpop.xlane.xlu0 %1646  ;;  %v6203_v56 = vpop.eup %5385  ;;  %1128 = vadd.xlane.f32.xlu0 %v1127_v16  ;;  %1125 = vadd.xlane.f32.xlu1 %v1124_v13 }
 0x2b5   : > { %5395 = vpow2.f32 %v1671_v11  ;;  %v1673_v12 = vmul.f32 1.442695, %v1664_v21  ;;  %v1665_v60 = vsub.f32 %v6111_v49, %v1647_v44  ;;  %v1130_v7 = vsel %vm1072_vm11, %v6203_v56, 0.0 }
 0x2b6   : > { %v6206_v26 = vpop.eup %5387  ;;  %v1650_v61 = vpop.xlane.xlu1 %1649 }
 0x2b7   : > { %5397 = vpow2.f32 %v1673_v12  ;;  %v1675_v5 = vmul.f32 1.442695, %v1665_v60  ;;  %v1666_v63 = vsub.f32 %v6117_v53, %v1650_v61  ;;  %v1133_v8 = vsel %vm1072_vm11, %v6206_v26, 0.0 }
 0x2b8   : > { %v1653_v36 = vpop.xlane.xlu0 %1652  ;;  %v6213_v50 = vpop.eup %5389  ;;  %1134 = vadd.xlane.f32.xlu0 %v1133_v8  ;;  %1131 = vadd.xlane.f32.xlu1 %v1130_v7 }
 0x2b9   : > { %5399 = vpow2.f32 %v1675_v5  ;;  %v1677_v49 = vmul.f32 1.442695, %v1666_v63  ;;  %v1667_v9 = vsub.f32 %v6123_v0, %v1653_v36  ;;  %v1136_v39 = vsel %vm1072_vm11, %v6213_v50, 0.0 }
 0x2ba   : > { %v6216_v38 = vpop.eup %5391  ;;  %v1656_v51 = vpop.xlane.xlu1 %1655 }
 0x2bb   : > { %5401 = vpow2.f32 %v1677_v49  ;;  %v1679_v53 = vmul.f32 1.442695, %v1667_v9  ;;  %v1668_v19 = vsub.f32 %v6129_v17, %v1656_v51  ;;  %v1139_v37 = vsel %vm1072_vm11, %v6216_v38, 0.0  ;;  %v5341_v9 = vld [vmem:[%s7371_s8] sm:$0xff]   ;;  %v5342_v51 = vld [vmem:[%s7371_s8 + $0x8] ss:$0 sps:$4 sm:$0xff]  }
 0x2bc   : > { %v1659_v40 = vpop.xlane.xlu0 %1658  ;;  %v6223_v43 = vpop.eup %5393  ;;  %1140 = vadd.xlane.f32.xlu0 %v1139_v37  ;;  %1137 = vadd.xlane.f32.xlu1 %v1136_v39 }
 0x2bd   : > { %5403 = vpow2.f32 %v1679_v53  ;;  %v1681_v0 = vmul.f32 1.442695, %v1668_v19  ;;  %v1669_v14 = vsub.f32 %v6127_v10, %v1659_v40  ;;  %v1142_v11 = vsel %vm1072_vm11, %v6223_v43, 0.0  ;;  %5022 = vmatprep.subr.bf16.mxu0 %v5341_v9 }
 0x2be   : > { %v1662_v46 = vpop.xlane.xlu1 %1661  ;;  %5023 = vmatpush3.bf16.msra.mxu0 %v5341_v9  ;;  %v1852_v53 = vsel %vm699_vm0, %v5342_v51, 0 }
 0x2bf   : > { %v6226_v55 = vpop.eup %5395  ;;  %5405 = vpow2.f32 %v1681_v0  ;;  %v1683_v17 = vmul.f32 1.442695, %v1669_v14  ;;  %v1670_v58 = vsub.f32 %v6133_v22, %v1662_v46  ;;  %5308 = vmatprep.subr.msk.bf16.mxu0 %vm699_vm0, %v5342_v51 }
 0x2c0   : > { %v1687_v4 = vsel %vm1072_vm11, %v6226_v55, 0.0  ;;  %1143 = vadd.xlane.f32.xlu1 %v1142_v11 }
 0x2c1   : > { %v6233_v21 = vpop.eup %5397  ;;  %5407 = vpow2.f32 %v1683_v17  ;;  %v1685_v16 = vmul.f32 1.442695, %v1670_v58  ;;  %1688 = vadd.xlane.f32.xlu0 %v1687_v4 }
 0x2c2   : > { %v1690_v22 = vsel %vm1072_vm11, %v6233_v21, 0.0  ;;  %5025 = vmatpush3.bf16.msra.mxu0 %v1852_v53 }
 0x2c3   : > { %v6235_v10 = vpop.eup %5399  ;;  %5409 = vpow2.f32 %v1685_v16 }
 0x2c4   : > { %v1693_v44 = vsel %vm1072_vm11, %v6235_v10, 0.0  ;;  %1691 = vadd.xlane.f32.xlu1 %v1690_v22 }
 0x2c5   : > { %v6241_v13 = vpop.eup %5401  ;;  %1694 = vadd.xlane.f32.xlu0 %v1693_v44 }
 0x2c6   : > { %v1696_v61 = vsel %vm1072_vm11, %v6241_v13, 0.0 }
 0x2c7   : > { %v6243_v12 = vpop.eup %5403 }
 0x2c8   : > { %v1699_v60 = vsel %vm1072_vm11, %v6243_v12, 0.0  ;;  %1697 = vadd.xlane.f32.xlu1 %v1696_v61 }
 0x2c9   : > { %v6249_v5 = vpop.eup %5405  ;;  %1700 = vadd.xlane.f32.xlu0 %v1699_v60 }
 0x2ca   : > { %v1702_v36 = vsel %vm1072_vm11, %v6249_v5, 0.0 }
 0x2cb   : > { %v6251_v63 = vpop.eup %5407 }
 0x2cc   : > { %v1705_v8 = vsel %vm1072_vm11, %v6251_v63, 0.0  ;;  %1703 = vadd.xlane.f32.xlu1 %v1702_v36 }
 0x2cd   : > { %v6257_v7 = vpop.eup %5409  ;;  %1706 = vadd.xlane.f32.xlu0 %v1705_v8 }
 0x2ce   : > { %v1708_v49 = vsel %vm1072_vm11, %v6257_v7, 0.0 }
 0x2d0   : > { %1709 = vadd.xlane.f32.xlu1 %v1708_v49 }
 0x32d   : > { %v1329_v19 = vpop.xlane.xlu0 %1328 }
 0x32e   : > { %5411 = vrcp.f32 %v1329_v19 }
 0x331   : > { %v1335_v37 = vpop.xlane.xlu0 %1334  ;;  %v1332_v40 = vpop.xlane.xlu1 %1331 }
 0x332   : > { %5413 = vrcp.f32 %v1332_v40 }
 0x333   : > { %5415 = vrcp.f32 %v1335_v37 }
 0x335   : > { %v1341_v39 = vpop.xlane.xlu0 %1340  ;;  %v1338_v0 = vpop.xlane.xlu1 %1337 }
 0x336   : > { %5417 = vrcp.f32 %v1338_v0 }
 0x337   : > { %5419 = vrcp.f32 %v1341_v39 }
 0x338   : > { %v5412_v17 = vpop.eup %5411 }
 0x339   : > { %v1347_v14 = vpop.xlane.xlu0 %1346  ;;  %v1344_v46 = vpop.xlane.xlu1 %1343  ;;  %v1352_v16 = vmul.f32 %v5412_v17, %v6149_v25 }
 0x33a   : > { %5421 = vrcp.f32 %v1344_v46 }
 0x33b   : > { %5423 = vrcp.f32 %v1347_v14 }
 0x33c   : > { %v5414_v58 = vpop.eup %5413 }
 0x33d   : > { %v1123_v4 = vpop.xlane.xlu0 %1122  ;;  %v1350_v11 = vpop.xlane.xlu1 %1349  ;;  %v1354_v44 = vmul.f32 %v5414_v58, %v6157_v59 }
 0x33e   : > { %v5416_v22 = vpop.eup %5415  ;;  %5425 = vrcp.f32 %v1350_v11 }
 0x33f   : > { %v1367_v60 = vpack.c.bf16 %v1354_v44, %v1352_v16  ;;  %5427 = vrcp.f32 %v1123_v4  ;;  %v1356_v49 = vmul.f32 %v5416_v22, %v6151_v1 }
 0x340   : > { %v5418_v61 = vpop.eup %5417 }
 0x341   : > { %v1129_v8 = vpop.xlane.xlu0 %1128  ;;  %v1126_v36 = vpop.xlane.xlu1 %1125  ;;  %v1358_v9 = vmul.f32 %v5418_v61, %v6164_v6  ;;  %4966 = vmatprep.mubr.msk.bf16.mxu1 %vm1072_vm11, %v1367_v60 }
 0x342   : > { %v5420_v51 = vpop.eup %5419  ;;  %5429 = vrcp.f32 %v1126_v36 }
 0x343   : > { %v1368_v53 = vpack.c.bf16 %v1358_v9, %v1356_v49  ;;  %5431 = vrcp.f32 %v1129_v8  ;;  %v1360_v37 = vmul.f32 %v5420_v51, %v6166_v23 }
 0x344   : > { %v5422_v19 = vpop.eup %5421 }
 0x345   : > { %v1135_v25 = vpop.xlane.xlu0 %1134  ;;  %v1132_v59 = vpop.xlane.xlu1 %1131  ;;  %4967 = vmatmul.mubr.msk.bf16.vlgmr.msra.gmra.mrb[20].mxu1 %vm1072_vm11, %v1368_v53  ;;  %v1362_v40 = vmul.f32 %v5422_v19, %v6174_v3 }
 0x346   : > { %v5424_v39 = vpop.eup %5423  ;;  %4975 = vmatpush3.bf16.msk.msra.mxu1 %vm6028_vm10, %v5958_v24  ;;  %5433 = vrcp.f32 %v1132_v59 }
 0x347   : > { %4976 = vmatprep.subr.msk.bf16.mxu1 %vm6028_vm10, %v5953_v20  ;;  %v1369_v1 = vpack.c.bf16 %v1362_v40, %v1360_v37  ;;  %5435 = vrcp.f32 %v1135_v25  ;;  %v1364_v23 = vmul.f32 %v5424_v39, %v6176_v2 }
 0x348   : > { %v5426_v6 = vpop.eup %5425 }
 0x349   : > { %v1141_v0 = vpop.xlane.xlu0 %1140  ;;  %v1138_v14 = vpop.xlane.xlu1 %1137  ;;  %4970 = vmatprep.mubr.msk.bf16.mxu1 %vm1072_vm11, %v1369_v1  ;;  %v1366_v3 = vmul.f32 %v5426_v6, %v6184_v35 }
 0x34a   : > { %v5428_v46 = vpop.eup %5427  ;;  %4977 = vmatpush3.bf16.msk.msra.mxu1 %vm6028_vm10, %v5953_v20  ;;  %5437 = vrcp.f32 %v1138_v14 }
 0x34b   : > { %4978 = vmatprep.subr.msk.bf16.mxu1 %vm6028_vm10, %v5965_v57  ;;  %v1370_v17 = vpack.c.bf16 %v1366_v3, %v1364_v23  ;;  %5439 = vrcp.f32 %v1141_v0  ;;  %v1146_v2 = vmul.f32 %v5428_v46, %v6186_v15 }
 0x34c   : > { %v5430_v58 = vpop.eup %5429 }
 0x34d   : > { %v1144_v11 = vpop.xlane.xlu1 %1143  ;;  %4971 = vmatmul.mubr.msk.bf16.gmra.mrb[24].mxu1 %vm1072_vm11, %v1370_v17  ;;  %v1148_v35 = vmul.f32 %v5430_v58, %v6193_v18  ;;  %v5432_v16 = vpop.eup %5431 }
 0x34e   : > { %v1689_v4 = vpop.xlane.xlu0 %1688  ;;  %4979 = vmatpush3.bf16.msk.msra.mxu1 %vm6028_vm10, %v5965_v57  ;;  %5441 = vrcp.f32 %v1144_v11  ;;  %v1150_v18 = vmul.f32 %v5432_v16, %v6196_v62 }
 0x34f   : > { %4980 = vmatprep.subr.msk.bf16.mxu1 %vm6028_vm10, %v5961_v48  ;;  %v1161_v44 = vpack.c.bf16 %v1148_v35, %v1146_v2  ;;  %5443 = vrcp.f32 %v1689_v4 }
 0x350   : > { %v5434_v22 = vpop.eup %5433 }
 0x351   : > { %v1692_v61 = vpop.xlane.xlu1 %1691  ;;  %v1152_v8 = vmul.f32 %v5434_v22, %v6203_v56  ;;  %4982 = vmatprep.mubr.msk.bf16.mxu1 %vm1072_vm11, %v1161_v44  ;;  %v5436_v36 = vpop.eup %5435 }
 0x352   : > { %v1695_v60 = vpop.xlane.xlu0 %1694  ;;  %4981 = vmatpush3.bf16.msk.msra.mxu1 %vm6028_vm10, %v5961_v48  ;;  %5445 = vrcp.f32 %v1692_v61  ;;  %v1154_v62 = vmul.f32 %v5436_v36, %v6206_v26 }
 0x353   : > { %v1162_v49 = vpack.c.bf16 %v1152_v8, %v1150_v18  ;;  %5006 = vmatprep.subr.msk.bf16.mxu1 %vm6304_vm12, %v5958_v24  ;;  %5447 = vrcp.f32 %v1695_v60  ;;  %v4509_v8 = vld [vmem:[%s7372_s9] ss:$0 sm:$0xff] }
 0x354   : > { %v5438_v9 = vpop.eup %5437 }
 0x355   : > { %v1698_v53 = vpop.xlane.xlu1 %1697  ;;  %4983 = vmatmul.mubr.msk.bf16.vlgmr.msra.gmra.mrb[20].mxu1 %vm1072_vm11, %v1162_v49  ;;  %v1156_v56 = vmul.f32 %v5438_v9, %v6213_v50  ;;  %v5440_v19 = vpop.eup %5439 }
 0x356   : > { %v1701_v51 = vpop.xlane.xlu0 %1700  ;;  %5007 = vmatpush3.bf16.msk.msra.mxu1 %vm6304_vm12, %v5958_v24  ;;  %5449 = vrcp.f32 %v1698_v53  ;;  %v1158_v26 = vmul.f32 %v5440_v19, %v6216_v38 }
 0x357   : > { %5008 = vmatprep.subr.msk.bf16.mxu1 %vm6304_vm12, %v5953_v20  ;;  %v1163_v25 = vpack.c.bf16 %v1156_v56, %v1154_v62  ;;  %5451 = vrcp.f32 %v1701_v51 }
 0x358   : > { %v5442_v59 = vpop.eup %5441 }
 0x359   : > { %v1704_v40 = vpop.xlane.xlu1 %1703  ;;  %4986 = vmatprep.mubr.msk.bf16.mxu1 %vm1072_vm11, %v1163_v25  ;;  %v1160_v50 = vmul.f32 %v5442_v59, %v6223_v43  ;;  %v5444_v39 = vpop.eup %5443 }
 0x35a   : > { %v1707_v37 = vpop.xlane.xlu0 %1706  ;;  %5009 = vmatpush3.bf16.msk.msra.mxu1 %vm6304_vm12, %v5953_v20  ;;  %5453 = vrcp.f32 %v1704_v40  ;;  %v1712_v38 = vmul.f32 %v5444_v39, %v6226_v55 }
 0x35b   : > { %5455 = vrcp.f32 %v1707_v37  ;;  %5010 = vmatprep.subr.msk.bf16.mxu1 %vm6304_vm12, %v5965_v57  ;;  %v1164_v24 = vpack.c.bf16 %v1160_v50, %v1158_v26 }
 0x35c   : > { %v5446_v1 = vpop.eup %5445 }
 0x35d   : > { %v1710_v6 = vpop.xlane.xlu1 %1709  ;;  %4987 = vmatmul.mubr.msk.bf16.gmra.mrb[24].mxu1 %vm1072_vm11, %v1164_v24  ;;  %v1714_v43 = vmul.f32 %v5446_v1, %v6233_v21  ;;  %v5448_v0 = vpop.eup %5447 }
 0x35e   : > { %5457 = vrcp.f32 %v1710_v6  ;;  %5011 = vmatpush3.bf16.msk.msra.mxu1 %vm6304_vm12, %v5965_v57  ;;  %v1716_v23 = vmul.f32 %v5448_v0, %v6235_v10 }
 0x35f   : > { %5012 = vmatprep.subr.msk.bf16.mxu1 %vm6304_vm12, %v5961_v48  ;;  %v1727_v20 = vpack.c.bf16 %v1714_v43, %v1712_v38 }
 0x360   : > { %v5450_v14 = vpop.eup %5449 }
 0x361   : > { %v1718_v3 = vmul.f32 %v5450_v14, %v6241_v13  ;;  %5014 = vmatprep.mubr.msk.bf16.mxu1 %vm1072_vm11, %v1727_v20  ;;  %v5452_v55 = vpop.eup %5451 }
 0x362   : > { %5013 = vmatpush3.bf16.msk.msra.mxu1 %vm6304_vm12, %v5961_v48  ;;  %v1720_v17 = vmul.f32 %v5452_v55, %v6243_v12 }
 0x363   : > { %v1728_v21 = vpack.c.bf16 %v1718_v3, %v1716_v23 }
 0x364   : > { %v5454_v46 = vpop.eup %5453 }
 0x365   : > { %v5456_v57 = vpop.eup %5455  ;;  %5015 = vmatmul.mubr.msk.bf16.vlgmr.msra.gmra.mrb[20].mxu1 %vm1072_vm11, %v1728_v21  ;;  %v1722_v58 = vmul.f32 %v5454_v46, %v6249_v5 }
 0x366   : > { %v1724_v13 = vmul.f32 %v5456_v57, %v6251_v63 }
 0x367   : > { %v1729_v10 = vpack.c.bf16 %v1722_v58, %v1720_v17 }
 0x368   : > { %v5458_v4 = vpop.eup %5457 }
 0x369   : > { %v1726_v11 = vmul.f32 %v5458_v4, %v6257_v7  ;;  %5018 = vmatprep.mubr.msk.bf16.mxu1 %vm1072_vm11, %v1729_v10 }
 0x36b   : > { %v1730_v2 = vpack.c.bf16 %v1726_v11, %v1724_v13 }
 0x36d   : > { %5019 = vmatmul.mubr.msk.bf16.gmra.mrb[24].mxu1 %vm1072_vm11, %v1730_v2 }
 0x438   : > { %v5016_v48 = vpop.f32.mrb[20].mxu1 }
 0x439   : > { %v1777_v35 = vpop.f32.mrb[21].mxu1 }
 0x43a   : > { %v5017_v16 = vpop.f32.mrb[22].mxu1 }
 0x43b   : > { %v1817_v44 = vpack.c.bf16 %v5017_v16, %v5016_v48  ;;  %v1780_v22 = vpop.f32.mrb[23].mxu1 }
 0x43c   : > { %v1816_v60 = vpack.c.bf16 %v1780_v22, %v1777_v35 }
 0x43e   : > { %5026 = vmatprep.mubr.msk.bf16.mxu0 %vm686_vm1, %v1816_v60 }
 0x43f   : > { %5027 = vmatmul.mubr.msk.bf16.vlgmr.msra.gmra.mrb[28].mxu0 %vm686_vm1, %v1817_v44 }
 0x440   : > { %v5020_v12 = vpop.f32.mrb[24].mxu1 }
 0x441   : > { %v1793_v5 = vpop.f32.mrb[25].mxu1 }
 0x442   : > { %v5021_v63 = vpop.f32.mrb[26].mxu1 }
 0x443   : > { %v1819_v61 = vpack.c.bf16 %v5021_v63, %v5020_v12  ;;  %v1796_v7 = vpop.f32.mrb[27].mxu1 }
 0x444   : > { %v1818_v18 = vpack.c.bf16 %v1796_v7, %v1793_v5 }
 0x446   : > { %5030 = vmatprep.mubr.msk.bf16.mxu0 %vm686_vm1, %v1818_v18 }
 0x447   : > { %5031 = vmatmul.mubr.msk.bf16.gmra.mrb[32].mxu0 %vm686_vm1, %v1819_v61 }
 0x512   : > { %v5028_v36 = vpop.f32.mrb[28].mxu0 }
 0x513   : > { %v1888_v49 = vpop.f32.mrb[29].mxu0  ;;  %v1897_v9 = vadd.f32 %v5028_v36, %v4509_v8 }
 0x514   : > { %v1889_v51 = vadd.f32 %v4509_v8, %v1888_v49  ;;  %v5029_v53 = vpop.f32.mrb[30].mxu0 }
 0x515   : > { %v1891_v62 = vpop.f32.mrb[31].mxu0  ;;  %v1900_v56 = vadd.f32 %v5029_v53, %v4509_v8  ;;  %v1921_v40 = vadd.f32 %v1897_v9, %v5803_v33 }
 0x516   : > { %v1892_v19 = vadd.f32 %v4509_v8, %v1891_v62  ;;  %v1919_v25 = vadd.f32 %v1889_v51, %v5799_v31 }
 0x517   : > { %v1922_v39 = vadd.f32 %v1900_v56, %v5805_v34  ;;  %v1935_v43 = vsel %vm686_vm1, %v1921_v40, 0.0 }
 0x518   : > { %v1929_v59 = vsel %vm686_vm1, %v1919_v25, 0.0  ;;  %v1920_v37 = vadd.f32 %v1892_v19, %v5801_v32 }
 0x519   : > { %1930 = vadd.xlane.f32.xlu0 %v1929_v59  ;;  %v1938_v32 = vsel %vm686_vm1, %v1922_v39, 0.0 }
 0x51a   : > { %v5032_v26 = vpop.f32.mrb[32].mxu0  ;;  %v1932_v50 = vsel %vm686_vm1, %v1920_v37, 0.0 }
 0x51b   : > { %1933 = vadd.xlane.f32.xlu1 %v1932_v50  ;;  %v1904_v24 = vpop.f32.mrb[33].mxu0  ;;  %v1913_v1 = vadd.f32 %v5032_v26, %v4509_v8 }
 0x51c   : > { %v1905_v6 = vadd.f32 %v4509_v8, %v1904_v24  ;;  %v5033_v38 = vpop.f32.mrb[34].mxu0  ;;  %v5343_v24 = vld [vmem:[%s7375_s12] sm:$0xff]  }
 0x51d   : > { %1936 = vadd.xlane.f32.xlu0 %v1935_v43  ;;  %v1907_v31 = vpop.f32.mrb[35].mxu0  ;;  %v1916_v0 = vadd.f32 %v5033_v38, %v4509_v8  ;;  %v1925_v23 = vadd.f32 %v1913_v1, %v5795_v29  ;;  %5034 = vmatprep.subr.bf16.mxu1 %v5343_v24  ;;  %v5344_v1 = vld [vmem:[%s7375_s12 + $0x8] ss:$0 sps:$4 sm:$0xff]   ;;  %v5345_v38 = vld [vmem:[%s7377_s14] sm:$0xff]  }
 0x51e   : > { %v1908_v20 = vadd.f32 %v4509_v8, %v1907_v31  ;;  %v1923_v33 = vadd.f32 %v1905_v6, %v5791_v27  ;;  %5035 = vmatpush3.bf16.msra.mxu1 %v5343_v24  ;;  %v2098_v6 = vsel %vm699_vm0, %v5344_v1, 0  ;;  %v5346_v43 = vld [vmem:[%s7377_s14 + $0x8] sm:$0xff]   ;;  %5046 = vmatprep.subr.bf16.mxu0 %v5345_v38 }
 0x51f   : > { %1939 = vadd.xlane.f32.xlu1 %v1938_v32  ;;  %v1926_v55 = vadd.f32 %v1916_v0, %v5797_v30  ;;  %v1947_v21 = vsel %vm686_vm1, %v1925_v23, 0.0  ;;  %5309 = vmatprep.subr.msk.bf16.mxu1 %vm699_vm0, %v5344_v1 }
 0x520   : > { %v1941_v14 = vsel %vm686_vm1, %v1923_v33, 0.0  ;;  %v1924_v34 = vadd.f32 %v1908_v20, %v5793_v28  ;;  %5047 = vmatpush3.bf16.msra.mxu0 %v5345_v38 }
 0x521   : > { %1942 = vadd.xlane.f32.xlu0 %v1941_v14  ;;  %v1950_v46 = vsel %vm686_vm1, %v1926_v55, 0.0  ;;  %5048 = vmatprep.subr.bf16.mxu0 %v5346_v43 }
 0x522   : > { %v1944_v3 = vsel %vm686_vm1, %v1924_v34, 0.0  ;;  %5037 = vmatpush3.bf16.msra.mxu1 %v2098_v6 }
 0x523   : > { %1945 = vadd.xlane.f32.xlu1 %v1944_v3 }
 0x524   : > { %5049 = vmatpush3.bf16.msra.mxu0 %v5346_v43 }
 0x525   : > { %1948 = vadd.xlane.f32.xlu0 %v1947_v21 }
 0x527   : > { %1951 = vadd.xlane.f32.xlu1 %v1950_v46 }
 0x5a6   : > { %v1931_v27 = vpop.xlane.xlu0 %1930 }
 0x5a7   : > { %v1954_v57 = vmul.f32 0.041666668, %v1931_v27 }
 0x5a8   : > { %v1934_v17 = vpop.xlane.xlu1 %1933 }
 0x5a9   : > { %v6380_v58 = vsub.f32 %v1919_v25, %v1954_v57  ;;  %v1955_v28 = vmul.f32 0.041666668, %v1934_v17 }
 0x5aa   : > { %v1937_v4 = vpop.xlane.xlu0 %1936 }
 0x5ab   : > { %v6382_v29 = vsub.f32 %v1920_v37, %v1955_v28  ;;  %v1956_v10 = vmul.f32 0.041666668, %v1937_v4  ;;  %v1970_v30 = vmul.f32 %v6380_v58, %v6380_v58 }
 0x5ac   : > { %v1940_v13 = vpop.xlane.xlu1 %1939 }
 0x5ad   : > { %v6386_v11 = vsub.f32 %v1921_v40, %v1956_v10  ;;  %v1957_v2 = vmul.f32 0.041666668, %v1940_v13  ;;  %v1978_v48 = vsel %vm686_vm1, %v1970_v30, 0.0  ;;  %v1971_v35 = vmul.f32 %v6382_v29, %v6382_v29 }
 0x5ae   : > { %1979 = vadd.xlane.f32.xlu0 %v1978_v48  ;;  %v1943_v16 = vpop.xlane.xlu0 %1942 }
 0x5af   : > { %v6391_v44 = vsub.f32 %v1922_v39, %v1957_v2  ;;  %v1958_v22 = vmul.f32 0.041666668, %v1943_v16  ;;  %v1981_v60 = vsel %vm686_vm1, %v1971_v35, 0.0  ;;  %v1972_v12 = vmul.f32 %v6386_v11, %v6386_v11  ;;  %v4516_v35 = vld [vmem:[%s7373_s10] ss:$0 sm:$0xff] }
 0x5b0   : > { %1982 = vadd.xlane.f32.xlu1 %v1981_v60  ;;  %v1946_v5 = vpop.xlane.xlu1 %1945 }
 0x5b1   : > { %v6396_v63 = vsub.f32 %v1923_v33, %v1958_v22  ;;  %v1959_v61 = vmul.f32 0.041666668, %v1946_v5  ;;  %v1984_v7 = vsel %vm686_vm1, %v1972_v12, 0.0  ;;  %v1973_v18 = vmul.f32 %v6391_v44, %v6391_v44 }
 0x5b2   : > { %1985 = vadd.xlane.f32.xlu0 %v1984_v7  ;;  %v1949_v8 = vpop.xlane.xlu0 %1948 }
 0x5b3   : > { %v6401_v36 = vsub.f32 %v1924_v34, %v1959_v61  ;;  %v1960_v49 = vmul.f32 0.041666668, %v1949_v8  ;;  %v1987_v9 = vsel %vm686_vm1, %v1973_v18, 0.0  ;;  %v1974_v51 = vmul.f32 %v6396_v63, %v6396_v63  ;;  %v4517_v8 = vld [vmem:[%s7374_s11] ss:$0 sm:$0xff] }
 0x5b4   : > { %1988 = vadd.xlane.f32.xlu1 %v1987_v9  ;;  %v1952_v53 = vpop.xlane.xlu1 %1951 }
 0x5b5   : > { %v6406_v62 = vsub.f32 %v1925_v23, %v1960_v49  ;;  %v1961_v56 = vmul.f32 0.041666668, %v1952_v53  ;;  %v1990_v19 = vsel %vm686_vm1, %v1974_v51, 0.0  ;;  %v1975_v25 = vmul.f32 %v6401_v36, %v6401_v36 }
 0x5b6   : > { %1991 = vadd.xlane.f32.xlu0 %v1990_v19 }
 0x5b7   : > { %v6411_v59 = vsub.f32 %v1926_v55, %v1961_v56  ;;  %v1993_v37 = vsel %vm686_vm1, %v1975_v25, 0.0  ;;  %v1976_v40 = vmul.f32 %v6406_v62, %v6406_v62 }
 0x5b8   : > { %1994 = vadd.xlane.f32.xlu1 %v1993_v37 }
 0x5b9   : > { %v1996_v26 = vsel %vm686_vm1, %v1976_v40, 0.0  ;;  %v1977_v50 = vmul.f32 %v6411_v59, %v6411_v59 }
 0x5ba   : > { %1997 = vadd.xlane.f32.xlu0 %v1996_v26 }
 0x5bb   : > { %v1999_v39 = vsel %vm686_vm1, %v1977_v50, 0.0 }
 0x5bc   : > { %2000 = vadd.xlane.f32.xlu1 %v1999_v39 }
 0x63b   : > { %v1980_v31 = vpop.xlane.xlu0 %1979 }
 0x63c   : > { %v2002_v0 = vmul.f32 0.041666668, %v1980_v31 }
 0x63d   : > { %v1983_v20 = vpop.xlane.xlu1 %1982 }
 0x63e   : > { %v2010_v32 = vadd.f32 1e-05, %v2002_v0  ;;  %v2003_v33 = vmul.f32 0.041666668, %v1983_v20 }
 0x63f   : > { %v1986_v14 = vpop.xlane.xlu0 %1985 }
 0x640   : > { %5459 = vrsqrt.f32 %v2010_v32  ;;  %v2011_v34 = vadd.f32 1e-05, %v2003_v33  ;;  %v2004_v23 = vmul.f32 0.041666668, %v1986_v14  ;;  %v5347_v14 = vld [vmem:[%s7377_s14 + $0x10] sm:$0xff]  }
 0x641   : > { %v1989_v3 = vpop.xlane.xlu1 %1988  ;;  %5050 = vmatprep.subr.bf16.mxu0 %v5347_v14 }
 0x642   : > { %5461 = vrsqrt.f32 %v2011_v34  ;;  %v2012_v55 = vadd.f32 1e-05, %v2004_v23  ;;  %v2005_v21 = vmul.f32 0.041666668, %v1989_v3  ;;  %5051 = vmatpush3.bf16.msra.mxu0 %v5347_v14  ;;  %v5348_v34 = vld [vmem:[%s7377_s14 + $0x18] sm:$0xff]  }
 0x643   : > { %v1992_v46 = vpop.xlane.xlu0 %1991  ;;  %5052 = vmatprep.subr.bf16.mxu0 %v5348_v34  ;;  %v4518_v23 = vld [vmem:[%s7376_s13] ss:$0 sm:$0xff] }
 0x644   : > { %5463 = vrsqrt.f32 %v2012_v55  ;;  %v2013_v27 = vadd.f32 1e-05, %v2005_v21  ;;  %v2006_v57 = vmul.f32 0.041666668, %v1992_v46 }
 0x645   : > { %v1995_v17 = vpop.xlane.xlu1 %1994 }
 0x646   : > { %5465 = vrsqrt.f32 %v2013_v27  ;;  %v2014_v28 = vadd.f32 1e-05, %v2006_v57  ;;  %v2007_v4 = vmul.f32 0.041666668, %v1995_v17  ;;  %5053 = vmatpush3.bf16.msra.mxu0 %v5348_v34 }
 0x647   : > { %v1998_v10 = vpop.xlane.xlu0 %1997 }
 0x648   : > { %5467 = vrsqrt.f32 %v2014_v28  ;;  %v2015_v30 = vadd.f32 1e-05, %v2007_v4  ;;  %v2008_v13 = vmul.f32 0.041666668, %v1998_v10 }
 0x649   : > { %v2001_v2 = vpop.xlane.xlu1 %2000 }
 0x64a   : > { %v5460_v48 = vpop.eup %5459  ;;  %5469 = vrsqrt.f32 %v2015_v30  ;;  %v2016_v16 = vadd.f32 1e-05, %v2008_v13  ;;  %v2009_v22 = vmul.f32 0.041666668, %v2001_v2 }
 0x64b   : > { %v2026_v60 = vmul.f32 %v5460_v48, %v6380_v58 }
 0x64c   : > { %v5462_v12 = vpop.eup %5461  ;;  %5471 = vrsqrt.f32 %v2016_v16  ;;  %v2017_v5 = vadd.f32 1e-05, %v2009_v22 }
 0x64d   : > { %v2027_v61 = vmul.f32 %v5462_v12, %v6382_v29  ;;  %v2040_v7 = vmul.f32 %v4516_v35, %v2026_v60 }
 0x64e   : > { %v5464_v18 = vpop.eup %5463  ;;  %5473 = vrsqrt.f32 %v2017_v5 }
 0x64f   : > { %v2028_v49 = vmul.f32 %v5464_v18, %v6386_v11  ;;  %v2041_v9 = vmul.f32 %v4516_v35, %v2027_v61  ;;  %v6444_v58 = vadd.f32 %v4517_v8, %v2040_v7 }
 0x650   : > { %v5466_v51 = vpop.eup %5465 }
 0x651   : > { %v2042_v53 = vmul.f32 %v4516_v35, %v2028_v49  ;;  %v2029_v56 = vmul.f32 %v5466_v51, %v6391_v44  ;;  %v6446_v19 = vadd.f32 %v4517_v8, %v2041_v9 }
 0x652   : > { %v5468_v25 = vpop.eup %5467 }
 0x653   : > { %v2043_v29 = vmul.f32 %v4516_v35, %v2029_v56  ;;  %v2062_v37 = vpack.c.bf16 %v6446_v19, %v6444_v58  ;;  %v2030_v40 = vmul.f32 %v5468_v25, %v6396_v63  ;;  %v6451_v50 = vadd.f32 %v4517_v8, %v2042_v53  ;;  %v4525_v56 = vld [vmem:[%s7378_s15] ss:$0 sm:$0xff] }
 0x654   : > { %v5470_v26 = vpop.eup %5469 }
 0x655   : > { %v6453_v11 = vadd.f32 %v4517_v8, %v2043_v29  ;;  %5038 = vmatprep.mubr.msk.bf16.mxu1 %vm686_vm1, %v2062_v37  ;;  %v2031_v44 = vmul.f32 %v5470_v26, %v6401_v36  ;;  %v2044_v39 = vmul.f32 %v4516_v35, %v2030_v40 }
 0x656   : > { %v5472_v24 = vpop.eup %5471 }
 0x657   : > { %v2032_v1 = vmul.f32 %v5472_v24, %v6406_v62  ;;  %v2063_v6 = vpack.c.bf16 %v6453_v11, %v6451_v50  ;;  %v2045_v38 = vmul.f32 %v4516_v35, %v2031_v44  ;;  %v6462_v31 = vadd.f32 %v4517_v8, %v2044_v39 }
 0x658   : > { %v5474_v43 = vpop.eup %5473 }
 0x659   : > { %v2033_v63 = vmul.f32 %v5474_v43, %v6411_v59  ;;  %5039 = vmatmul.mubr.msk.bf16.vlgmr.msra.gmra.mrb[28].mxu1 %vm686_vm1, %v2063_v6  ;;  %v6464_v0 = vadd.f32 %v4517_v8, %v2045_v38  ;;  %v2046_v20 = vmul.f32 %v4516_v35, %v2032_v1 }
 0x65b   : > { %v2064_v36 = vpack.c.bf16 %v6464_v0, %v6462_v31  ;;  %v2047_v32 = vmul.f32 %v4516_v35, %v2033_v63  ;;  %v6469_v62 = vadd.f32 %v4517_v8, %v2046_v20 }
 0x65d   : > { %5042 = vmatprep.mubr.msk.bf16.mxu1 %vm686_vm1, %v2064_v36  ;;  %v6471_v33 = vadd.f32 %v4517_v8, %v2047_v32 }
 0x65f   : > { %v2065_v59 = vpack.c.bf16 %v6471_v33, %v6469_v62 }
 0x661   : > { %5043 = vmatmul.mubr.msk.bf16.gmra.mrb[32].mxu1 %vm686_vm1, %v2065_v59 }
 0x72c   : > { %v5040_v3 = vpop.f32.mrb[28].mxu1 }
 0x72d   : > { %v2143_v55 = vadd.f32 %v5040_v3, %v4518_v23  ;;  %v2134_v21 = vpop.f32.mrb[29].mxu1 }
 0x72e   : > { %v2135_v46 = vadd.f32 %v4518_v23, %v2134_v21  ;;  %v5041_v27 = vpop.f32.mrb[30].mxu1 }
 0x72f   : > { %v2146_v57 = vadd.f32 %v5041_v27, %v4518_v23  ;;  %v2137_v17 = vpop.f32.mrb[31].mxu1  ;;  %v2167_v4 = vmax.f32 %v2143_v55, 0.0 }
 0x730   : > { %v2138_v28 = vadd.f32 %v4518_v23, %v2137_v17  ;;  %v2165_v30 = vmax.f32 %v2135_v46, 0.0 }
 0x731   : > { %v2168_v10 = vmax.f32 %v2146_v57, 0.0 }
 0x732   : > { %v2166_v13 = vmax.f32 %v2138_v28, 0.0 }
 0x733   : > { %v2174_v2 = vpack.c.bf16 %v2168_v10, %v2167_v4 }
 0x734   : > { %v2173_v48 = vpack.c.bf16 %v2166_v13, %v2165_v30  ;;  %v5044_v35 = vpop.f32.mrb[32].mxu1 }
 0x735   : > { %v2159_v16 = vadd.f32 %v5044_v35, %v4518_v23  ;;  %v2150_v22 = vpop.f32.mrb[33].mxu1 }
 0x736   : > { %v2151_v60 = vadd.f32 %v4518_v23, %v2150_v22  ;;  %v5045_v12 = vpop.f32.mrb[34].mxu1  ;;  %5054 = vmatprep.mubr.msk.bf16.mxu0 %vm1072_vm11, %v2173_v48 }
 0x737   : > { %v2162_v5 = vadd.f32 %v5045_v12, %v4518_v23  ;;  %v2153_v61 = vpop.f32.mrb[35].mxu1  ;;  %5055 = vmatmul.mubr.msk.bf16.vlgmr.msra.gmra.mrb[36].mxu0 %vm1072_vm11, %v2174_v2  ;;  %v2171_v18 = vmax.f32 %v2159_v16, 0.0 }
 0x738   : > { %v2154_v7 = vadd.f32 %v4518_v23, %v2153_v61  ;;  %v2169_v49 = vmax.f32 %v2151_v60, 0.0 }
 0x739   : > { %v2172_v8 = vmax.f32 %v2162_v5, 0.0 }
 0x73a   : > { %v2170_v9 = vmax.f32 %v2154_v7, 0.0 }
 0x73b   : > { %v2176_v51 = vpack.c.bf16 %v2172_v8, %v2171_v18 }
 0x73c   : > { %v2175_v53 = vpack.c.bf16 %v2170_v9, %v2169_v49 }
 0x73e   : > { %5058 = vmatprep.mubr.msk.bf16.mxu0 %vm1072_vm11, %v2175_v53 }
 0x73f   : > { %5059 = vmatmul.mubr.msk.bf16.gmra.mrb[40].mxu0 %vm1072_vm11, %v2176_v51 }
 0x80a   : > { %v5056_v25 = vpop.f32.mrb[36].mxu0 }
 0x80b   : > { %v2262_v29 = vpop.f32.mrb[37].mxu0  ;;  %v2271_v37 = vadd.f32 %v5056_v25, %v4525_v56 }
 0x80c   : > { %v2263_v40 = vadd.f32 %v4525_v56, %v2262_v29  ;;  %v5057_v26 = vpop.f32.mrb[38].mxu0 }
 0x80d   : > { %v2265_v44 = vpop.f32.mrb[39].mxu0  ;;  %v2274_v39 = vadd.f32 %v5057_v26, %v4525_v56  ;;  %v2295_v43 = vadd.f32 %v2271_v37, %v6451_v50 }
 0x80e   : > { %v2266_v24 = vadd.f32 %v4525_v56, %v2265_v44  ;;  %v2293_v1 = vadd.f32 %v2263_v40, %v6444_v58 }
 0x80f   : > { %v2296_v36 = vadd.f32 %v2274_v39, %v6453_v11  ;;  %v2309_v23 = vsel %vm686_vm1, %v2295_v43, 0.0 }
 0x810   : > { %v2303_v6 = vsel %vm686_vm1, %v2293_v1, 0.0  ;;  %v2294_v38 = vadd.f32 %v2266_v24, %v6446_v19 }
 0x811   : > { %2304 = vadd.xlane.f32.xlu0 %v2303_v6  ;;  %v2312_v19 = vsel %vm686_vm1, %v2296_v36, 0.0 }
 0x812   : > { %v5060_v63 = vpop.f32.mrb[40].mxu0  ;;  %v2306_v20 = vsel %vm686_vm1, %v2294_v38, 0.0 }
 0x813   : > { %2307 = vadd.xlane.f32.xlu1 %v2306_v20  ;;  %v2278_v32 = vpop.f32.mrb[41].mxu0  ;;  %v2287_v59 = vadd.f32 %v5060_v63, %v4525_v56 }
 0x814   : > { %v2279_v14 = vadd.f32 %v4525_v56, %v2278_v32  ;;  %v5061_v34 = vpop.f32.mrb[42].mxu0  ;;  %v5349_v32 = vld [vmem:[%s7402_s28 + $0xc] sm:$0xff]  }
 0x815   : > { %2310 = vadd.xlane.f32.xlu0 %v2309_v23  ;;  %v2281_v58 = vpop.f32.mrb[43].mxu0  ;;  %v2290_v3 = vadd.f32 %v5061_v34, %v4525_v56  ;;  %v2299_v46 = vadd.f32 %v2287_v59, %v6469_v62  ;;  %v5351_v59 = vld [vmem:[%s7400_s2 + $0xc] sm:$0xff]   ;;  %5074 = vmatprep.subr.bf16.mxu0 %v5349_v32  ;;  %v5352_v34 = vld [vmem:[%s7400_s2 + $0x14] ss:$0 sps:$4 sm:$0xff]  }
 0x816   : > { %v2282_v55 = vadd.f32 %v4525_v56, %v2281_v58  ;;  %v2297_v50 = vadd.f32 %v2279_v14, %v6462_v31  ;;  %5062 = vmatprep.subr.bf16.mxu1 %v5351_v59  ;;  %5075 = vmatpush3.bf16.msra.mxu0 %v5349_v32  ;;  %v5350_v14 = vld [vmem:[%s7402_s28 + $0x14] ss:$0 sps:$4 sm:$0xff]   ;;  %v2473_v58 = vsel %vm699_vm0, %v5352_v34, 0 }
 0x817   : > { %2313 = vadd.xlane.f32.xlu1 %v2312_v19  ;;  %v2300_v57 = vadd.f32 %v2290_v3, %v6471_v33  ;;  %v2321_v17 = vsel %vm686_vm1, %v2299_v46, 0.0  ;;  %5063 = vmatpush3.bf16.msra.mxu1 %v5351_v59  ;;  %v2562_v23 = vsel %vm699_vm0, %v5350_v14, 0  ;;  %v6567_v3 = vld [vmem:[%s7405_s18 + $0xc] sm:$0xff]  }
 0x818   : > { %v2315_v21 = vsel %vm686_vm1, %v2297_v50, 0.0  ;;  %v2298_v11 = vadd.f32 %v2282_v55, %v6464_v0  ;;  %5311 = vmatprep.subr.msk.bf16.mxu0 %vm699_vm0, %v5350_v14  ;;  %5310 = vmatprep.subr.msk.bf16.mxu1 %vm699_vm0, %v5352_v34 }
 0x819   : > { %2316 = vadd.xlane.f32.xlu0 %v2315_v21  ;;  %v2324_v28 = vsel %vm686_vm1, %v2300_v57, 0.0 }
 0x81a   : > { %v2318_v27 = vsel %vm686_vm1, %v2298_v11, 0.0  ;;  %5077 = vmatpush3.bf16.msra.mxu0 %v2562_v23 }
 0x81b   : > { %2319 = vadd.xlane.f32.xlu1 %v2318_v27  ;;  %5065 = vmatpush3.bf16.msra.mxu1 %v2473_v58  ;;  %v5354_v58 = vld [vmem:[%s7405_s18 + $0x14] ss:$0 sps:$4 sm:$0xff]  }
 0x81c   : > { %5086 = vmatprep.subr.bf16.mxu1 %v6567_v3 }
 0x81d   : > { %2322 = vadd.xlane.f32.xlu0 %v2321_v17 }
 0x81f   : > { %2325 = vadd.xlane.f32.xlu1 %v2324_v28 }
 0x89e   : > { %v2305_v31 = vpop.xlane.xlu0 %2304 }
 0x89f   : > { %v2327_v4 = vmul.f32 0.041666668, %v2305_v31 }
 0x8a0   : > { %v2308_v10 = vpop.xlane.xlu1 %2307 }
 0x8a1   : > { %v6508_v30 = vsub.f32 %v2293_v1, %v2327_v4  ;;  %v2328_v0 = vmul.f32 0.041666668, %v2308_v10 }
 0x8a2   : > { %v2311_v13 = vpop.xlane.xlu0 %2310 }
 0x8a3   : > { %v6510_v62 = vsub.f32 %v2294_v38, %v2328_v0  ;;  %v2329_v2 = vmul.f32 0.041666668, %v2311_v13  ;;  %v2343_v33 = vmul.f32 %v6508_v30, %v6508_v30 }
 0x8a4   : > { %v2314_v48 = vpop.xlane.xlu1 %2313 }
 0x8a5   : > { %v6514_v35 = vsub.f32 %v2295_v43, %v2329_v2  ;;  %v2330_v16 = vmul.f32 0.041666668, %v2314_v48  ;;  %v2351_v22 = vsel %vm686_vm1, %v2343_v33, 0.0  ;;  %v2344_v60 = vmul.f32 %v6510_v62, %v6510_v62 }
 0x8a6   : > { %2352 = vadd.xlane.f32.xlu0 %v2351_v22  ;;  %v2317_v12 = vpop.xlane.xlu0 %2316 }
 0x8a7   : > { %v6519_v5 = vsub.f32 %v2296_v36, %v2330_v16  ;;  %v2331_v61 = vmul.f32 0.041666668, %v2317_v12  ;;  %v2354_v7 = vsel %vm686_vm1, %v2344_v60, 0.0  ;;  %v2345_v18 = vmul.f32 %v6514_v35, %v6514_v35 }
 0x8a8   : > { %2355 = vadd.xlane.f32.xlu1 %v2354_v7  ;;  %v2320_v8 = vpop.xlane.xlu1 %2319 }
 0x8a9   : > { %v6524_v49 = vsub.f32 %v2297_v50, %v2331_v61  ;;  %v2332_v9 = vmul.f32 0.041666668, %v2320_v8  ;;  %v2357_v51 = vsel %vm686_vm1, %v2345_v18, 0.0  ;;  %v2346_v53 = vmul.f32 %v6519_v5, %v6519_v5  ;;  %v4534_v61 = vld [vmem:[%s7379_s16] ss:$0 sm:$0xff] }
 0x8aa   : > { %2358 = vadd.xlane.f32.xlu0 %v2357_v51  ;;  %v2323_v56 = vpop.xlane.xlu0 %2322 }
 0x8ab   : > { %v6529_v25 = vsub.f32 %v2298_v11, %v2332_v9  ;;  %v2333_v29 = vmul.f32 0.041666668, %v2323_v56  ;;  %v2360_v37 = vsel %vm686_vm1, %v2346_v53, 0.0  ;;  %v2347_v40 = vmul.f32 %v6524_v49, %v6524_v49 }
 0x8ac   : > { %2361 = vadd.xlane.f32.xlu1 %v2360_v37  ;;  %v2326_v26 = vpop.xlane.xlu1 %2325  ;;  %v4535_v37 = vld [vmem:[%s7380_s17] ss:$0 sm:$0xff] }
 0x8ad   : > { %v6534_v44 = vsub.f32 %v2299_v46, %v2333_v29  ;;  %v2334_v39 = vmul.f32 0.041666668, %v2326_v26  ;;  %v2363_v24 = vsel %vm686_vm1, %v2347_v40, 0.0  ;;  %v2348_v1 = vmul.f32 %v6529_v25, %v6529_v25 }
 0x8ae   : > { %2364 = vadd.xlane.f32.xlu0 %v2363_v24 }
 0x8af   : > { %v6539_v6 = vsub.f32 %v2300_v57, %v2334_v39  ;;  %v2366_v38 = vsel %vm686_vm1, %v2348_v1, 0.0  ;;  %v2349_v43 = vmul.f32 %v6534_v44, %v6534_v44 }
 0x8b0   : > { %2367 = vadd.xlane.f32.xlu1 %v2366_v38 }
 0x8b1   : > { %v2369_v63 = vsel %vm686_vm1, %v2349_v43, 0.0  ;;  %v2350_v20 = vmul.f32 %v6539_v6, %v6539_v6 }
 0x8b2   : > { %2370 = vadd.xlane.f32.xlu0 %v2369_v63 }
 0x8b3   : > { %v2372_v36 = vsel %vm686_vm1, %v2350_v20, 0.0 }
 0x8b4   : > { %2373 = vadd.xlane.f32.xlu1 %v2372_v36 }
 0x933   : > { %v2353_v55 = vpop.xlane.xlu0 %2352 }
 0x934   : > { %v2375_v19 = vmul.f32 0.041666668, %v2353_v55 }
 0x935   : > { %v2356_v50 = vpop.xlane.xlu1 %2355 }
 0x936   : > { %v2383_v21 = vadd.f32 1e-05, %v2375_v19  ;;  %v2376_v11 = vmul.f32 0.041666668, %v2356_v50 }
 0x937   : > { %v2359_v46 = vpop.xlane.xlu0 %2358 }
 0x938   : > { %5475 = vrsqrt.f32 %v2383_v21  ;;  %v2384_v27 = vadd.f32 1e-05, %v2376_v11  ;;  %v2377_v57 = vmul.f32 0.041666668, %v2359_v46  ;;  %v2651_v46 = vsel %vm699_vm0, %v5354_v58, 0 }
 0x939   : > { %v2362_v17 = vpop.xlane.xlu1 %2361 }
 0x93a   : > { %5477 = vrsqrt.f32 %v2384_v27  ;;  %v2385_v28 = vadd.f32 1e-05, %v2377_v57  ;;  %v2378_v31 = vmul.f32 0.041666668, %v2362_v17  ;;  %v6629_v57 = vld [vmem:[%s7368_s5 + $0x1] ss:$0 sm:$0xff] }
 0x93b   : > { %v2365_v4 = vpop.xlane.xlu0 %2364  ;;  %v6634_v17 = vld [vmem:[%s7369_s6 + $0x1] ss:$0 sm:$0xff] }
 0x93c   : > { %5479 = vrsqrt.f32 %v2385_v28  ;;  %v2386_v10 = vadd.f32 1e-05, %v2378_v31  ;;  %v2379_v0 = vmul.f32 0.041666668, %v2365_v4 }
 0x93d   : > { %v2368_v13 = vpop.xlane.xlu1 %2367 }
 0x93e   : > { %5481 = vrsqrt.f32 %v2386_v10  ;;  %v2387_v2 = vadd.f32 1e-05, %v2379_v0  ;;  %v2380_v33 = vmul.f32 0.041666668, %v2368_v13 }
 0x93f   : > { %v2371_v48 = vpop.xlane.xlu0 %2370 }
 0x940   : > { %5483 = vrsqrt.f32 %v2387_v2  ;;  %v2388_v16 = vadd.f32 1e-05, %v2380_v33  ;;  %v2381_v22 = vmul.f32 0.041666668, %v2371_v48 }
 0x941   : > { %v2374_v60 = vpop.xlane.xlu1 %2373 }
 0x942   : > { %v5476_v12 = vpop.eup %5475  ;;  %5485 = vrsqrt.f32 %v2388_v16  ;;  %v2389_v7 = vadd.f32 1e-05, %v2381_v22  ;;  %v2382_v18 = vmul.f32 0.041666668, %v2374_v60 }
 0x943   : > { %v2399_v8 = vmul.f32 %v5476_v12, %v6508_v30 }
 0x944   : > { %v5478_v9 = vpop.eup %5477  ;;  %5487 = vrsqrt.f32 %v2389_v7  ;;  %v2390_v51 = vadd.f32 1e-05, %v2382_v18 }
 0x945   : > { %v2400_v53 = vmul.f32 %v5478_v9, %v6510_v62  ;;  %v2413_v56 = vmul.f32 %v4534_v61, %v2399_v8 }
 0x946   : > { %v5480_v29 = vpop.eup %5479  ;;  %5489 = vrsqrt.f32 %v2390_v51 }
 0x947   : > { %v2401_v40 = vmul.f32 %v5480_v29, %v6514_v35  ;;  %v2414_v26 = vmul.f32 %v4534_v61, %v2400_v53  ;;  %v6580_v30 = vadd.f32 %v4535_v37, %v2413_v56 }
 0x948   : > { %v5482_v39 = vpop.eup %5481 }
 0x949   : > { %v2415_v24 = vmul.f32 %v4534_v61, %v2401_v40  ;;  %v2402_v1 = vmul.f32 %v5482_v39, %v6519_v5  ;;  %v6582_v38 = vadd.f32 %v4535_v37, %v2414_v26 }
 0x94a   : > { %v5484_v43 = vpop.eup %5483 }
 0x94b   : > { %v2416_v62 = vmul.f32 %v4534_v61, %v2402_v1  ;;  %v2403_v63 = vmul.f32 %v5484_v43, %v6524_v49  ;;  %v2435_v20 = vpack.c.bf16 %v6582_v38, %v6580_v30  ;;  %v6587_v32 = vadd.f32 %v4535_v37, %v2415_v24 }
 0x94c   : > { %v5486_v36 = vpop.eup %5485 }
 0x94d   : > { %v6589_v35 = vadd.f32 %v4535_v37, %v2416_v62  ;;  %v2404_v59 = vmul.f32 %v5486_v36, %v6529_v25  ;;  %5066 = vmatprep.mubr.msk.bf16.mxu1 %vm686_vm1, %v2435_v20  ;;  %5078 = vmatprep.mubr.msk.bf16.mxu0 %vm686_vm1, %v2435_v20  ;;  %v2417_v5 = vmul.f32 %v4534_v61, %v2403_v63 }
 0x94e   : > { %v5488_v14 = vpop.eup %5487 }
 0x94f   : > { %v2405_v34 = vmul.f32 %v5488_v14, %v6534_v44  ;;  %v2436_v49 = vpack.c.bf16 %v6589_v35, %v6587_v32  ;;  %v2418_v23 = vmul.f32 %v4534_v61, %v2404_v59  ;;  %v6600_v19 = vadd.f32 %v4535_v37, %v2417_v5 }
 0x950   : > { %v5490_v55 = vpop.eup %5489 }
 0x951   : > { %v2406_v25 = vmul.f32 %v5490_v55, %v6539_v6  ;;  %5067 = vmatmul.mubr.msk.bf16.vlgmr.msra.gmra.mrb[36].mxu1 %vm686_vm1, %v2436_v49  ;;  %5079 = vmatmul.mubr.msk.bf16.vlgmr.msra.gmra.mrb[44].mxu0 %vm686_vm1, %v2436_v49  ;;  %v6605_v50 = vadd.f32 %v4535_v37, %v2418_v23  ;;  %v2419_v44 = vmul.f32 %v4534_v61, %v2405_v34 }
 0x952   : > { %5087 = vmatpush3.bf16.msra.mxu1 %v6567_v3 }
 0x953   : > { %v2437_v21 = vpack.c.bf16 %v6605_v50, %v6600_v19  ;;  %v2420_v11 = vmul.f32 %v4534_v61, %v2406_v25  ;;  %5312 = vmatprep.subr.msk.bf16.mxu1 %vm699_vm0, %v5354_v58  ;;  %v6614_v6 = vadd.f32 %v4535_v37, %v2419_v44 }
 0x955   : > { %5070 = vmatprep.mubr.msk.bf16.mxu1 %vm686_vm1, %v2437_v21  ;;  %5082 = vmatprep.mubr.msk.bf16.mxu0 %vm686_vm1, %v2437_v21  ;;  %v6616_v27 = vadd.f32 %v4535_v37, %v2420_v11 }
 0x956   : > { %5089 = vmatpush3.bf16.msra.mxu1 %v2651_v46 }
 0x957   : > { %v2438_v3 = vpack.c.bf16 %v6616_v27, %v6614_v6 }
 0x959   : > { %5071 = vmatmul.mubr.msk.bf16.gmra.mrb[40].mxu1 %vm686_vm1, %v2438_v3  ;;  %5083 = vmatmul.mubr.msk.bf16.gmra.mrb[48].mxu0 %vm686_vm1, %v2438_v3 }
 0x95a   : > { %5090 = vmatprep.mubr.msk.bf16.mxu1 %vm686_vm1, %v2435_v20 }
 0x961   : > { %5091 = vmatmul.mubr.msk.bf16.vlgmr.msra.gmra.mrb[44].mxu1 %vm686_vm1, %v2436_v49 }
 0x962   : > { %5094 = vmatprep.mubr.msk.bf16.mxu1 %vm686_vm1, %v2437_v21 }
 0x969   : > { %5095 = vmatmul.mubr.msk.bf16.gmra.mrb[48].mxu1 %vm686_vm1, %v2438_v3 }
 0xa24   : > { %v5068_v28 = vpop.f32.mrb[36].mxu1  ;;  %v5080_v31 = vpop.f32.mrb[44].mxu0 }
 0xa25   : > { %v2518_v4 = vadd.f32 %v5068_v28, %v6629_v57  ;;  %v2509_v10 = vpop.f32.mrb[37].mxu1  ;;  %v2598_v0 = vpop.f32.mrb[45].mxu0  ;;  %v2607_v13 = vadd.f32 %v5080_v31, %v6634_v17 }
 0xa26   : > { %v2510_v2 = vadd.f32 %v6629_v57, %v2509_v10  ;;  %v2599_v33 = vadd.f32 %v6634_v17, %v2598_v0  ;;  %v5069_v48 = vpop.f32.mrb[38].mxu1  ;;  %v5081_v16 = vpop.f32.mrb[46].mxu0 }
 0xa27   : > { %v6642_v22 = vsel %vm947_vm6, %v2518_v4, 0.0  ;;  %v2937_v60 = vsel %vm5842_vm7, %v2518_v4, 0.0  ;;  %v3292_v12 = vsel %vm5846_vm8, %v2518_v4, 0.0  ;;  %v2521_v61 = vadd.f32 %v5069_v48, %v6629_v57  ;;  %v2512_v7 = vpop.f32.mrb[39].mxu1  ;;  %v2601_v18 = vpop.f32.mrb[47].mxu0 }
 0xa28   : > { %v2722_v8 = vsel %vm947_vm6, %v2510_v2, 0.0  ;;  %v2935_v9 = vsel %vm5842_vm7, %v2510_v2, 0.0  ;;  %v3290_v51 = vsel %vm5846_vm8, %v2510_v2, 0.0  ;;  %v2610_v53 = vadd.f32 %v5081_v16, %v6634_v17 }
 0xa29   : > { %v6658_v56 = vsel %vm947_vm6, %v2521_v61, 0.0  ;;  %v2938_v29 = vsel %vm5842_vm7, %v2521_v61, 0.0  ;;  %v3293_v37 = vsel %vm5846_vm8, %v2521_v61, 0.0  ;;  %v2513_v40 = vadd.f32 %v6629_v57, %v2512_v7 }
 0xa2a   : > { %v2731_v26 = vpack.c.bf16 %v6658_v56, %v6642_v22  ;;  %v6667_v39 = vpack.c.bf16 %v2938_v29, %v2937_v60  ;;  %v6669_v24 = vpack.c.bf16 %v3293_v37, %v3292_v12  ;;  %v6671_v1 = vpack.c.bf16 %v2610_v53, %v2607_v13 }
 0xa2b   : > { %v2723_v43 = vsel %vm947_vm6, %v2513_v40, 0.0  ;;  %v2936_v62 = vsel %vm5842_vm7, %v2513_v40, 0.0  ;;  %v3291_v63 = vsel %vm5846_vm8, %v2513_v40, 0.0  ;;  %v2602_v20 = vadd.f32 %v6634_v17, %v2601_v18 }
 0xa2c   : > { %v2730_v36 = vpack.c.bf16 %v2723_v43, %v2722_v8  ;;  %v2943_v59 = vpack.c.bf16 %v2936_v62, %v2935_v9  ;;  %v6680_v5 = vpack.c.bf16 %v3291_v63, %v3290_v51  ;;  %v5072_v14 = vpop.f32.mrb[40].mxu1  ;;  %v5084_v34 = vpop.f32.mrb[48].mxu0  ;;  %v4562_v43 = vld [vmem:[%s7370_s7 + $0x1] ss:$0 sm:$0xff]  ;;  %v2762_v45 = vsel %vm686_vm1, %v6671_v1, 0 }
 0xa2d   : > { %v6682_v49 = vpack.c.bf16 %v2602_v20, %v2599_v33  ;;  %v2534_v23 = vadd.f32 %v5072_v14, %v6629_v57  ;;  %v2525_v58 = vpop.f32.mrb[41].mxu1  ;;  %v2614_v55 = vpop.f32.mrb[49].mxu0  ;;  %v2623_v46 = vadd.f32 %v5084_v34, %v6634_v17 }
 0xa2e   : > { %v2526_v25 = vadd.f32 %v6629_v57, %v2525_v58  ;;  %5106 = vmatprep.mubr.msk.bf16.mxu0 %vm686_vm1, %v2730_v36  ;;  %5122 = vmatprep.mubr.msk.bf16.mxu1 %vm686_vm1, %v2943_v59  ;;  %v5073_v44 = vpop.f32.mrb[42].mxu1  ;;  %v5085_v21 = vpop.f32.mrb[50].mxu0  ;;  %v2615_v3 = vadd.f32 %v6634_v17, %v2614_v55 }
 0xa2f   : > { %v6690_v11 = vsel %vm947_vm6, %v2534_v23, 0.0  ;;  %5313 = vmatprep.subr.msk.bf16.mxu0 %vm686_vm1, %v6682_v49  ;;  %5317 = vmatprep.subr.msk.bf16.mxu1 %vm686_vm1, %v6682_v49  ;;  %v6700_v28 = vsel %vm686_vm1, %v6682_v49, 0  ;;  %v2528_v31 = vpop.f32.mrb[43].mxu1  ;;  %v2617_v4 = vpop.f32.mrb[51].mxu0  ;;  %v2941_v10 = vsel %vm5842_vm7, %v2534_v23, 0.0  ;;  %v3296_v0 = vsel %vm5846_vm8, %v2534_v23, 0.0 }
 0xa30   : > { %v6708_v13 = vsel %vm947_vm6, %v2526_v25, 0.0  ;;  %5099 = vmatpush3.bf16.xpose.msra.mxu0 %v6700_v28  ;;  %5115 = vmatpush3.bf16.xpose.msra.mxu1 %v6700_v28  ;;  %v2537_v2 = vadd.f32 %v5073_v44, %v6629_v57  ;;  %v2939_v33 = vsel %vm5842_vm7, %v2526_v25, 0.0  ;;  %v2626_v48 = vadd.f32 %v5085_v21, %v6634_v17 }
 0xa31   : > { %5314 = vmatprep.subr.msk.bf16.mxu0 %vm686_vm1, %v6671_v1  ;;  %5318 = vmatprep.subr.msk.bf16.mxu1 %vm686_vm1, %v6671_v1  ;;  %v2529_v16 = vadd.f32 %v6629_v57, %v2528_v31  ;;  %v2618_v60 = vadd.f32 %v6634_v17, %v2617_v4  ;;  %v3294_v12 = vsel %vm5846_vm8, %v2526_v25, 0.0 }
 0xa32   : > { %v2729_v61 = vsel %vm947_vm6, %v2537_v2, 0.0  ;;  %v2942_v7 = vsel %vm5842_vm7, %v2537_v2, 0.0  ;;  %v3297_v18 = vsel %vm5846_vm8, %v2537_v2, 0.0  ;;  %v6733_v57 = vpack.c.bf16 %v2626_v48, %v2623_v46 }
 0xa33   : > { %v2733_v8 = vpack.c.bf16 %v2729_v61, %v6690_v11  ;;  %v2946_v9 = vpack.c.bf16 %v2942_v7, %v2941_v10  ;;  %v6731_v51 = vpack.c.bf16 %v3297_v18, %v3296_v0  ;;  %v2727_v17 = vsel %vm947_vm6, %v2529_v16, 0.0 }
 0xa34   : > { %v2940_v53 = vsel %vm5842_vm7, %v2529_v16, 0.0  ;;  %v3295_v29 = vsel %vm5846_vm8, %v2529_v16, 0.0  ;;  %v2720_v37 = vpack.c.bf16 %v2618_v60, %v2615_v3  ;;  %v5092_v40 = vpop.f32.mrb[44].mxu1  ;;  %v2732_v62 = vpack.c.bf16 %v2727_v17, %v6708_v13 }
 0xa35   : > { %v2945_v63 = vpack.c.bf16 %v2940_v53, %v2939_v33  ;;  %v3300_v20 = vpack.c.bf16 %v3295_v29, %v3294_v12  ;;  %v2687_v36 = vpop.f32.mrb[45].mxu1  ;;  %v2696_v42 = vadd.f32 %v5092_v40, %v4562_v43  ;;  %v2768_v2 = vsel %vm686_vm1, %v6733_v57, 0 }
 0xa36   : > { %v5093_v59 = vpop.f32.mrb[46].mxu1  ;;  %v2688_v47 = vadd.f32 %v4562_v43, %v2687_v36  ;;  %v2765_v46 = vsel %vm686_vm1, %v2720_v37, 0 }
 0xa37   : > { %v2699_v14 = vadd.f32 %v5093_v59, %v4562_v43  ;;  %v2690_v34 = vpop.f32.mrb[47].mxu1 }
 0xa38   : > { %5101 = vmatpush3.bf16.xpose.msra.mxu0 %v2762_v45  ;;  %5117 = vmatpush3.bf16.xpose.msra.mxu1 %v2762_v45  ;;  %v2691_v23 = vadd.f32 %v4562_v43, %v2690_v34 }
 0xa39   : > { %v6747_v58 = vpack.c.bf16 %v2699_v14, %v2696_v42  ;;  %5315 = vmatprep.subr.msk.bf16.mxu0 %vm686_vm1, %v2720_v37  ;;  %5319 = vmatprep.subr.msk.bf16.mxu1 %vm686_vm1, %v2720_v37 }
 0xa3a   : > { %v6751_v55 = vpack.c.bf16 %v2691_v23, %v2688_v47 }
 0xa3c   : > { %v5096_v25 = vpop.f32.mrb[48].mxu1 }
 0xa3d   : > { %v2703_v44 = vpop.f32.mrb[49].mxu1  ;;  %v2712_v11 = vadd.f32 %v5096_v25, %v4562_v43 }
 0xa3e   : > { %v5097_v21 = vpop.f32.mrb[50].mxu1  ;;  %v2704_v4 = vadd.f32 %v4562_v43, %v2703_v44 }
 0xa3f   : > { %v2715_v3 = vadd.f32 %v5097_v21, %v4562_v43  ;;  %v2706_v31 = vpop.f32.mrb[51].mxu1 }
 0xa40   : > { %5103 = vmatpush3.bf16.xpose.msra.mxu0 %v2765_v46  ;;  %5119 = vmatpush3.bf16.xpose.msra.mxu1 %v2765_v46  ;;  %v2707_v10 = vadd.f32 %v4562_v43, %v2706_v31 }
 0xa41   : > { %v6754_v0 = vpack.c.bf16 %v2715_v3, %v2712_v11  ;;  %5316 = vmatprep.subr.msk.bf16.mxu0 %vm686_vm1, %v6733_v57  ;;  %5320 = vmatprep.subr.msk.bf16.mxu1 %vm686_vm1, %v6733_v57 }
 0xa42   : > { %v6760_v13 = vpack.c.bf16 %v2707_v10, %v2704_v4 }
 0xa48   : > { %5105 = vmatpush3.bf16.xpose.msra.mxu0 %v2768_v2  ;;  %5121 = vmatpush3.bf16.xpose.msra.mxu1 %v2768_v2 }
 0xa49   : > { %5130 = vmatprep.subr.msk.bf16.mxu0 %vm5975_vm9, %v6751_v55  ;;  %5321 = vmatprep.subr.msk.bf16.mxu1 %vm686_vm1, %v6682_v49 }
 0xa4f   : > { %5107 = vmatmul.mubr.msk.bf16.vlgmr.msra.gmra.mrb[52].mxu0 %vm686_vm1, %v2731_v26  ;;  %5123 = vmatmul.mubr.msk.bf16.vlgmr.msra.gmra.mrb[52].mxu1 %vm686_vm1, %v6667_v39 }
 0xa50   : > { %5110 = vmatprep.mubr.msk.bf16.mxu0 %vm686_vm1, %v2732_v62  ;;  %5126 = vmatprep.mubr.msk.bf16.mxu1 %vm686_vm1, %v2945_v63 }
 0xa51   : > { %5131 = vmatpush3.bf16.msk.msra.mxu0 %vm5975_vm9, %v6751_v55  ;;  %5163 = vmatpush3.bf16.xpose.msra.mxu1 %v6700_v28 }
 0xa52   : > { %5132 = vmatprep.subr.msk.bf16.mxu0 %vm5975_vm9, %v6747_v58  ;;  %5322 = vmatprep.subr.msk.bf16.mxu1 %vm686_vm1, %v6671_v1 }
 0xa55   : > { %5133 = vmatpush3.bf16.msk.msra.mxu0 %vm5975_vm9, %v6747_v58 }
 0xa56   : > { %5134 = vmatprep.subr.msk.bf16.mxu0 %vm5975_vm9, %v6760_v13 }
 0xa57   : > { %5111 = vmatmul.mubr.msk.bf16.gmra.mrb[56].mxu0 %vm686_vm1, %v2733_v8  ;;  %5127 = vmatmul.mubr.msk.bf16.gmra.mrb[56].mxu1 %vm686_vm1, %v2946_v9 }
 0xa58   : > { %5170 = vmatprep.mubr.msk.bf16.mxu1 %vm686_vm1, %v6680_v5 }
 0xa59   : > { %5135 = vmatpush3.bf16.msk.msra.mxu0 %vm5975_vm9, %v6760_v13  ;;  %5165 = vmatpush3.bf16.xpose.msra.mxu1 %v2762_v45 }
 0xa5a   : > { %5136 = vmatprep.subr.msk.bf16.mxu0 %vm5975_vm9, %v6754_v0  ;;  %5323 = vmatprep.subr.msk.bf16.mxu1 %vm686_vm1, %v2720_v37 }
 0xa5d   : > { %5137 = vmatpush3.bf16.msk.msra.mxu0 %vm5975_vm9, %v6754_v0 }
 0xa5e   : > { %5146 = vmatprep.subr.msk.bf16.mxu0 %vm6028_vm10, %v6751_v55 }
 0xa61   : > { %5167 = vmatpush3.bf16.xpose.msra.mxu1 %v2765_v46 }
 0xa62   : > { %5324 = vmatprep.subr.msk.bf16.mxu1 %vm686_vm1, %v6733_v57 }
 0xa69   : > { %5169 = vmatpush3.bf16.xpose.msra.mxu1 %v2768_v2 }
 0xa70   : > { %5171 = vmatmul.mubr.msk.bf16.vlgmr.msra.gmra.mrb[60].mxu1 %vm686_vm1, %v6669_v24 }
 0xa71   : > { %5174 = vmatprep.mubr.msk.bf16.mxu1 %vm686_vm1, %v3300_v20 }
 0xa78   : > { %5175 = vmatmul.mubr.msk.bf16.gmra.mrb[64].mxu1 %vm686_vm1, %v6731_v51 }
 0xb22   : > { %v5108_v22 = vpop.f32.mrb[52].mxu0  ;;  %v5124_v54 = vpop.f32.mrb[52].mxu1 }
 0xb23   : > { %v2804_v56 = vpop.f32.mrb[53].mxu0  ;;  %v3005_v26 = vpop.f32.mrb[53].mxu1  ;;  %v6818_v33 = vmul.f32 0.35355338, %v5124_v54  ;;  %v6852_v45 = vmul.f32 0.35355338, %v5108_v22 }
 0xb24   : > { %v6816_v39 = vmul.f32 0.35355338, %v3005_v26  ;;  %v5109_v1 = vpop.f32.mrb[54].mxu0  ;;  %v5125_v5 = vpop.f32.mrb[54].mxu1  ;;  %v6844_v20 = vmul.f32 0.35355338, %v2804_v56 }
 0xb25   : > { %v2807_v49 = vpop.f32.mrb[55].mxu0  ;;  %v3008_v28 = vpop.f32.mrb[55].mxu1  ;;  %v6824_v16 = vmul.f32 0.35355338, %v5125_v5  ;;  %v3050_v7 = vsel %vm1072_vm11, %v6818_v33, -inf  ;;  %v2849_v25 = vsel %vm1072_vm11, %v6852_v45, -inf }
 0xb26   : > { %v6820_v48 = vmul.f32 0.35355338, %v3008_v28  ;;  %v3044_v24 = vsel %vm1072_vm11, %v6816_v39, -inf  ;;  %v6848_v59 = vmul.f32 0.35355338, %v2807_v49  ;;  %v2843_v14 = vsel %vm1072_vm11, %v6844_v20, -inf }
 0xb27   : > { %3045 = vmax.xlane.f32.xlu0 %v3044_v24  ;;  %v3053_v17 = vsel %vm1072_vm11, %v6824_v16, -inf  ;;  %v6856_v34 = vmul.f32 0.35355338, %v5109_v1 }
 0xb28   : > { %v3047_v60 = vsel %vm1072_vm11, %v6820_v48, -inf  ;;  %v2846_v47 = vsel %vm1072_vm11, %v6848_v59, -inf }
 0xb29   : > { %3048 = vmax.xlane.f32.xlu1 %v3047_v60  ;;  %v2852_v21 = vsel %vm1072_vm11, %v6856_v34, -inf }
 0xb2a   : > { %v5112_v12 = vpop.f32.mrb[56].mxu0  ;;  %v5128_v61 = vpop.f32.mrb[56].mxu1 }
 0xb2b   : > { %3051 = vmax.xlane.f32.xlu0 %v3050_v7  ;;  %v2820_v18 = vpop.f32.mrb[57].mxu0  ;;  %v3021_v8 = vpop.f32.mrb[57].mxu1  ;;  %v6834_v37 = vmul.f32 0.35355338, %v5128_v61  ;;  %v6868_v11 = vmul.f32 0.35355338, %v5112_v12 }
 0xb2c   : > { %v6830_v9 = vmul.f32 0.35355338, %v3021_v8  ;;  %v5113_v51 = vpop.f32.mrb[58].mxu0  ;;  %v5129_v57 = vpop.f32.mrb[58].mxu1  ;;  %v6860_v23 = vmul.f32 0.35355338, %v2820_v18 }
 0xb2d   : > { %3054 = vmax.xlane.f32.xlu1 %v3053_v17  ;;  %v2823_v53 = vpop.f32.mrb[59].mxu0  ;;  %v3024_v29 = vpop.f32.mrb[59].mxu1  ;;  %v6840_v62 = vmul.f32 0.35355338, %v5129_v57  ;;  %v3062_v36 = vsel %vm1072_vm11, %v6834_v37, -inf  ;;  %v2861_v4 = vsel %vm1072_vm11, %v6868_v11, -inf }
 0xb2e   : > { %v6836_v40 = vmul.f32 0.35355338, %v3024_v29  ;;  %v3056_v43 = vsel %vm1072_vm11, %v6830_v9, -inf  ;;  %v6864_v44 = vmul.f32 0.35355338, %v2823_v53  ;;  %v2855_v46 = vsel %vm1072_vm11, %v6860_v23, -inf }
 0xb2f   : > { %3057 = vmax.xlane.f32.xlu0 %v3056_v43  ;;  %v3065_v42 = vsel %vm1072_vm11, %v6840_v62, -inf  ;;  %v6872_v3 = vmul.f32 0.35355338, %v5113_v51 }
 0xb30   : > { %v3059_v63 = vsel %vm1072_vm11, %v6836_v40, -inf  ;;  %v2858_v31 = vsel %vm1072_vm11, %v6864_v44, -inf }
 0xb31   : > { %3060 = vmax.xlane.f32.xlu1 %v3059_v63  ;;  %v2864_v22 = vsel %vm1072_vm11, %v6872_v3, -inf }
 0xb33   : > { %3063 = vmax.xlane.f32.xlu0 %v3062_v36 }
 0xb35   : > { %3066 = vmax.xlane.f32.xlu1 %v3065_v42 }
 0xb37   : > { %2844 = vmax.xlane.f32.xlu0 %v2843_v14 }
 0xb39   : > { %2847 = vmax.xlane.f32.xlu1 %v2846_v47 }
 0xb3b   : > { %2850 = vmax.xlane.f32.xlu0 %v2849_v25 }
 0xb3d   : > { %2853 = vmax.xlane.f32.xlu1 %v2852_v21 }
 0xb3f   : > { %2856 = vmax.xlane.f32.xlu0 %v2855_v46 }
 0xb41   : > { %2859 = vmax.xlane.f32.xlu1 %v2858_v31 }
 0xb43   : > { %v5172_v10 = vpop.f32.mrb[60].mxu1  ;;  %2862 = vmax.xlane.f32.xlu0 %v2861_v4 }
 0xb44   : > { %v3360_v2 = vpop.f32.mrb[61].mxu1  ;;  %v6882_v1 = vmul.f32 0.35355338, %v5172_v10 }
 0xb45   : > { %v6880_v54 = vmul.f32 0.35355338, %v3360_v2  ;;  %v5173_v56 = vpop.f32.mrb[62].mxu1  ;;  %2865 = vmax.xlane.f32.xlu1 %v2864_v22 }
 0xb46   : > { %v3363_v26 = vpop.f32.mrb[63].mxu1  ;;  %v6888_v28 = vmul.f32 0.35355338, %v5173_v56  ;;  %v3405_v12 = vsel %vm1072_vm11, %v6882_v1, -inf }
 0xb47   : > { %v6884_v5 = vmul.f32 0.35355338, %v3363_v26  ;;  %v3399_v49 = vsel %vm1072_vm11, %v6880_v54, -inf }
 0xb48   : > { %3400 = vmax.xlane.f32.xlu0 %v3399_v49  ;;  %v3408_v8 = vsel %vm1072_vm11, %v6888_v28, -inf }
 0xb49   : > { %v3402_v24 = vsel %vm1072_vm11, %v6884_v5, -inf }
 0xb4a   : > { %3403 = vmax.xlane.f32.xlu1 %v3402_v24 }
 0xb4b   : > { %v5176_v60 = vpop.f32.mrb[64].mxu1 }
 0xb4c   : > { %v3376_v61 = vpop.f32.mrb[65].mxu1  ;;  %3406 = vmax.xlane.f32.xlu0 %v3405_v12  ;;  %v6898_v57 = vmul.f32 0.35355338, %v5176_v60 }
 0xb4d   : > { %v6894_v7 = vmul.f32 0.35355338, %v3376_v61  ;;  %v5177_v18 = vpop.f32.mrb[66].mxu1 }
 0xb4e   : > { %v3379_v51 = vpop.f32.mrb[67].mxu1  ;;  %3409 = vmax.xlane.f32.xlu1 %v3408_v8  ;;  %v6904_v29 = vmul.f32 0.35355338, %v5177_v18  ;;  %v3417_v63 = vsel %vm1072_vm11, %v6898_v57, -inf }
 0xb4f   : > { %v6900_v17 = vmul.f32 0.35355338, %v3379_v51  ;;  %v3411_v53 = vsel %vm1072_vm11, %v6894_v7, -inf }
 0xb50   : > { %3412 = vmax.xlane.f32.xlu0 %v3411_v53  ;;  %v3420_v36 = vsel %vm1072_vm11, %v6904_v29, -inf }
 0xb51   : > { %v3414_v43 = vsel %vm1072_vm11, %v6900_v17, -inf }
 0xb52   : > { %3415 = vmax.xlane.f32.xlu1 %v3414_v43 }
 0xb54   : > { %3418 = vmax.xlane.f32.xlu0 %v3417_v63 }
 0xb56   : > { %3421 = vmax.xlane.f32.xlu1 %v3420_v36 }
 0xbb4   : > { %v3046_v42 = vpop.xlane.xlu0 %3045 }
 0xbb5   : > { %v3068_v14 = vsub.f32 %v6816_v39, %v3046_v42 }
 0xbb6   : > { %v3049_v47 = vpop.xlane.xlu1 %3048 }
 0xbb7   : > { %v3076_v25 = vmul.f32 1.442695, %v3068_v14  ;;  %v3069_v21 = vsub.f32 %v6820_v48, %v3049_v47 }
 0xbb8   : > { %v3052_v46 = vpop.xlane.xlu0 %3051 }
 0xbb9   : > { %5491 = vpow2.f32 %v3076_v25  ;;  %v3078_v31 = vmul.f32 1.442695, %v3069_v21  ;;  %v3070_v4 = vsub.f32 %v6818_v33, %v3052_v46 }
 0xbba   : > { %v3055_v10 = vpop.xlane.xlu1 %3054 }
 0xbbb   : > { %5493 = vpow2.f32 %v3078_v31  ;;  %v3080_v2 = vmul.f32 1.442695, %v3070_v4  ;;  %v3071_v22 = vsub.f32 %v6824_v16, %v3055_v10 }
 0xbbc   : > { %v3058_v56 = vpop.xlane.xlu0 %3057 }
 0xbbd   : > { %5495 = vpow2.f32 %v3080_v2  ;;  %v3082_v26 = vmul.f32 1.442695, %v3071_v22  ;;  %v3072_v49 = vsub.f32 %v6830_v9, %v3058_v56 }
 0xbbe   : > { %v3061_v39 = vpop.xlane.xlu1 %3060 }
 0xbbf   : > { %5497 = vpow2.f32 %v3082_v26  ;;  %v3084_v24 = vmul.f32 1.442695, %v3072_v49  ;;  %v3073_v48 = vsub.f32 %v6836_v40, %v3061_v39 }
 0xbc0   : > { %v3064_v60 = vpop.xlane.xlu0 %3063 }
 0xbc1   : > { %5499 = vpow2.f32 %v3084_v24  ;;  %v3086_v12 = vmul.f32 1.442695, %v3073_v48  ;;  %v3074_v33 = vsub.f32 %v6834_v37, %v3064_v60 }
 0xbc2   : > { %v3067_v61 = vpop.xlane.xlu1 %3066 }
 0xbc3   : > { %v6919_v18 = vpop.eup %5491  ;;  %5501 = vpow2.f32 %v3086_v12  ;;  %v3088_v16 = vmul.f32 1.442695, %v3074_v33  ;;  %v3075_v8 = vsub.f32 %v6840_v62, %v3067_v61 }
 0xbc4   : > { %v2845_v51 = vpop.xlane.xlu0 %2844  ;;  %v3092_v9 = vsel %vm1072_vm11, %v6919_v18, 0.0 }
 0xbc5   : > { %v6924_v53 = vpop.eup %5493  ;;  %5503 = vpow2.f32 %v3088_v16  ;;  %v3090_v40 = vmul.f32 1.442695, %v3075_v8  ;;  %v2867_v43 = vsub.f32 %v6844_v20, %v2845_v51  ;;  %3093 = vadd.xlane.f32.xlu0 %v3092_v9 }
 0xbc6   : > { %v2848_v63 = vpop.xlane.xlu1 %2847  ;;  %v3095_v37 = vsel %vm1072_vm11, %v6924_v53, 0.0 }
 0xbc7   : > { %v6929_v36 = vpop.eup %5495  ;;  %5505 = vpow2.f32 %v3090_v40  ;;  %v2875_v42 = vmul.f32 1.442695, %v2867_v43  ;;  %v2868_v62 = vsub.f32 %v6848_v59, %v2848_v63  ;;  %3096 = vadd.xlane.f32.xlu1 %v3095_v37 }
 0xbc8   : > { %v2851_v14 = vpop.xlane.xlu0 %2850  ;;  %v3098_v47 = vsel %vm1072_vm11, %v6929_v36, 0.0 }
 0xbc9   : > { %v6934_v25 = vpop.eup %5497  ;;  %5507 = vpow2.f32 %v2875_v42  ;;  %v2877_v20 = vmul.f32 1.442695, %v2868_v62  ;;  %v2869_v21 = vsub.f32 %v6852_v45, %v2851_v14  ;;  %3099 = vadd.xlane.f32.xlu0 %v3098_v47 }
 0xbca   : > { %v2854_v46 = vpop.xlane.xlu1 %2853  ;;  %v3101_v31 = vsel %vm1072_vm11, %v6934_v25, 0.0 }
 0xbcb   : > { %v6939_v4 = vpop.eup %5499  ;;  %5509 = vpow2.f32 %v2877_v20  ;;  %v2879_v59 = vmul.f32 1.442695, %v2869_v21  ;;  %v2870_v10 = vsub.f32 %v6856_v34, %v2854_v46  ;;  %3102 = vadd.xlane.f32.xlu1 %v3101_v31 }
 0xbcc   : > { %v2857_v2 = vpop.xlane.xlu0 %2856  ;;  %v3104_v22 = vsel %vm1072_vm11, %v6939_v4, 0.0 }
 0xbcd   : > { %v6944_v56 = vpop.eup %5501  ;;  %5511 = vpow2.f32 %v2879_v59  ;;  %v2881_v45 = vmul.f32 1.442695, %v2870_v10  ;;  %v2871_v26 = vsub.f32 %v6860_v23, %v2857_v2  ;;  %3105 = vadd.xlane.f32.xlu0 %v3104_v22 }
 0xbce   : > { %v2860_v49 = vpop.xlane.xlu1 %2859  ;;  %v3107_v39 = vsel %vm1072_vm11, %v6944_v56, 0.0 }
 0xbcf   : > { %v6949_v24 = vpop.eup %5503  ;;  %5513 = vpow2.f32 %v2881_v45  ;;  %v2883_v34 = vmul.f32 1.442695, %v2871_v26  ;;  %v2872_v48 = vsub.f32 %v6864_v44, %v2860_v49  ;;  %3108 = vadd.xlane.f32.xlu1 %v3107_v39 }
 0xbd0   : > { %v2863_v60 = vpop.xlane.xlu0 %2862  ;;  %v3110_v12 = vsel %vm1072_vm11, %v6949_v24, 0.0 }
 0xbd1   : > { %v6954_v33 = vpop.eup %5505  ;;  %5515 = vpow2.f32 %v2883_v34  ;;  %v2885_v23 = vmul.f32 1.442695, %v2872_v48  ;;  %v2873_v61 = vsub.f32 %v6868_v11, %v2863_v60  ;;  %3111 = vadd.xlane.f32.xlu0 %v3110_v12 }
 0xbd2   : > { %v2866_v16 = vpop.xlane.xlu1 %2865  ;;  %v3113_v8 = vsel %vm1072_vm11, %v6954_v33, 0.0 }
 0xbd3   : > { %v6959_v51 = vpop.eup %5507  ;;  %5517 = vpow2.f32 %v2885_v23  ;;  %v2887_v44 = vmul.f32 1.442695, %v2873_v61  ;;  %v2874_v9 = vsub.f32 %v6872_v3, %v2866_v16  ;;  %3114 = vadd.xlane.f32.xlu1 %v3113_v8 }
 0xbd4   : > { %v2891_v40 = vsel %vm1072_vm11, %v6959_v51, 0.0 }
 0xbd5   : > { %v6964_v43 = vpop.eup %5509  ;;  %5519 = vpow2.f32 %v2887_v44  ;;  %v2889_v63 = vmul.f32 1.442695, %v2874_v9  ;;  %v3401_v11 = vpop.xlane.xlu0 %3400  ;;  %2892 = vadd.xlane.f32.xlu0 %v2891_v40 }
 0xbd6   : > { %v3423_v37 = vsub.f32 %v6880_v54, %v3401_v11  ;;  %v2894_v42 = vsel %vm1072_vm11, %v6964_v43, 0.0 }
 0xbd7   : > { %v6969_v62 = vpop.eup %5511  ;;  %5521 = vpow2.f32 %v2889_v63  ;;  %v3404_v14 = vpop.xlane.xlu1 %3403  ;;  %2895 = vadd.xlane.f32.xlu1 %v2894_v42 }
 0xbd8   : > { %v3431_v3 = vmul.f32 1.442695, %v3423_v37  ;;  %v3424_v47 = vsub.f32 %v6884_v5, %v3404_v14  ;;  %v2897_v20 = vsel %vm1072_vm11, %v6969_v62, 0.0 }
 0xbd9   : > { %v6974_v21 = vpop.eup %5513  ;;  %v3407_v46 = vpop.xlane.xlu0 %3406  ;;  %2898 = vadd.xlane.f32.xlu0 %v2897_v20 }
 0xbda   : > { %5523 = vpow2.f32 %v3431_v3  ;;  %v3433_v54 = vmul.f32 1.442695, %v3424_v47  ;;  %v3425_v31 = vsub.f32 %v6882_v1, %v3407_v46  ;;  %v2900_v59 = vsel %vm1072_vm11, %v6974_v21, 0.0 }
 0xbdb   : > { %v6979_v10 = vpop.eup %5515  ;;  %v3410_v2 = vpop.xlane.xlu1 %3409  ;;  %2901 = vadd.xlane.f32.xlu1 %v2900_v59 }
 0xbdc   : > { %5525 = vpow2.f32 %v3433_v54  ;;  %v3435_v5 = vmul.f32 1.442695, %v3425_v31  ;;  %v3426_v22 = vsub.f32 %v6888_v28, %v3410_v2  ;;  %v2903_v45 = vsel %vm1072_vm11, %v6979_v10, 0.0 }
 0xbdd   : > { %v6984_v26 = vpop.eup %5517  ;;  %v3413_v49 = vpop.xlane.xlu0 %3412  ;;  %2904 = vadd.xlane.f32.xlu0 %v2903_v45  ;;  %v5355_v45 = vld [vmem:[%s7371_s8 + $0xc] sm:$0xff]  }
 0xbde   : > { %5527 = vpow2.f32 %v3435_v5  ;;  %v3437_v1 = vmul.f32 1.442695, %v3426_v22  ;;  %v3427_v39 = vsub.f32 %v6894_v7, %v3413_v49  ;;  %v2906_v34 = vsel %vm1072_vm11, %v6984_v26, 0.0  ;;  %v5356_v49 = vld [vmem:[%s7371_s8 + $0x14] ss:$0 sps:$4 sm:$0xff]   ;;  %5194 = vmatprep.subr.bf16.mxu1 %v5355_v45 }
 0xbdf   : > { %v6989_v48 = vpop.eup %5519  ;;  %v3416_v60 = vpop.xlane.xlu1 %3415  ;;  %2907 = vadd.xlane.f32.xlu1 %v2906_v34  ;;  %5195 = vmatpush3.bf16.msra.mxu1 %v5355_v45 }
 0xbe0   : > { %5529 = vpow2.f32 %v3437_v1  ;;  %v3439_v28 = vmul.f32 1.442695, %v3427_v39  ;;  %v3428_v12 = vsub.f32 %v6900_v17, %v3416_v60  ;;  %v2909_v23 = vsel %vm1072_vm11, %v6989_v48, 0.0  ;;  %5325 = vmatprep.subr.msk.bf16.mxu1 %vm699_vm0, %v5356_v49 }
 0xbe1   : > { %v6994_v61 = vpop.eup %5521  ;;  %v3419_v16 = vpop.xlane.xlu0 %3418  ;;  %2910 = vadd.xlane.f32.xlu0 %v2909_v23  ;;  %v3614_v1 = vsel %vm699_vm0, %v5356_v49, 0 }
 0xbe2   : > { %5531 = vpow2.f32 %v3439_v28  ;;  %v3441_v7 = vmul.f32 1.442695, %v3428_v12  ;;  %v3429_v8 = vsub.f32 %v6898_v57, %v3419_v16  ;;  %v2912_v44 = vsel %vm1072_vm11, %v6994_v61, 0.0 }
 0xbe3   : > { %v3422_v9 = vpop.xlane.xlu1 %3421  ;;  %2913 = vadd.xlane.f32.xlu1 %v2912_v44  ;;  %5197 = vmatpush3.bf16.msra.mxu1 %v3614_v1 }
 0xbe4   : > { %v6999_v40 = vpop.eup %5523  ;;  %5533 = vpow2.f32 %v3441_v7  ;;  %v3443_v17 = vmul.f32 1.442695, %v3429_v8  ;;  %v3430_v63 = vsub.f32 %v6904_v29, %v3422_v9 }
 0xbe5   : > { %v3447_v11 = vsel %vm1072_vm11, %v6999_v40, 0.0 }
 0xbe6   : > { %v7004_v37 = vpop.eup %5525  ;;  %5535 = vpow2.f32 %v3443_v17  ;;  %v3445_v42 = vmul.f32 1.442695, %v3430_v63  ;;  %3448 = vadd.xlane.f32.xlu0 %v3447_v11 }
 0xbe7   : > { %v3450_v57 = vsel %vm1072_vm11, %v7004_v37, 0.0 }
 0xbe8   : > { %v7008_v14 = vpop.eup %5527  ;;  %5537 = vpow2.f32 %v3445_v42  ;;  %3451 = vadd.xlane.f32.xlu1 %v3450_v57 }
 0xbe9   : > { %v3453_v3 = vsel %vm1072_vm11, %v7008_v14, 0.0 }
 0xbea   : > { %v7012_v47 = vpop.eup %5529  ;;  %3454 = vadd.xlane.f32.xlu0 %v3453_v3 }
 0xbeb   : > { %v3456_v29 = vsel %vm1072_vm11, %v7012_v47, 0.0 }
 0xbec   : > { %v7016_v20 = vpop.eup %5531  ;;  %3457 = vadd.xlane.f32.xlu1 %v3456_v29 }
 0xbed   : > { %v3459_v46 = vsel %vm1072_vm11, %v7016_v20, 0.0 }
 0xbee   : > { %v7020_v54 = vpop.eup %5533  ;;  %3460 = vadd.xlane.f32.xlu0 %v3459_v46 }
 0xbef   : > { %v3462_v31 = vsel %vm1072_vm11, %v7020_v54, 0.0 }
 0xbf0   : > { %v7024_v59 = vpop.eup %5535  ;;  %3463 = vadd.xlane.f32.xlu1 %v3462_v31 }
 0xbf1   : > { %v3465_v2 = vsel %vm1072_vm11, %v7024_v59, 0.0 }
 0xbf2   : > { %v7028_v5 = vpop.eup %5537  ;;  %3466 = vadd.xlane.f32.xlu0 %v3465_v2 }
 0xbf3   : > { %v3468_v22 = vsel %vm1072_vm11, %v7028_v5, 0.0 }
 0xbf4   : > { %3469 = vadd.xlane.f32.xlu1 %v3468_v22 }
 0xc52   : > { %v3094_v39 = vpop.xlane.xlu0 %3093 }
 0xc53   : > { %5539 = vrcp.f32 %v3094_v39 }
 0xc54   : > { %v3097_v34 = vpop.xlane.xlu1 %3096 }
 0xc55   : > { %5541 = vrcp.f32 %v3097_v34 }
 0xc56   : > { %v3100_v60 = vpop.xlane.xlu0 %3099 }
 0xc57   : > { %5543 = vrcp.f32 %v3100_v60 }
 0xc58   : > { %v3103_v28 = vpop.xlane.xlu1 %3102 }
 0xc59   : > { %5545 = vrcp.f32 %v3103_v28 }
 0xc5a   : > { %v3106_v12 = vpop.xlane.xlu0 %3105 }
 0xc5b   : > { %5547 = vrcp.f32 %v3106_v12 }
 0xc5c   : > { %v3109_v23 = vpop.xlane.xlu1 %3108 }
 0xc5d   : > { %v5540_v16 = vpop.eup %5539  ;;  %5549 = vrcp.f32 %v3109_v23 }
 0xc5e   : > { %v3112_v7 = vpop.xlane.xlu0 %3111  ;;  %v3117_v9 = vmul.f32 %v5540_v16, %v6919_v18 }
 0xc5f   : > { %v5542_v8 = vpop.eup %5541  ;;  %5551 = vrcp.f32 %v3112_v7 }
 0xc60   : > { %v3115_v44 = vpop.xlane.xlu1 %3114  ;;  %v3119_v17 = vmul.f32 %v5542_v8, %v6924_v53 }
 0xc61   : > { %v5544_v63 = vpop.eup %5543  ;;  %5553 = vrcp.f32 %v3115_v44 }
 0xc62   : > { %v2893_v11 = vpop.xlane.xlu0 %2892  ;;  %v3132_v42 = vpack.c.bf16 %v3119_v17, %v3117_v9  ;;  %v3121_v3 = vmul.f32 %v5544_v63, %v6929_v36 }
 0xc63   : > { %v5546_v57 = vpop.eup %5545  ;;  %5555 = vrcp.f32 %v2893_v11 }
 0xc64   : > { %v3123_v29 = vmul.f32 %v5546_v57, %v6934_v25  ;;  %5138 = vmatprep.mubr.msk.bf16.mxu0 %vm1072_vm11, %v3132_v42  ;;  %v2896_v46 = vpop.xlane.xlu1 %2895 }
 0xc65   : > { %v5548_v31 = vpop.eup %5547  ;;  %5557 = vrcp.f32 %v2896_v46 }
 0xc66   : > { %v3133_v2 = vpack.c.bf16 %v3123_v29, %v3121_v3  ;;  %v2899_v22 = vpop.xlane.xlu0 %2898  ;;  %v3125_v45 = vmul.f32 %v5548_v31, %v6939_v4 }
 0xc67   : > { %v5550_v18 = vpop.eup %5549  ;;  %5559 = vrcp.f32 %v2899_v22 }
 0xc68   : > { %5139 = vmatmul.mubr.msk.bf16.vlgmr.msra.gmra.mrb[60].mxu0 %vm1072_vm11, %v3133_v2  ;;  %v2902_v53 = vpop.xlane.xlu1 %2901  ;;  %v3127_v49 = vmul.f32 %v5550_v18, %v6944_v56 }
 0xc69   : > { %v5552_v1 = vpop.eup %5551  ;;  %5147 = vmatpush3.bf16.msk.msra.mxu0 %vm6028_vm10, %v6751_v55  ;;  %5561 = vrcp.f32 %v2902_v53 }
 0xc6a   : > { %5148 = vmatprep.subr.msk.bf16.mxu0 %vm6028_vm10, %v6747_v58  ;;  %v2905_v36 = vpop.xlane.xlu0 %2904  ;;  %v3134_v25 = vpack.c.bf16 %v3127_v49, %v3125_v45  ;;  %v3129_v4 = vmul.f32 %v5552_v1, %v6949_v24 }
 0xc6b   : > { %v5554_v39 = vpop.eup %5553  ;;  %5563 = vrcp.f32 %v2905_v36 }
 0xc6c   : > { %5142 = vmatprep.mubr.msk.bf16.mxu0 %vm1072_vm11, %v3134_v25  ;;  %v2908_v34 = vpop.xlane.xlu1 %2907  ;;  %v3131_v56 = vmul.f32 %v5554_v39, %v6954_v33 }
 0xc6d   : > { %v5556_v60 = vpop.eup %5555  ;;  %5149 = vmatpush3.bf16.msk.msra.mxu0 %vm6028_vm10, %v6747_v58  ;;  %5565 = vrcp.f32 %v2908_v34 }
 0xc6e   : > { %5150 = vmatprep.subr.msk.bf16.mxu0 %vm6028_vm10, %v6760_v13  ;;  %v2911_v28 = vpop.xlane.xlu0 %2910  ;;  %v3135_v12 = vpack.c.bf16 %v3131_v56, %v3129_v4  ;;  %v2916_v24 = vmul.f32 %v5556_v60, %v6959_v51 }
 0xc6f   : > { %v5558_v23 = vpop.eup %5557  ;;  %5567 = vrcp.f32 %v2911_v28 }
 0xc70   : > { %5143 = vmatmul.mubr.msk.bf16.gmra.mrb[64].mxu0 %vm1072_vm11, %v3135_v12  ;;  %v2914_v16 = vpop.xlane.xlu1 %2913  ;;  %v2918_v33 = vmul.f32 %v5558_v23, %v6964_v43 }
 0xc71   : > { %v5560_v7 = vpop.eup %5559  ;;  %5151 = vmatpush3.bf16.msk.msra.mxu0 %vm6028_vm10, %v6760_v13  ;;  %5569 = vrcp.f32 %v2914_v16 }
 0xc72   : > { %5152 = vmatprep.subr.msk.bf16.mxu0 %vm6028_vm10, %v6754_v0  ;;  %v2931_v8 = vpack.c.bf16 %v2918_v33, %v2916_v24  ;;  %v2920_v17 = vmul.f32 %v5560_v7, %v6969_v62 }
 0xc73   : > { %v5562_v44 = vpop.eup %5561  ;;  %v3449_v9 = vpop.xlane.xlu0 %3448 }
 0xc74   : > { %v2922_v63 = vmul.f32 %v5562_v44, %v6974_v21  ;;  %5571 = vrcp.f32 %v3449_v9  ;;  %5154 = vmatprep.mubr.msk.bf16.mxu0 %vm1072_vm11, %v2931_v8 }
 0xc75   : > { %v5564_v51 = vpop.eup %5563  ;;  %5153 = vmatpush3.bf16.msk.msra.mxu0 %vm6028_vm10, %v6754_v0  ;;  %v3452_v43 = vpop.xlane.xlu1 %3451 }
 0xc76   : > { %v2932_v11 = vpack.c.bf16 %v2922_v63, %v2920_v17  ;;  %5573 = vrcp.f32 %v3452_v43  ;;  %5178 = vmatprep.subr.msk.bf16.mxu0 %vm6304_vm12, %v6751_v55  ;;  %v2924_v62 = vmul.f32 %v5564_v51, %v6979_v10 }
 0xc77   : > { %v5566_v42 = vpop.eup %5565  ;;  %v3455_v57 = vpop.xlane.xlu0 %3454 }
 0xc78   : > { %5575 = vrcp.f32 %v3455_v57  ;;  %5155 = vmatmul.mubr.msk.bf16.vlgmr.msra.gmra.mrb[60].mxu0 %vm1072_vm11, %v2932_v11  ;;  %v2926_v21 = vmul.f32 %v5566_v42, %v6984_v26 }
 0xc79   : > { %v5568_v3 = vpop.eup %5567  ;;  %5179 = vmatpush3.bf16.msk.msra.mxu0 %vm6304_vm12, %v6751_v55  ;;  %v3458_v52 = vpop.xlane.xlu1 %3457 }
 0xc7a   : > { %5577 = vrcp.f32 %v3458_v52  ;;  %5180 = vmatprep.subr.msk.bf16.mxu0 %vm6304_vm12, %v6747_v58  ;;  %v2933_v29 = vpack.c.bf16 %v2926_v21, %v2924_v62  ;;  %v2928_v10 = vmul.f32 %v5568_v3, %v6989_v48 }
 0xc7b   : > { %v5570_v46 = vpop.eup %5569  ;;  %v3461_v31 = vpop.xlane.xlu0 %3460 }
 0xc7c   : > { %5579 = vrcp.f32 %v3461_v31  ;;  %5158 = vmatprep.mubr.msk.bf16.mxu0 %vm1072_vm11, %v2933_v29  ;;  %v2930_v26 = vmul.f32 %v5570_v46, %v6994_v61 }
 0xc7d   : > { %5181 = vmatpush3.bf16.msk.msra.mxu0 %vm6304_vm12, %v6747_v58  ;;  %v3464_v55 = vpop.xlane.xlu1 %3463 }
 0xc7e   : > { %v5572_v2 = vpop.eup %5571  ;;  %5581 = vrcp.f32 %v3464_v55  ;;  %5182 = vmatprep.subr.msk.bf16.mxu0 %vm6304_vm12, %v6760_v13  ;;  %v2934_v22 = vpack.c.bf16 %v2930_v26, %v2928_v10 }
 0xc7f   : > { %v3467_v18 = vpop.xlane.xlu0 %3466  ;;  %v3472_v58 = vmul.f32 %v5572_v2, %v6999_v40 }
 0xc80   : > { %v5574_v53 = vpop.eup %5573  ;;  %5583 = vrcp.f32 %v3467_v18  ;;  %5159 = vmatmul.mubr.msk.bf16.gmra.mrb[64].mxu0 %vm1072_vm11, %v2934_v22 }
 0xc81   : > { %5183 = vmatpush3.bf16.msk.msra.mxu0 %vm6304_vm12, %v6760_v13  ;;  %v3470_v48 = vpop.xlane.xlu1 %3469  ;;  %v3474_v61 = vmul.f32 %v5574_v53, %v7004_v37 }
 0xc82   : > { %v5576_v45 = vpop.eup %5575  ;;  %5585 = vrcp.f32 %v3470_v48  ;;  %5184 = vmatprep.subr.msk.bf16.mxu0 %vm6304_vm12, %v6754_v0 }
 0xc83   : > { %v3487_v49 = vpack.c.bf16 %v3474_v61, %v3472_v58  ;;  %v3476_v36 = vmul.f32 %v5576_v45, %v7008_v14 }
 0xc84   : > { %v5578_v1 = vpop.eup %5577 }
 0xc85   : > { %v3478_v25 = vmul.f32 %v5578_v1, %v7012_v47  ;;  %5185 = vmatpush3.bf16.msk.msra.mxu0 %vm6304_vm12, %v6754_v0  ;;  %5186 = vmatprep.mubr.msk.bf16.mxu0 %vm1072_vm11, %v3487_v49 }
 0xc86   : > { %v5580_v13 = vpop.eup %5579 }
 0xc87   : > { %v3488_v40 = vpack.c.bf16 %v3478_v25, %v3476_v36  ;;  %v3480_v39 = vmul.f32 %v5580_v13, %v7016_v20 }
 0xc88   : > { %v5582_v37 = vpop.eup %5581 }
 0xc89   : > { %5187 = vmatmul.mubr.msk.bf16.vlgmr.msra.gmra.mrb[60].mxu0 %vm1072_vm11, %v3488_v40  ;;  %v3482_v34 = vmul.f32 %v5582_v37, %v7020_v54 }
 0xc8a   : > { %v5584_v4 = vpop.eup %5583 }
 0xc8b   : > { %v3489_v56 = vpack.c.bf16 %v3482_v34, %v3480_v39  ;;  %v3484_v47 = vmul.f32 %v5584_v4, %v7024_v59 }
 0xc8c   : > { %v5586_v14 = vpop.eup %5585 }
 0xc8d   : > { %5190 = vmatprep.mubr.msk.bf16.mxu0 %vm1072_vm11, %v3489_v56  ;;  %v3486_v15 = vmul.f32 %v5586_v14, %v7028_v5  ;;  %v4633_v5 = vld [vmem:[%s7372_s9 + $0x1] ss:$0 sm:$0xff] }
 0xc8f   : > { %v3490_v0 = vpack.c.bf16 %v3486_v15, %v3484_v47 }
 0xc91   : > { %5191 = vmatmul.mubr.msk.bf16.gmra.mrb[64].mxu0 %vm1072_vm11, %v3490_v0 }
 0xd5c   : > { %v5188_v60 = vpop.f32.mrb[60].mxu0 }
 0xd5d   : > { %v3537_v28 = vpop.f32.mrb[61].mxu0 }
 0xd5e   : > { %v5189_v12 = vpop.f32.mrb[62].mxu0 }
 0xd5f   : > { %v3577_v23 = vpack.c.bf16 %v5189_v12, %v5188_v60  ;;  %v3540_v16 = vpop.f32.mrb[63].mxu0 }
 0xd60   : > { %v3576_v20 = vpack.c.bf16 %v3540_v16, %v3537_v28 }
 0xd62   : > { %5198 = vmatprep.mubr.msk.bf16.mxu1 %vm686_vm1, %v3576_v20 }
 0xd63   : > { %5199 = vmatmul.mubr.msk.bf16.vlgmr.msra.gmra.mrb[68].mxu1 %vm686_vm1, %v3577_v23 }
 0xd64   : > { %v5192_v54 = vpop.f32.mrb[64].mxu0 }
 0xd65   : > { %v3553_v24 = vpop.f32.mrb[65].mxu0 }
 0xd66   : > { %v5193_v33 = vpop.f32.mrb[66].mxu0 }
 0xd67   : > { %v3579_v7 = vpack.c.bf16 %v5193_v33, %v5192_v54  ;;  %v3556_v59 = vpop.f32.mrb[67].mxu0 }
 0xd68   : > { %v3578_v8 = vpack.c.bf16 %v3556_v59, %v3553_v24 }
 0xd6a   : > { %5202 = vmatprep.mubr.msk.bf16.mxu1 %vm686_vm1, %v3578_v8 }
 0xd6b   : > { %5203 = vmatmul.mubr.msk.bf16.gmra.mrb[72].mxu1 %vm686_vm1, %v3579_v7 }
 0xe36   : > { %v5200_v44 = vpop.f32.mrb[68].mxu1 }
 0xe37   : > { %v3650_v9 = vpop.f32.mrb[69].mxu1  ;;  %v3659_v17 = vadd.f32 %v5200_v44, %v4633_v5 }
 0xe38   : > { %v3651_v63 = vadd.f32 %v4633_v5, %v3650_v9  ;;  %v5201_v51 = vpop.f32.mrb[70].mxu1 }
 0xe39   : > { %v3653_v43 = vpop.f32.mrb[71].mxu1  ;;  %v3662_v42 = vadd.f32 %v5201_v51, %v4633_v5  ;;  %v3683_v62 = vadd.f32 %v3659_v17, %v6587_v32 }
 0xe3a   : > { %v3681_v11 = vadd.f32 %v3651_v63, %v6580_v30  ;;  %v3654_v57 = vadd.f32 %v4633_v5, %v3653_v43 }
 0xe3b   : > { %v3684_v52 = vadd.f32 %v3662_v42, %v6589_v35  ;;  %v3699_v30 = vsel %vm686_vm1, %v3683_v62, 0.0 }
 0xe3c   : > { %v3682_v21 = vadd.f32 %v3654_v57, %v6582_v38  ;;  %v3693_v3 = vsel %vm686_vm1, %v3681_v11, 0.0 }
 0xe3d   : > { %3694 = vadd.xlane.f32.xlu0 %v3693_v3  ;;  %v3702_v18 = vsel %vm686_vm1, %v3684_v52, 0.0 }
 0xe3e   : > { %v5204_v29 = vpop.f32.mrb[72].mxu1  ;;  %v3696_v46 = vsel %vm686_vm1, %v3682_v21, 0.0 }
 0xe3f   : > { %3697 = vadd.xlane.f32.xlu1 %v3696_v46  ;;  %v3666_v31 = vpop.f32.mrb[73].mxu1  ;;  %v3675_v10 = vadd.f32 %v5204_v29, %v4633_v5  ;;  %v5360_v29 = vld [vmem:[%s7377_s14 + $0x28] sm:$0xff]  }
 0xe40   : > { %v3667_v26 = vadd.f32 %v4633_v5, %v3666_v31  ;;  %v5205_v55 = vpop.f32.mrb[74].mxu1 }
 0xe41   : > { %3700 = vadd.xlane.f32.xlu0 %v3699_v30  ;;  %v3669_v2 = vpop.f32.mrb[75].mxu1  ;;  %v3678_v38 = vadd.f32 %v5205_v55, %v4633_v5  ;;  %v3687_v35 = vadd.f32 %v3675_v10, %v6614_v6 }
 0xe42   : > { %v3685_v32 = vadd.f32 %v3667_v26, %v6600_v19  ;;  %v3670_v22 = vadd.f32 %v4633_v5, %v3669_v2 }
 0xe43   : > { %3703 = vadd.xlane.f32.xlu1 %v3702_v18  ;;  %v3688_v58 = vadd.f32 %v3678_v38, %v6616_v27  ;;  %v3711_v45 = vsel %vm686_vm1, %v3687_v35, 0.0 }
 0xe44   : > { %v3686_v53 = vadd.f32 %v3670_v22, %v6605_v50  ;;  %v3705_v48 = vsel %vm686_vm1, %v3685_v32, 0.0 }
 0xe45   : > { %3706 = vadd.xlane.f32.xlu0 %v3705_v48  ;;  %v3714_v19 = vsel %vm686_vm1, %v3688_v58, 0.0 }
 0xe46   : > { %v3708_v61 = vsel %vm686_vm1, %v3686_v53, 0.0 }
 0xe47   : > { %3709 = vadd.xlane.f32.xlu1 %v3708_v61 }
 0xe49   : > { %3712 = vadd.xlane.f32.xlu0 %v3711_v45 }
 0xe4b   : > { %3715 = vadd.xlane.f32.xlu1 %v3714_v19 }
 0xeca   : > { %v3695_v49 = vpop.xlane.xlu0 %3694 }
 0xecb   : > { %v3717_v1 = vmul.f32 0.041666668, %v3695_v49 }
 0xecc   : > { %v3698_v36 = vpop.xlane.xlu1 %3697 }
 0xecd   : > { %v7144_v6 = vsub.f32 %v3681_v11, %v3717_v1  ;;  %v3718_v50 = vmul.f32 0.041666668, %v3698_v36 }
 0xece   : > { %v3701_v25 = vpop.xlane.xlu0 %3700 }
 0xecf   : > { %v7146_v13 = vsub.f32 %v3682_v21, %v3718_v50  ;;  %v3719_v40 = vmul.f32 0.041666668, %v3701_v25  ;;  %v3733_v27 = vmul.f32 %v7144_v6, %v7144_v6  ;;  %v5358_v21 = vld [vmem:[%s7375_s12 + $0x14] ss:$0 sps:$4 sm:$0xff]   ;;  %v4642_v25 = vld [vmem:[%s7373_s10 + $0x1] ss:$0 sm:$0xff] }
 0xed0   : > { %v3704_v37 = vpop.xlane.xlu1 %3703  ;;  %v3863_v3 = vsel %vm699_vm0, %v5358_v21, 0 }
 0xed1   : > { %v7150_v39 = vsub.f32 %v3683_v62, %v3719_v40  ;;  %v3720_v34 = vmul.f32 0.041666668, %v3704_v37  ;;  %v3741_v4 = vsel %vm686_vm1, %v3733_v27, 0.0  ;;  %v3734_v56 = vmul.f32 %v7146_v13, %v7146_v13  ;;  %v5357_v62 = vld [vmem:[%s7375_s12 + $0xc] sm:$0xff]  }
 0xed2   : > { %3742 = vadd.xlane.f32.xlu0 %v3741_v4  ;;  %v3707_v14 = vpop.xlane.xlu0 %3706  ;;  %5206 = vmatprep.subr.bf16.mxu0 %v5357_v62 }
 0xed3   : > { %v7155_v47 = vsub.f32 %v3684_v52, %v3720_v34  ;;  %v3721_v15 = vmul.f32 0.041666668, %v3707_v14  ;;  %v3744_v0 = vsel %vm686_vm1, %v3734_v56, 0.0  ;;  %v3735_v60 = vmul.f32 %v7150_v39, %v7150_v39  ;;  %5207 = vmatpush3.bf16.msra.mxu0 %v5357_v62  ;;  %v5359_v52 = vld [vmem:[%s7377_s14 + $0x20] sm:$0xff]  }
 0xed4   : > { %3745 = vadd.xlane.f32.xlu1 %v3744_v0  ;;  %v3710_v28 = vpop.xlane.xlu1 %3709  ;;  %5326 = vmatprep.subr.msk.bf16.mxu0 %vm699_vm0, %v5358_v21  ;;  %v4643_v0 = vld [vmem:[%s7374_s11 + $0x1] ss:$0 sm:$0xff] }
 0xed5   : > { %v7160_v12 = vsub.f32 %v3685_v32, %v3721_v15  ;;  %v3722_v23 = vmul.f32 0.041666668, %v3710_v28  ;;  %v3747_v16 = vsel %vm686_vm1, %v3735_v60, 0.0  ;;  %v3736_v20 = vmul.f32 %v7155_v47, %v7155_v47  ;;  %5218 = vmatprep.subr.bf16.mxu1 %v5359_v52 }
 0xed6   : > { %3748 = vadd.xlane.f32.xlu0 %v3747_v16  ;;  %v3713_v54 = vpop.xlane.xlu0 %3712  ;;  %5219 = vmatpush3.bf16.msra.mxu1 %v5359_v52 }
 0xed7   : > { %v7165_v24 = vsub.f32 %v3686_v53, %v3722_v23  ;;  %v3723_v33 = vmul.f32 0.041666668, %v3713_v54  ;;  %v3750_v7 = vsel %vm686_vm1, %v3736_v20, 0.0  ;;  %v3737_v59 = vmul.f32 %v7160_v12, %v7160_v12  ;;  %5209 = vmatpush3.bf16.msra.mxu0 %v3863_v3  ;;  %5220 = vmatprep.subr.bf16.mxu1 %v5360_v29 }
 0xed8   : > { %3751 = vadd.xlane.f32.xlu1 %v3750_v7  ;;  %v3716_v8 = vpop.xlane.xlu1 %3715 }
 0xed9   : > { %v7170_v5 = vsub.f32 %v3687_v35, %v3723_v33  ;;  %v3724_v44 = vmul.f32 0.041666668, %v3716_v8  ;;  %v3753_v9 = vsel %vm686_vm1, %v3737_v59, 0.0  ;;  %v3738_v17 = vmul.f32 %v7165_v24, %v7165_v24 }
 0xeda   : > { %3754 = vadd.xlane.f32.xlu0 %v3753_v9  ;;  %5221 = vmatpush3.bf16.msra.mxu1 %v5360_v29  ;;  %v5361_v29 = vld [vmem:[%s7377_s14 + $0x30] sm:$0xff]  }
 0xedb   : > { %v7175_v63 = vsub.f32 %v3688_v58, %v3724_v44  ;;  %v3756_v51 = vsel %vm686_vm1, %v3738_v17, 0.0  ;;  %v3739_v43 = vmul.f32 %v7170_v5, %v7170_v5  ;;  %5222 = vmatprep.subr.bf16.mxu1 %v5361_v29 }
 0xedc   : > { %3757 = vadd.xlane.f32.xlu1 %v3756_v51 }
 0xedd   : > { %v3759_v11 = vsel %vm686_vm1, %v3739_v43, 0.0  ;;  %v3740_v42 = vmul.f32 %v7175_v63, %v7175_v63 }
 0xede   : > { %3760 = vadd.xlane.f32.xlu0 %v3759_v11  ;;  %5223 = vmatpush3.bf16.msra.mxu1 %v5361_v29 }
 0xedf   : > { %v3762_v57 = vsel %vm686_vm1, %v3740_v42, 0.0 }
 0xee0   : > { %3763 = vadd.xlane.f32.xlu1 %v3762_v57 }
 0xf5f   : > { %v3743_v46 = vpop.xlane.xlu0 %3742 }
 0xf60   : > { %v3765_v31 = vmul.f32 0.041666668, %v3743_v46  ;;  %v5362_v46 = vld [vmem:[%s7377_s14 + $0x38] sm:$0xff]  }
 0xf61   : > { %v3746_v10 = vpop.xlane.xlu1 %3745  ;;  %5224 = vmatprep.subr.bf16.mxu1 %v5362_v46 }
 0xf62   : > { %v3773_v26 = vadd.f32 1e-05, %v3765_v31  ;;  %v3766_v55 = vmul.f32 0.041666668, %v3746_v10  ;;  %5225 = vmatpush3.bf16.msra.mxu1 %v5362_v46  ;;  %v4648_v31 = vld [vmem:[%s7376_s13 + $0x1] ss:$0 sm:$0xff] }
 0xf63   : > { %v3749_v30 = vpop.xlane.xlu0 %3748 }
 0xf64   : > { %5587 = vrsqrt.f32 %v3773_v26  ;;  %v3774_v2 = vadd.f32 1e-05, %v3766_v55  ;;  %v3767_v32 = vmul.f32 0.041666668, %v3749_v30 }
 0xf65   : > { %v3752_v38 = vpop.xlane.xlu1 %3751 }
 0xf66   : > { %5589 = vrsqrt.f32 %v3774_v2  ;;  %v3775_v22 = vadd.f32 1e-05, %v3767_v32  ;;  %v3768_v18 = vmul.f32 0.041666668, %v3752_v38 }
 0xf67   : > { %v3755_v35 = vpop.xlane.xlu0 %3754 }
 0xf68   : > { %5591 = vrsqrt.f32 %v3775_v22  ;;  %v3776_v53 = vadd.f32 1e-05, %v3768_v18  ;;  %v3769_v48 = vmul.f32 0.041666668, %v3755_v35 }
 0xf69   : > { %v3758_v58 = vpop.xlane.xlu1 %3757 }
 0xf6a   : > { %5593 = vrsqrt.f32 %v3776_v53  ;;  %v3777_v61 = vadd.f32 1e-05, %v3769_v48  ;;  %v3770_v45 = vmul.f32 0.041666668, %v3758_v58 }
 0xf6b   : > { %v3761_v19 = vpop.xlane.xlu0 %3760 }
 0xf6c   : > { %5595 = vrsqrt.f32 %v3777_v61  ;;  %v3778_v49 = vadd.f32 1e-05, %v3770_v45  ;;  %v3771_v1 = vmul.f32 0.041666668, %v3761_v19 }
 0xf6d   : > { %v3764_v36 = vpop.xlane.xlu1 %3763 }
 0xf6e   : > { %v5588_v50 = vpop.eup %5587  ;;  %5597 = vrsqrt.f32 %v3778_v49  ;;  %v3779_v40 = vadd.f32 1e-05, %v3771_v1  ;;  %v3772_v27 = vmul.f32 0.041666668, %v3764_v36 }
 0xf6f   : > { %v3789_v37 = vmul.f32 %v5588_v50, %v7144_v6 }
 0xf70   : > { %v5590_v34 = vpop.eup %5589  ;;  %5599 = vrsqrt.f32 %v3779_v40  ;;  %v3780_v4 = vadd.f32 1e-05, %v3772_v27 }
 0xf71   : > { %v3790_v56 = vmul.f32 %v5590_v34, %v7146_v13  ;;  %v3803_v14 = vmul.f32 %v4642_v25, %v3789_v37 }
 0xf72   : > { %v5592_v15 = vpop.eup %5591  ;;  %5601 = vrsqrt.f32 %v3780_v4 }
 0xf73   : > { %v3791_v60 = vmul.f32 %v5592_v15, %v7150_v39  ;;  %v3804_v28 = vmul.f32 %v4642_v25, %v3790_v56  ;;  %v7208_v6 = vadd.f32 %v4643_v0, %v3803_v14  ;;  %v4664_v15 = vld [vmem:[%s7378_s15 + $0x1] ss:$0 sm:$0xff] }
 0xf74   : > { %v5594_v23 = vpop.eup %5593 }
 0xf75   : > { %v3805_v16 = vmul.f32 %v4642_v25, %v3791_v60  ;;  %v3792_v20 = vmul.f32 %v5594_v23, %v7155_v47  ;;  %v7210_v54 = vadd.f32 %v4643_v0, %v3804_v28 }
 0xf76   : > { %v5596_v33 = vpop.eup %5595 }
 0xf77   : > { %v3806_v13 = vmul.f32 %v4642_v25, %v3792_v20  ;;  %v3793_v7 = vmul.f32 %v5596_v33, %v7160_v12  ;;  %v3825_v59 = vpack.c.bf16 %v7210_v54, %v7208_v6  ;;  %v7215_v44 = vadd.f32 %v4643_v0, %v3805_v16 }
 0xf78   : > { %v5598_v8 = vpop.eup %5597 }
 0xf79   : > { %v7217_v39 = vadd.f32 %v4643_v0, %v3806_v13  ;;  %v3794_v9 = vmul.f32 %v5598_v8, %v7165_v24  ;;  %5210 = vmatprep.mubr.msk.bf16.mxu0 %vm686_vm1, %v3825_v59  ;;  %v3807_v47 = vmul.f32 %v4642_v25, %v3793_v7 }
 0xf7a   : > { %v5600_v17 = vpop.eup %5599 }
 0xf7b   : > { %v3795_v51 = vmul.f32 %v5600_v17, %v7170_v5  ;;  %v3826_v43 = vpack.c.bf16 %v7217_v39, %v7215_v44  ;;  %v3808_v12 = vmul.f32 %v4642_v25, %v3794_v9  ;;  %v7226_v57 = vadd.f32 %v4643_v0, %v3807_v47 }
 0xf7c   : > { %v5602_v11 = vpop.eup %5601 }
 0xf7d   : > { %v3796_v42 = vmul.f32 %v5602_v11, %v7175_v63  ;;  %5211 = vmatmul.mubr.msk.bf16.vlgmr.msra.gmra.mrb[68].mxu0 %vm686_vm1, %v3826_v43  ;;  %v7228_v62 = vadd.f32 %v4643_v0, %v3808_v12  ;;  %v3809_v24 = vmul.f32 %v4642_v25, %v3795_v51 }
 0xf7f   : > { %v3827_v21 = vpack.c.bf16 %v7228_v62, %v7226_v57  ;;  %v3810_v3 = vmul.f32 %v4642_v25, %v3796_v42  ;;  %v7233_v5 = vadd.f32 %v4643_v0, %v3809_v24 }
 0xf81   : > { %5214 = vmatprep.mubr.msk.bf16.mxu0 %vm686_vm1, %v3827_v21  ;;  %v7235_v52 = vadd.f32 %v4643_v0, %v3810_v3 }
 0xf83   : > { %v3828_v63 = vpack.c.bf16 %v7235_v52, %v7233_v5 }
 0xf85   : > { %5215 = vmatmul.mubr.msk.bf16.gmra.mrb[72].mxu0 %vm686_vm1, %v3828_v63 }
0x1050   : > { %v5212_v10 = vpop.f32.mrb[68].mxu0 }
0x1051   : > { %v3908_v26 = vadd.f32 %v5212_v10, %v4648_v31  ;;  %v3899_v55 = vpop.f32.mrb[69].mxu0 }
0x1052   : > { %v3900_v30 = vadd.f32 %v4648_v31, %v3899_v55  ;;  %v5213_v2 = vpop.f32.mrb[70].mxu0 }
0x1053   : > { %v3911_v32 = vadd.f32 %v5213_v2, %v4648_v31  ;;  %v3902_v38 = vpop.f32.mrb[71].mxu0  ;;  %v3932_v18 = vmax.f32 %v3908_v26, 0.0 }
0x1054   : > { %v3903_v22 = vadd.f32 %v4648_v31, %v3902_v38  ;;  %v3930_v53 = vmax.f32 %v3900_v30, 0.0 }
0x1055   : > { %v3933_v35 = vmax.f32 %v3911_v32, 0.0 }
0x1056   : > { %v3931_v48 = vmax.f32 %v3903_v22, 0.0 }
0x1057   : > { %v3939_v58 = vpack.c.bf16 %v3933_v35, %v3932_v18 }
0x1058   : > { %v3938_v61 = vpack.c.bf16 %v3931_v48, %v3930_v53  ;;  %v5216_v45 = vpop.f32.mrb[72].mxu0 }
0x1059   : > { %v3924_v19 = vadd.f32 %v5216_v45, %v4648_v31  ;;  %v3915_v49 = vpop.f32.mrb[73].mxu0 }
0x105a   : > { %v3916_v1 = vadd.f32 %v4648_v31, %v3915_v49  ;;  %v5217_v36 = vpop.f32.mrb[74].mxu0  ;;  %5226 = vmatprep.mubr.msk.bf16.mxu1 %vm1072_vm11, %v3938_v61 }
0x105b   : > { %v3927_v50 = vadd.f32 %v5217_v36, %v4648_v31  ;;  %v3918_v25 = vpop.f32.mrb[75].mxu0  ;;  %5227 = vmatmul.mubr.msk.bf16.vlgmr.msra.gmra.mrb[76].mxu1 %vm1072_vm11, %v3939_v58  ;;  %v3936_v27 = vmax.f32 %v3924_v19, 0.0 }
0x105c   : > { %v3919_v40 = vadd.f32 %v4648_v31, %v3918_v25  ;;  %v3934_v34 = vmax.f32 %v3916_v1, 0.0 }
0x105d   : > { %v3937_v37 = vmax.f32 %v3927_v50, 0.0 }
0x105e   : > { %v3935_v4 = vmax.f32 %v3919_v40, 0.0 }
0x105f   : > { %v3941_v56 = vpack.c.bf16 %v3937_v37, %v3936_v27 }
0x1060   : > { %v3940_v14 = vpack.c.bf16 %v3935_v4, %v3934_v34 }
0x1062   : > { %5230 = vmatprep.mubr.msk.bf16.mxu1 %vm1072_vm11, %v3940_v14 }
0x1063   : > { %5231 = vmatmul.mubr.msk.bf16.gmra.mrb[80].mxu1 %vm1072_vm11, %v3941_v56 }
0x112e   : > { %v5228_v0 = vpop.f32.mrb[76].mxu1 }
0x112f   : > { %v4029_v60 = vpop.f32.mrb[77].mxu1  ;;  %v4038_v28 = vadd.f32 %v5228_v0, %v4664_v15 }
0x1130   : > { %v4030_v23 = vadd.f32 %v4664_v15, %v4029_v60  ;;  %v5229_v16 = vpop.f32.mrb[78].mxu1 }
0x1131   : > { %v4032_v20 = vpop.f32.mrb[79].mxu1  ;;  %v4041_v13 = vadd.f32 %v5229_v16, %v4664_v15  ;;  %v4062_v59 = vadd.f32 %v4038_v28, %v7215_v44 }
0x1132   : > { %v4060_v33 = vadd.f32 %v4030_v23, %v7208_v6  ;;  %v4033_v7 = vadd.f32 %v4664_v15, %v4032_v20 }
0x1133   : > { %v4063_v47 = vadd.f32 %v4041_v13, %v7217_v39  ;;  %v4078_v6 = vsel %vm686_vm1, %v4062_v59, 0.0 }
0x1134   : > { %v4061_v8 = vadd.f32 %v4033_v7, %v7210_v54  ;;  %v4072_v9 = vsel %vm686_vm1, %v4060_v33, 0.0 }
0x1135   : > { %4073 = vadd.xlane.f32.xlu0 %v4072_v9  ;;  %v4081_v3 = vsel %vm686_vm1, %v4063_v47, 0.0 }
0x1136   : > { %v5232_v17 = vpop.f32.mrb[80].mxu1  ;;  %v4075_v51 = vsel %vm686_vm1, %v4061_v8, 0.0 }
0x1137   : > { %4076 = vadd.xlane.f32.xlu1 %v4075_v51  ;;  %v4045_v43 = vpop.f32.mrb[81].mxu1  ;;  %v4054_v12 = vadd.f32 %v5232_v17, %v4664_v15 }
0x1138   : > { %v4046_v11 = vadd.f32 %v4664_v15, %v4045_v43  ;;  %v5233_v42 = vpop.f32.mrb[82].mxu1 }
0x1139   : > { %4079 = vadd.xlane.f32.xlu0 %v4078_v6  ;;  %v4048_v24 = vpop.f32.mrb[83].mxu1  ;;  %v4057_v54 = vadd.f32 %v5233_v42, %v4664_v15  ;;  %v4066_v39 = vadd.f32 %v4054_v12, %v7233_v5 }
0x113a   : > { %v4064_v44 = vadd.f32 %v4046_v11, %v7226_v57  ;;  %v4049_v21 = vadd.f32 %v4664_v15, %v4048_v24 }
0x113b   : > { %4082 = vadd.xlane.f32.xlu1 %v4081_v3  ;;  %v4067_v46 = vadd.f32 %v4057_v54, %v7235_v52  ;;  %v4090_v10 = vsel %vm686_vm1, %v4066_v39, 0.0 }
0x113c   : > { %v4065_v63 = vadd.f32 %v4049_v21, %v7228_v62  ;;  %v4084_v29 = vsel %vm686_vm1, %v4064_v44, 0.0 }
0x113d   : > { %4085 = vadd.xlane.f32.xlu0 %v4084_v29  ;;  %v4093_v57 = vsel %vm686_vm1, %v4067_v46, 0.0 }
0x113e   : > { %v4087_v31 = vsel %vm686_vm1, %v4065_v63, 0.0 }
0x113f   : > { %4088 = vadd.xlane.f32.xlu1 %v4087_v31 }
0x1141   : > { %4091 = vadd.xlane.f32.xlu0 %v4090_v10 }
0x1143   : > { %4094 = vadd.xlane.f32.xlu1 %v4093_v57 }
0x11c2   : > { %v4074_v26 = vpop.xlane.xlu0 %4073 }
0x11c3   : > { %v4096_v55 = vmul.f32 0.041666668, %v4074_v26 }
0x11c4   : > { %v4077_v30 = vpop.xlane.xlu1 %4076 }
0x11c5   : > { %v7272_v5 = vsub.f32 %v4060_v33, %v4096_v55  ;;  %v4097_v62 = vmul.f32 0.041666668, %v4077_v30 }
0x11c6   : > { %v4080_v2 = vpop.xlane.xlu0 %4079 }
0x11c7   : > { %v7274_v32 = vsub.f32 %v4061_v8, %v4097_v62  ;;  %v4098_v38 = vmul.f32 0.041666668, %v4080_v2  ;;  %v4112_v52 = vmul.f32 %v7272_v5, %v7272_v5  ;;  %v4205_v8 = vld [vmem:[%s7416_s22 + $0x8] sm:$0xff]  ;;  %v4675_v62 = vld [vmem:[%s7379_s16 + $0x1] ss:$0 sm:$0xff] }
0x11c8   : > { %v4083_v22 = vpop.xlane.xlu1 %4082 }
0x11c9   : > { %v7278_v18 = vsub.f32 %v4062_v59, %v4098_v38  ;;  %v4099_v35 = vmul.f32 0.041666668, %v4083_v22  ;;  %v4120_v53 = vsel %vm686_vm1, %v4112_v52, 0.0  ;;  %v4113_v48 = vmul.f32 %v7274_v32, %v7274_v32  ;;  %v4204_v59 = vld [vmem:[%s7416_s22] sm:$0xff] }
0x11ca   : > { %4121 = vadd.xlane.f32.xlu0 %v4120_v53  ;;  %v4086_v58 = vpop.xlane.xlu0 %4085  ;;  %v5252_v9 = vpack.c.bf16 %v4205_v8, %v4204_v59 }
0x11cb   : > { %v7283_v61 = vsub.f32 %v4063_v47, %v4099_v35  ;;  %v4100_v45 = vmul.f32 0.041666668, %v4086_v58  ;;  %v4123_v19 = vsel %vm686_vm1, %v4113_v48, 0.0  ;;  %v4114_v49 = vmul.f32 %v7278_v18, %v7278_v18  ;;  %v4206_v47 = vld [vmem:[%s7416_s22 + $0x10] sm:$0xff]  ;;  %v4676_v35 = vld [vmem:[%s7380_s17 + $0x1] ss:$0 sm:$0xff] }
0x11cc   : > { %4124 = vadd.xlane.f32.xlu1 %v4123_v19  ;;  %v4089_v1 = vpop.xlane.xlu1 %4088  ;;  %5253 = vmatprep.subr.bf16.mxu0 %v5252_v9 }
0x11cd   : > { %v7288_v36 = vsub.f32 %v4064_v44, %v4100_v45  ;;  %v4101_v50 = vmul.f32 0.041666668, %v4089_v1  ;;  %v4126_v25 = vsel %vm686_vm1, %v4114_v49, 0.0  ;;  %v4115_v40 = vmul.f32 %v7283_v61, %v7283_v61  ;;  %5255 = vmatpush3.bf16.msra.mxu0 %v5252_v9 }
0x11ce   : > { %4127 = vadd.xlane.f32.xlu0 %v4126_v25  ;;  %v4092_v27 = vpop.xlane.xlu0 %4091  ;;  %5238 = vmatprep.subr.mxu0 %v4206_v47 }
0x11cf   : > { %v7293_v37 = vsub.f32 %v4065_v63, %v4101_v50  ;;  %v4102_v34 = vmul.f32 0.041666668, %v4092_v27  ;;  %v4129_v4 = vsel %vm686_vm1, %v4115_v40, 0.0  ;;  %v4116_v56 = vmul.f32 %v7288_v36, %v7288_v36 }
0x11d0   : > { %4130 = vadd.xlane.f32.xlu1 %v4129_v4  ;;  %v4095_v14 = vpop.xlane.xlu1 %4094 }
0x11d1   : > { %v7298_v15 = vsub.f32 %v4066_v39, %v4102_v34  ;;  %v4103_v0 = vmul.f32 0.041666668, %v4095_v14  ;;  %v4132_v60 = vsel %vm686_vm1, %v4116_v56, 0.0  ;;  %v4117_v28 = vmul.f32 %v7293_v37, %v7293_v37  ;;  %5239 = vmatpush3.msra.mxu0 %v4206_v47 }
0x11d2   : > { %4133 = vadd.xlane.f32.xlu0 %v4132_v60 }
0x11d3   : > { %v7303_v23 = vsub.f32 %v4067_v46, %v4103_v0  ;;  %v4135_v16 = vsel %vm686_vm1, %v4117_v28, 0.0  ;;  %v4118_v20 = vmul.f32 %v7298_v15, %v7298_v15 }
0x11d4   : > { %4136 = vadd.xlane.f32.xlu1 %v4135_v16 }
0x11d5   : > { %v4138_v33 = vsel %vm686_vm1, %v4118_v20, 0.0  ;;  %v4119_v13 = vmul.f32 %v7303_v23, %v7303_v23 }
0x11d6   : > { %4139 = vadd.xlane.f32.xlu0 %v4138_v33 }
0x11d7   : > { %v4141_v7 = vsel %vm686_vm1, %v4119_v13, 0.0 }
0x11d8   : > { %4142 = vadd.xlane.f32.xlu1 %v4141_v7 }
0x1257   : > { %v4122_v17 = vpop.xlane.xlu0 %4121 }
0x1258   : > { %v4144_v51 = vmul.f32 0.041666668, %v4122_v17 }
0x1259   : > { %v4125_v43 = vpop.xlane.xlu1 %4124 }
0x125a   : > { %v4152_v12 = vadd.f32 1e-05, %v4144_v51  ;;  %v4145_v11 = vmul.f32 0.041666668, %v4125_v43 }
0x125b   : > { %v4128_v42 = vpop.xlane.xlu0 %4127 }
0x125c   : > { %5603 = vrsqrt.f32 %v4152_v12  ;;  %v4153_v6 = vadd.f32 1e-05, %v4145_v11  ;;  %v4146_v24 = vmul.f32 0.041666668, %v4128_v42 }
0x125d   : > { %v4131_v44 = vpop.xlane.xlu1 %4130 }
0x125e   : > { %5605 = vrsqrt.f32 %v4153_v6  ;;  %v4154_v54 = vadd.f32 1e-05, %v4146_v24  ;;  %v4147_v21 = vmul.f32 0.041666668, %v4131_v44 }
0x125f   : > { %v4134_v3 = vpop.xlane.xlu0 %4133 }
0x1260   : > { %5607 = vrsqrt.f32 %v4154_v54  ;;  %v4155_v39 = vadd.f32 1e-05, %v4147_v21  ;;  %v4148_v63 = vmul.f32 0.041666668, %v4134_v3 }
0x1261   : > { %v4137_v29 = vpop.xlane.xlu1 %4136 }
0x1262   : > { %5609 = vrsqrt.f32 %v4155_v39  ;;  %v4156_v46 = vadd.f32 1e-05, %v4148_v63  ;;  %v4149_v31 = vmul.f32 0.041666668, %v4137_v29 }
0x1263   : > { %v4140_v10 = vpop.xlane.xlu0 %4139 }
0x1264   : > { %5611 = vrsqrt.f32 %v4156_v46  ;;  %v4157_v57 = vadd.f32 1e-05, %v4149_v31  ;;  %v4150_v26 = vmul.f32 0.041666668, %v4140_v10 }
0x1265   : > { %v4143_v55 = vpop.xlane.xlu1 %4142 }
0x1266   : > { %v5604_v30 = vpop.eup %5603  ;;  %5613 = vrsqrt.f32 %v4157_v57  ;;  %v4158_v2 = vadd.f32 1e-05, %v4150_v26  ;;  %v4151_v38 = vmul.f32 0.041666668, %v4143_v55 }
0x1267   : > { %v4168_v52 = vmul.f32 %v5604_v30, %v7272_v5 }
0x1268   : > { %v5606_v22 = vpop.eup %5605  ;;  %5615 = vrsqrt.f32 %v4158_v2  ;;  %v4159_v53 = vadd.f32 1e-05, %v4151_v38  ;;  %v4363_v2 = vshrl.u32 %v661_v41, 7 }
0x1269   : > { %v4169_v48 = vmul.f32 %v5606_v22, %v7274_v32  ;;  %v4182_v58 = vmul.f32 %v4675_v62, %v4168_v52  ;;  %v4360_v52 = vld [vmem:[%s7418_s20] sm:$0x1] }
0x126a   : > { %v5608_v45 = vpop.eup %5607  ;;  %5617 = vrsqrt.f32 %v4159_v53 }
0x126b   : > { %v4183_v19 = vmul.f32 %v4675_v62, %v4169_v48  ;;  %v4196_v49 = vadd.f32 %v4676_v35, %v4182_v58  ;;  %v4170_v1 = vmul.f32 %v5608_v45, %v7278_v18 }
0x126c   : > { %v5610_v50 = vpop.eup %5609 }
0x126d   : > { %v4197_v25 = vadd.f32 %v4676_v35, %v4183_v19  ;;  %5240 = vmatprep.mubr.msk.f32.mxu0 %vm686_vm1, %v4196_v49  ;;  %v4184_v5 = vmul.f32 %v4675_v62, %v4170_v1  ;;  %v4171_v40 = vmul.f32 %v5610_v50, %v7283_v61 }
0x126e   : > { %v5612_v27 = vpop.eup %5611 }
0x126f   : > { %5241 = vmatmul.mubr.msk.f32.vlgmr.msra.gmra.mrb[76].mxu0 %vm686_vm1, %v4197_v25  ;;  %v4198_v34 = vadd.f32 %v4676_v35, %v4184_v5  ;;  %v4185_v4 = vmul.f32 %v4675_v62, %v4171_v40  ;;  %v4172_v32 = vmul.f32 %v5612_v27, %v7288_v36 }
0x1270   : > { %v5614_v56 = vpop.eup %5613 }
0x1271   : > { %5243 = vmatprep.mubr.msk.f32.mxu0 %vm686_vm1, %v4198_v34  ;;  %v4199_v14 = vadd.f32 %v4676_v35, %v4185_v4  ;;  %v4186_v0 = vmul.f32 %v4675_v62, %v4172_v32  ;;  %v4173_v18 = vmul.f32 %v5614_v56, %v7293_v37 }
0x1272   : > { %v5616_v60 = vpop.eup %5615 }
0x1273   : > { %5244 = vmatmul.mubr.msk.f32.gmra.mrb[78].mxu0 %vm686_vm1, %v4199_v14  ;;  %v4200_v28 = vadd.f32 %v4676_v35, %v4186_v0  ;;  %v4187_v16 = vmul.f32 %v4675_v62, %v4173_v18  ;;  %v4174_v61 = vmul.f32 %v5616_v60, %v7298_v15 }
0x1274   : > { %v5618_v20 = vpop.eup %5617 }
0x1275   : > { %5246 = vmatprep.mubr.msk.f32.mxu0 %vm686_vm1, %v4200_v28  ;;  %v4201_v33 = vadd.f32 %v4676_v35, %v4187_v16  ;;  %v4188_v13 = vmul.f32 %v4675_v62, %v4174_v61  ;;  %v4175_v36 = vmul.f32 %v5618_v20, %v7303_v23 }
0x1277   : > { %5247 = vmatmul.mubr.msk.f32.gmra.mrb[80].mxu0 %vm686_vm1, %v4201_v33  ;;  %v4202_v7 = vadd.f32 %v4676_v35, %v4188_v13  ;;  %v4189_v59 = vmul.f32 %v4675_v62, %v4175_v36 }
0x1279   : > { %5249 = vmatprep.mubr.msk.f32.mxu0 %vm686_vm1, %v4202_v7  ;;  %v4203_v37 = vadd.f32 %v4676_v35, %v4189_v59  ;;  %v4364_v35 = vsub.s32 0, %v4363_v2 }
0x127b   : > { %5250 = vmatmul.mubr.msk.f32.gmra.mrb[82].mxu0 %vm686_vm1, %v4203_v37 }
0x1342   : > { %v5242_v8 = vpop.f32.mrb[76].mxu0 }
0x1343   : > { %v4338_v15 = vsel %vm4336_vm13, %v5242_v8, 0.0  ;;  %v4297_v9 = vpop.f32.mrb[77].mxu0 }
0x1344   : > { %v4337_v47 = vsel %vm4336_vm13, %v4297_v9, 0.0 }
0x1345   : > { %v4339_v17 = vadd.f32 %v4338_v15, %v4337_v47 }
0x1346   : > { %v5245_v51 = vpop.f32.mrb[78].mxu0 }
0x1347   : > { %v4307_v43 = vpop.f32.mrb[79].mxu0  ;;  %v4342_v11 = vsel %vm4336_vm13, %v5245_v51, 0.0 }
0x1348   : > { %v4340_v23 = vsel %vm4336_vm13, %v4307_v43, 0.0 }
0x1349   : > { %v4341_v12 = vadd.f32 %v4340_v23, %v4339_v17 }
0x134a   : > { %v5248_v42 = vpop.f32.mrb[80].mxu0 }
0x134b   : > { %v4317_v6 = vpop.f32.mrb[81].mxu0  ;;  %v4343_v24 = vadd.f32 %v4342_v11, %v4341_v12  ;;  %v4346_v21 = vsel %vm4336_vm13, %v5248_v42, 0.0 }
0x134c   : > { %v4344_v44 = vsel %vm4336_vm13, %v4317_v6, 0.0 }
0x134d   : > { %v4345_v54 = vadd.f32 %v4344_v44, %v4343_v24 }
0x134e   : > { %v5251_v3 = vpop.f32.mrb[82].mxu0 }
0x134f   : > { %v4327_v39 = vpop.f32.mrb[83].mxu0  ;;  %v4347_v63 = vadd.f32 %v4346_v21, %v4345_v54  ;;  %v4350_v31 = vsel %vm4336_vm13, %v5251_v3, 0.0 }
0x1350   : > { %v4348_v29 = vsel %vm4336_vm13, %v4327_v39, 0.0 }
0x1351   : > { %v4349_v46 = vadd.f32 %v4348_v29, %v4347_v63 }
0x1353   : > { %v4351_v10 = vadd.f32 %v4350_v31, %v4349_v46 }
0x1355   : > { %v4352_v57 = vrot.slane %v4351_v10, 4 }
0x1357   : > { %v4353_v26 = vadd.f32 %v4352_v57, %v4351_v10 }
0x1359   : > { %v4354_v55 = vrot.slane %v4353_v26, 2 }
0x135b   : > { %v4355_v30 = vadd.f32 %v4354_v55, %v4353_v26 }
0x135d   : > { %v4356_v62 = vrot.slane %v4355_v30, 1 }
0x135f   : > { %v4357_v38 = vadd.f32 %v4356_v62, %v4355_v30 }
0x1361   : > { %v4359_v22 = vmul.f32 0.015625, %v4357_v38 }
0x1363   : > { %v4361_v53 = vadd.f32 %v4360_v52, %v4359_v22 }
0x1365   : > { %v4365_v48 = vrot.slane %v4361_v53, %v4364_v35 }
0x1367   : > { %4366 = vst.msk [vmem:[%s627_s29] sm:$0xff] %vm4336_vm13, %v4365_v48 }
0x1368 PF: > { %s7420_s30 = sld [smem:[#allocation2_spill]] }
0x136e   : > { %s30_s1 = sadd.s32 1, %s7420_s30  }
0x136f   : > { %p27_p4 = scmp.ge.s32.totalorder %s30_s1, 4  }
0x1371   :  { %29 = sbr.rel (!%p27_p4) target bundleno = 9 (0x9), region = 146 }

</bundles_post_ra>
